<compile_context>
chip_gen: v7x
topology: tpu7x:2x2x1
jax: 0.10.0
libtpu: 0.0.40
codegen_flags: <defaults>
</compile_context>

<pallas_src>
import numpy as np
import jax
import jax.numpy as jnp
from jax import lax
from jax.experimental import pallas as pl
from jax.experimental.pallas import tpu as pltpu

# ----- model config: ViT_base(image_size=16, patch_size=4, output_dim=8, depth=2, heads=2)
IMAGE_SIZE = 16
PATCH = 4
OUTPUT_DIM = 8
DEPTH = 2
HEADS = 2
DIM_HEAD = 64                          # vit-pytorch Attention default dim_head
DIM = IMAGE_SIZE                       # dim = int(image_size)
MLP_DIM = DIM // 2                     # mlp_dim = dim / 2
CHANNELS = 3
PATCH_DIM = PATCH * PATCH * CHANNELS   # 48
N_PATCHES = (IMAGE_SIZE // PATCH) ** 2 # 16
N_TOKENS = N_PATCHES + 1               # 17 (cls + patches)
INNER = HEADS * DIM_HEAD               # 128
EPS = 1e-5                             # PyTorch LayerNorm default eps
SCALE = DIM_HEAD ** -0.5

# ----- kernel tiling
B_TILE = 8                             # images per grid step (136 rows ≈ one
                                       # 128-row MXU pass; works on v5e/v6e/v7x)
R_ROWS = B_TILE * N_TOKENS             # 136 flattened token rows per tile
NEG_INF = -1e30                        # additive mask for cross-image attention

# rows inside the packed patch-embed / head vector slab (lane-padded to PATCH_DIM)
_PE_LN1_G, _PE_LN1_B, _PE_B, _PE_LN2_G, _PE_LN2_B, _HD_LN_G, _HD_LN_B, _HD_B = range(8)
# rows inside the packed per-layer vector slab
_A_G, _A_B, _BO, _F_G, _F_B, _B1, _B2 = range(7)


def _layernorm(x, gamma, beta):
    mean = jnp.mean(x, axis=-1, keepdims=True)
    var = jnp.mean((x - mean) ** 2, axis=-1, keepdims=True)
    return (x - mean) * lax.rsqrt(var + EPS) * gamma + beta


def _bf16(x):
    return x.astype(jnp.bfloat16)


# ------------------------------ fused kernel --------------------------------

def _vit_fused_kernel(p_ref, addpos_ref, keep_ref, bias_ref, pev_ref, lv_ref,
                      pe_w_ref, wqkv_ref, wo_ref, w1_ref, w2_ref, hd_w_ref,
                      o_ref):
    pev = pev_ref[...]                                    # (8, PATCH_DIM) f32

    # ---- patch embedding: LayerNorm -> Linear -> LayerNorm, all B_TILE
    #      images flattened into one (R_ROWS, PATCH_DIM) slab.
    #      Row 0 of each image is a zero pad (cls slot); its output is
    #      discarded below via `keep` (0 on cls rows).
    t = _layernorm(p_ref[...],
                   pev[_PE_LN1_G:_PE_LN1_G + 1, :], pev[_PE_LN1_B:_PE_LN1_B + 1, :])
    t = jnp.dot(_bf16(t), pe_w_ref[...], preferred_element_type=jnp.float32)
    t = t + pev[_PE_B:_PE_B + 1, :DIM]
    t = _layernorm(t,
                   pev[_PE_LN2_G:_PE_LN2_G + 1, :DIM], pev[_PE_LN2_B:_PE_LN2_B + 1, :DIM])

    # ---- cls-token replacement + positional embedding (both precomputed into
    #      `addpos`; `keep` zeroes the cls rows of t).  emb_dropout = identity.
    x = t * keep_ref[...] + addpos_ref[...]               # (R_ROWS, DIM) f32

    attn_bias = bias_ref[...]                             # (R_ROWS, R_ROWS) block-diag mask

    # ---- transformer blocks (pre-norm, residual)
    for l in range(DEPTH):
        lv = lv_ref[l]                                    # (7, DIM) f32 vector slab

        # -- multi-head self-attention with fused QKV projection
        xn = _layernorm(x, lv[_A_G:_A_G + 1, :], lv[_A_B:_A_B + 1, :])
        qkv = jnp.dot(_bf16(xn), wqkv_ref[l],
                      preferred_element_type=jnp.float32)  # (R_ROWS, 3*INNER)
        wo_l = wo_ref[l]                                   # (INNER, DIM) bf16
        attn_out = None
        for h in range(HEADS):                             # static unroll (HEADS=2)
            q = qkv[:, h * DIM_HEAD:(h + 1) * DIM_HEAD] * SCALE
            k = qkv[:, INNER + h * DIM_HEAD:INNER + (h + 1) * DIM_HEAD]
            v = qkv[:, 2 * INNER + h * DIM_HEAD:2 * INNER + (h + 1) * DIM_HEAD]
            # per-image attention via the additive block-diagonal bias
            logits = lax.dot_general(_bf16(q), _bf16(k), (((1,), (1,)), ((), ())),
                                     preferred_element_type=jnp.float32) + attn_bias
            logits = logits - jnp.max(logits, axis=-1, keepdims=True)
            p = jnp.exp(logits)
            attn = p * pl.reciprocal(jnp.sum(p, axis=-1, keepdims=True),
                                     approx=True)          # EUP slot
            head = jnp.dot(_bf16(attn), _bf16(v),
                           preferred_element_type=jnp.float32)      # (R_ROWS, DIM_HEAD)
            # project with this head's slice of W_o (no lane-crossing concat)
            proj = jnp.dot(_bf16(head), wo_l[h * DIM_HEAD:(h + 1) * DIM_HEAD, :],
                           preferred_element_type=jnp.float32)      # (R_ROWS, DIM)
            attn_out = proj if attn_out is None else attn_out + proj
        x = x + attn_out + lv[_BO:_BO + 1, :]

        # -- feed-forward: Linear -> GELU(tanh, EUP) -> Linear; dropout = identity
        xn = _layernorm(x, lv[_F_G:_F_G + 1, :], lv[_F_B:_F_B + 1, :])
        hmid = jnp.dot(_bf16(xn), w1_ref[l],
                       preferred_element_type=jnp.float32) + lv[_B1:_B1 + 1, :MLP_DIM]
        hmid = jax.nn.gelu(hmid, approximate=True)
        x = x + jnp.dot(_bf16(hmid), w2_ref[l],
                        preferred_element_type=jnp.float32) + lv[_B2:_B2 + 1, :]

    # ---- cls pooling (rows 0, N_TOKENS, 2*N_TOKENS, ...) via a tiny 0/1
    #      selection matmul -> dense (B_TILE, DIM) slab; then fc head
    #      LayerNorm -> Linear; one (B_TILE, OUTPUT_DIM) store per tile.
    sel = jnp.where(
        lax.broadcasted_iota(jnp.int32, (B_TILE, R_ROWS), 1)
        == lax.broadcasted_iota(jnp.int32, (B_TILE, R_ROWS), 0) * N_TOKENS,
        1.0, 0.0)
    cls = jnp.dot(_bf16(sel), _bf16(x), preferred_element_type=jnp.float32)
    cn = _layernorm(cls,
                    pev[_HD_LN_G:_HD_LN_G + 1, :DIM], pev[_HD_LN_B:_HD_LN_B + 1, :DIM])
    o_ref[...] = (jnp.dot(_bf16(cn), hd_w_ref[...],
                          preferred_element_type=jnp.float32)
                  + pev[_HD_B:_HD_B + 1, :OUTPUT_DIM])


# ------------------------------- wrapper -------------------------------------

def _full_spec(shape):
    nd = len(shape)
    return pl.BlockSpec(shape, lambda *_: (0,) * nd)


@jax.jit
def vit_base_forward(x, params):
    # x: (B, C, H, W)  NCHW, like PyTorch
    B, C, H, W = x.shape
    hn, wn = H // PATCH, W // PATCH
    # einops 'b c (h p1) (w p2) -> b (h w) (p1 p2 c)'
    patches = (x.reshape(B, C, hn, PATCH, wn, PATCH)
                 .transpose(0, 2, 4, 3, 5, 1)
                 .reshape(B, hn * wn, PATCH * PATCH * C))
    B_pad = ((B + B_TILE - 1) // B_TILE) * B_TILE
    # zero cls-slot row per image + pad batch to a multiple of B_TILE
    patches = jnp.pad(patches, ((0, B_pad - B), (1, 0), (0, 0)))
    patches = patches.reshape(B_pad * N_TOKENS, PATCH_DIM)            # (B_pad*N, 48)

    # ---- static per-tile constants ------------------------------------------
    tok = np.arange(R_ROWS)
    is_cls_np = (tok % N_TOKENS == 0).astype(np.float32)[:, None]     # (R, 1)
    img_id = tok // N_TOKENS
    keep = jnp.asarray(1.0 - is_cls_np)                               # 0 on cls rows
    attn_bias = jnp.asarray(
        np.where(img_id[:, None] == img_id[None, :], 0.0, NEG_INF).astype(np.float32))

    pp = params
    # cls token folded into the additive (pos + cls) term
    addpos = (jnp.tile(pp['pos_embedding'], (B_TILE, 1))
              + jnp.asarray(is_cls_np) * pp['cls_token'])             # (R, DIM)

    # ---- pack the tiny vectors into two slabs (fewer inputs / DMA descriptors)
    def pad_cols(a, w):
        return jnp.pad(a, ((0, 0), (0, w - a.shape[-1])))
    pev = jnp.concatenate([
        pp['pe_ln1_g'], pp['pe_ln1_b'],
        pad_cols(pp['pe_b'], PATCH_DIM), pad_cols(pp['pe_ln2_g'], PATCH_DIM),
        pad_cols(pp['pe_ln2_b'], PATCH_DIM),
        pad_cols(pp['hd_ln_g'], PATCH_DIM), pad_cols(pp['hd_ln_b'], PATCH_DIM),
        pad_cols(pp['hd_b'], PATCH_DIM)], axis=0)                     # (8, 48)
    lv = jnp.concatenate([
        pp['a_ln_g'], pp['a_ln_b'], pp['bo'], pp['f_ln_g'], pp['f_ln_b'],
        jnp.pad(pp['b1'], ((0, 0), (0, 0), (0, DIM - MLP_DIM))), pp['b2']],
        axis=1)                                                       # (DEPTH, 7, 16)

    # MXU operands in bf16 (≈1e-3 deviation vs f32 PyTorch; LN/residuals stay f32)
    bf = jnp.bfloat16
    pe_w, wqkv, wo = pp['pe_w'].astype(bf), pp['wqkv'].astype(bf), pp['wo'].astype(bf)
    w1, w2, hd_w = pp['w1'].astype(bf), pp['w2'].astype(bf), pp['hd_w'].astype(bf)

    steps = B_pad // B_TILE
    macs = steps * (R_ROWS * PATCH_DIM * DIM
                    + DEPTH * (R_ROWS * DIM * 3 * INNER
                               + HEADS * 2 * R_ROWS * R_ROWS * DIM_HEAD
                               + R_ROWS * INNER * DIM
                               + 2 * R_ROWS * DIM * MLP_DIM)
                    + B_TILE * R_ROWS * DIM + B_TILE * DIM * OUTPUT_DIM)
    transc = steps * (DEPTH * HEADS * R_ROWS * R_ROWS + DEPTH * R_ROWS * MLP_DIM)
    bytes_acc = (4 * (patches.size + addpos.size + keep.size + attn_bias.size
                      + pev.size + lv.size)
                 + 2 * (pe_w.size + wqkv.size + wo.size + w1.size + w2.size + hd_w.size)
                 + 4 * B_pad * OUTPUT_DIM)

    out = pl.pallas_call(
        _vit_fused_kernel,
        grid=(steps,),
        in_specs=[
            pl.BlockSpec((R_ROWS, PATCH_DIM), lambda b: (b, 0)),      # patches
            _full_spec((R_ROWS, DIM)),                                # addpos
            _full_spec((R_ROWS, 1)),                                  # keep mask
            _full_spec((R_ROWS, R_ROWS)),                             # block-diag bias
            _full_spec((8, PATCH_DIM)),                               # pe/head vec slab
            _full_spec((DEPTH, 7, DIM)),                              # per-layer vec slab
            _full_spec((PATCH_DIM, DIM)),                             # pe_w   (bf16)
            _full_spec((DEPTH, DIM, 3 * INNER)),                      # wqkv   (bf16)
            _full_spec((DEPTH, INNER, DIM)),                          # wo     (bf16)
            _full_spec((DEPTH, DIM, MLP_DIM)),                        # w1     (bf16)
            _full_spec((DEPTH, MLP_DIM, DIM)),                        # w2     (bf16)
            _full_spec((DIM, OUTPUT_DIM)),                            # hd_w   (bf16)
        ],
        out_specs=pl.BlockSpec((B_TILE, OUTPUT_DIM), lambda b: (b, 0)),
        out_shape=jax.ShapeDtypeStruct((B_pad, OUTPUT_DIM), jnp.float32),
        compiler_params=pltpu.CompilerParams(
            dimension_semantics=("parallel",)),                        # v7x megacore
        cost_estimate=pl.CostEstimate(flops=2 * macs, transcendentals=transc,
                                      bytes_accessed=bytes_acc),
    )(patches, addpos, keep, attn_bias, pev, lv, pe_w, wqkv, wo, w1, w2, hd_w)
    return out[:B]                                                    # (B, OUTPUT_DIM)


# ------------------------------ params ---------------------------------------

def init_params(key):
    keys = iter(jax.random.split(key, 16))

    def nrm(shape, scale=0.02):
        return scale * jax.random.normal(next(keys), shape, dtype=jnp.float32)

    return {
        # patch embedding: LayerNorm(patch_dim) -> Linear(patch_dim, dim) -> LayerNorm(dim)
        'pe_ln1_g': jnp.ones((1, PATCH_DIM), jnp.float32),
        'pe_ln1_b': jnp.zeros((1, PATCH_DIM), jnp.float32),
        'pe_w': nrm((PATCH_DIM, DIM)),
        'pe_b': jnp.zeros((1, DIM), jnp.float32),
        'pe_ln2_g': jnp.ones((1, DIM), jnp.float32),
        'pe_ln2_b': jnp.zeros((1, DIM), jnp.float32),
        'cls_token': nrm((1, DIM)),
        'pos_embedding': nrm((N_TOKENS, DIM)),
        # per-layer weights stacked on a leading DEPTH axis;
        # wqkv columns laid out [Q(all heads) | K(all heads) | V(all heads)].
        'a_ln_g': jnp.ones((DEPTH, 1, DIM), jnp.float32),
        'a_ln_b': jnp.zeros((DEPTH, 1, DIM), jnp.float32),
        'wqkv': nrm((DEPTH, DIM, 3 * INNER)),        # to_qkv has no bias
        'wo': nrm((DEPTH, INNER, DIM)),
        'bo': jnp.zeros((DEPTH, 1, DIM), jnp.float32),
        'f_ln_g': jnp.ones((DEPTH, 1, DIM), jnp.float32),
        'f_ln_b': jnp.zeros((DEPTH, 1, DIM), jnp.float32),
        'w1': nrm((DEPTH, DIM, MLP_DIM)),
        'b1': jnp.zeros((DEPTH, 1, MLP_DIM), jnp.float32),
        'w2': nrm((DEPTH, MLP_DIM, DIM)),
        'b2': jnp.zeros((DEPTH, 1, DIM), jnp.float32),
        # fc head: LayerNorm(dim) -> Linear(dim, output_dim)
        'hd_ln_g': jnp.ones((1, DIM), jnp.float32),
        'hd_ln_b': jnp.zeros((1, DIM), jnp.float32),
        'hd_w': nrm((DIM, OUTPUT_DIM)),
        'hd_b': jnp.zeros((1, OUTPUT_DIM), jnp.float32),
    }


if __name__ == "__main__":
    key = jax.random.PRNGKey(0)
    k_param, k_input = jax.random.split(key)
    params = init_params(k_param)
    B = 16                                            # 2 grid steps of B_TILE=8
    x = jax.random.normal(k_input, (B, CHANNELS, IMAGE_SIZE, IMAGE_SIZE),
                          dtype=jnp.float32)          # NCHW, like PyTorch
    out = vit_base_forward(x, params)
    out = jax.block_until_ready(out)
    assert out.shape == (B, OUTPUT_DIM) and out.dtype == jnp.float32
    assert bool(jnp.all(jnp.isfinite(out)))
    print("KERNEL_OK")
</pallas_src>

<mosaic_0001>
module attributes {stable_mosaic.version = 11 : i64} {
  func.func @_vit_fused_kernel(%arg0: i32, %arg1: memref<136x48xf32, #tpu.memory_space<vmem>>, %arg2: memref<136x16xf32, #tpu.memory_space<vmem>>, %arg3: memref<136x1xf32, #tpu.memory_space<vmem>>, %arg4: memref<136x136xf32, #tpu.memory_space<vmem>>, %arg5: memref<8x48xf32, #tpu.memory_space<vmem>>, %arg6: memref<2x7x16xf32, #tpu.memory_space<vmem>>, %arg7: memref<48x16xbf16, #tpu.memory_space<vmem>>, %arg8: memref<2x16x384xbf16, #tpu.memory_space<vmem>>, %arg9: memref<2x128x16xbf16, #tpu.memory_space<vmem>>, %arg10: memref<2x16x8xbf16, #tpu.memory_space<vmem>>, %arg11: memref<2x8x16xbf16, #tpu.memory_space<vmem>>, %arg12: memref<16x8xbf16, #tpu.memory_space<vmem>>, %arg13: memref<8x8xf32, #tpu.memory_space<vmem>>) attributes {dimension_semantics = [#tpu.dimension_semantics<parallel>], iteration_bounds = array<i64: 2>, scalar_prefetch = 0 : i64, scratch_operands = 0 : i64, tpu.core_type = #tpu.core_type<tc>, window_params = [{transform_indices = @transform_0, window_bounds = array<i64: 136, 48>}, {pipeline_mode = #tpu.pipeline_mode<synchronous>, transform_indices = @transform_1, window_bounds = array<i64: 136, 16>}, {pipeline_mode = #tpu.pipeline_mode<synchronous>, transform_indices = @transform_2, window_bounds = array<i64: 136, 1>}, {pipeline_mode = #tpu.pipeline_mode<synchronous>, transform_indices = @transform_3, window_bounds = array<i64: 136, 136>}, {pipeline_mode = #tpu.pipeline_mode<synchronous>, transform_indices = @transform_4, window_bounds = array<i64: 8, 48>}, {pipeline_mode = #tpu.pipeline_mode<synchronous>, transform_indices = @transform_5, window_bounds = array<i64: 2, 7, 16>}, {pipeline_mode = #tpu.pipeline_mode<synchronous>, transform_indices = @transform_6, window_bounds = array<i64: 48, 16>}, {pipeline_mode = #tpu.pipeline_mode<synchronous>, transform_indices = @transform_7, window_bounds = array<i64: 2, 16, 384>}, {pipeline_mode = #tpu.pipeline_mode<synchronous>, transform_indices = @transform_8, window_bounds = array<i64: 2, 128, 16>}, {pipeline_mode = #tpu.pipeline_mode<synchronous>, transform_indices = @transform_9, window_bounds = array<i64: 2, 16, 8>}, {pipeline_mode = #tpu.pipeline_mode<synchronous>, transform_indices = @transform_10, window_bounds = array<i64: 2, 8, 16>}, {pipeline_mode = #tpu.pipeline_mode<synchronous>, transform_indices = @transform_11, window_bounds = array<i64: 16, 8>}, {transform_indices = @transform_12, window_bounds = array<i64: 8, 8>}]} {
    %c0 = arith.constant 0 : index
    %c0_0 = arith.constant 0 : index
    %0 = vector.load %arg5[%c0, %c0_0] : memref<8x48xf32, #tpu.memory_space<vmem>>, vector<8x48xf32>
    %c0_1 = arith.constant 0 : index
    %c0_2 = arith.constant 0 : index
    %1 = vector.load %arg1[%c0_1, %c0_2] : memref<136x48xf32, #tpu.memory_space<vmem>>, vector<136x48xf32>
    %2 = vector.extract_strided_slice %0 {offsets = [0, 0], sizes = [1, 48], strides = [1, 1]} : vector<8x48xf32> to vector<1x48xf32>
    %3 = vector.extract_strided_slice %0 {offsets = [1, 0], sizes = [1, 48], strides = [1, 1]} : vector<8x48xf32> to vector<1x48xf32>
    %cst = arith.constant dense<0.000000e+00> : vector<136xf32>
    %4 = vector.multi_reduction <add>, %1, %cst [1] : vector<136x48xf32> to vector<136xf32>
    %5 = vector.shape_cast %4 : vector<136xf32> to vector<136x1xf32>
    %cst_3 = arith.constant 4.800000e+01 : f32
    %6 = vector.broadcast %cst_3 : f32 to vector<136x1xf32>
    %7 = arith.divf %5, %6 : vector<136x1xf32>
    %8 = vector.broadcast %7 : vector<136x1xf32> to vector<136x48xf32>
    %9 = arith.subf %1, %8 : vector<136x48xf32>
    %10 = arith.mulf %9, %9 : vector<136x48xf32>
    %cst_4 = arith.constant dense<0.000000e+00> : vector<136xf32>
    %11 = vector.multi_reduction <add>, %10, %cst_4 [1] : vector<136x48xf32> to vector<136xf32>
    %12 = vector.shape_cast %11 : vector<136xf32> to vector<136x1xf32>
    %cst_5 = arith.constant 4.800000e+01 : f32
    %13 = vector.broadcast %cst_5 : f32 to vector<136x1xf32>
    %14 = arith.divf %12, %13 : vector<136x1xf32>
    %15 = vector.broadcast %7 : vector<136x1xf32> to vector<136x48xf32>
    %16 = arith.subf %1, %15 : vector<136x48xf32>
    %cst_6 = arith.constant 9.99999974E-6 : f32
    %17 = vector.broadcast %cst_6 : f32 to vector<136x1xf32>
    %18 = arith.addf %14, %17 : vector<136x1xf32>
    %19 = math.rsqrt %18 : vector<136x1xf32>
    %20 = vector.broadcast %19 : vector<136x1xf32> to vector<136x48xf32>
    %21 = arith.mulf %16, %20 : vector<136x48xf32>
    %22 = vector.broadcast %2 : vector<1x48xf32> to vector<136x48xf32>
    %23 = arith.mulf %21, %22 : vector<136x48xf32>
    %24 = vector.broadcast %3 : vector<1x48xf32> to vector<136x48xf32>
    %25 = arith.addf %23, %24 : vector<136x48xf32>
    %26 = arith.truncf %25 : vector<136x48xf32> to vector<136x48xbf16>
    %c0_7 = arith.constant 0 : index
    %c0_8 = arith.constant 0 : index
    %27 = vector.load %arg7[%c0_7, %c0_8] : memref<48x16xbf16, #tpu.memory_space<vmem>>, vector<48x16xbf16>
    %cst_9 = arith.constant dense<0.000000e+00> : vector<136x16xf32>
    %28 = tpu.matmul %26, %27, %cst_9 {dimension_numbers = #tpu.dot_dimension_numbers<[1], [0], [0], [1], [0, 0, 1, 1], [], []>} : vector<136x48xbf16>, vector<48x16xbf16>, vector<136x16xf32> -> vector<136x16xf32>
    %29 = vector.extract_strided_slice %0 {offsets = [2, 0], sizes = [1, 16], strides = [1, 1]} : vector<8x48xf32> to vector<1x16xf32>
    %30 = vector.broadcast %29 : vector<1x16xf32> to vector<136x16xf32>
    %31 = arith.addf %28, %30 : vector<136x16xf32>
    %32 = vector.extract_strided_slice %0 {offsets = [3, 0], sizes = [1, 16], strides = [1, 1]} : vector<8x48xf32> to vector<1x16xf32>
    %33 = vector.extract_strided_slice %0 {offsets = [4, 0], sizes = [1, 16], strides = [1, 1]} : vector<8x48xf32> to vector<1x16xf32>
    %cst_10 = arith.constant dense<0.000000e+00> : vector<136xf32>
    %34 = vector.multi_reduction <add>, %31, %cst_10 [1] : vector<136x16xf32> to vector<136xf32>
    %35 = vector.shape_cast %34 : vector<136xf32> to vector<136x1xf32>
    %cst_11 = arith.constant 1.600000e+01 : f32
    %36 = vector.broadcast %cst_11 : f32 to vector<136x1xf32>
    %37 = arith.divf %35, %36 : vector<136x1xf32>
    %38 = vector.broadcast %37 : vector<136x1xf32> to vector<136x16xf32>
    %39 = arith.subf %31, %38 : vector<136x16xf32>
    %40 = arith.mulf %39, %39 : vector<136x16xf32>
    %cst_12 = arith.constant dense<0.000000e+00> : vector<136xf32>
    %41 = vector.multi_reduction <add>, %40, %cst_12 [1] : vector<136x16xf32> to vector<136xf32>
    %42 = vector.shape_cast %41 : vector<136xf32> to vector<136x1xf32>
    %cst_13 = arith.constant 1.600000e+01 : f32
    %43 = vector.broadcast %cst_13 : f32 to vector<136x1xf32>
    %44 = arith.divf %42, %43 : vector<136x1xf32>
    %45 = vector.broadcast %37 : vector<136x1xf32> to vector<136x16xf32>
    %46 = arith.subf %31, %45 : vector<136x16xf32>
    %cst_14 = arith.constant 9.99999974E-6 : f32
    %47 = vector.broadcast %cst_14 : f32 to vector<136x1xf32>
    %48 = arith.addf %44, %47 : vector<136x1xf32>
    %49 = math.rsqrt %48 : vector<136x1xf32>
    %50 = vector.broadcast %49 : vector<136x1xf32> to vector<136x16xf32>
    %51 = arith.mulf %46, %50 : vector<136x16xf32>
    %52 = vector.broadcast %32 : vector<1x16xf32> to vector<136x16xf32>
    %53 = arith.mulf %51, %52 : vector<136x16xf32>
    %54 = vector.broadcast %33 : vector<1x16xf32> to vector<136x16xf32>
    %55 = arith.addf %53, %54 : vector<136x16xf32>
    %c0_15 = arith.constant 0 : index
    %c0_16 = arith.constant 0 : index
    %56 = vector.load %arg3[%c0_15, %c0_16] : memref<136x1xf32, #tpu.memory_space<vmem>>, vector<136x1xf32>
    %57 = vector.broadcast %56 : vector<136x1xf32> to vector<136x16xf32>
    %58 = arith.mulf %55, %57 : vector<136x16xf32>
    %c0_17 = arith.constant 0 : index
    %c0_18 = arith.constant 0 : index
    %59 = vector.load %arg2[%c0_17, %c0_18] : memref<136x16xf32, #tpu.memory_space<vmem>>, vector<136x16xf32>
    %60 = arith.addf %58, %59 : vector<136x16xf32>
    %c0_19 = arith.constant 0 : index
    %c0_20 = arith.constant 0 : index
    %61 = vector.load %arg4[%c0_19, %c0_20] : memref<136x136xf32, #tpu.memory_space<vmem>>, vector<136x136xf32>
    %c0_21 = arith.constant 0 : index
    %c0_22 = arith.constant 0 : index
    %c0_23 = arith.constant 0 : index
    %62 = vector.load %arg6[%c0_21, %c0_22, %c0_23] : memref<2x7x16xf32, #tpu.memory_space<vmem>>, vector<1x7x16xf32>
    %63 = vector.shape_cast %62 : vector<1x7x16xf32> to vector<7x16xf32>
    %64 = vector.extract_strided_slice %63 {offsets = [0, 0], sizes = [1, 16], strides = [1, 1]} : vector<7x16xf32> to vector<1x16xf32>
    %65 = vector.extract_strided_slice %63 {offsets = [1, 0], sizes = [1, 16], strides = [1, 1]} : vector<7x16xf32> to vector<1x16xf32>
    %cst_24 = arith.constant dense<0.000000e+00> : vector<136xf32>
    %66 = vector.multi_reduction <add>, %60, %cst_24 [1] : vector<136x16xf32> to vector<136xf32>
    %67 = vector.shape_cast %66 : vector<136xf32> to vector<136x1xf32>
    %cst_25 = arith.constant 1.600000e+01 : f32
    %68 = vector.broadcast %cst_25 : f32 to vector<136x1xf32>
    %69 = arith.divf %67, %68 : vector<136x1xf32>
    %70 = vector.broadcast %69 : vector<136x1xf32> to vector<136x16xf32>
    %71 = arith.subf %60, %70 : vector<136x16xf32>
    %72 = arith.mulf %71, %71 : vector<136x16xf32>
    %cst_26 = arith.constant dense<0.000000e+00> : vector<136xf32>
    %73 = vector.multi_reduction <add>, %72, %cst_26 [1] : vector<136x16xf32> to vector<136xf32>
    %74 = vector.shape_cast %73 : vector<136xf32> to vector<136x1xf32>
    %cst_27 = arith.constant 1.600000e+01 : f32
    %75 = vector.broadcast %cst_27 : f32 to vector<136x1xf32>
    %76 = arith.divf %74, %75 : vector<136x1xf32>
    %77 = vector.broadcast %69 : vector<136x1xf32> to vector<136x16xf32>
    %78 = arith.subf %60, %77 : vector<136x16xf32>
    %cst_28 = arith.constant 9.99999974E-6 : f32
    %79 = vector.broadcast %cst_28 : f32 to vector<136x1xf32>
    %80 = arith.addf %76, %79 : vector<136x1xf32>
    %81 = math.rsqrt %80 : vector<136x1xf32>
    %82 = vector.broadcast %81 : vector<136x1xf32> to vector<136x16xf32>
    %83 = arith.mulf %78, %82 : vector<136x16xf32>
    %84 = vector.broadcast %64 : vector<1x16xf32> to vector<136x16xf32>
    %85 = arith.mulf %83, %84 : vector<136x16xf32>
    %86 = vector.broadcast %65 : vector<1x16xf32> to vector<136x16xf32>
    %87 = arith.addf %85, %86 : vector<136x16xf32>
    %88 = arith.truncf %87 : vector<136x16xf32> to vector<136x16xbf16>
    %c0_29 = arith.constant 0 : index
    %c0_30 = arith.constant 0 : index
    %c0_31 = arith.constant 0 : index
    %89 = vector.load %arg8[%c0_29, %c0_30, %c0_31] : memref<2x16x384xbf16, #tpu.memory_space<vmem>>, vector<1x16x384xbf16>
    %90 = vector.shape_cast %89 : vector<1x16x384xbf16> to vector<16x384xbf16>
    %cst_32 = arith.constant dense<0.000000e+00> : vector<136x384xf32>
    %91 = tpu.matmul %88, %90, %cst_32 {dimension_numbers = #tpu.dot_dimension_numbers<[1], [0], [0], [1], [0, 0, 1, 1], [], []>} : vector<136x16xbf16>, vector<16x384xbf16>, vector<136x384xf32> -> vector<136x384xf32>
    %c0_33 = arith.constant 0 : index
    %c0_34 = arith.constant 0 : index
    %c0_35 = arith.constant 0 : index
    %92 = vector.load %arg9[%c0_33, %c0_34, %c0_35] : memref<2x128x16xbf16, #tpu.memory_space<vmem>>, vector<1x128x16xbf16>
    %93 = vector.shape_cast %92 : vector<1x128x16xbf16> to vector<128x16xbf16>
    %94 = vector.extract_strided_slice %91 {offsets = [0, 0], sizes = [136, 64], strides = [1, 1]} : vector<136x384xf32> to vector<136x64xf32>
    %cst_36 = arith.constant 1.250000e-01 : f32
    %95 = vector.broadcast %cst_36 : f32 to vector<136x64xf32>
    %96 = arith.mulf %94, %95 : vector<136x64xf32>
    %97 = vector.extract_strided_slice %91 {offsets = [0, 128], sizes = [136, 64], strides = [1, 1]} : vector<136x384xf32> to vector<136x64xf32>
    %98 = vector.extract_strided_slice %91 {offsets = [0, 256], sizes = [136, 64], strides = [1, 1]} : vector<136x384xf32> to vector<136x64xf32>
    %99 = arith.truncf %96 : vector<136x64xf32> to vector<136x64xbf16>
    %100 = arith.truncf %97 : vector<136x64xf32> to vector<136x64xbf16>
    %cst_37 = arith.constant dense<0.000000e+00> : vector<136x136xf32>
    %101 = tpu.matmul %99, %100, %cst_37 {dimension_numbers = #tpu.dot_dimension_numbers<[1], [1], [0], [0], [0, 0, 1, 0], [], []>} : vector<136x64xbf16>, vector<136x64xbf16>, vector<136x136xf32> -> vector<136x136xf32>
    %102 = arith.addf %101, %61 : vector<136x136xf32>
    %cst_38 = arith.constant dense<0xFF800000> : vector<136xf32>
    %103 = vector.multi_reduction <maximumf>, %102, %cst_38 [1] : vector<136x136xf32> to vector<136xf32>
    %104 = vector.shape_cast %103 : vector<136xf32> to vector<136x1xf32>
    %105 = vector.broadcast %104 : vector<136x1xf32> to vector<136x136xf32>
    %106 = arith.subf %102, %105 : vector<136x136xf32>
    %107 = math.exp %106 : vector<136x136xf32>
    %cst_39 = arith.constant dense<0.000000e+00> : vector<136xf32>
    %108 = vector.multi_reduction <add>, %107, %cst_39 [1] : vector<136x136xf32> to vector<136xf32>
    %109 = vector.shape_cast %108 : vector<136xf32> to vector<136x1xf32>
    %110 = tpu.reciprocal %109 {approx = true} : vector<136x1xf32> -> vector<136x1xf32>
    %111 = vector.broadcast %110 : vector<136x1xf32> to vector<136x136xf32>
    %112 = arith.mulf %107, %111 : vector<136x136xf32>
    %113 = arith.truncf %112 : vector<136x136xf32> to vector<136x136xbf16>
    %114 = arith.truncf %98 : vector<136x64xf32> to vector<136x64xbf16>
    %cst_40 = arith.constant dense<0.000000e+00> : vector<136x64xf32>
    %115 = tpu.matmul %113, %114, %cst_40 {dimension_numbers = #tpu.dot_dimension_numbers<[1], [0], [0], [1], [0, 0, 1, 1], [], []>} : vector<136x136xbf16>, vector<136x64xbf16>, vector<136x64xf32> -> vector<136x64xf32>
    %116 = arith.truncf %115 : vector<136x64xf32> to vector<136x64xbf16>
    %117 = vector.extract_strided_slice %93 {offsets = [0, 0], sizes = [64, 16], strides = [1, 1]} : vector<128x16xbf16> to vector<64x16xbf16>
    %cst_41 = arith.constant dense<0.000000e+00> : vector<136x16xf32>
    %118 = tpu.matmul %116, %117, %cst_41 {dimension_numbers = #tpu.dot_dimension_numbers<[1], [0], [0], [1], [0, 0, 1, 1], [], []>} : vector<136x64xbf16>, vector<64x16xbf16>, vector<136x16xf32> -> vector<136x16xf32>
    %119 = vector.extract_strided_slice %91 {offsets = [0, 64], sizes = [136, 64], strides = [1, 1]} : vector<136x384xf32> to vector<136x64xf32>
    %cst_42 = arith.constant 1.250000e-01 : f32
    %120 = vector.broadcast %cst_42 : f32 to vector<136x64xf32>
    %121 = arith.mulf %119, %120 : vector<136x64xf32>
    %122 = vector.extract_strided_slice %91 {offsets = [0, 192], sizes = [136, 64], strides = [1, 1]} : vector<136x384xf32> to vector<136x64xf32>
    %123 = vector.extract_strided_slice %91 {offsets = [0, 320], sizes = [136, 64], strides = [1, 1]} : vector<136x384xf32> to vector<136x64xf32>
    %124 = arith.truncf %121 : vector<136x64xf32> to vector<136x64xbf16>
    %125 = arith.truncf %122 : vector<136x64xf32> to vector<136x64xbf16>
    %cst_43 = arith.constant dense<0.000000e+00> : vector<136x136xf32>
    %126 = tpu.matmul %124, %125, %cst_43 {dimension_numbers = #tpu.dot_dimension_numbers<[1], [1], [0], [0], [0, 0, 1, 0], [], []>} : vector<136x64xbf16>, vector<136x64xbf16>, vector<136x136xf32> -> vector<136x136xf32>
    %127 = arith.addf %126, %61 : vector<136x136xf32>
    %cst_44 = arith.constant dense<0xFF800000> : vector<136xf32>
    %128 = vector.multi_reduction <maximumf>, %127, %cst_44 [1] : vector<136x136xf32> to vector<136xf32>
    %129 = vector.shape_cast %128 : vector<136xf32> to vector<136x1xf32>
    %130 = vector.broadcast %129 : vector<136x1xf32> to vector<136x136xf32>
    %131 = arith.subf %127, %130 : vector<136x136xf32>
    %132 = math.exp %131 : vector<136x136xf32>
    %cst_45 = arith.constant dense<0.000000e+00> : vector<136xf32>
    %133 = vector.multi_reduction <add>, %132, %cst_45 [1] : vector<136x136xf32> to vector<136xf32>
    %134 = vector.shape_cast %133 : vector<136xf32> to vector<136x1xf32>
    %135 = tpu.reciprocal %134 {approx = true} : vector<136x1xf32> -> vector<136x1xf32>
    %136 = vector.broadcast %135 : vector<136x1xf32> to vector<136x136xf32>
    %137 = arith.mulf %132, %136 : vector<136x136xf32>
    %138 = arith.truncf %137 : vector<136x136xf32> to vector<136x136xbf16>
    %139 = arith.truncf %123 : vector<136x64xf32> to vector<136x64xbf16>
    %cst_46 = arith.constant dense<0.000000e+00> : vector<136x64xf32>
    %140 = tpu.matmul %138, %139, %cst_46 {dimension_numbers = #tpu.dot_dimension_numbers<[1], [0], [0], [1], [0, 0, 1, 1], [], []>} : vector<136x136xbf16>, vector<136x64xbf16>, vector<136x64xf32> -> vector<136x64xf32>
    %141 = arith.truncf %140 : vector<136x64xf32> to vector<136x64xbf16>
    %142 = vector.extract_strided_slice %93 {offsets = [64, 0], sizes = [64, 16], strides = [1, 1]} : vector<128x16xbf16> to vector<64x16xbf16>
    %cst_47 = arith.constant dense<0.000000e+00> : vector<136x16xf32>
    %143 = tpu.matmul %141, %142, %cst_47 {dimension_numbers = #tpu.dot_dimension_numbers<[1], [0], [0], [1], [0, 0, 1, 1], [], []>} : vector<136x64xbf16>, vector<64x16xbf16>, vector<136x16xf32> -> vector<136x16xf32>
    %144 = arith.addf %118, %143 : vector<136x16xf32>
    %145 = arith.addf %60, %144 : vector<136x16xf32>
    %146 = vector.extract_strided_slice %63 {offsets = [2, 0], sizes = [1, 16], strides = [1, 1]} : vector<7x16xf32> to vector<1x16xf32>
    %147 = vector.broadcast %146 : vector<1x16xf32> to vector<136x16xf32>
    %148 = arith.addf %145, %147 : vector<136x16xf32>
    %149 = vector.extract_strided_slice %63 {offsets = [3, 0], sizes = [1, 16], strides = [1, 1]} : vector<7x16xf32> to vector<1x16xf32>
    %150 = vector.extract_strided_slice %63 {offsets = [4, 0], sizes = [1, 16], strides = [1, 1]} : vector<7x16xf32> to vector<1x16xf32>
    %cst_48 = arith.constant dense<0.000000e+00> : vector<136xf32>
    %151 = vector.multi_reduction <add>, %148, %cst_48 [1] : vector<136x16xf32> to vector<136xf32>
    %152 = vector.shape_cast %151 : vector<136xf32> to vector<136x1xf32>
    %cst_49 = arith.constant 1.600000e+01 : f32
    %153 = vector.broadcast %cst_49 : f32 to vector<136x1xf32>
    %154 = arith.divf %152, %153 : vector<136x1xf32>
    %155 = vector.broadcast %154 : vector<136x1xf32> to vector<136x16xf32>
    %156 = arith.subf %148, %155 : vector<136x16xf32>
    %157 = arith.mulf %156, %156 : vector<136x16xf32>
    %cst_50 = arith.constant dense<0.000000e+00> : vector<136xf32>
    %158 = vector.multi_reduction <add>, %157, %cst_50 [1] : vector<136x16xf32> to vector<136xf32>
    %159 = vector.shape_cast %158 : vector<136xf32> to vector<136x1xf32>
    %cst_51 = arith.constant 1.600000e+01 : f32
    %160 = vector.broadcast %cst_51 : f32 to vector<136x1xf32>
    %161 = arith.divf %159, %160 : vector<136x1xf32>
    %162 = vector.broadcast %154 : vector<136x1xf32> to vector<136x16xf32>
    %163 = arith.subf %148, %162 : vector<136x16xf32>
    %cst_52 = arith.constant 9.99999974E-6 : f32
    %164 = vector.broadcast %cst_52 : f32 to vector<136x1xf32>
    %165 = arith.addf %161, %164 : vector<136x1xf32>
    %166 = math.rsqrt %165 : vector<136x1xf32>
    %167 = vector.broadcast %166 : vector<136x1xf32> to vector<136x16xf32>
    %168 = arith.mulf %163, %167 : vector<136x16xf32>
    %169 = vector.broadcast %149 : vector<1x16xf32> to vector<136x16xf32>
    %170 = arith.mulf %168, %169 : vector<136x16xf32>
    %171 = vector.broadcast %150 : vector<1x16xf32> to vector<136x16xf32>
    %172 = arith.addf %170, %171 : vector<136x16xf32>
    %173 = arith.truncf %172 : vector<136x16xf32> to vector<136x16xbf16>
    %c0_53 = arith.constant 0 : index
    %c0_54 = arith.constant 0 : index
    %c0_55 = arith.constant 0 : index
    %174 = vector.load %arg10[%c0_53, %c0_54, %c0_55] : memref<2x16x8xbf16, #tpu.memory_space<vmem>>, vector<1x16x8xbf16>
    %175 = vector.shape_cast %174 : vector<1x16x8xbf16> to vector<16x8xbf16>
    %cst_56 = arith.constant dense<0.000000e+00> : vector<136x8xf32>
    %176 = tpu.matmul %173, %175, %cst_56 {dimension_numbers = #tpu.dot_dimension_numbers<[1], [0], [0], [1], [0, 0, 1, 1], [], []>} : vector<136x16xbf16>, vector<16x8xbf16>, vector<136x8xf32> -> vector<136x8xf32>
    %177 = vector.extract_strided_slice %63 {offsets = [5, 0], sizes = [1, 8], strides = [1, 1]} : vector<7x16xf32> to vector<1x8xf32>
    %178 = vector.broadcast %177 : vector<1x8xf32> to vector<136x8xf32>
    %179 = arith.addf %176, %178 : vector<136x8xf32>
    %180 = arith.mulf %179, %179 : vector<136x8xf32>
    %181 = arith.mulf %179, %180 : vector<136x8xf32>
    %cst_57 = arith.constant 4.471500e-02 : f32
    %182 = vector.broadcast %cst_57 : f32 to vector<136x8xf32>
    %183 = arith.mulf %182, %181 : vector<136x8xf32>
    %184 = arith.addf %179, %183 : vector<136x8xf32>
    %cst_58 = arith.constant 0.797884583 : f32
    %185 = vector.broadcast %cst_58 : f32 to vector<136x8xf32>
    %186 = arith.mulf %185, %184 : vector<136x8xf32>
    %187 = math.tanh %186 : vector<136x8xf32>
    %cst_59 = arith.constant 1.000000e+00 : f32
    %188 = vector.broadcast %cst_59 : f32 to vector<136x8xf32>
    %189 = arith.addf %188, %187 : vector<136x8xf32>
    %cst_60 = arith.constant 5.000000e-01 : f32
    %190 = vector.broadcast %cst_60 : f32 to vector<136x8xf32>
    %191 = arith.mulf %190, %189 : vector<136x8xf32>
    %192 = arith.mulf %179, %191 : vector<136x8xf32>
    %193 = arith.truncf %192 : vector<136x8xf32> to vector<136x8xbf16>
    %c0_61 = arith.constant 0 : index
    %c0_62 = arith.constant 0 : index
    %c0_63 = arith.constant 0 : index
    %194 = vector.load %arg11[%c0_61, %c0_62, %c0_63] : memref<2x8x16xbf16, #tpu.memory_space<vmem>>, vector<1x8x16xbf16>
    %195 = vector.shape_cast %194 : vector<1x8x16xbf16> to vector<8x16xbf16>
    %cst_64 = arith.constant dense<0.000000e+00> : vector<136x16xf32>
    %196 = tpu.matmul %193, %195, %cst_64 {dimension_numbers = #tpu.dot_dimension_numbers<[1], [0], [0], [1], [0, 0, 1, 1], [], []>} : vector<136x8xbf16>, vector<8x16xbf16>, vector<136x16xf32> -> vector<136x16xf32>
    %197 = arith.addf %148, %196 : vector<136x16xf32>
    %198 = vector.extract_strided_slice %63 {offsets = [6, 0], sizes = [1, 16], strides = [1, 1]} : vector<7x16xf32> to vector<1x16xf32>
    %199 = vector.broadcast %198 : vector<1x16xf32> to vector<136x16xf32>
    %200 = arith.addf %197, %199 : vector<136x16xf32>
    %c1 = arith.constant 1 : index
    %c0_65 = arith.constant 0 : index
    %c0_66 = arith.constant 0 : index
    %201 = vector.load %arg6[%c1, %c0_65, %c0_66] : memref<2x7x16xf32, #tpu.memory_space<vmem>>, vector<1x7x16xf32>
    %202 = vector.shape_cast %201 : vector<1x7x16xf32> to vector<7x16xf32>
    %203 = vector.extract_strided_slice %202 {offsets = [0, 0], sizes = [1, 16], strides = [1, 1]} : vector<7x16xf32> to vector<1x16xf32>
    %204 = vector.extract_strided_slice %202 {offsets = [1, 0], sizes = [1, 16], strides = [1, 1]} : vector<7x16xf32> to vector<1x16xf32>
    %cst_67 = arith.constant dense<0.000000e+00> : vector<136xf32>
    %205 = vector.multi_reduction <add>, %200, %cst_67 [1] : vector<136x16xf32> to vector<136xf32>
    %206 = vector.shape_cast %205 : vector<136xf32> to vector<136x1xf32>
    %cst_68 = arith.constant 1.600000e+01 : f32
    %207 = vector.broadcast %cst_68 : f32 to vector<136x1xf32>
    %208 = arith.divf %206, %207 : vector<136x1xf32>
    %209 = vector.broadcast %208 : vector<136x1xf32> to vector<136x16xf32>
    %210 = arith.subf %200, %209 : vector<136x16xf32>
    %211 = arith.mulf %210, %210 : vector<136x16xf32>
    %cst_69 = arith.constant dense<0.000000e+00> : vector<136xf32>
    %212 = vector.multi_reduction <add>, %211, %cst_69 [1] : vector<136x16xf32> to vector<136xf32>
    %213 = vector.shape_cast %212 : vector<136xf32> to vector<136x1xf32>
    %cst_70 = arith.constant 1.600000e+01 : f32
    %214 = vector.broadcast %cst_70 : f32 to vector<136x1xf32>
    %215 = arith.divf %213, %214 : vector<136x1xf32>
    %216 = vector.broadcast %208 : vector<136x1xf32> to vector<136x16xf32>
    %217 = arith.subf %200, %216 : vector<136x16xf32>
    %cst_71 = arith.constant 9.99999974E-6 : f32
    %218 = vector.broadcast %cst_71 : f32 to vector<136x1xf32>
    %219 = arith.addf %215, %218 : vector<136x1xf32>
    %220 = math.rsqrt %219 : vector<136x1xf32>
    %221 = vector.broadcast %220 : vector<136x1xf32> to vector<136x16xf32>
    %222 = arith.mulf %217, %221 : vector<136x16xf32>
    %223 = vector.broadcast %203 : vector<1x16xf32> to vector<136x16xf32>
    %224 = arith.mulf %222, %223 : vector<136x16xf32>
    %225 = vector.broadcast %204 : vector<1x16xf32> to vector<136x16xf32>
    %226 = arith.addf %224, %225 : vector<136x16xf32>
    %227 = arith.truncf %226 : vector<136x16xf32> to vector<136x16xbf16>
    %c1_72 = arith.constant 1 : index
    %c0_73 = arith.constant 0 : index
    %c0_74 = arith.constant 0 : index
    %228 = vector.load %arg8[%c1_72, %c0_73, %c0_74] : memref<2x16x384xbf16, #tpu.memory_space<vmem>>, vector<1x16x384xbf16>
    %229 = vector.shape_cast %228 : vector<1x16x384xbf16> to vector<16x384xbf16>
    %cst_75 = arith.constant dense<0.000000e+00> : vector<136x384xf32>
    %230 = tpu.matmul %227, %229, %cst_75 {dimension_numbers = #tpu.dot_dimension_numbers<[1], [0], [0], [1], [0, 0, 1, 1], [], []>} : vector<136x16xbf16>, vector<16x384xbf16>, vector<136x384xf32> -> vector<136x384xf32>
    %c1_76 = arith.constant 1 : index
    %c0_77 = arith.constant 0 : index
    %c0_78 = arith.constant 0 : index
    %231 = vector.load %arg9[%c1_76, %c0_77, %c0_78] : memref<2x128x16xbf16, #tpu.memory_space<vmem>>, vector<1x128x16xbf16>
    %232 = vector.shape_cast %231 : vector<1x128x16xbf16> to vector<128x16xbf16>
    %233 = vector.extract_strided_slice %230 {offsets = [0, 0], sizes = [136, 64], strides = [1, 1]} : vector<136x384xf32> to vector<136x64xf32>
    %cst_79 = arith.constant 1.250000e-01 : f32
    %234 = vector.broadcast %cst_79 : f32 to vector<136x64xf32>
    %235 = arith.mulf %233, %234 : vector<136x64xf32>
    %236 = vector.extract_strided_slice %230 {offsets = [0, 128], sizes = [136, 64], strides = [1, 1]} : vector<136x384xf32> to vector<136x64xf32>
    %237 = vector.extract_strided_slice %230 {offsets = [0, 256], sizes = [136, 64], strides = [1, 1]} : vector<136x384xf32> to vector<136x64xf32>
    %238 = arith.truncf %235 : vector<136x64xf32> to vector<136x64xbf16>
    %239 = arith.truncf %236 : vector<136x64xf32> to vector<136x64xbf16>
    %cst_80 = arith.constant dense<0.000000e+00> : vector<136x136xf32>
    %240 = tpu.matmul %238, %239, %cst_80 {dimension_numbers = #tpu.dot_dimension_numbers<[1], [1], [0], [0], [0, 0, 1, 0], [], []>} : vector<136x64xbf16>, vector<136x64xbf16>, vector<136x136xf32> -> vector<136x136xf32>
    %241 = arith.addf %240, %61 : vector<136x136xf32>
    %cst_81 = arith.constant dense<0xFF800000> : vector<136xf32>
    %242 = vector.multi_reduction <maximumf>, %241, %cst_81 [1] : vector<136x136xf32> to vector<136xf32>
    %243 = vector.shape_cast %242 : vector<136xf32> to vector<136x1xf32>
    %244 = vector.broadcast %243 : vector<136x1xf32> to vector<136x136xf32>
    %245 = arith.subf %241, %244 : vector<136x136xf32>
    %246 = math.exp %245 : vector<136x136xf32>
    %cst_82 = arith.constant dense<0.000000e+00> : vector<136xf32>
    %247 = vector.multi_reduction <add>, %246, %cst_82 [1] : vector<136x136xf32> to vector<136xf32>
    %248 = vector.shape_cast %247 : vector<136xf32> to vector<136x1xf32>
    %249 = tpu.reciprocal %248 {approx = true} : vector<136x1xf32> -> vector<136x1xf32>
    %250 = vector.broadcast %249 : vector<136x1xf32> to vector<136x136xf32>
    %251 = arith.mulf %246, %250 : vector<136x136xf32>
    %252 = arith.truncf %251 : vector<136x136xf32> to vector<136x136xbf16>
    %253 = arith.truncf %237 : vector<136x64xf32> to vector<136x64xbf16>
    %cst_83 = arith.constant dense<0.000000e+00> : vector<136x64xf32>
    %254 = tpu.matmul %252, %253, %cst_83 {dimension_numbers = #tpu.dot_dimension_numbers<[1], [0], [0], [1], [0, 0, 1, 1], [], []>} : vector<136x136xbf16>, vector<136x64xbf16>, vector<136x64xf32> -> vector<136x64xf32>
    %255 = arith.truncf %254 : vector<136x64xf32> to vector<136x64xbf16>
    %256 = vector.extract_strided_slice %232 {offsets = [0, 0], sizes = [64, 16], strides = [1, 1]} : vector<128x16xbf16> to vector<64x16xbf16>
    %cst_84 = arith.constant dense<0.000000e+00> : vector<136x16xf32>
    %257 = tpu.matmul %255, %256, %cst_84 {dimension_numbers = #tpu.dot_dimension_numbers<[1], [0], [0], [1], [0, 0, 1, 1], [], []>} : vector<136x64xbf16>, vector<64x16xbf16>, vector<136x16xf32> -> vector<136x16xf32>
    %258 = vector.extract_strided_slice %230 {offsets = [0, 64], sizes = [136, 64], strides = [1, 1]} : vector<136x384xf32> to vector<136x64xf32>
    %cst_85 = arith.constant 1.250000e-01 : f32
    %259 = vector.broadcast %cst_85 : f32 to vector<136x64xf32>
    %260 = arith.mulf %258, %259 : vector<136x64xf32>
    %261 = vector.extract_strided_slice %230 {offsets = [0, 192], sizes = [136, 64], strides = [1, 1]} : vector<136x384xf32> to vector<136x64xf32>
    %262 = vector.extract_strided_slice %230 {offsets = [0, 320], sizes = [136, 64], strides = [1, 1]} : vector<136x384xf32> to vector<136x64xf32>
    %263 = arith.truncf %260 : vector<136x64xf32> to vector<136x64xbf16>
    %264 = arith.truncf %261 : vector<136x64xf32> to vector<136x64xbf16>
    %cst_86 = arith.constant dense<0.000000e+00> : vector<136x136xf32>
    %265 = tpu.matmul %263, %264, %cst_86 {dimension_numbers = #tpu.dot_dimension_numbers<[1], [1], [0], [0], [0, 0, 1, 0], [], []>} : vector<136x64xbf16>, vector<136x64xbf16>, vector<136x136xf32> -> vector<136x136xf32>
    %266 = arith.addf %265, %61 : vector<136x136xf32>
    %cst_87 = arith.constant dense<0xFF800000> : vector<136xf32>
    %267 = vector.multi_reduction <maximumf>, %266, %cst_87 [1] : vector<136x136xf32> to vector<136xf32>
    %268 = vector.shape_cast %267 : vector<136xf32> to vector<136x1xf32>
    %269 = vector.broadcast %268 : vector<136x1xf32> to vector<136x136xf32>
    %270 = arith.subf %266, %269 : vector<136x136xf32>
    %271 = math.exp %270 : vector<136x136xf32>
    %cst_88 = arith.constant dense<0.000000e+00> : vector<136xf32>
    %272 = vector.multi_reduction <add>, %271, %cst_88 [1] : vector<136x136xf32> to vector<136xf32>
    %273 = vector.shape_cast %272 : vector<136xf32> to vector<136x1xf32>
    %274 = tpu.reciprocal %273 {approx = true} : vector<136x1xf32> -> vector<136x1xf32>
    %275 = vector.broadcast %274 : vector<136x1xf32> to vector<136x136xf32>
    %276 = arith.mulf %271, %275 : vector<136x136xf32>
    %277 = arith.truncf %276 : vector<136x136xf32> to vector<136x136xbf16>
    %278 = arith.truncf %262 : vector<136x64xf32> to vector<136x64xbf16>
    %cst_89 = arith.constant dense<0.000000e+00> : vector<136x64xf32>
    %279 = tpu.matmul %277, %278, %cst_89 {dimension_numbers = #tpu.dot_dimension_numbers<[1], [0], [0], [1], [0, 0, 1, 1], [], []>} : vector<136x136xbf16>, vector<136x64xbf16>, vector<136x64xf32> -> vector<136x64xf32>
    %280 = arith.truncf %279 : vector<136x64xf32> to vector<136x64xbf16>
    %281 = vector.extract_strided_slice %232 {offsets = [64, 0], sizes = [64, 16], strides = [1, 1]} : vector<128x16xbf16> to vector<64x16xbf16>
    %cst_90 = arith.constant dense<0.000000e+00> : vector<136x16xf32>
    %282 = tpu.matmul %280, %281, %cst_90 {dimension_numbers = #tpu.dot_dimension_numbers<[1], [0], [0], [1], [0, 0, 1, 1], [], []>} : vector<136x64xbf16>, vector<64x16xbf16>, vector<136x16xf32> -> vector<136x16xf32>
    %283 = arith.addf %257, %282 : vector<136x16xf32>
    %284 = arith.addf %200, %283 : vector<136x16xf32>
    %285 = vector.extract_strided_slice %202 {offsets = [2, 0], sizes = [1, 16], strides = [1, 1]} : vector<7x16xf32> to vector<1x16xf32>
    %286 = vector.broadcast %285 : vector<1x16xf32> to vector<136x16xf32>
    %287 = arith.addf %284, %286 : vector<136x16xf32>
    %288 = vector.extract_strided_slice %202 {offsets = [3, 0], sizes = [1, 16], strides = [1, 1]} : vector<7x16xf32> to vector<1x16xf32>
    %289 = vector.extract_strided_slice %202 {offsets = [4, 0], sizes = [1, 16], strides = [1, 1]} : vector<7x16xf32> to vector<1x16xf32>
    %cst_91 = arith.constant dense<0.000000e+00> : vector<136xf32>
    %290 = vector.multi_reduction <add>, %287, %cst_91 [1] : vector<136x16xf32> to vector<136xf32>
    %291 = vector.shape_cast %290 : vector<136xf32> to vector<136x1xf32>
    %cst_92 = arith.constant 1.600000e+01 : f32
    %292 = vector.broadcast %cst_92 : f32 to vector<136x1xf32>
    %293 = arith.divf %291, %292 : vector<136x1xf32>
    %294 = vector.broadcast %293 : vector<136x1xf32> to vector<136x16xf32>
    %295 = arith.subf %287, %294 : vector<136x16xf32>
    %296 = arith.mulf %295, %295 : vector<136x16xf32>
    %cst_93 = arith.constant dense<0.000000e+00> : vector<136xf32>
    %297 = vector.multi_reduction <add>, %296, %cst_93 [1] : vector<136x16xf32> to vector<136xf32>
    %298 = vector.shape_cast %297 : vector<136xf32> to vector<136x1xf32>
    %cst_94 = arith.constant 1.600000e+01 : f32
    %299 = vector.broadcast %cst_94 : f32 to vector<136x1xf32>
    %300 = arith.divf %298, %299 : vector<136x1xf32>
    %301 = vector.broadcast %293 : vector<136x1xf32> to vector<136x16xf32>
    %302 = arith.subf %287, %301 : vector<136x16xf32>
    %cst_95 = arith.constant 9.99999974E-6 : f32
    %303 = vector.broadcast %cst_95 : f32 to vector<136x1xf32>
    %304 = arith.addf %300, %303 : vector<136x1xf32>
    %305 = math.rsqrt %304 : vector<136x1xf32>
    %306 = vector.broadcast %305 : vector<136x1xf32> to vector<136x16xf32>
    %307 = arith.mulf %302, %306 : vector<136x16xf32>
    %308 = vector.broadcast %288 : vector<1x16xf32> to vector<136x16xf32>
    %309 = arith.mulf %307, %308 : vector<136x16xf32>
    %310 = vector.broadcast %289 : vector<1x16xf32> to vector<136x16xf32>
    %311 = arith.addf %309, %310 : vector<136x16xf32>
    %312 = arith.truncf %311 : vector<136x16xf32> to vector<136x16xbf16>
    %c1_96 = arith.constant 1 : index
    %c0_97 = arith.constant 0 : index
    %c0_98 = arith.constant 0 : index
    %313 = vector.load %arg10[%c1_96, %c0_97, %c0_98] : memref<2x16x8xbf16, #tpu.memory_space<vmem>>, vector<1x16x8xbf16>
    %314 = vector.shape_cast %313 : vector<1x16x8xbf16> to vector<16x8xbf16>
    %cst_99 = arith.constant dense<0.000000e+00> : vector<136x8xf32>
    %315 = tpu.matmul %312, %314, %cst_99 {dimension_numbers = #tpu.dot_dimension_numbers<[1], [0], [0], [1], [0, 0, 1, 1], [], []>} : vector<136x16xbf16>, vector<16x8xbf16>, vector<136x8xf32> -> vector<136x8xf32>
    %316 = vector.extract_strided_slice %202 {offsets = [5, 0], sizes = [1, 8], strides = [1, 1]} : vector<7x16xf32> to vector<1x8xf32>
    %317 = vector.broadcast %316 : vector<1x8xf32> to vector<136x8xf32>
    %318 = arith.addf %315, %317 : vector<136x8xf32>
    %319 = arith.mulf %318, %318 : vector<136x8xf32>
    %320 = arith.mulf %318, %319 : vector<136x8xf32>
    %cst_100 = arith.constant 4.471500e-02 : f32
    %321 = vector.broadcast %cst_100 : f32 to vector<136x8xf32>
    %322 = arith.mulf %321, %320 : vector<136x8xf32>
    %323 = arith.addf %318, %322 : vector<136x8xf32>
    %cst_101 = arith.constant 0.797884583 : f32
    %324 = vector.broadcast %cst_101 : f32 to vector<136x8xf32>
    %325 = arith.mulf %324, %323 : vector<136x8xf32>
    %326 = math.tanh %325 : vector<136x8xf32>
    %cst_102 = arith.constant 1.000000e+00 : f32
    %327 = vector.broadcast %cst_102 : f32 to vector<136x8xf32>
    %328 = arith.addf %327, %326 : vector<136x8xf32>
    %cst_103 = arith.constant 5.000000e-01 : f32
    %329 = vector.broadcast %cst_103 : f32 to vector<136x8xf32>
    %330 = arith.mulf %329, %328 : vector<136x8xf32>
    %331 = arith.mulf %318, %330 : vector<136x8xf32>
    %332 = arith.truncf %331 : vector<136x8xf32> to vector<136x8xbf16>
    %c1_104 = arith.constant 1 : index
    %c0_105 = arith.constant 0 : index
    %c0_106 = arith.constant 0 : index
    %333 = vector.load %arg11[%c1_104, %c0_105, %c0_106] : memref<2x8x16xbf16, #tpu.memory_space<vmem>>, vector<1x8x16xbf16>
    %334 = vector.shape_cast %333 : vector<1x8x16xbf16> to vector<8x16xbf16>
    %cst_107 = arith.constant dense<0.000000e+00> : vector<136x16xf32>
    %335 = tpu.matmul %332, %334, %cst_107 {dimension_numbers = #tpu.dot_dimension_numbers<[1], [0], [0], [1], [0, 0, 1, 1], [], []>} : vector<136x8xbf16>, vector<8x16xbf16>, vector<136x16xf32> -> vector<136x16xf32>
    %336 = arith.addf %287, %335 : vector<136x16xf32>
    %337 = vector.extract_strided_slice %202 {offsets = [6, 0], sizes = [1, 16], strides = [1, 1]} : vector<7x16xf32> to vector<1x16xf32>
    %338 = vector.broadcast %337 : vector<1x16xf32> to vector<136x16xf32>
    %339 = arith.addf %336, %338 : vector<136x16xf32>
    %340 = tpu.iota {dimensions = array<i32: 1>} : vector<8x136xi32>
    %341 = tpu.iota {dimensions = array<i32: 0>} : vector<8x136xi32>
    %c17_i32 = arith.constant 17 : i32
    %342 = vector.broadcast %c17_i32 : i32 to vector<8x136xi32>
    %343 = arith.muli %341, %342 : vector<8x136xi32>
    %344 = arith.cmpi eq, %340, %343 : vector<8x136xi32>
    %cst_108 = arith.constant 1.000000e+00 : f32
    %cst_109 = arith.constant 0.000000e+00 : f32
    %345 = vector.broadcast %cst_108 : f32 to vector<8x136xf32>
    %346 = vector.broadcast %cst_109 : f32 to vector<8x136xf32>
    %347 = arith.select %344, %345, %346 : vector<8x136xi1>, vector<8x136xf32>
    %348 = arith.truncf %347 : vector<8x136xf32> to vector<8x136xbf16>
    %349 = arith.truncf %339 : vector<136x16xf32> to vector<136x16xbf16>
    %cst_110 = arith.constant dense<0.000000e+00> : vector<8x16xf32>
    %350 = tpu.matmul %348, %349, %cst_110 {dimension_numbers = #tpu.dot_dimension_numbers<[1], [0], [0], [1], [0, 0, 1, 1], [], []>} : vector<8x136xbf16>, vector<136x16xbf16>, vector<8x16xf32> -> vector<8x16xf32>
    %351 = vector.extract_strided_slice %0 {offsets = [5, 0], sizes = [1, 16], strides = [1, 1]} : vector<8x48xf32> to vector<1x16xf32>
    %352 = vector.extract_strided_slice %0 {offsets = [6, 0], sizes = [1, 16], strides = [1, 1]} : vector<8x48xf32> to vector<1x16xf32>
    %cst_111 = arith.constant dense<0.000000e+00> : vector<8xf32>
    %353 = vector.multi_reduction <add>, %350, %cst_111 [1] : vector<8x16xf32> to vector<8xf32>
    %354 = vector.shape_cast %353 : vector<8xf32> to vector<8x1xf32>
    %cst_112 = arith.constant 1.600000e+01 : f32
    %355 = vector.broadcast %cst_112 : f32 to vector<8x1xf32>
    %356 = arith.divf %354, %355 : vector<8x1xf32>
    %357 = vector.broadcast %356 : vector<8x1xf32> to vector<8x16xf32>
    %358 = arith.subf %350, %357 : vector<8x16xf32>
    %359 = arith.mulf %358, %358 : vector<8x16xf32>
    %cst_113 = arith.constant dense<0.000000e+00> : vector<8xf32>
    %360 = vector.multi_reduction <add>, %359, %cst_113 [1] : vector<8x16xf32> to vector<8xf32>
    %361 = vector.shape_cast %360 : vector<8xf32> to vector<8x1xf32>
    %cst_114 = arith.constant 1.600000e+01 : f32
    %362 = vector.broadcast %cst_114 : f32 to vector<8x1xf32>
    %363 = arith.divf %361, %362 : vector<8x1xf32>
    %364 = vector.broadcast %356 : vector<8x1xf32> to vector<8x16xf32>
    %365 = arith.subf %350, %364 : vector<8x16xf32>
    %cst_115 = arith.constant 9.99999974E-6 : f32
    %366 = vector.broadcast %cst_115 : f32 to vector<8x1xf32>
    %367 = arith.addf %363, %366 : vector<8x1xf32>
    %368 = math.rsqrt %367 : vector<8x1xf32>
    %369 = vector.broadcast %368 : vector<8x1xf32> to vector<8x16xf32>
    %370 = arith.mulf %365, %369 : vector<8x16xf32>
    %371 = vector.broadcast %351 : vector<1x16xf32> to vector<8x16xf32>
    %372 = arith.mulf %370, %371 : vector<8x16xf32>
    %373 = vector.broadcast %352 : vector<1x16xf32> to vector<8x16xf32>
    %374 = arith.addf %372, %373 : vector<8x16xf32>
    %375 = arith.truncf %374 : vector<8x16xf32> to vector<8x16xbf16>
    %c0_116 = arith.constant 0 : index
    %c0_117 = arith.constant 0 : index
    %376 = vector.load %arg12[%c0_116, %c0_117] : memref<16x8xbf16, #tpu.memory_space<vmem>>, vector<16x8xbf16>
    %cst_118 = arith.constant dense<0.000000e+00> : vector<8x8xf32>
    %377 = tpu.matmul %375, %376, %cst_118 {dimension_numbers = #tpu.dot_dimension_numbers<[1], [0], [0], [1], [0, 0, 1, 1], [], []>} : vector<8x16xbf16>, vector<16x8xbf16>, vector<8x8xf32> -> vector<8x8xf32>
    %378 = vector.extract_strided_slice %0 {offsets = [7, 0], sizes = [1, 8], strides = [1, 1]} : vector<8x48xf32> to vector<1x8xf32>
    %379 = vector.broadcast %378 : vector<1x8xf32> to vector<8x8xf32>
    %380 = arith.addf %377, %379 : vector<8x8xf32>
    %c0_119 = arith.constant 0 : index
    %c0_120 = arith.constant 0 : index
    %381 = vector.load %arg13[%c0_119, %c0_120] : memref<8x8xf32, #tpu.memory_space<vmem>>, vector<8x8xf32>
    tpu.vector_store %arg13[%c0_119, %c0_120], %380 {strides = array<i32>} : memref<8x8xf32, #tpu.memory_space<vmem>>, vector<8x8xf32>,
    return
  }
  func.func @transform_0(%arg0: i32) -> (i32, i32) {
    %c0_i32 = arith.constant 0 : i32
    %c0_i32_0 = arith.constant 0 : i32
    return %arg0, %c0_i32 : i32, i32
  }
  func.func @transform_1(%arg0: i32) -> (i32, i32) {
    %c0_i32 = arith.constant 0 : i32
    %c0_i32_0 = arith.constant 0 : i32
    %c0_i32_1 = arith.constant 0 : i32
    return %c0_i32, %c0_i32_0 : i32, i32
  }
  func.func @transform_2(%arg0: i32) -> (i32, i32) {
    %c0_i32 = arith.constant 0 : i32
    %c0_i32_0 = arith.constant 0 : i32
    %c0_i32_1 = arith.constant 0 : i32
    return %c0_i32, %c0_i32_0 : i32, i32
  }
  func.func @transform_3(%arg0: i32) -> (i32, i32) {
    %c0_i32 = arith.constant 0 : i32
    %c0_i32_0 = arith.constant 0 : i32
    %c0_i32_1 = arith.constant 0 : i32
    return %c0_i32, %c0_i32_0 : i32, i32
  }
  func.func @transform_4(%arg0: i32) -> (i32, i32) {
    %c0_i32 = arith.constant 0 : i32
    %c0_i32_0 = arith.constant 0 : i32
    %c0_i32_1 = arith.constant 0 : i32
    return %c0_i32, %c0_i32_0 : i32, i32
  }
  func.func @transform_5(%arg0: i32) -> (i32, i32, i32) {
    %c0_i32 = arith.constant 0 : i32
    %c0_i32_0 = arith.constant 0 : i32
    %c0_i32_1 = arith.constant 0 : i32
    %c0_i32_2 = arith.constant 0 : i32
    return %c0_i32, %c0_i32_0, %c0_i32_1 : i32, i32, i32
  }
  func.func @transform_6(%arg0: i32) -> (i32, i32) {
    %c0_i32 = arith.constant 0 : i32
    %c0_i32_0 = arith.constant 0 : i32
    %c0_i32_1 = arith.constant 0 : i32
    return %c0_i32, %c0_i32_0 : i32, i32
  }
  func.func @transform_7(%arg0: i32) -> (i32, i32, i32) {
    %c0_i32 = arith.constant 0 : i32
    %c0_i32_0 = arith.constant 0 : i32
    %c0_i32_1 = arith.constant 0 : i32
    %c0_i32_2 = arith.constant 0 : i32
    return %c0_i32, %c0_i32_0, %c0_i32_1 : i32, i32, i32
  }
  func.func @transform_8(%arg0: i32) -> (i32, i32, i32) {
    %c0_i32 = arith.constant 0 : i32
    %c0_i32_0 = arith.constant 0 : i32
    %c0_i32_1 = arith.constant 0 : i32
    %c0_i32_2 = arith.constant 0 : i32
    return %c0_i32, %c0_i32_0, %c0_i32_1 : i32, i32, i32
  }
  func.func @transform_9(%arg0: i32) -> (i32, i32, i32) {
    %c0_i32 = arith.constant 0 : i32
    %c0_i32_0 = arith.constant 0 : i32
    %c0_i32_1 = arith.constant 0 : i32
    %c0_i32_2 = arith.constant 0 : i32
    return %c0_i32, %c0_i32_0, %c0_i32_1 : i32, i32, i32
  }
  func.func @transform_10(%arg0: i32) -> (i32, i32, i32) {
    %c0_i32 = arith.constant 0 : i32
    %c0_i32_0 = arith.constant 0 : i32
    %c0_i32_1 = arith.constant 0 : i32
    %c0_i32_2 = arith.constant 0 : i32
    return %c0_i32, %c0_i32_0, %c0_i32_1 : i32, i32, i32
  }
  func.func @transform_11(%arg0: i32) -> (i32, i32) {
    %c0_i32 = arith.constant 0 : i32
    %c0_i32_0 = arith.constant 0 : i32
    %c0_i32_1 = arith.constant 0 : i32
    return %c0_i32, %c0_i32_0 : i32, i32
  }
  func.func @transform_12(%arg0: i32) -> (i32, i32) {
    %c0_i32 = arith.constant 0 : i32
    %c0_i32_0 = arith.constant 0 : i32
    return %arg0, %c0_i32 : i32, i32
  }
}

</mosaic_0001>

<bundles_post_ra>
// kernel: tile.9
= control target key start
LH: loop header
LB: loop body
LE: loop exit
PB: predicated region body
PF: predicated region fallthrough
CT: control target
= control target key end

     0   :  { %vm4_vm0 = vcmask 1047556   ;;  %vm29_vm1 = vcmask 72704   ;;  %s237_s14 = smov 102   ;;  %s238_s27 = smov 119   ;;  %vm6_vm2 = vcmask 138240   ;;  %vm33_vm3 = vcmask 64512   ;;  %s438_s0 = inlined_call_operand.vmem [shape: f32[8,17,16], index: 0, kind: input, shape index: {}]   ;;  %s439_s1 = inlined_call_operand.vmem [shape: f32[136,16], index: 1, kind: output, shape index: {}]  }
   0x1   :  { %v200_v0 = vld [vmem:[%s438_s0 + $0x6] ss:$8 sm:$0xf]   ;;  %v189_v3 = vld [vmem:[%s438_s0 + $0x7] ss:$8 sm:$0xf]  }
   0x2   :  { %v201_v1 = vld [vmem:[%s438_s0 + $0x6] ss:$8 sm:$0xf0]   ;;  %v190_v4 = vld [vmem:[%s438_s0 + $0x7] ss:$8 sm:$0xf0]  }
   0x3   :  { %v65_v2 = vsel %vm4_vm0, %v201_v1, %v200_v0  ;;  %v22_v5 = vsel %vm4_vm0, %v190_v4, %v189_v3  ;;  %v191_v6 = vld [vmem:[%s438_s0 + $0x7] ss:$8 sm:$0xf]   ;;  %v202_v9 = vld [vmem:[%s438_s0 + $0x46] ss:$8 sm:$0xf]  }
   0x4   :  { %66 = vrot.lane.b32.xlu1 %v65_v2, %s237_s14  ;;  %v192_v7 = vld [vmem:[%s438_s0 + $0x7] ss:$8 sm:$0xf0]   ;;  %v203_v10 = vld [vmem:[%s438_s0 + $0x46] ss:$8 sm:$0xf0]  }
   0x5   :  { %v28_v8 = vsel %vm4_vm0, %v192_v7, %v191_v6  ;;  %v75_v12 = vsel %vm4_vm0, %v203_v10, %v202_v9  ;;  %v194_v13 = vld [vmem:[%s438_s0 + $0x47] ss:$8 sm:$0xf]   ;;  %v207_v19 = vld [vmem:[%s438_s0 + $0x45] ss:$8 sm:$0xf]  }
   0x6   :  { %v30_v11 = vsel %vm29_vm1, %v28_v8, %v22_v5  ;;  %v195_v14 = vld [vmem:[%s438_s0 + $0x47] ss:$8 sm:$0xf0]   ;;  %v208_v21 = vld [vmem:[%s438_s0 + $0x45] ss:$8 sm:$0xf0]  }
   0x7   :  { %31 = vrot.lane.b32.xlu0 %v30_v11, %s238_s27  ;;  %v43_v15 = vsel %vm4_vm0, %v195_v14, %v194_v13  ;;  %v196_v16 = vld [vmem:[%s438_s0 + $0x47] ss:$8 sm:$0xf]   ;;  %v205_v22 = vld [vmem:[%s438_s0 + $0x5] ss:$8 sm:$0xf]   ;;  %v96_v23 = vsel %vm4_vm0, %v208_v21, %v207_v19 }
   0x8   :  { %v197_v17 = vld [vmem:[%s438_s0 + $0x47] ss:$8 sm:$0xf0]   ;;  %76 = vrot.lane.b32.xlu1 %v75_v12, %s237_s14  ;;  %v206_v24 = vld [vmem:[%s438_s0 + $0x5] ss:$8 sm:$0xf0]  }
   0x9   :  { %v49_v18 = vsel %vm4_vm0, %v197_v17, %v196_v16  ;;  %v212_v25 = vld [vmem:[%s438_s0 + $0x44] ss:$8 sm:$0xf]   ;;  %s239_s15 = smov 85   ;;  %v86_v27 = vsel %vm4_vm0, %v206_v24, %v205_v22  ;;  %s240_s24 = smov 68   ;;  %vm36_vm4 = vcmask 1048504  }
   0xa   :  { %v51_v20 = vsel %vm29_vm1, %v49_v18, %v43_v15  ;;  %v213_v26 = vld [vmem:[%s438_s0 + $0x44] ss:$8 sm:$0xf0]   ;;  %v217_v31 = vld [vmem:[%s438_s0 + $0x43] ss:$8 sm:$0xf]  }
   0xb   :  { %52 = vrot.lane.b32.xlu0 %v51_v20, %s238_s27  ;;  %v117_v28 = vsel %vm4_vm0, %v213_v26, %v212_v25  ;;  %v210_v29 = vld [vmem:[%s438_s0 + $0x4] ss:$8 sm:$0xf]   ;;  %v218_v32 = vld [vmem:[%s438_s0 + $0x43] ss:$8 sm:$0xf0]  }
   0xc   :  { %97 = vrot.lane.b32.xlu1 %v96_v23, %s239_s15  ;;  %v211_v30 = vld [vmem:[%s438_s0 + $0x4] ss:$8 sm:$0xf0]   ;;  %v138_v34 = vsel %vm4_vm0, %v218_v32, %v217_v31  ;;  %v215_v35 = vld [vmem:[%s438_s0 + $0x3] ss:$8 sm:$0xf]  }
   0xd   :  { %v107_v33 = vsel %vm4_vm0, %v211_v30, %v210_v29  ;;  %v216_v36 = vld [vmem:[%s438_s0 + $0x3] ss:$8 sm:$0xf0]   ;;  %v222_v37 = vld [vmem:[%s438_s0 + $0x42] ss:$8 sm:$0xf]  }
   0xe   :  { %v223_v38 = vld [vmem:[%s438_s0 + $0x42] ss:$8 sm:$0xf0]   ;;  %v2_v40 = vld [vmem:[%s438_s0] ss:$8 sm:$0xf]   ;;  %v128_v41 = vsel %vm4_vm0, %v216_v36, %v215_v35 }
   0xf   :  { %87 = vrot.lane.b32.xlu0 %v86_v27, %s239_s15  ;;  %v220_v39 = vld [vmem:[%s438_s0 + $0x2] ss:$8 sm:$0xf]   ;;  %s241_s8 = smov 51   ;;  %v159_v44 = vsel %vm4_vm0, %v223_v38, %v222_v37  ;;  %s242_s25 = smov 34   ;;  %vm68_vm5 = vcmask 974640  }
  0x10   :  { %118 = vrot.lane.b32.xlu1 %v117_v28, %s240_s24  ;;  %v3_v42 = vld [vmem:[%s438_s0] ss:$8 sm:$0xf0]   ;;  %v221_v45 = vld [vmem:[%s438_s0 + $0x2] ss:$8 sm:$0xf0]  }
  0x11   :  { %v186_v43 = vld [vmem:[%s438_s0 + $0x40] ss:$8 sm:$0xf]   ;;  %v5_v46 = vsel %vm4_vm0, %v3_v42, %v2_v40  ;;  %v227_v48 = vld [vmem:[%s438_s0 + $0x41] ss:$8 sm:$0xf]   ;;  %v149_v51 = vsel %vm4_vm0, %v221_v45, %v220_v39 }
  0x12   :  { %v187_v47 = vld [vmem:[%s438_s0 + $0x40] ss:$8 sm:$0xf0]   ;;  %v228_v49 = vld [vmem:[%s438_s0 + $0x41] ss:$8 sm:$0xf0]  }
  0x13   :  { %108 = vrot.lane.b32.xlu0 %v107_v33, %s240_s24  ;;  %7 = vst.msk [vmem:[%s439_s1] sm:$0xff] %vm6_vm2, %v5_v46   ;;  %v13_v50 = vsel %vm4_vm0, %v187_v47, %v186_v43  ;;  %v180_v52 = vsel %vm4_vm0, %v228_v49, %v227_v48  ;;  %v225_v53 = vld [vmem:[%s438_s0 + $0x1] ss:$8 sm:$0xf]   ;;  %vm89_vm6 = vcmask 835240   ;;  %vm110_vm7 = vcmask 695840  }
  0x14   :  { %139 = vrot.lane.b32.xlu1 %v138_v34, %s241_s8  ;;  %188 = vst.msk [vmem:[%s439_s1 + $0x10] sm:$0xff] %vm6_vm2, %v13_v50   ;;  %v226_v54 = vld [vmem:[%s438_s0 + $0x1] ss:$8 sm:$0xf0]   ;;  %s243_s0 = smov 17   ;;  %vm131_vm8 = vcmask 556440  }
  0x15   :  { %v170_v55 = vsel %vm4_vm0, %v226_v54, %v225_v53  ;;  %vm152_vm9 = vcmask 417040   ;;  %vm173_vm10 = vcmask 277640  }
  0x17   :  { %129 = vrot.lane.b32.xlu0 %v128_v41, %s241_s8 }
  0x18   :  { %160 = vrot.lane.b32.xlu1 %v159_v44, %s242_s25 }
  0x1b   :  { %150 = vrot.lane.b32.xlu0 %v149_v51, %s242_s25 }
  0x1c   :  { %181 = vrot.lane.b32.xlu1 %v180_v52, %s243_s0 }
  0x1f   :  { %171 = vrot.lane.b32.xlu0 %v170_v55, %s243_s0 }
  0x76   :  { %v67_v56 = vpop.permute.xlu1 %66  }
  0x79   :  { %v32_v57 = vpop.permute.xlu0 %31  }
  0x7a   :  { %193 = vst.msk [vmem:[%s439_s1 + $0x8] sm:$0xff] %vm33_vm3, %v32_v57   ;;  %v77_v58 = vpop.permute.xlu1 %76  }
  0x7b   :  { %37 = vst.msk [vmem:[%s439_s1] sm:$0xff] %vm36_vm4, %v32_v57  }
  0x7c   :  { %69 = vst.msk [vmem:[%s439_s1] sm:$0xff] %vm68_vm5, %v67_v56  }
  0x7d   :  { %v53_v59 = vpop.permute.xlu0 %52  }
  0x7e   :  { %198 = vst.msk [vmem:[%s439_s1 + $0x18] sm:$0xff] %vm33_vm3, %v53_v59   ;;  %v98_v60 = vpop.permute.xlu1 %97  }
  0x7f   :  { %199 = vst.msk [vmem:[%s439_s1 + $0x10] sm:$0xff] %vm36_vm4, %v53_v59  }
  0x80   :  { %204 = vst.msk [vmem:[%s439_s1 + $0x10] sm:$0xff] %vm68_vm5, %v77_v58  }
  0x81   :  { %209 = vst.msk [vmem:[%s439_s1 + $0x10] sm:$0xff] %vm89_vm6, %v98_v60   ;;  %v88_v61 = vpop.permute.xlu0 %87  }
  0x82   :  { %90 = vst.msk [vmem:[%s439_s1] sm:$0xff] %vm89_vm6, %v88_v61   ;;  %v119_v62 = vpop.permute.xlu1 %118  }
  0x83   :  { %214 = vst.msk [vmem:[%s439_s1 + $0x10] sm:$0xff] %vm110_vm7, %v119_v62  }
  0x85   :  { %v109_v63 = vpop.permute.xlu0 %108  }
  0x86   :  { %111 = vst.msk [vmem:[%s439_s1] sm:$0xff] %vm110_vm7, %v109_v63   ;;  %v140_v0 = vpop.permute.xlu1 %139  }
  0x87   :  { %219 = vst.msk [vmem:[%s439_s1 + $0x10] sm:$0xff] %vm131_vm8, %v140_v0  }
  0x89   :  { %v130_v1 = vpop.permute.xlu0 %129  }
  0x8a   :  { %132 = vst.msk [vmem:[%s439_s1] sm:$0xff] %vm131_vm8, %v130_v1   ;;  %v161_v2 = vpop.permute.xlu1 %160  }
  0x8b   :  { %224 = vst.msk [vmem:[%s439_s1 + $0x10] sm:$0xff] %vm152_vm9, %v161_v2  }
  0x8d   :  { %v151_v3 = vpop.permute.xlu0 %150  }
  0x8e   :  { %153 = vst.msk [vmem:[%s439_s1] sm:$0xff] %vm152_vm9, %v151_v3   ;;  %v182_v4 = vpop.permute.xlu1 %181  }
  0x8f   :  { %229 = vst.msk [vmem:[%s439_s1 + $0x10] sm:$0xff] %vm173_vm10, %v182_v4  }
  0x91   :  { %v172_v5 = vpop.permute.xlu0 %171  }
  0x92   :  { %174 = vst.msk [vmem:[%s439_s1] sm:$0xff] %vm173_vm10, %v172_v5  }

// kernel: vit_base_forward.1
= control target key start
LH: loop header
LB: loop body
LE: loop exit
PB: predicated region body
PF: predicated region fallthrough
CT: control target
= control target key end

     0   :  { %s9304_s21 = smov 0   ;;  %s14104_s0 = inlined_call_operand.vmem [shape: f32[272,48], index: 0, kind: input, shape index: {}]   ;;  %s14105_s1 = inlined_call_operand.vmem [shape: f32[136,16], index: 1, kind: input, shape index: {}]   ;;  %s14106_s2 = inlined_call_operand.vmem [shape: f32[136,1], index: 2, kind: input, shape index: {}]   ;;  %s14107_s3 = inlined_call_operand.vmem [shape: f32[136,136], index: 3, kind: input, shape index: {}]   ;;  %s14108_s4 = inlined_call_operand.vmem [shape: f32[8,48], index: 4, kind: input, shape index: {}]   ;;  %s14109_s5 = inlined_call_operand.vmem [shape: f32[2,7,16], index: 5, kind: input, shape index: {}]   ;;  %s14110_s6 = inlined_call_operand.vmem [shape: bf16[48,16], index: 6, kind: input, shape index: {}]   ;;  %s14111_s7 = inlined_call_operand.vmem [shape: bf16[2,16,384], index: 7, kind: input, shape index: {}]   ;;  %s14112_s8 = inlined_call_operand.vmem [shape: bf16[2,128,16], index: 8, kind: input, shape index: {}]   ;;  %s14113_s9 = inlined_call_operand.vmem [shape: bf16[2,16,8], index: 9, kind: input, shape index: {}]   ;;  %s14114_s10 = inlined_call_operand.vmem [shape: bf16[2,8,16], index: 10, kind: input, shape index: {}]   ;;  %s14115_s11 = inlined_call_operand.vmem [shape: bf16[16,8], index: 11, kind: input, shape index: {}]   ;;  %s14116_s12 = inlined_call_operand.vmem [shape: f32[16,8], index: 12, kind: output, shape index: {}]  }
   0x1 LB: > { %s9310_s22 = sadd.s32 4294967295, %s9232_s21   ;;  %p7614_p0 = scmp.ge.s32.totalorder %s9232_s21, 1  ;;  %s9232_s21 = sphi %s9304_s21, %s22_s21  }
   0x2   : > { %p363_p1 = scmp.lt.s32.totalorder %s9232_s21, 3 }
   0x4   : > { %p364_p2 = pnand %p7614_p0, %p363_p1 }
   0x6   : > { %367 = sbr.rel (%p364_p2) target bundleno = 6797 (0x1a8d), region = 68 }
   0xd   : > { %s404_s23 = smul.u32 17, %s9310_s22  ;;  %vm433_vm0 = vcmask 392192   ;;  %vm9235_vm1 = vmmov 0   ;;  %vm866_vm2 = vcmask 130048   ;;  %vm1914_vm3 = vcmask 523264   ;;  %s9237_s14 = smov 64  }
   0xe   : > { %vm2434_vm4 = vcmask 1043456   ;;  %vm2090_vm5 = vcmask 64512   ;;  %p410_p4 = scmp.lt.s32.totalorder %s9310_s22, 1 }
   0xf   : > { %p405_p3 = scmp.lt.s32.totalorder %s404_s23, 33 }
  0x10   : > { %s14584_s22 = smov (!%p410_p4, %s9310_s22), 1 }
  0x11   : > { %s14582_s23 = smov (!%p405_p3, %s404_s23), 33  ;;  %s7616_s13 = sshll.u32 %s14584_s22, 3 }
  0x12   : > { %s7615_s24 = sshll.u32 %s14582_s23, 3  ;;  %s413_s17 = scalar_lea.vmem %s14116_s12, %s7616_s13 }
  0x13   : > { %s9318_s27 = scalar_lea.vmem %s14104_s0, %s7615_s24 }
  0x14   : > { %v416_v0 = vld [vmem:[%s9318_s27] sm:$0xff]  ;;  %v418_v1 = vld [vmem:[%s9318_s27 + $0x10] sm:$0xff]  ;;  %v417_v2 = vld [vmem:[%s9318_s27 + $0x8] sm:$0xff] }
  0x15   : > { %v434_v3 = vsel %vm433_vm0, %v416_v0, 0.0  ;;  %v440_v4 = vsel %vm433_vm0, %v418_v1, 0.0  ;;  %v419_v5 = vld [vmem:[%s9318_s27 + $0x18] sm:$0xff]  ;;  %v9327_v6 = vld [vmem:[%s9318_s27 + $0x20] sm:$0xff]  ;;  %v9330_v7 = vld [vmem:[%s9318_s27 + $0x28] sm:$0xff]  ;;  %v437_v10 = vsel %vm433_vm0, %v417_v2, 0.0 }
  0x16   : > { %435 = vadd.xlane.f32.xlu0 %v434_v3  ;;  %441 = vadd.xlane.f32.xlu1 %v440_v4  ;;  %v9333_v8 = vld [vmem:[%s9318_s27 + $0x30] sm:$0xff]  ;;  %v9336_v9 = vld [vmem:[%s9318_s27 + $0x38] sm:$0xff]  ;;  %v443_v11 = vsel %vm433_vm0, %v419_v5, 0.0  ;;  %v9341_v12 = vld [vmem:[%s9318_s27 + $0x40] sm:$0xff]  ;;  %v446_v14 = vsel %vm433_vm0, %v9327_v6, 0.0  ;;  %v449_v15 = vsel %vm433_vm0, %v9330_v7, 0.0 }
  0x17   : > { %v9344_v13 = vld [vmem:[%s9318_s27 + $0x48] sm:$0xff]  ;;  %v452_v16 = vsel %vm433_vm0, %v9333_v8, 0.0  ;;  %v455_v17 = vsel %vm433_vm0, %v9336_v9, 0.0  ;;  %v458_v18 = vsel %vm433_vm0, %v9341_v12, 0.0  ;;  %v9359_v20 = vld [vmem:[%s9318_s27 + $0x50] sm:$0xff]  ;;  %v9362_v21 = vld [vmem:[%s9318_s27 + $0x58] sm:$0xff] }
  0x18   : > { %v461_v19 = vsel %vm433_vm0, %v9344_v13, 0.0  ;;  %v464_v22 = vsel %vm433_vm0, %v9359_v20, 0.0  ;;  %v467_v23 = vsel %vm433_vm0, %v9362_v21, 0.0  ;;  %v9369_v24 = vld [vmem:[%s9318_s27 + $0x60] sm:$0xff]  ;;  %v9372_v25 = vld [vmem:[%s9318_s27 + $0x68] sm:$0xff]  ;;  %v9379_v28 = vld [vmem:[%s9318_s27 + $0x70] sm:$0xff] }
  0x19   : > { %v470_v26 = vsel %vm433_vm0, %v9369_v24, 0.0  ;;  %v473_v27 = vsel %vm433_vm0, %v9372_v25, 0.0  ;;  %v9382_v29 = vld [vmem:[%s9318_s27 + $0x78] sm:$0xff]  ;;  %v476_v30 = vsel %vm433_vm0, %v9379_v28, 0.0  ;;  %v9389_v32 = vld [vmem:[%s9318_s27 + $0x80] sm:$0xff] }
  0x1a   : > { %438 = vadd.xlane.f32.xlu0 %v437_v10  ;;  %444 = vadd.xlane.f32.xlu1 %v443_v11  ;;  %v479_v31 = vsel %vm433_vm0, %v9382_v29, 0.0  ;;  %v482_v33 = vsel %vm433_vm0, %v9389_v32, 0.0 }
  0x1e   : > { %447 = vadd.xlane.f32.xlu0 %v446_v14  ;;  %450 = vadd.xlane.f32.xlu1 %v449_v15 }
  0x22   : > { %453 = vadd.xlane.f32.xlu0 %v452_v16  ;;  %456 = vadd.xlane.f32.xlu1 %v455_v17 }
  0x26   : > { %459 = vadd.xlane.f32.xlu0 %v458_v18  ;;  %462 = vadd.xlane.f32.xlu1 %v461_v19 }
  0x2a   : > { %465 = vadd.xlane.f32.xlu0 %v464_v22  ;;  %468 = vadd.xlane.f32.xlu1 %v467_v23 }
  0x2e   : > { %471 = vadd.xlane.f32.xlu0 %v470_v26  ;;  %474 = vadd.xlane.f32.xlu1 %v473_v27 }
  0x32   : > { %477 = vadd.xlane.f32.xlu0 %v476_v30  ;;  %480 = vadd.xlane.f32.xlu1 %v479_v31 }
  0x36   : > { %483 = vadd.xlane.f32.xlu0 %v482_v33 }
  0xa3   : > { %v436_v34 = vpop.xlane.xlu0 %435  ;;  %v442_v35 = vpop.xlane.xlu1 %441 }
  0xa4   : > { %v486_v36 = vmul.f32 0.020833334, %v436_v34  ;;  %v488_v37 = vmul.f32 0.020833334, %v442_v35 }
  0xa6   : > { %v9393_v38 = vsub.f32 %v416_v0, %v486_v36  ;;  %v9395_v39 = vsub.f32 %v418_v1, %v488_v37 }
  0xa7   : > { %v439_v40 = vpop.xlane.xlu0 %438  ;;  %v445_v41 = vpop.xlane.xlu1 %444 }
  0xa8   : > { %v487_v42 = vmul.f32 0.020833334, %v439_v40  ;;  %v489_v43 = vmul.f32 0.020833334, %v445_v41  ;;  %v520_v44 = vmul.f32 %v9393_v38, %v9393_v38  ;;  %v522_v45 = vmul.f32 %v9395_v39, %v9395_v39 }
  0xaa   : > { %v9401_v46 = vsub.f32 %v417_v2, %v487_v42  ;;  %v9403_v47 = vsub.f32 %v419_v5, %v489_v43  ;;  %v537_v48 = vsel %vm433_vm0, %v520_v44, 0.0  ;;  %v543_v51 = vsel %vm433_vm0, %v522_v45, 0.0 }
  0xab   : > { %538 = vadd.xlane.f32.xlu1 %v537_v48  ;;  %v448_v49 = vpop.xlane.xlu0 %447  ;;  %v451_v50 = vpop.xlane.xlu1 %450 }
  0xac   : > { %v490_v52 = vmul.f32 0.020833334, %v448_v49  ;;  %v491_v53 = vmul.f32 0.020833334, %v451_v50  ;;  %v521_v54 = vmul.f32 %v9401_v46, %v9401_v46  ;;  %v523_v55 = vmul.f32 %v9403_v47, %v9403_v47 }
  0xae   : > { %v9412_v56 = vsub.f32 %v9327_v6, %v490_v52  ;;  %v9415_v57 = vsub.f32 %v9330_v7, %v491_v53  ;;  %v540_v58 = vsel %vm433_vm0, %v521_v54, 0.0  ;;  %v546_v61 = vsel %vm433_vm0, %v523_v55, 0.0 }
  0xaf   : > { %544 = vadd.xlane.f32.xlu1 %v543_v51  ;;  %541 = vadd.xlane.f32.xlu0 %v540_v58  ;;  %v454_v59 = vpop.xlane.xlu0 %453  ;;  %v457_v60 = vpop.xlane.xlu1 %456 }
  0xb0   : > { %v492_v62 = vmul.f32 0.020833334, %v454_v59  ;;  %v493_v63 = vmul.f32 0.020833334, %v457_v60  ;;  %v524_v0 = vmul.f32 %v9412_v56, %v9412_v56  ;;  %v525_v1 = vmul.f32 %v9415_v57, %v9415_v57 }
  0xb2   : > { %v9424_v2 = vsub.f32 %v9333_v8, %v492_v62  ;;  %v9427_v3 = vsub.f32 %v9336_v9, %v493_v63  ;;  %v549_v4 = vsel %vm433_vm0, %v524_v0, 0.0  ;;  %v552_v7 = vsel %vm433_vm0, %v525_v1, 0.0  ;;  %v8477_v0 = vld [vmem:[%s14110_s6 + $0x10] sm:$0xff]   ;;  %v1131_v1 = vld [vmem:[%s14106_s2] sm:$0xff] }
  0xb3   : > { %547 = vadd.xlane.f32.xlu0 %v546_v61  ;;  %550 = vadd.xlane.f32.xlu1 %v549_v4  ;;  %v460_v5 = vpop.xlane.xlu0 %459  ;;  %v463_v6 = vpop.xlane.xlu1 %462  ;;  %v8475_v61 = vld [vmem:[%s14110_s6] sm:$0xff]   ;;  %v14118_v62 = vmov 0.0   ;;  %v1132_v4 = vld [vmem:[%s14106_s2 + $0x8] sm:$0xff] }
  0xb4   : > { %v494_v10 = vmul.f32 0.020833334, %v460_v5  ;;  %v495_v11 = vmul.f32 0.020833334, %v463_v6  ;;  %v526_v14 = vmul.f32 %v9424_v2, %v9424_v2  ;;  %v527_v8 = vmul.f32 %v9427_v3, %v9427_v3  ;;  %7990 = vmatprep.subr.bf16.mxu0 %v14118_v62  ;;  %7996 = vmatprep.mubr.msk.bf16.mxu0 %vm9235_vm1, %v14118_v62  ;;  %v1133_v6 = vld [vmem:[%s14106_s2 + $0x10] sm:$0xff] }
  0xb5   : > { %7991 = vmatpush3.bf16.msra.mxu0 %v8475_v61  ;;  %v14120_v5 = vmov 0  }
  0xb6   : > { %v9436_v15 = vsub.f32 %v9341_v12, %v494_v10  ;;  %v9439_v9 = vsub.f32 %v9344_v13, %v495_v11  ;;  %v555_v16 = vsel %vm433_vm0, %v526_v14, 0.0  ;;  %v558_v19 = vsel %vm433_vm0, %v527_v8, 0.0  ;;  %7992 = vmatprep.subr.bf16.mxu0 %v14118_v62  ;;  %8473 = vset.pattern.permute.xlu1 %v14120_v5  ;;  %v1134_v10 = vld [vmem:[%s14106_s2 + $0x18] sm:$0xff]  ;;  %v1136_v11 = vld [vmem:[%s14106_s2 + $0x28] sm:$0xff]  ;;  %v1137_v14 = vld [vmem:[%s14106_s2 + $0x30] sm:$0xff] }
  0xb7   : > { %553 = vadd.xlane.f32.xlu0 %v552_v7  ;;  %556 = vadd.xlane.f32.xlu1 %v555_v16  ;;  %v466_v17 = vpop.xlane.xlu0 %465  ;;  %v469_v18 = vpop.xlane.xlu1 %468  ;;  %v1135_v7 = vld [vmem:[%s14106_s2 + $0x20] sm:$0xff]  ;;  %v1138_v16 = vld [vmem:[%s14106_s2 + $0x38] sm:$0xff] }
  0xb8   : > { %v496_v22 = vmul.f32 0.020833334, %v466_v17  ;;  %v497_v23 = vmul.f32 0.020833334, %v469_v18  ;;  %v528_v26 = vmul.f32 %v9436_v15, %v9436_v15  ;;  %v529_v12 = vmul.f32 %v9439_v9, %v9439_v9  ;;  %8474 = vset.pattern.permute.xlu0 %v14120_v5  ;;  %1670 = vmatprep.mubr.bf16.mxu1 %v14120_v5  ;;  %v1139_v8 = vld [vmem:[%s14106_s2 + $0x40] sm:$0xff] }
  0xba   : > { %v9448_v27 = vsub.f32 %v9359_v20, %v496_v22  ;;  %v9451_v13 = vsub.f32 %v9362_v21, %v497_v23  ;;  %v561_v30 = vsel %vm433_vm0, %v528_v26, 0.0  ;;  %v564_v34 = vsel %vm433_vm0, %v529_v12, 0.0 }
  0xbb   : > { %559 = vadd.xlane.f32.xlu0 %v558_v19  ;;  %562 = vadd.xlane.f32.xlu1 %v561_v30  ;;  %v472_v31 = vpop.xlane.xlu0 %471  ;;  %v475_v33 = vpop.xlane.xlu1 %474  ;;  %v14117_v30 = vlaneseq }
  0xbc   : > { %v498_v35 = vmul.f32 0.020833334, %v472_v31  ;;  %v499_v36 = vmul.f32 0.020833334, %v475_v33  ;;  %v530_v37 = vmul.f32 %v9448_v27, %v9448_v27  ;;  %v531_v20 = vmul.f32 %v9451_v13, %v9451_v13 }
  0xbe   : > { %v9460_v40 = vsub.f32 %v9369_v24, %v498_v35  ;;  %v9463_v21 = vsub.f32 %v9372_v25, %v499_v36  ;;  %v567_v41 = vsel %vm433_vm0, %v530_v37, 0.0  ;;  %v570_v44 = vsel %vm433_vm0, %v531_v20, 0.0 }
  0xbf   : > { %565 = vadd.xlane.f32.xlu0 %v564_v34  ;;  %568 = vadd.xlane.f32.xlu1 %v567_v41  ;;  %v478_v42 = vpop.xlane.xlu0 %477  ;;  %v481_v43 = vpop.xlane.xlu1 %480  ;;  %v9537_v37 = vshrl.u32 %v14117_v30, 7  ;;  %v10550_v30 = vld [vmem:[%s14107_s3 + $0x48] sm:$0xff] }
  0xc0   : > { %v500_v45 = vmul.f32 0.020833334, %v478_v42  ;;  %v501_v48 = vmul.f32 0.020833334, %v481_v43  ;;  %v532_v49 = vmul.f32 %v9460_v40, %v9460_v40  ;;  %v533_v24 = vmul.f32 %v9463_v21, %v9463_v21 }
  0xc1   : > { %14274 = vst [vmem:[#allocation2_spill] sm:$0xff] %v9537_v37 }
  0xc2   : > { %v9472_v50 = vsub.f32 %v9379_v28, %v500_v45  ;;  %v9475_v25 = vsub.f32 %v9382_v29, %v501_v48  ;;  %v573_v51 = vsel %vm433_vm0, %v532_v49, 0.0  ;;  %v576_v54 = vsel %vm433_vm0, %v533_v24, 0.0  ;;  %v9545_v48 = vld [vmem:[%s14108_s4] sm:$0xff] }
  0xc3   : > { %571 = vadd.xlane.f32.xlu0 %v570_v44  ;;  %574 = vadd.xlane.f32.xlu1 %v573_v51  ;;  %v484_v52 = vpop.xlane.xlu0 %483  ;;  %v9540_v45 = vsub.s32 0, %v9537_v37 }
  0xc4   : > { %v502_v53 = vmul.f32 0.020833334, %v484_v52  ;;  %v534_v55 = vmul.f32 %v9472_v50, %v9472_v50  ;;  %v535_v58 = vmul.f32 %v9475_v25, %v9475_v25 }
  0xc5   : > { %14275 = vst [vmem:[#allocation3_spill] sm:$0xff] %v9540_v45 }
  0xc6   : > { %v9484_v28 = vsub.f32 %v9389_v32, %v502_v53  ;;  %v579_v29 = vsel %vm433_vm0, %v534_v55, 0.0  ;;  %v582_v59 = vsel %vm433_vm0, %v535_v58, 0.0  ;;  %v8476_v32 = vld [vmem:[%s14110_s6 + $0x8] sm:$0xff]   ;;  %v9550_v55 = vrot.slane %v9545_v48, %v9540_v45 }
  0xc7   : > { %577 = vadd.xlane.f32.xlu0 %v576_v54  ;;  %580 = vadd.xlane.f32.xlu1 %v579_v29  ;;  %v9553_v58 = vsub.s32 1, %v9537_v37 }
  0xc8   : > { %v536_v60 = vmul.f32 %v9484_v28, %v9484_v28  ;;  %7993 = vmatpush3.bf16.msra.mxu0 %v8476_v32 }
  0xc9   : > { %7994 = vmatprep.subr.bf16.mxu0 %v14118_v62  ;;  %14276 = vst [vmem:[#allocation4_spill] sm:$0xff] %v9553_v58 }
  0xca   : > { %v585_v63 = vsel %vm433_vm0, %v536_v60, 0.0 }
  0xcb   : > { %583 = vadd.xlane.f32.xlu0 %v582_v59  ;;  %586 = vadd.xlane.f32.xlu1 %v585_v63 }
  0xcc   : > { %7995 = vmatpush3.bf16.msra.mxu0 %v8477_v0 }
  0xcd   : > { %1969 = vmatprep.subr.bf16.mxu0 %v14120_v5 }
  0xdc   : > { %1150 = vperm.xlu1 %8473, %v1131_v1  }
  0xe0   : > { %1160 = vperm.xlu1 %8473, %v1133_v6  }
  0xe1   : > { %1155 = vperm.xlu0 %8474, %v1132_v4  }
  0xe4   : > { %1165 = vperm.xlu1 %8473, %v1134_v10  }
  0xe5   : > { %1170 = vperm.xlu0 %8474, %v1135_v7  }
  0xe8   : > { %1180 = vperm.xlu1 %8473, %v1137_v14  }
  0xe9   : > { %1175 = vperm.xlu0 %8474, %v1136_v11  }
  0xec   : > { %1185 = vperm.xlu1 %8473, %v1138_v16  }
  0xed   : > { %1190 = vperm.xlu0 %8474, %v1139_v8  }
 0x138   : > { %v539_v17 = vpop.xlane.xlu1 %538 }
 0x139   : > { %v588_v18 = vmul.f32 0.020833334, %v539_v17 }
 0x13b   : > { %v605_v19 = vadd.f32 1e-05, %v588_v18 }
 0x13c   : > { %v545_v22 = vpop.xlane.xlu1 %544  ;;  %v542_v23 = vpop.xlane.xlu0 %541 }
 0x13d   : > { %8505 = vrsqrt.f32 %v605_v19  ;;  %v590_v26 = vmul.f32 0.020833334, %v545_v22  ;;  %v589_v12 = vmul.f32 0.020833334, %v542_v23 }
 0x13f   : > { %v606_v31 = vadd.f32 1e-05, %v589_v12  ;;  %v607_v33 = vadd.f32 1e-05, %v590_v26 }
 0x140   : > { %v551_v34 = vpop.xlane.xlu1 %550  ;;  %v548_v35 = vpop.xlane.xlu0 %547 }
 0x141   : > { %v591_v36 = vmul.f32 0.020833334, %v548_v35  ;;  %8507 = vrsqrt.f32 %v606_v31  ;;  %v592_v41 = vmul.f32 0.020833334, %v551_v34 }
 0x142   : > { %8509 = vrsqrt.f32 %v607_v33 }
 0x143   : > { %v608_v20 = vadd.f32 1e-05, %v591_v36  ;;  %v609_v51 = vadd.f32 1e-05, %v592_v41 }
 0x144   : > { %v557_v42 = vpop.xlane.xlu1 %556  ;;  %v554_v43 = vpop.xlane.xlu0 %553 }
 0x145   : > { %v593_v44 = vmul.f32 0.020833334, %v554_v43  ;;  %8511 = vrsqrt.f32 %v608_v20  ;;  %v594_v60 = vmul.f32 0.020833334, %v557_v42 }
 0x147   : > { %v8506_v49 = vpop.eup %8505  ;;  %v610_v24 = vadd.f32 1e-05, %v593_v44  ;;  %v611_v10 = vadd.f32 1e-05, %v594_v60 }
 0x148   : > { %v563_v52 = vpop.xlane.xlu1 %562  ;;  %v560_v53 = vpop.xlane.xlu0 %559  ;;  %v639_v54 = vmul.f32 %v8506_v49, %v9393_v38  ;;  %v9559_v38 = vrot.slane %v9545_v48, %v9553_v58 }
 0x149   : > { %8513 = vrsqrt.f32 %v610_v24  ;;  %v595_v29 = vmul.f32 0.020833334, %v560_v53  ;;  %v596_v22 = vmul.f32 0.020833334, %v563_v52 }
 0x14a   : > { %8515 = vrsqrt.f32 %v609_v51  ;;  %v660_v32 = vmul.f32 %v9550_v55, %v639_v54 }
 0x14b   : > { %v8508_v59 = vpop.eup %8507  ;;  %v612_v1 = vadd.f32 1e-05, %v595_v29  ;;  %v613_v35 = vadd.f32 1e-05, %v596_v22 }
 0x14c   : > { %v569_v61 = vpop.xlane.xlu1 %568  ;;  %v640_v63 = vmul.f32 %v8508_v59, %v9401_v46  ;;  %v8510_v0 = vpop.eup %8509  ;;  %v681_v14 = vadd.f32 %v9559_v38, %v660_v32 }
 0x14d   : > { %v566_v4 = vpop.xlane.xlu0 %565  ;;  %v641_v46 = vmul.f32 %v8510_v0, %v9395_v39  ;;  %8517 = vrsqrt.f32 %v612_v1  ;;  %v598_v52 = vmul.f32 0.020833334, %v569_v61 }
 0x14e   : > { %v661_v6 = vmul.f32 %v9550_v55, %v640_v63  ;;  %v597_v16 = vmul.f32 0.020833334, %v566_v4  ;;  %8519 = vrsqrt.f32 %v611_v10 }
 0x14f   : > { %v8512_v7 = vpop.eup %8511  ;;  %v662_v12 = vmul.f32 %v9550_v55, %v641_v46  ;;  %v615_v60 = vadd.f32 1e-05, %v598_v52 }
 0x150   : > { %v575_v11 = vpop.xlane.xlu1 %574  ;;  %v682_v8 = vadd.f32 %v9559_v38, %v661_v6  ;;  %v642_v17 = vmul.f32 %v8512_v7, %v9403_v47  ;;  %v614_v33 = vadd.f32 1e-05, %v597_v16 }
 0x151   : > { %v572_v39 = vpop.xlane.xlu0 %571  ;;  %v683_v41 = vadd.f32 %v9559_v38, %v662_v12  ;;  %v600_v6 = vmul.f32 0.020833334, %v575_v11 }
 0x152   : > { %v698_v18 = vpack.c.bf16 %v682_v8, %v681_v14  ;;  %v663_v26 = vmul.f32 %v9550_v55, %v642_v17  ;;  %8521 = vrsqrt.f32 %v614_v33  ;;  %v599_v43 = vmul.f32 0.020833334, %v572_v39 }
 0x153   : > { %v8514_v19 = vpop.eup %8513  ;;  %8523 = vrsqrt.f32 %v613_v35  ;;  %v617_v16 = vadd.f32 1e-05, %v600_v6 }
 0x154   : > { %v581_v23 = vpop.xlane.xlu1 %580  ;;  %7997 = vmatmul.mubr.msk.bf16.vlgmr.msra.gmra.mrb[0].mxu0 %vm433_vm0, %v698_v18  ;;  %v8516_v31 = vpop.eup %8515  ;;  %v684_v34 = vadd.f32 %v9559_v38, %v663_v26  ;;  %v644_v47 = vmul.f32 %v8514_v19, %v9415_v57  ;;  %v616_v54 = vadd.f32 1e-05, %v599_v43 }
 0x155   : > { %8000 = vmatprep.mubr.msk.bf16.mxu0 %vm9235_vm1, %v14118_v62  ;;  %v643_v42 = vmul.f32 %v8516_v31, %v9412_v56  ;;  %v578_v56 = vpop.xlane.xlu0 %577  ;;  %v602_v33 = vmul.f32 0.020833334, %v581_v23 }
 0x156   : > { %v699_v49 = vpack.c.bf16 %v684_v34, %v683_v41  ;;  %v665_v24 = vmul.f32 %v9550_v55, %v644_v47  ;;  %v601_v32 = vmul.f32 0.020833334, %v578_v56 }
 0x157   : > { %v8518_v51 = vpop.eup %8517  ;;  %v664_v57 = vmul.f32 %v9550_v55, %v643_v42  ;;  %v619_v35 = vadd.f32 1e-05, %v602_v33 }
 0x158   : > { %v587_v36 = vpop.xlane.xlu1 %586  ;;  %v8520_v53 = vpop.eup %8519  ;;  %v686_v29 = vadd.f32 %v9559_v38, %v665_v24  ;;  %v646_v59 = vmul.f32 %v8518_v51, %v9427_v3  ;;  %v618_v14 = vadd.f32 1e-05, %v601_v32 }
 0x159   : > { %v604_v20 = vmul.f32 0.020833334, %v587_v36  ;;  %v685_v63 = vadd.f32 %v9559_v38, %v664_v57  ;;  %v645_v61 = vmul.f32 %v8520_v53, %v9424_v2  ;;  %v584_v8 = vpop.xlane.xlu0 %583 }
 0x15a   : > { %v667_v1 = vmul.f32 %v9550_v55, %v646_v59  ;;  %v603_v19 = vmul.f32 0.020833334, %v584_v8 }
 0x15b   : > { %v621_v44 = vadd.f32 1e-05, %v604_v20  ;;  %v700_v0 = vpack.c.bf16 %v686_v29, %v685_v63  ;;  %v666_v7 = vmul.f32 %v9550_v55, %v645_v61 }
 0x15c   : > { %8001 = vmatmul.mubr.msk.bf16.gmra.mrb[4].mxu0 %vm433_vm0, %v699_v49  ;;  %v8522_v4 = vpop.eup %8521  ;;  %v688_v2 = vadd.f32 %v9559_v38, %v667_v1  ;;  %v620_v34 = vadd.f32 1e-05, %v603_v19 }
 0x15d   : > { %8525 = vrsqrt.f32 %v621_v44  ;;  %8004 = vmatprep.mubr.msk.bf16.mxu0 %vm9235_vm1, %v14118_v62  ;;  %v8524_v10 = vpop.eup %8523  ;;  %v648_v46 = vmul.f32 %v8522_v4, %v9439_v9  ;;  %v687_v11 = vadd.f32 %v9559_v38, %v666_v7 }
 0x15e   : > { %8527 = vrsqrt.f32 %v616_v54  ;;  %v647_v18 = vmul.f32 %v8524_v10, %v9436_v15 }
 0x15f   : > { %8529 = vrsqrt.f32 %v615_v60  ;;  %v701_v26 = vpack.c.bf16 %v688_v2, %v687_v11  ;;  %v669_v12 = vmul.f32 %v9550_v55, %v648_v46 }
 0x160   : > { %8531 = vrsqrt.f32 %v618_v14  ;;  %v668_v9 = vmul.f32 %v9550_v55, %v647_v18 }
 0x161   : > { %8533 = vrsqrt.f32 %v617_v16  ;;  %v690_v15 = vadd.f32 %v9559_v38, %v669_v12 }
 0x162   : > { %v689_v36 = vadd.f32 %v9559_v38, %v668_v9  ;;  %8535 = vrsqrt.f32 %v620_v34 }
 0x163   : > { %8537 = vrsqrt.f32 %v619_v35 }
 0x164   : > { %8005 = vmatmul.mubr.msk.bf16.gmra.mrb[8].mxu0 %vm433_vm0, %v700_v0  ;;  %v702_v20 = vpack.c.bf16 %v690_v15, %v689_v36 }
 0x165   : > { %8008 = vmatprep.mubr.msk.bf16.mxu0 %vm9235_vm1, %v14118_v62 }
 0x167   : > { %v8526_v3 = vpop.eup %8525 }
 0x168   : > { %v655_v17 = vmul.f32 %v8526_v3, %v9484_v28  ;;  %v8528_v31 = vpop.eup %8527 }
 0x169   : > { %v8530_v28 = vpop.eup %8529  ;;  %v650_v47 = vmul.f32 %v8528_v31, %v9451_v13 }
 0x16a   : > { %v676_v22 = vmul.f32 %v9550_v55, %v655_v17  ;;  %v649_v23 = vmul.f32 %v8530_v28, %v9448_v27  ;;  %v8532_v42 = vpop.eup %8531 }
 0x16b   : > { %v671_v41 = vmul.f32 %v9550_v55, %v650_v47  ;;  %v8534_v44 = vpop.eup %8533  ;;  %v652_v49 = vmul.f32 %v8532_v42, %v9463_v21 }
 0x16c   : > { %v697_v39 = vadd.f32 %v9559_v38, %v676_v22  ;;  %8009 = vmatmul.mubr.msk.bf16.gmra.mrb[12].mxu0 %vm433_vm0, %v701_v26  ;;  %v670_v43 = vmul.f32 %v9550_v55, %v649_v23  ;;  %v651_v24 = vmul.f32 %v8534_v44, %v9460_v40  ;;  %v8536_v57 = vpop.eup %8535 }
 0x16d   : > { %8012 = vmatprep.mubr.msk.bf16.mxu0 %vm9235_vm1, %v14118_v62  ;;  %v692_v13 = vadd.f32 %v9559_v38, %v671_v41  ;;  %v673_v52 = vmul.f32 %v9550_v55, %v652_v49  ;;  %v8538_v54 = vpop.eup %8537  ;;  %v654_v21 = vmul.f32 %v8536_v57, %v9475_v25  ;;  %v9636_v25 = vsub.s32 2, %v9537_v37 }
 0x16e   : > { %v691_v27 = vadd.f32 %v9559_v38, %v670_v43  ;;  %v672_v53 = vmul.f32 %v9550_v55, %v651_v24  ;;  %v653_v40 = vmul.f32 %v8538_v54, %v9472_v50  ;;  %v706_v50 = vpack.c.bf16 %v697_v39, %v697_v39 }
 0x16f   : > { %v694_v56 = vadd.f32 %v9559_v38, %v673_v52  ;;  %v675_v60 = vmul.f32 %v9550_v55, %v654_v21  ;;  %14277 = vst [vmem:[#allocation5_spill] sm:$0xff] %v9636_v25 }
 0x170   : > { %v703_v51 = vpack.c.bf16 %v692_v13, %v691_v27  ;;  %v693_v29 = vadd.f32 %v9559_v38, %v672_v53  ;;  %v674_v63 = vmul.f32 %v9550_v55, %v653_v40  ;;  %v9640_v55 = vrot.slane %v9545_v48, %v9636_v25 }
 0x171   : > { %v696_v61 = vadd.f32 %v9559_v38, %v675_v60 }
 0x172   : > { %v704_v59 = vpack.c.bf16 %v694_v56, %v693_v29  ;;  %v695_v32 = vadd.f32 %v9559_v38, %v674_v63 }
 0x174   : > { %8013 = vmatmul.mubr.msk.bf16.gmra.mrb[16].mxu0 %vm433_vm0, %v702_v20  ;;  %v705_v0 = vpack.c.bf16 %v696_v61, %v695_v32 }
 0x175   : > { %8016 = vmatprep.mubr.msk.bf16.mxu0 %vm9235_vm1, %v14118_v62 }
 0x17c   : > { %8017 = vmatmul.mubr.msk.bf16.gmra.mrb[20].mxu0 %vm433_vm0, %v703_v51 }
 0x17d   : > { %8020 = vmatprep.mubr.msk.bf16.mxu0 %vm9235_vm1, %v14118_v62 }
 0x184   : > { %8021 = vmatmul.mubr.msk.bf16.gmra.mrb[24].mxu0 %vm433_vm0, %v704_v59 }
 0x185   : > { %8024 = vmatprep.mubr.msk.bf16.mxu0 %vm9235_vm1, %v14118_v62 }
 0x18c   : > { %8025 = vmatmul.mubr.msk.bf16.gmra.mrb[28].mxu0 %vm433_vm0, %v705_v0 }
 0x18d   : > { %8028 = vmatprep.mubr.msk.bf16.mxu0 %vm9235_vm1, %v14118_v62 }
 0x194   : > { %8029 = vmatmul.mubr.msk.bf16.gmra.mrb[32].mxu0 %vm433_vm0, %v706_v50 }
 0x195   : > { %2001 = vmatprep.mubr.bf16.mxu0 %v14120_v5 }
 0x227   : > { %v796_v1 = vpop.f32.mrb[0].mxu0 }
 0x228   : > { %v7998_v38 = vpop.f32.mrb[1].mxu0  ;;  %v9643_v4 = vadd.f32 %v796_v1, %v9640_v55 }
 0x229   : > { %v799_v6 = vpop.f32.mrb[2].mxu0 }
 0x22a   : > { %v7999_v7 = vpop.f32.mrb[3].mxu0  ;;  %v867_v10 = vsel %vm866_vm2, %v9643_v4, 0.0  ;;  %v9648_v14 = vadd.f32 %v799_v6, %v9640_v55 }
 0x22b   : > { %868 = vadd.xlane.f32.xlu0 %v867_v10 }
 0x22c   : > { %v870_v3 = vsel %vm866_vm2, %v9648_v14, 0.0 }
 0x22d   : > { %871 = vadd.xlane.f32.xlu1 %v870_v3 }
 0x22f   : > { %v804_v8 = vpop.f32.mrb[4].mxu0 }
 0x230   : > { %v8002_v2 = vpop.f32.mrb[5].mxu0  ;;  %v9653_v46 = vadd.f32 %v804_v8, %v9640_v55 }
 0x231   : > { %v807_v16 = vpop.f32.mrb[6].mxu0 }
 0x232   : > { %v8003_v17 = vpop.f32.mrb[7].mxu0  ;;  %v873_v11 = vsel %vm866_vm2, %v9653_v46, 0.0  ;;  %v9658_v18 = vadd.f32 %v807_v16, %v9640_v55 }
 0x233   : > { %874 = vadd.xlane.f32.xlu0 %v873_v11 }
 0x234   : > { %v876_v19 = vsel %vm866_vm2, %v9658_v18, 0.0 }
 0x235   : > { %877 = vadd.xlane.f32.xlu1 %v876_v19 }
 0x237   : > { %v812_v22 = vpop.f32.mrb[8].mxu0 }
 0x238   : > { %v8006_v26 = vpop.f32.mrb[9].mxu0  ;;  %v9663_v12 = vadd.f32 %v812_v22, %v9640_v55 }
 0x239   : > { %v815_v31 = vpop.f32.mrb[10].mxu0  ;;  %v1141_v26 = vld [vmem:[%s14106_s2 + $0x50] sm:$0xff] }
 0x23a   : > { %v8007_v33 = vpop.f32.mrb[11].mxu0  ;;  %v879_v39 = vsel %vm866_vm2, %v9663_v12, 0.0  ;;  %v9668_v9 = vadd.f32 %v815_v31, %v9640_v55  ;;  %v1142_v31 = vld [vmem:[%s14106_s2 + $0x58] sm:$0xff] }
 0x23b   : > { %880 = vadd.xlane.f32.xlu0 %v879_v39  ;;  %v1143_v33 = vld [vmem:[%s14106_s2 + $0x60] sm:$0xff]  ;;  %v1144_v39 = vld [vmem:[%s14106_s2 + $0x68] sm:$0xff] }
 0x23c   : > { %v882_v28 = vsel %vm866_vm2, %v9668_v9, 0.0 }
 0x23d   : > { %883 = vadd.xlane.f32.xlu1 %v882_v28 }
 0x23f   : > { %v820_v34 = vpop.f32.mrb[12].mxu0 }
 0x240   : > { %v8010_v15 = vpop.f32.mrb[13].mxu0  ;;  %v9673_v47 = vadd.f32 %v820_v34, %v9640_v55 }
 0x241   : > { %v823_v35 = vpop.f32.mrb[14].mxu0  ;;  %v9742_v15 = vpop.permute.xlu1 %1150 }
 0x242   : > { %v8011_v36 = vpop.f32.mrb[15].mxu0  ;;  %v885_v23 = vsel %vm866_vm2, %v9673_v47, 0.0  ;;  %v9678_v20 = vadd.f32 %v823_v35, %v9640_v55  ;;  %v9744_v35 = vpop.permute.xlu0 %1155 }
 0x243   : > { %886 = vadd.xlane.f32.xlu0 %v885_v23 }
 0x244   : > { %v888_v41 = vsel %vm866_vm2, %v9678_v20, 0.0 }
 0x245   : > { %889 = vadd.xlane.f32.xlu1 %v888_v41  ;;  %v9746_v36 = vpop.permute.xlu1 %1160 }
 0x246   : > { %v9748_v23 = vpop.permute.xlu0 %1170 }
 0x247   : > { %v828_v42 = vpop.f32.mrb[16].mxu0 }
 0x248   : > { %v8014_v43 = vpop.f32.mrb[17].mxu0  ;;  %v9683_v44 = vadd.f32 %v828_v42, %v9640_v55 }
 0x249   : > { %v831_v13 = vpop.f32.mrb[18].mxu0  ;;  %v9750_v41 = vpop.permute.xlu1 %1165 }
 0x24a   : > { %v8015_v49 = vpop.f32.mrb[19].mxu0  ;;  %v891_v27 = vsel %vm866_vm2, %v9683_v44, 0.0  ;;  %v9688_v24 = vadd.f32 %v831_v13, %v9640_v55  ;;  %v9752_v42 = vpop.permute.xlu0 %1175 }
 0x24b   : > { %892 = vadd.xlane.f32.xlu0 %v891_v27 }
 0x24c   : > { %v894_v51 = vsel %vm866_vm2, %v9688_v24, 0.0 }
 0x24d   : > { %895 = vadd.xlane.f32.xlu1 %v894_v51  ;;  %v9754_v43 = vpop.permute.xlu1 %1180 }
 0x24e   : > { %v9756_v13 = vpop.permute.xlu0 %1190 }
 0x24f   : > { %v836_v52 = vpop.f32.mrb[20].mxu0 }
 0x250   : > { %v8018_v57 = vpop.f32.mrb[21].mxu0  ;;  %v9693_v53 = vadd.f32 %v836_v52, %v9640_v55 }
 0x251   : > { %v839_v54 = vpop.f32.mrb[22].mxu0  ;;  %v9758_v49 = vpop.permute.xlu1 %1185 }
 0x252   : > { %v8019_v56 = vpop.f32.mrb[23].mxu0  ;;  %v897_v21 = vsel %vm866_vm2, %v9693_v53, 0.0  ;;  %v9698_v29 = vadd.f32 %v839_v54, %v9640_v55 }
 0x253   : > { %898 = vadd.xlane.f32.xlu0 %v897_v21 }
 0x254   : > { %v900_v40 = vsel %vm866_vm2, %v9698_v29, 0.0 }
 0x255   : > { %901 = vadd.xlane.f32.xlu1 %v900_v40 }
 0x257   : > { %v844_v59 = vpop.f32.mrb[24].mxu0 }
 0x258   : > { %v8022_v60 = vpop.f32.mrb[25].mxu0  ;;  %v9703_v63 = vadd.f32 %v844_v59, %v9640_v55 }
 0x259   : > { %v847_v61 = vpop.f32.mrb[26].mxu0 }
 0x25a   : > { %v8023_v32 = vpop.f32.mrb[27].mxu0  ;;  %v903_v0 = vsel %vm866_vm2, %v9703_v63, 0.0  ;;  %v9708_v50 = vadd.f32 %v847_v61, %v9640_v55 }
 0x25b   : > { %904 = vadd.xlane.f32.xlu0 %v903_v0 }
 0x25c   : > { %v906_v1 = vsel %vm866_vm2, %v9708_v50, 0.0 }
 0x25d   : > { %907 = vadd.xlane.f32.xlu1 %v906_v1 }
 0x25f   : > { %v852_v38 = vpop.f32.mrb[28].mxu0 }
 0x260   : > { %v8026_v6 = vpop.f32.mrb[29].mxu0  ;;  %v9713_v7 = vadd.f32 %v852_v38, %v9640_v55 }
 0x261   : > { %v855_v10 = vpop.f32.mrb[30].mxu0 }
 0x262   : > { %v8027_v3 = vpop.f32.mrb[31].mxu0  ;;  %v909_v8 = vsel %vm866_vm2, %v9713_v7, 0.0  ;;  %v9718_v2 = vadd.f32 %v855_v10, %v9640_v55 }
 0x263   : > { %910 = vadd.xlane.f32.xlu0 %v909_v8 }
 0x264   : > { %v912_v34 = vsel %vm866_vm2, %v9718_v2, 0.0 }
 0x267   : > { %v860_v16 = vpop.f32.mrb[32].mxu0 }
 0x268   : > { %v8030_v17 = vpop.f32.mrb[33].mxu0  ;;  %v9721_v11 = vadd.f32 %v860_v16, %v9640_v55  ;;  %v1140_v55 = vld [vmem:[%s14106_s2 + $0x48] sm:$0xff] }
 0x269   : > { %v863_v19 = vpop.f32.mrb[34].mxu0 }
 0x26a   : > { %v8031_v22 = vpop.f32.mrb[35].mxu0  ;;  %v915_v28 = vsel %vm866_vm2, %v9721_v11, 0.0 }
 0x26e   : > { %1200 = vperm.xlu1 %8473, %v1141_v26  }
 0x272   : > { %1205 = vperm.xlu1 %8473, %v1142_v31  }
 0x276   : > { %1210 = vperm.xlu1 %8473, %v1143_v33  }
 0x279   : > { %1195 = vperm.xlu0 %8474, %v1140_v55  }
 0x27a   : > { %1215 = vperm.xlu1 %8473, %v1144_v39  }
 0x298   : > { %916 = vadd.xlane.f32.xlu0 %v915_v28 }
 0x29e   : > { %913 = vadd.xlane.f32.xlu1 %v912_v34 }
 0x2b8   : > { %v869_v27 = vpop.xlane.xlu0 %868 }
 0x2b9   : > { %v919_v51 = vmul.f32 0.0625, %v869_v27 }
 0x2ba   : > { %v872_v52 = vpop.xlane.xlu1 %871 }
 0x2bb   : > { %v9761_v57 = vsub.f32 %v9643_v4, %v919_v51  ;;  %v920_v54 = vmul.f32 0.0625, %v872_v52 }
 0x2bd   : > { %v9764_v56 = vsub.f32 %v9648_v14, %v920_v54  ;;  %v953_v21 = vmul.f32 %v9761_v57, %v9761_v57 }
 0x2bf   : > { %v970_v40 = vsel %vm866_vm2, %v953_v21, 0.0  ;;  %v954_v59 = vmul.f32 %v9764_v56, %v9764_v56 }
 0x2c0   : > { %971 = vadd.xlane.f32.xlu1 %v970_v40  ;;  %v875_v60 = vpop.xlane.xlu0 %874 }
 0x2c1   : > { %v921_v61 = vmul.f32 0.0625, %v875_v60  ;;  %v973_v32 = vsel %vm866_vm2, %v954_v59, 0.0 }
 0x2c2   : > { %v878_v0 = vpop.xlane.xlu1 %877  ;;  %974 = vadd.xlane.f32.xlu0 %v973_v32 }
 0x2c3   : > { %v9773_v4 = vsub.f32 %v9653_v46, %v921_v61  ;;  %v922_v14 = vmul.f32 0.0625, %v878_v0 }
 0x2c5   : > { %v9776_v1 = vsub.f32 %v9658_v18, %v922_v14  ;;  %v955_v38 = vmul.f32 %v9773_v4, %v9773_v4 }
 0x2c7   : > { %v976_v6 = vsel %vm866_vm2, %v955_v38, 0.0  ;;  %v956_v10 = vmul.f32 %v9776_v1, %v9776_v1 }
 0x2c8   : > { %977 = vadd.xlane.f32.xlu1 %v976_v6  ;;  %v881_v3 = vpop.xlane.xlu0 %880 }
 0x2c9   : > { %v923_v8 = vmul.f32 0.0625, %v881_v3  ;;  %v979_v16 = vsel %vm866_vm2, %v956_v10, 0.0 }
 0x2ca   : > { %v884_v17 = vpop.xlane.xlu1 %883  ;;  %980 = vadd.xlane.f32.xlu0 %v979_v16 }
 0x2cb   : > { %v9785_v46 = vsub.f32 %v9663_v12, %v923_v8  ;;  %v924_v18 = vmul.f32 0.0625, %v884_v17 }
 0x2cd   : > { %v9788_v19 = vsub.f32 %v9668_v9, %v924_v18  ;;  %v957_v22 = vmul.f32 %v9785_v46, %v9785_v46 }
 0x2cf   : > { %v982_v26 = vsel %vm866_vm2, %v957_v22, 0.0  ;;  %v958_v31 = vmul.f32 %v9788_v19, %v9788_v19  ;;  %v1145_v22 = vld [vmem:[%s14106_s2 + $0x70] sm:$0xff] }
 0x2d0   : > { %983 = vadd.xlane.f32.xlu1 %v982_v26  ;;  %v887_v33 = vpop.xlane.xlu0 %886 }
 0x2d1   : > { %v925_v55 = vmul.f32 0.0625, %v887_v33  ;;  %v985_v39 = vsel %vm866_vm2, %v958_v31, 0.0 }
 0x2d2   : > { %v890_v28 = vpop.xlane.xlu1 %889  ;;  %986 = vadd.xlane.f32.xlu0 %v985_v39 }
 0x2d3   : > { %v9797_v12 = vsub.f32 %v9673_v47, %v925_v55  ;;  %v926_v9 = vmul.f32 0.0625, %v890_v28 }
 0x2d5   : > { %v9800_v34 = vsub.f32 %v9678_v20, %v926_v9  ;;  %v959_v27 = vmul.f32 %v9797_v12, %v9797_v12 }
 0x2d7   : > { %v988_v51 = vsel %vm866_vm2, %v959_v27, 0.0  ;;  %v960_v52 = vmul.f32 %v9800_v34, %v9800_v34 }
 0x2d8   : > { %989 = vadd.xlane.f32.xlu1 %v988_v51  ;;  %v893_v54 = vpop.xlane.xlu0 %892 }
 0x2d9   : > { %v927_v21 = vmul.f32 0.0625, %v893_v54  ;;  %v991_v40 = vsel %vm866_vm2, %v960_v52, 0.0 }
 0x2da   : > { %v896_v59 = vpop.xlane.xlu1 %895  ;;  %992 = vadd.xlane.f32.xlu0 %v991_v40 }
 0x2db   : > { %v9809_v47 = vsub.f32 %v9683_v44, %v927_v21  ;;  %v928_v20 = vmul.f32 0.0625, %v896_v59 }
 0x2dd   : > { %v9812_v60 = vsub.f32 %v9688_v24, %v928_v20  ;;  %v961_v61 = vmul.f32 %v9809_v47, %v9809_v47 }
 0x2df   : > { %v994_v32 = vsel %vm866_vm2, %v961_v61, 0.0  ;;  %v962_v0 = vmul.f32 %v9812_v60, %v9812_v60 }
 0x2e0   : > { %995 = vadd.xlane.f32.xlu1 %v994_v32  ;;  %v899_v44 = vpop.xlane.xlu0 %898 }
 0x2e1   : > { %v997_v14 = vsel %vm866_vm2, %v962_v0, 0.0  ;;  %v929_v26 = vmul.f32 0.0625, %v899_v44 }
 0x2e2   : > { %v902_v38 = vpop.xlane.xlu1 %901  ;;  %998 = vadd.xlane.f32.xlu0 %v997_v14  ;;  %v1147_v14 = vld [vmem:[%s14106_s2 + $0x80] sm:$0xff] }
 0x2e3   : > { %v930_v6 = vmul.f32 0.0625, %v902_v38  ;;  %v9836_v33 = vsub.f32 %v9693_v53, %v929_v26 }
 0x2e5   : > { %v9821_v10 = vsub.f32 %v9698_v29, %v930_v6  ;;  %v963_v9 = vmul.f32 %v9836_v33, %v9836_v33 }
 0x2e7   : > { %v964_v24 = vmul.f32 %v9821_v10, %v9821_v10  ;;  %v1000_v51 = vsel %vm866_vm2, %v963_v9, 0.0  ;;  %v9882_v9 = vsub.s32 3, %v9537_v37 }
 0x2e8   : > { %v905_v3 = vpop.xlane.xlu0 %904 }
 0x2e9   : > { %v931_v8 = vmul.f32 0.0625, %v905_v3  ;;  %v1003_v16 = vsel %vm866_vm2, %v964_v24, 0.0  ;;  %14278 = vst [vmem:[#allocation6_spill] sm:$0xff] %v9882_v9 }
 0x2ea   : > { %1004 = vadd.xlane.f32.xlu0 %v1003_v16  ;;  %v908_v31 = vpop.xlane.xlu1 %907 }
 0x2eb   : > { %v9827_v17 = vsub.f32 %v9703_v63, %v931_v8  ;;  %v932_v55 = vmul.f32 0.0625, %v908_v31 }
 0x2ed   : > { %v965_v18 = vmul.f32 %v9827_v17, %v9827_v17  ;;  %v9839_v63 = vsub.f32 %v9708_v50, %v932_v55 }
 0x2ee   : > { %v9849_v54 = vpop.permute.xlu1 %1200 }
 0x2ef   : > { %v1006_v29 = vsel %vm866_vm2, %v965_v18, 0.0  ;;  %v966_v52 = vmul.f32 %v9839_v63, %v9839_v63 }
 0x2f0   : > { %1007 = vadd.xlane.f32.xlu0 %v1006_v29  ;;  %v911_v39 = vpop.xlane.xlu0 %910 }
 0x2f1   : > { %1220 = vperm.xlu1 %8473, %v1145_v22   ;;  %v933_v28 = vmul.f32 0.0625, %v911_v39  ;;  %v1009_v53 = vsel %vm866_vm2, %v966_v52, 0.0 }
 0x2f2   : > { %v9854_v21 = vpop.permute.xlu1 %1205 }
 0x2f3   : > { %v9844_v27 = vsub.f32 %v9713_v7, %v933_v28 }
 0x2f5   : > { %v967_v50 = vmul.f32 %v9844_v27, %v9844_v27 }
 0x2f6   : > { %v9857_v7 = vpop.permute.xlu1 %1210 }
 0x2f7   : > { %v1012_v40 = vsel %vm866_vm2, %v967_v50, 0.0 }
 0x2f8   : > { %v9859_v59 = vpop.permute.xlu0 %1195 }
 0x2fa   : > { %v9861_v20 = vpop.permute.xlu1 %1215 }
 0x315   : > { %1001 = vadd.xlane.f32.xlu1 %v1000_v51 }
 0x319   : > { %1010 = vadd.xlane.f32.xlu1 %v1009_v53  ;;  %v9885_v53 = vsub.s32 4, %v9537_v37  ;;  %v10567_v37 = vld [vmem:[%s14107_s3 + $0x20] sm:$0xff] }
 0x31b   : > { %14279 = vst [vmem:[#allocation7_spill] sm:$0xff] %v9885_v53 }
 0x31d   : > { %1013 = vadd.xlane.f32.xlu1 %v1012_v40  ;;  %v9889_v40 = vrot.slane %v9545_v48, %v9882_v9 }
 0x325   : > { %v917_v61 = vpop.xlane.xlu0 %916 }
 0x326   : > { %v935_v32 = vmul.f32 0.0625, %v917_v61 }
 0x328   : > { %v9867_v6 = vsub.f32 %v9721_v11, %v935_v32  ;;  %v1146_v11 = vld [vmem:[%s14106_s2 + $0x78] sm:$0xff] }
 0x32a   : > { %v969_v8 = vmul.f32 %v9867_v6, %v9867_v6 }
 0x32b   : > { %v914_v0 = vpop.xlane.xlu1 %913 }
 0x32c   : > { %v934_v38 = vmul.f32 0.0625, %v914_v0  ;;  %v1018_v16 = vsel %vm866_vm2, %v969_v8, 0.0 }
 0x32e   : > { %v9870_v44 = vsub.f32 %v9718_v2, %v934_v38  ;;  %1230 = vperm.xlu1 %8473, %v1147_v14   ;;  %v9894_v14 = vrot.slane %v9545_v48, %v9885_v53  ;;  %v1250_v48 = vld [vmem:[%s14105_s1] sm:$0xff] }
 0x330   : > { %v968_v24 = vmul.f32 %v9870_v44, %v9870_v44 }
 0x332   : > { %v1015_v3 = vsel %vm866_vm2, %v968_v24, 0.0 }
 0x333   : > { %1016 = vadd.xlane.f32.xlu0 %v1015_v3 }
 0x337   : > { %1019 = vadd.xlane.f32.xlu0 %v1018_v16 }
 0x34d   : > { %v972_v18 = vpop.xlane.xlu1 %971  ;;  %1225 = vperm.xlu0 %8474, %v1146_v11  }
 0x34e   : > { %v1021_v2 = vmul.f32 0.0625, %v972_v18 }
 0x34f   : > { %v975_v22 = vpop.xlane.xlu0 %974 }
 0x350   : > { %v1038_v29 = vadd.f32 1e-05, %v1021_v2  ;;  %v1022_v26 = vmul.f32 0.0625, %v975_v22 }
 0x352   : > { %8539 = vrsqrt.f32 %v1038_v29  ;;  %v1039_v31 = vadd.f32 1e-05, %v1022_v26 }
 0x354   : > { %8541 = vrsqrt.f32 %v1039_v31 }
 0x355   : > { %v978_v55 = vpop.xlane.xlu1 %977 }
 0x356   : > { %v1023_v39 = vmul.f32 0.0625, %v978_v55 }
 0x357   : > { %v981_v28 = vpop.xlane.xlu0 %980 }
 0x358   : > { %v1040_v51 = vadd.f32 1e-05, %v1023_v39  ;;  %v1024_v52 = vmul.f32 0.0625, %v981_v28 }
 0x35a   : > { %8543 = vrsqrt.f32 %v1040_v51  ;;  %v1041_v50 = vadd.f32 1e-05, %v1024_v52 }
 0x35c   : > { %v8540_v61 = vpop.eup %8539  ;;  %8545 = vrsqrt.f32 %v1041_v50 }
 0x35d   : > { %v984_v32 = vpop.xlane.xlu1 %983  ;;  %v1072_v0 = vmul.f32 %v8540_v61, %v9761_v57 }
 0x35e   : > { %v8542_v38 = vpop.eup %8541  ;;  %v1025_v24 = vmul.f32 0.0625, %v984_v32 }
 0x35f   : > { %v987_v3 = vpop.xlane.xlu0 %986  ;;  %v1093_v8 = vmul.f32 %v9889_v40, %v1072_v0  ;;  %v1073_v16 = vmul.f32 %v8542_v38, %v9764_v56  ;;  %v1251_v56 = vld [vmem:[%s14105_s1 + $0x8] sm:$0xff] }
 0x360   : > { %v1042_v11 = vadd.f32 1e-05, %v1025_v24  ;;  %v1026_v18 = vmul.f32 0.0625, %v987_v3 }
 0x361   : > { %v1114_v2 = vadd.f32 %v9894_v14, %v1093_v8  ;;  %v1094_v22 = vmul.f32 %v9889_v40, %v1073_v16  ;;  %v1252_v16 = vld [vmem:[%s14105_s1 + $0x10] sm:$0xff] }
 0x362   : > { %8547 = vrsqrt.f32 %v1042_v11  ;;  %v1043_v29 = vadd.f32 1e-05, %v1026_v18 }
 0x363   : > { %v1233_v57 = vmul.f32 %v9742_v15, %v1114_v2  ;;  %v1115_v26 = vadd.f32 %v9894_v14, %v1094_v22  ;;  %v1253_v22 = vld [vmem:[%s14105_s1 + $0x18] sm:$0xff] }
 0x364   : > { %v8544_v31 = vpop.eup %8543  ;;  %8549 = vrsqrt.f32 %v1043_v29 }
 0x365   : > { %v990_v55 = vpop.xlane.xlu1 %989  ;;  %v9908_v39 = vadd.f32 %v1250_v48, %v1233_v57  ;;  %v1234_v28 = vmul.f32 %v9744_v35, %v1115_v26  ;;  %v1074_v51 = vmul.f32 %v8544_v31, %v9773_v4 }
 0x366   : > { %v8546_v52 = vpop.eup %8545  ;;  %v1027_v50 = vmul.f32 0.0625, %v990_v55 }
 0x367   : > { %14280 = vst [vmem:[#allocation8_spill] sm:$0xff] %v9908_v39  ;;  %v993_v61 = vpop.xlane.xlu0 %992  ;;  %v1319_v15 = vsel %vm866_vm2, %v9908_v39, 0.0  ;;  %v9914_v32 = vadd.f32 %v1251_v56, %v1234_v28  ;;  %v1095_v0 = vmul.f32 %v9889_v40, %v1074_v51  ;;  %v1075_v38 = vmul.f32 %v8546_v52, %v9776_v1 }
 0x368   : > { %v1044_v24 = vadd.f32 1e-05, %v1027_v50  ;;  %v1028_v3 = vmul.f32 0.0625, %v993_v61  ;;  %1320 = vadd.xlane.f32.xlu1 %v1319_v15 }
 0x369   : > { %14281 = vst [vmem:[#allocation9_spill] sm:$0xff] %v9914_v32  ;;  %v1116_v8 = vadd.f32 %v9894_v14, %v1095_v0  ;;  %v1096_v35 = vmul.f32 %v9889_v40, %v1075_v38  ;;  %v1322_v11 = vsel %vm866_vm2, %v9914_v32, 0.0  ;;  %v1254_v0 = vld [vmem:[%s14105_s1 + $0x20] sm:$0xff] }
 0x36a   : > { %8551 = vrsqrt.f32 %v1044_v24  ;;  %v1045_v4 = vadd.f32 1e-05, %v1028_v3 }
 0x36b   : > { %v1235_v18 = vmul.f32 %v9746_v36, %v1116_v8  ;;  %v1117_v1 = vadd.f32 %v9894_v14, %v1096_v35  ;;  %v1255_v8 = vld [vmem:[%s14105_s1 + $0x28] sm:$0xff] }
 0x36c   : > { %v8548_v2 = vpop.eup %8547  ;;  %8553 = vrsqrt.f32 %v1045_v4  ;;  %1323 = vadd.xlane.f32.xlu0 %v1322_v11 }
 0x36d   : > { %v996_v29 = vpop.xlane.xlu1 %995  ;;  %v9930_v48 = vadd.f32 %v1252_v16, %v1235_v18  ;;  %v1236_v57 = vmul.f32 %v9750_v41, %v1117_v1  ;;  %v1076_v26 = vmul.f32 %v8548_v2, %v9785_v46 }
 0x36e   : > { %v8550_v31 = vpop.eup %8549  ;;  %v1029_v56 = vmul.f32 0.0625, %v996_v29 }
 0x36f   : > { %14282 = vst [vmem:[#allocation10_spill] sm:$0xff] %v9930_v48  ;;  %v999_v55 = vpop.xlane.xlu0 %998  ;;  %v1325_v36 = vsel %vm866_vm2, %v9930_v48, 0.0  ;;  %v9936_v28 = vadd.f32 %v1253_v22, %v1236_v57  ;;  %v1097_v51 = vmul.f32 %v9889_v40, %v1076_v26  ;;  %v1077_v52 = vmul.f32 %v8550_v31, %v9788_v19  ;;  %v1256_v31 = vld [vmem:[%s14105_s1 + $0x30] sm:$0xff] }
 0x370   : > { %v1046_v50 = vadd.f32 1e-05, %v1029_v56  ;;  %v1030_v61 = vmul.f32 0.0625, %v999_v55  ;;  %1326 = vadd.xlane.f32.xlu1 %v1325_v36  ;;  %v1257_v36 = vld [vmem:[%s14105_s1 + $0x38] sm:$0xff] }
 0x371   : > { %14283 = vst [vmem:[#allocation11_spill] sm:$0xff] %v9936_v28  ;;  %v1118_v15 = vadd.f32 %v9894_v14, %v1097_v51  ;;  %v1098_v41 = vmul.f32 %v9889_v40, %v1077_v52  ;;  %v1328_v38 = vsel %vm866_vm2, %v9936_v28, 0.0 }
 0x372   : > { %8555 = vrsqrt.f32 %v1046_v50  ;;  %v1047_v46 = vadd.f32 1e-05, %v1030_v61 }
 0x373   : > { %v1237_v24 = vmul.f32 %v9748_v23, %v1118_v15  ;;  %v1119_v19 = vadd.f32 %v9894_v14, %v1098_v41 }
 0x374   : > { %v8552_v3 = vpop.eup %8551  ;;  %8557 = vrsqrt.f32 %v1047_v46  ;;  %1329 = vadd.xlane.f32.xlu1 %v1328_v38 }
 0x375   : > { %v9952_v35 = vadd.f32 %v1254_v0, %v1237_v24  ;;  %v1238_v4 = vmul.f32 %v9752_v42, %v1119_v19  ;;  %v1078_v16 = vmul.f32 %v8552_v3, %v9797_v12 }
 0x376   : > { %v8554_v11 = vpop.eup %8553 }
 0x377   : > { %14284 = vst [vmem:[#allocation12_spill] sm:$0xff] %v9952_v35  ;;  %v1005_v18 = vpop.xlane.xlu0 %1004  ;;  %v1331_v23 = vsel %vm866_vm2, %v9952_v35, 0.0  ;;  %v9958_v1 = vadd.f32 %v1255_v8, %v1238_v4  ;;  %v1099_v2 = vmul.f32 %v9889_v40, %v1078_v16  ;;  %v1079_v22 = vmul.f32 %v8554_v11, %v9800_v34 }
 0x378   : > { %v1032_v29 = vmul.f32 0.0625, %v1005_v18  ;;  %1332 = vadd.xlane.f32.xlu1 %v1331_v23 }
 0x379   : > { %14285 = vst [vmem:[#allocation13_spill] sm:$0xff] %v9958_v1  ;;  %v1334_v57 = vsel %vm866_vm2, %v9958_v1, 0.0  ;;  %v1120_v42 = vadd.f32 %v9894_v14, %v1099_v2  ;;  %v1100_v12 = vmul.f32 %v9889_v40, %v1079_v22 }
 0x37a   : > { %v1049_v26 = vadd.f32 1e-05, %v1032_v29  ;;  %1335 = vadd.xlane.f32.xlu0 %v1334_v57 }
 0x37b   : > { %v1239_v56 = vmul.f32 %v9754_v43, %v1120_v42  ;;  %v1121_v55 = vadd.f32 %v9894_v14, %v1100_v12 }
 0x37c   : > { %v8556_v34 = vpop.eup %8555  ;;  %8559 = vrsqrt.f32 %v1049_v26  ;;  %v1221_v26 = vpop.permute.xlu1 %1220 }
 0x37d   : > { %v1080_v51 = vmul.f32 %v8556_v34, %v9809_v47  ;;  %v9975_v52 = vadd.f32 %v1256_v31, %v1239_v56  ;;  %v1240_v50 = vmul.f32 %v9758_v49, %v1121_v55  ;;  %v1258_v49 = vld [vmem:[%s14105_s1 + $0x40] sm:$0xff]  ;;  %v1008_v57 = vpop.xlane.xlu0 %1007 }
 0x37e   : > { %v8558_v61 = vpop.eup %8557  ;;  %v1033_v42 = vmul.f32 0.0625, %v1008_v57  ;;  %v1264_v57 = vld [vmem:[%s14105_s1 + $0x70] sm:$0xff] }
 0x37f   : > { %14286 = vst [vmem:[#allocation14_spill] sm:$0xff] %v9975_v52  ;;  %v1337_v15 = vsel %vm866_vm2, %v9975_v52, 0.0  ;;  %v9980_v41 = vadd.f32 %v1257_v36, %v1240_v50  ;;  %v1101_v43 = vmul.f32 %v9889_v40, %v1080_v51  ;;  %v1081_v46 = vmul.f32 %v8558_v61, %v9812_v60  ;;  %v1259_v60 = vld [vmem:[%s14105_s1 + $0x48] sm:$0xff] }
 0x380   : > { %1338 = vadd.xlane.f32.xlu1 %v1337_v15  ;;  %v1050_v12 = vadd.f32 1e-05, %v1033_v42 }
 0x381   : > { %14287 = vst [vmem:[#allocation15_spill] sm:$0xff] %v9980_v41  ;;  %v1340_v0 = vsel %vm866_vm2, %v9980_v41, 0.0  ;;  %v1122_v47 = vadd.f32 %v9894_v14, %v1101_v43  ;;  %v1102_v38 = vmul.f32 %v9889_v40, %v1081_v46 }
 0x382   : > { %1341 = vadd.xlane.f32.xlu0 %v1340_v0  ;;  %8561 = vrsqrt.f32 %v1050_v12 }
 0x383   : > { %v1241_v24 = vmul.f32 %v9756_v13, %v1122_v47  ;;  %v1123_v19 = vadd.f32 %v9894_v14, %v1102_v38 }
 0x385   : > { %v9996_v3 = vadd.f32 %v1258_v49, %v1241_v24  ;;  %v1242_v8 = vmul.f32 %v9859_v59, %v1123_v19  ;;  %v1261_v59 = vld [vmem:[%s14105_s1 + $0x58] sm:$0xff] }
 0x386   : > { %v8560_v4 = vpop.eup %8559 }
 0x387   : > { %14288 = vst [vmem:[#allocation16_spill] sm:$0xff] %v9996_v3  ;;  %v1343_v16 = vsel %vm866_vm2, %v9996_v3, 0.0  ;;  %v10001_v11 = vadd.f32 %v1259_v60, %v1242_v8  ;;  %v1083_v18 = vmul.f32 %v8560_v4, %v9821_v10 }
 0x388   : > { %1344 = vadd.xlane.f32.xlu1 %v1343_v16 }
 0x389   : > { %14289 = vst [vmem:[#allocation17_spill] sm:$0xff] %v10001_v11  ;;  %v1346_v13 = vsel %vm866_vm2, %v10001_v11, 0.0  ;;  %v1104_v23 = vmul.f32 %v9889_v40, %v1083_v18  ;;  %v1262_v18 = vld [vmem:[%s14105_s1 + $0x60] sm:$0xff] }
 0x38a   : > { %1347 = vadd.xlane.f32.xlu0 %v1346_v13 }
 0x38b   : > { %v1125_v2 = vadd.f32 %v9894_v14, %v1104_v23 }
 0x38c   : > { %v8562_v51 = vpop.eup %8561 }
 0x38d   : > { %v1244_v22 = vmul.f32 %v9854_v21, %v1125_v2  ;;  %v1084_v15 = vmul.f32 %v8562_v51, %v9827_v17  ;;  %v1260_v17 = vld [vmem:[%s14105_s1 + $0x50] sm:$0xff]  ;;  %v1263_v2 = vld [vmem:[%s14105_s1 + $0x68] sm:$0xff] }
 0x38f   : > { %v10012_v29 = vadd.f32 %v1261_v59, %v1244_v22  ;;  %v1105_v46 = vmul.f32 %v9889_v40, %v1084_v15 }
 0x391   : > { %14290 = vst [vmem:[#allocation18_spill] sm:$0xff] %v10012_v29  ;;  %v1352_v10 = vsel %vm866_vm2, %v10012_v29, 0.0  ;;  %v1126_v49 = vadd.f32 %v9894_v14, %v1105_v46 }
 0x392   : > { %1353 = vadd.xlane.f32.xlu0 %v1352_v10 }
 0x393   : > { %v1245_v16 = vmul.f32 %v9857_v7, %v1126_v49 }
 0x395   : > { %v10042_v59 = vadd.f32 %v1262_v18, %v1245_v16 }
 0x397   : > { %14292 = vst [vmem:[#allocation20_spill] sm:$0xff] %v10042_v59 }
 0x3a2   : > { %v1002_v31 = vpop.xlane.xlu1 %1001 }
 0x3a3   : > { %v1031_v56 = vmul.f32 0.0625, %v1002_v31 }
 0x3a5   : > { %v1048_v55 = vadd.f32 1e-05, %v1031_v56 }
 0x3a6   : > { %v1011_v34 = vpop.xlane.xlu1 %1010 }
 0x3a7   : > { %8563 = vrsqrt.f32 %v1048_v55  ;;  %v1034_v36 = vmul.f32 0.0625, %v1011_v34 }
 0x3a9   : > { %v1051_v50 = vadd.f32 1e-05, %v1034_v36 }
 0x3aa   : > { %v1014_v21 = vpop.xlane.xlu1 %1013 }
 0x3ab   : > { %8565 = vrsqrt.f32 %v1051_v50  ;;  %v1035_v61 = vmul.f32 0.0625, %v1014_v21 }
 0x3ad   : > { %v1052_v43 = vadd.f32 1e-05, %v1035_v61 }
 0x3af   : > { %8567 = vrsqrt.f32 %v1052_v43 }
 0x3b1   : > { %v8564_v0 = vpop.eup %8563 }
 0x3b2   : > { %v1082_v47 = vmul.f32 %v8564_v0, %v9836_v33 }
 0x3b4   : > { %v1103_v38 = vmul.f32 %v9889_v40, %v1082_v47  ;;  %v1265_v47 = vld [vmem:[%s14105_s1 + $0x78] sm:$0xff] }
 0x3b5   : > { %v8566_v24 = vpop.eup %8565 }
 0x3b6   : > { %v1124_v19 = vadd.f32 %v9894_v14, %v1103_v38  ;;  %v1085_v60 = vmul.f32 %v8566_v24, %v9839_v63 }
 0x3b8   : > { %v1243_v8 = vmul.f32 %v9849_v54, %v1124_v19  ;;  %v1106_v4 = vmul.f32 %v9889_v40, %v1085_v60 }
 0x3b9   : > { %v8568_v33 = vpop.eup %8567 }
 0x3ba   : > { %v1086_v13 = vmul.f32 %v8568_v33, %v9844_v27  ;;  %v10033_v23 = vadd.f32 %v1260_v17, %v1243_v8  ;;  %v1127_v63 = vadd.f32 %v9894_v14, %v1106_v4  ;;  %v1266_v17 = vld [vmem:[%s14105_s1 + $0x80] sm:$0xff] }
 0x3bc   : > { %14291 = vst [vmem:[#allocation19_spill] sm:$0xff] %v10033_v23  ;;  %v1349_v54 = vsel %vm866_vm2, %v10033_v23, 0.0  ;;  %v1246_v7 = vmul.f32 %v9861_v20, %v1127_v63  ;;  %v1107_v22 = vmul.f32 %v9889_v40, %v1086_v13  ;;  %v1355_v20 = vsel %vm866_vm2, %v10042_v59, 0.0 }
 0x3bd   : > { %1350 = vadd.xlane.f32.xlu1 %v1349_v54 }
 0x3be   : > { %v10045_v10 = vadd.f32 %v1263_v2, %v1246_v7  ;;  %v1128_v27 = vadd.f32 %v9894_v14, %v1107_v22 }
 0x3c0   : > { %14293 = vst [vmem:[#allocation21_spill] sm:$0xff] %v10045_v10  ;;  %v1017_v42 = vpop.xlane.xlu0 %1016  ;;  %v1358_v12 = vsel %vm866_vm2, %v10045_v10, 0.0  ;;  %v1247_v31 = vmul.f32 %v1221_v26, %v1128_v27 }
 0x3c1   : > { %v1036_v56 = vmul.f32 0.0625, %v1017_v42  ;;  %1359 = vadd.xlane.f32.xlu0 %v1358_v12  ;;  %1356 = vadd.xlane.f32.xlu1 %v1355_v20 }
 0x3c2   : > { %v10055_v55 = vadd.f32 %v1264_v57, %v1247_v31 }
 0x3c3   : > { %v1053_v34 = vadd.f32 1e-05, %v1036_v56 }
 0x3c4   : > { %14294 = vst [vmem:[#allocation22_spill] sm:$0xff] %v10055_v55  ;;  %v1020_v36 = vpop.xlane.xlu0 %1019  ;;  %v1361_v51 = vsel %vm866_vm2, %v10055_v55, 0.0 }
 0x3c5   : > { %8569 = vrsqrt.f32 %v1053_v34  ;;  %v1037_v50 = vmul.f32 0.0625, %v1020_v36  ;;  %1362 = vadd.xlane.f32.xlu1 %v1361_v51 }
 0x3c7   : > { %v1054_v21 = vadd.f32 1e-05, %v1037_v50 }
 0x3c9   : > { %8571 = vrsqrt.f32 %v1054_v21 }
 0x3cc   : > { %v1226_v38 = vpop.permute.xlu0 %1225 }
 0x3cf   : > { %v8570_v61 = vpop.eup %8569 }
 0x3d0   : > { %v1087_v15 = vmul.f32 %v8570_v61, %v9870_v44  ;;  %v1231_v44 = vpop.permute.xlu1 %1230 }
 0x3d2   : > { %v1108_v26 = vmul.f32 %v9889_v40, %v1087_v15 }
 0x3d3   : > { %v8572_v43 = vpop.eup %8571 }
 0x3d4   : > { %v1088_v46 = vmul.f32 %v8572_v43, %v9867_v6  ;;  %v1129_v0 = vadd.f32 %v9894_v14, %v1108_v26 }
 0x3d6   : > { %v1248_v49 = vmul.f32 %v1226_v38, %v1129_v0  ;;  %v1109_v24 = vmul.f32 %v9889_v40, %v1088_v46 }
 0x3d8   : > { %v10067_v19 = vadd.f32 %v1265_v47, %v1248_v49  ;;  %v1130_v60 = vadd.f32 %v9894_v14, %v1109_v24 }
 0x3da   : > { %14295 = vst [vmem:[#allocation23_spill] sm:$0xff] %v10067_v19  ;;  %v1364_v6 = vsel %vm866_vm2, %v10067_v19, 0.0  ;;  %v1249_v8 = vmul.f32 %v1231_v44, %v1130_v60 }
 0x3db   : > { %1365 = vadd.xlane.f32.xlu0 %v1364_v6 }
 0x3dc   : > { %v10075_v4 = vadd.f32 %v1266_v17, %v1249_v8 }
 0x3de   : > { %14296 = vst [vmem:[#allocation24_spill] sm:$0xff] %v10075_v4  ;;  %v1367_v16 = vsel %vm866_vm2, %v10075_v4, 0.0 }
 0x3df   : > { %1368 = vadd.xlane.f32.xlu1 %v1367_v16 }
 0x3f5   : > { %v1321_v40 = vpop.xlane.xlu1 %1320 }
 0x3f6   : > { %v1370_v33 = vmul.f32 0.0625, %v1321_v40 }
 0x3f8   : > { %v10080_v14 = vsub.f32 %v9908_v39, %v1370_v33 }
 0x3f9   : > { %v1324_v18 = vpop.xlane.xlu0 %1323 }
 0x3fa   : > { %v1371_v13 = vmul.f32 0.0625, %v1324_v18  ;;  %v1404_v63 = vmul.f32 %v10080_v14, %v10080_v14 }
 0x3fc   : > { %v10085_v2 = vsub.f32 %v9914_v32, %v1371_v13  ;;  %v1421_v54 = vsel %vm866_vm2, %v1404_v63, 0.0 }
 0x3fd   : > { %v1327_v7 = vpop.xlane.xlu1 %1326  ;;  %1422 = vadd.xlane.f32.xlu0 %v1421_v54 }
 0x3fe   : > { %v1372_v22 = vmul.f32 0.0625, %v1327_v7  ;;  %v1405_v27 = vmul.f32 %v10085_v2, %v10085_v2 }
 0x400   : > { %v10091_v57 = vsub.f32 %v9930_v48, %v1372_v22  ;;  %v1424_v42 = vsel %vm866_vm2, %v1405_v27, 0.0 }
 0x401   : > { %v1330_v12 = vpop.xlane.xlu1 %1329  ;;  %1425 = vadd.xlane.f32.xlu1 %v1424_v42 }
 0x402   : > { %v1373_v20 = vmul.f32 0.0625, %v1330_v12  ;;  %v1406_v31 = vmul.f32 %v10091_v57, %v10091_v57 }
 0x404   : > { %v10097_v56 = vsub.f32 %v9936_v28, %v1373_v20  ;;  %v1427_v34 = vsel %vm866_vm2, %v1406_v31, 0.0  ;;  %v10642_v28 = vld [vmem:[%s14107_s3 + $0x50] sm:$0xff] }
 0x405   : > { %v1333_v36 = vpop.xlane.xlu1 %1332  ;;  %1428 = vadd.xlane.f32.xlu0 %v1427_v34 }
 0x406   : > { %v1374_v51 = vmul.f32 0.0625, %v1333_v36  ;;  %v1407_v50 = vmul.f32 %v10097_v56, %v10097_v56  ;;  %v8478_v36 = vld [vmem:[%s14111_s7 + $0x4] ss:$12 sps:$4 sm:$0xff]  }
 0x407   : > { %v1336_v21 = vpop.xlane.xlu0 %1335  ;;  %1638 = vmatprep.subr.bf16.mxu1 %v8478_v36 }
 0x408   : > { %v10103_v61 = vsub.f32 %v9952_v35, %v1374_v51  ;;  %v1375_v15 = vmul.f32 0.0625, %v1336_v21  ;;  %v1430_v26 = vsel %vm866_vm2, %v1407_v50, 0.0  ;;  %v8480_v50 = vld [vmem:[%s14111_s7] ss:$12 sps:$4 sm:$0xff]  }
 0x409   : > { %1431 = vadd.xlane.f32.xlu1 %v1430_v26  ;;  %1639 = vmatpush1.bf16.msra.mxu1 %v8480_v50 }
 0x40a   : > { %v10107_v43 = vsub.f32 %v9958_v1, %v1375_v15  ;;  %v1408_v46 = vmul.f32 %v10103_v61, %v10103_v61  ;;  %8032 = vmatprep.subr.bf16.mxu1 %v14118_v62 }
 0x40c   : > { %v1433_v0 = vsel %vm866_vm2, %v1408_v46, 0.0  ;;  %v1409_v47 = vmul.f32 %v10107_v43, %v10107_v43 }
 0x40d   : > { %v1339_v38 = vpop.xlane.xlu1 %1338  ;;  %1434 = vadd.xlane.f32.xlu0 %v1433_v0 }
 0x40e   : > { %v1376_v49 = vmul.f32 0.0625, %v1339_v38  ;;  %v1436_v24 = vsel %vm866_vm2, %v1409_v47, 0.0 }
 0x40f   : > { %1437 = vadd.xlane.f32.xlu1 %v1436_v24  ;;  %v1342_v60 = vpop.xlane.xlu0 %1341 }
 0x410   : > { %v10116_v44 = vsub.f32 %v9975_v52, %v1376_v49  ;;  %v1377_v17 = vmul.f32 0.0625, %v1342_v60 }
 0x412   : > { %v10119_v6 = vsub.f32 %v9980_v41, %v1377_v17  ;;  %v1410_v8 = vmul.f32 %v10116_v44, %v10116_v44 }
 0x414   : > { %v1439_v16 = vsel %vm866_vm2, %v1410_v8, 0.0  ;;  %v1411_v40 = vmul.f32 %v10119_v6, %v10119_v6 }
 0x415   : > { %v1345_v33 = vpop.xlane.xlu1 %1344  ;;  %1440 = vadd.xlane.f32.xlu0 %v1439_v16 }
 0x416   : > { %v1378_v18 = vmul.f32 0.0625, %v1345_v33  ;;  %v1442_v13 = vsel %vm866_vm2, %v1411_v40, 0.0 }
 0x417   : > { %1443 = vadd.xlane.f32.xlu1 %v1442_v13  ;;  %v1348_v63 = vpop.xlane.xlu0 %1347 }
 0x418   : > { %v10128_v54 = vsub.f32 %v9996_v3, %v1378_v18  ;;  %v1379_v7 = vmul.f32 0.0625, %v1348_v63 }
 0x41a   : > { %v10131_v22 = vsub.f32 %v10001_v11, %v1379_v7  ;;  %v1412_v27 = vmul.f32 %v10128_v54, %v10128_v54  ;;  %v10613_v11 = vld [vmem:[%s14107_s3 + $0x88] sm:$0xff] }
 0x41c   : > { %v1445_v42 = vsel %vm866_vm2, %v1412_v27, 0.0  ;;  %v1413_v12 = vmul.f32 %v10131_v22, %v10131_v22 }
 0x41d   : > { %1446 = vadd.xlane.f32.xlu0 %v1445_v42 }
 0x41e   : > { %v1448_v20 = vsel %vm866_vm2, %v1413_v12, 0.0 }
 0x41f   : > { %1449 = vadd.xlane.f32.xlu1 %v1448_v20  ;;  %v1354_v31 = vpop.xlane.xlu0 %1353 }
 0x420   : > { %v1381_v34 = vmul.f32 0.0625, %v1354_v31 }
 0x422   : > { %v10143_v51 = vsub.f32 %v10012_v29, %v1381_v34 }
 0x424   : > { %v1415_v21 = vmul.f32 %v10143_v51, %v10143_v51 }
 0x426   : > { %v1454_v15 = vsel %vm866_vm2, %v1415_v21, 0.0 }
 0x427   : > { %1455 = vadd.xlane.f32.xlu1 %v1454_v15 }
 0x44a   : > { %v1351_v26 = vpop.xlane.xlu1 %1350 }
 0x44b   : > { %v1380_v46 = vmul.f32 0.0625, %v1351_v26 }
 0x44d   : > { %v10153_v0 = vsub.f32 %v10033_v23, %v1380_v46 }
 0x44e   : > { %v1357_v47 = vpop.xlane.xlu1 %1356  ;;  %v1360_v38 = vpop.xlane.xlu0 %1359 }
 0x44f   : > { %v1382_v49 = vmul.f32 0.0625, %v1357_v47  ;;  %v1383_v24 = vmul.f32 0.0625, %v1360_v38  ;;  %v1414_v60 = vmul.f32 %v10153_v0, %v10153_v0 }
 0x451   : > { %v10158_v17 = vsub.f32 %v10042_v59, %v1382_v49  ;;  %v10161_v8 = vsub.f32 %v10045_v10, %v1383_v24  ;;  %v1451_v16 = vsel %vm866_vm2, %v1414_v60, 0.0 }
 0x452   : > { %v1363_v40 = vpop.xlane.xlu1 %1362  ;;  %1452 = vadd.xlane.f32.xlu0 %v1451_v16 }
 0x453   : > { %v1384_v33 = vmul.f32 0.0625, %v1363_v40  ;;  %v1416_v18 = vmul.f32 %v10158_v17, %v10158_v17  ;;  %v1417_v13 = vmul.f32 %v10161_v8, %v10161_v8 }
 0x455   : > { %v10169_v63 = vsub.f32 %v10055_v55, %v1384_v33  ;;  %v1457_v7 = vsel %vm866_vm2, %v1416_v18, 0.0  ;;  %v1460_v27 = vsel %vm866_vm2, %v1417_v13, 0.0 }
 0x456   : > { %1458 = vadd.xlane.f32.xlu0 %v1457_v7  ;;  %1461 = vadd.xlane.f32.xlu1 %v1460_v27 }
 0x457   : > { %v1418_v42 = vmul.f32 %v10169_v63, %v10169_v63 }
 0x459   : > { %v1463_v12 = vsel %vm866_vm2, %v1418_v42, 0.0  ;;  %v1318_v42 = vld [vmem:[%s14109_s5] sm:$0x7f] }
 0x45a   : > { %1464 = vadd.xlane.f32.xlu0 %v1463_v12 }
 0x468   : > { %v1366_v20 = vpop.xlane.xlu0 %1365 }
 0x469   : > { %v1385_v31 = vmul.f32 0.0625, %v1366_v20 }
 0x46b   : > { %v10177_v34 = vsub.f32 %v10067_v19, %v1385_v31 }
 0x46c   : > { %v1369_v36 = vpop.xlane.xlu1 %1368 }
 0x46d   : > { %v1386_v50 = vmul.f32 0.0625, %v1369_v36  ;;  %v1419_v21 = vmul.f32 %v10177_v34, %v10177_v34 }
 0x46f   : > { %v10182_v15 = vsub.f32 %v10075_v4, %v1386_v50  ;;  %v1466_v26 = vsel %vm866_vm2, %v1419_v21, 0.0  ;;  %v10193_v50 = vrot.slane %v1318_v42, %v9540_v45  ;;  %v10562_v45 = vld [vmem:[%s14107_s3 + $0x38] sm:$0xff]  ;;  %v10583_v4 = vld [vmem:[%s14107_s3 + $0x40] sm:$0xff] }
 0x470   : > { %1467 = vadd.xlane.f32.xlu1 %v1466_v26 }
 0x471   : > { %v1420_v46 = vmul.f32 %v10182_v15, %v10182_v15 }
 0x473   : > { %v1469_v47 = vsel %vm866_vm2, %v1420_v46, 0.0 }
 0x474   : > { %1470 = vadd.xlane.f32.xlu0 %v1469_v47 }
 0x48a   : > { %v1423_v38 = vpop.xlane.xlu0 %1422 }
 0x48b   : > { %v1472_v49 = vmul.f32 0.0625, %v1423_v38 }
 0x48d   : > { %v1489_v24 = vadd.f32 1e-05, %v1472_v49 }
 0x48e   : > { %v1426_v60 = vpop.xlane.xlu1 %1425 }
 0x48f   : > { %8573 = vrsqrt.f32 %v1489_v24  ;;  %v1473_v16 = vmul.f32 0.0625, %v1426_v60  ;;  %v10198_v60 = vrot.slane %v1318_v42, %v9553_v58 }
 0x491   : > { %v1490_v40 = vadd.f32 1e-05, %v1473_v16 }
 0x492   : > { %v1429_v33 = vpop.xlane.xlu0 %1428 }
 0x493   : > { %8575 = vrsqrt.f32 %v1490_v40  ;;  %v1474_v18 = vmul.f32 0.0625, %v1429_v33 }
 0x495   : > { %v1491_v13 = vadd.f32 1e-05, %v1474_v18 }
 0x496   : > { %v1432_v7 = vpop.xlane.xlu1 %1431 }
 0x497   : > { %8577 = vrsqrt.f32 %v1491_v13  ;;  %v1475_v27 = vmul.f32 0.0625, %v1432_v7 }
 0x499   : > { %v8574_v12 = vpop.eup %8573  ;;  %v1492_v20 = vadd.f32 1e-05, %v1475_v27 }
 0x49a   : > { %v1435_v31 = vpop.xlane.xlu0 %1434  ;;  %v1523_v36 = vmul.f32 %v8574_v12, %v10080_v14 }
 0x49b   : > { %8579 = vrsqrt.f32 %v1492_v20  ;;  %v1476_v21 = vmul.f32 0.0625, %v1435_v31 }
 0x49c   : > { %v1438_v26 = vpop.xlane.xlu1 %1437  ;;  %v1544_v24 = vmul.f32 %v10193_v50, %v1523_v36 }
 0x49d   : > { %v8576_v46 = vpop.eup %8575  ;;  %v1493_v47 = vadd.f32 1e-05, %v1476_v21  ;;  %v1477_v38 = vmul.f32 0.0625, %v1438_v26 }
 0x49e   : > { %v1524_v49 = vmul.f32 %v8576_v46, %v10085_v2  ;;  %v1565_v18 = vadd.f32 %v10198_v60, %v1544_v24  ;;  %v8481_v2 = vld [vmem:[%s14111_s7 + $0x8] ss:$12 sps:$4 sm:$0xff]  }
 0x49f   : > { %8581 = vrsqrt.f32 %v1493_v47  ;;  %v1494_v16 = vadd.f32 1e-05, %v1477_v38 }
 0x4a0   : > { %v1545_v14 = vmul.f32 %v10193_v50, %v1524_v49 }
 0x4a1   : > { %v8578_v40 = vpop.eup %8577  ;;  %8583 = vrsqrt.f32 %v1494_v16 }
 0x4a2   : > { %v1441_v33 = vpop.xlane.xlu0 %1440  ;;  %v1566_v13 = vadd.f32 %v10198_v60, %v1545_v14  ;;  %v1525_v7 = vmul.f32 %v8578_v40, %v10091_v57 }
 0x4a3   : > { %v1478_v27 = vmul.f32 0.0625, %v1441_v33 }
 0x4a4   : > { %v1444_v42 = vpop.xlane.xlu1 %1443  ;;  %v10207_v12 = vpack.c.bf16 %v1566_v13, %v1565_v18  ;;  %v1546_v26 = vmul.f32 %v10193_v50, %v1525_v7 }
 0x4a5   : > { %v8580_v20 = vpop.eup %8579  ;;  %v1495_v31 = vadd.f32 1e-05, %v1478_v27  ;;  %v1479_v36 = vmul.f32 0.0625, %v1444_v42 }
 0x4a6   : > { %7632 = vmatmul.mubr.msk.bf16.vlgmr.msra.gmra.mrb[0].mxu1 %vm866_vm2, %v10207_v12  ;;  %v1526_v21 = vmul.f32 %v8580_v20, %v10097_v56  ;;  %v1567_v49 = vadd.f32 %v10198_v60, %v1546_v26 }
 0x4a7   : > { %8585 = vrsqrt.f32 %v1495_v31  ;;  %v1496_v57 = vadd.f32 1e-05, %v1479_v36  ;;  %1680 = vmatprep.mubr.bf16.mxu1 %v14120_v5  ;;  %8033 = vmatpush3.bf16.msra.mxu1 %v8481_v2 }
 0x4a8   : > { %v1547_v46 = vmul.f32 %v10193_v50, %v1526_v21  ;;  %2438 = vmatprep.subr.bf16.mxu1 %v14120_v5 }
 0x4a9   : > { %v8582_v47 = vpop.eup %8581  ;;  %8587 = vrsqrt.f32 %v1496_v57 }
 0x4aa   : > { %v1447_v38 = vpop.xlane.xlu0 %1446  ;;  %v1568_v24 = vadd.f32 %v10198_v60, %v1547_v46  ;;  %v1527_v56 = vmul.f32 %v8582_v47, %v10103_v61 }
 0x4ab   : > { %v8584_v16 = vpop.eup %8583  ;;  %v1480_v14 = vmul.f32 0.0625, %v1447_v38 }
 0x4ac   : > { %v1450_v40 = vpop.xlane.xlu1 %1449  ;;  %v10219_v33 = vpack.c.bf16 %v1568_v24, %v1567_v49  ;;  %v1528_v18 = vmul.f32 %v8584_v16, %v10107_v43  ;;  %v1548_v27 = vmul.f32 %v10193_v50, %v1527_v56 }
 0x4ad   : > { %v1497_v13 = vadd.f32 1e-05, %v1480_v14  ;;  %v1481_v7 = vmul.f32 0.0625, %v1450_v40 }
 0x4ae   : > { %7633 = vmatmul.mubr.msk.bf16.gmra.mrb[4].mxu1 %vm866_vm2, %v10219_v33  ;;  %v1549_v2 = vmul.f32 %v10193_v50, %v1528_v18  ;;  %v1569_v31 = vadd.f32 %v10198_v60, %v1548_v27 }
 0x4af   : > { %8589 = vrsqrt.f32 %v1497_v13  ;;  %v1498_v42 = vadd.f32 1e-05, %v1481_v7  ;;  %1690 = vmatprep.mubr.bf16.mxu1 %v14120_v5 }
 0x4b0   : > { %v1570_v61 = vadd.f32 %v10198_v60, %v1549_v2 }
 0x4b1   : > { %v8586_v20 = vpop.eup %8585  ;;  %8591 = vrsqrt.f32 %v1498_v42 }
 0x4b2   : > { %v1529_v43 = vmul.f32 %v8586_v20, %v10116_v44  ;;  %v10230_v21 = vpack.c.bf16 %v1570_v61, %v1569_v31 }
 0x4b3   : > { %v8588_v36 = vpop.eup %8587 }
 0x4b4   : > { %v1530_v26 = vmul.f32 %v8588_v36, %v10119_v6  ;;  %v1550_v57 = vmul.f32 %v10193_v50, %v1529_v43 }
 0x4b6   : > { %7634 = vmatmul.mubr.msk.bf16.gmra.mrb[8].mxu1 %vm866_vm2, %v10230_v21  ;;  %v1551_v46 = vmul.f32 %v10193_v50, %v1530_v26  ;;  %v1571_v49 = vadd.f32 %v10198_v60, %v1550_v57 }
 0x4b7   : > { %1700 = vmatprep.mubr.bf16.mxu1 %v14120_v5 }
 0x4b8   : > { %v1572_v47 = vadd.f32 %v10198_v60, %v1551_v46 }
 0x4b9   : > { %v8590_v38 = vpop.eup %8589 }
 0x4ba   : > { %v1531_v44 = vmul.f32 %v8590_v38, %v10128_v54  ;;  %v10241_v56 = vpack.c.bf16 %v1572_v47, %v1571_v49  ;;  %v1456_v54 = vpop.xlane.xlu1 %1455 }
 0x4bb   : > { %v8592_v24 = vpop.eup %8591 }
 0x4bc   : > { %v1532_v6 = vmul.f32 %v8592_v24, %v10131_v22  ;;  %v1552_v16 = vmul.f32 %v10193_v50, %v1531_v44  ;;  %v1483_v22 = vmul.f32 0.0625, %v1456_v54 }
 0x4be   : > { %7635 = vmatmul.mubr.msk.bf16.gmra.mrb[12].mxu1 %vm866_vm2, %v10241_v56  ;;  %v1553_v14 = vmul.f32 %v10193_v50, %v1532_v6  ;;  %v1573_v18 = vadd.f32 %v10198_v60, %v1552_v16  ;;  %v1500_v7 = vadd.f32 1e-05, %v1483_v22 }
 0x4bf   : > { %1710 = vmatprep.mubr.bf16.mxu1 %v14120_v5 }
 0x4c0   : > { %v1574_v40 = vadd.f32 %v10198_v60, %v1553_v14  ;;  %8593 = vrsqrt.f32 %v1500_v7 }
 0x4c2   : > { %v10251_v13 = vpack.c.bf16 %v1574_v40, %v1573_v18 }
 0x4c6   : > { %7636 = vmatmul.mubr.msk.bf16.gmra.mrb[16].mxu1 %vm866_vm2, %v10251_v13 }
 0x4c7   : > { %1720 = vmatprep.mubr.bf16.mxu1 %v14120_v5 }
 0x4ca   : > { %v8594_v57 = vpop.eup %8593 }
 0x4cb   : > { %v1534_v46 = vmul.f32 %v8594_v57, %v10143_v51 }
 0x4cd   : > { %v1555_v49 = vmul.f32 %v10193_v50, %v1534_v46 }
 0x4cf   : > { %v1576_v40 = vadd.f32 %v10198_v60, %v1555_v49 }
 0x4df   : > { %v1453_v27 = vpop.xlane.xlu0 %1452 }
 0x4e0   : > { %v1482_v2 = vmul.f32 0.0625, %v1453_v27 }
 0x4e2   : > { %v1499_v42 = vadd.f32 1e-05, %v1482_v2 }
 0x4e3   : > { %v1462_v61 = vpop.xlane.xlu1 %1461  ;;  %v1459_v20 = vpop.xlane.xlu0 %1458 }
 0x4e4   : > { %8595 = vrsqrt.f32 %v1499_v42  ;;  %v1485_v31 = vmul.f32 0.0625, %v1462_v61  ;;  %v1484_v43 = vmul.f32 0.0625, %v1459_v20 }
 0x4e6   : > { %v1502_v36 = vadd.f32 1e-05, %v1485_v31  ;;  %v1501_v26 = vadd.f32 1e-05, %v1484_v43 }
 0x4e7   : > { %v1465_v44 = vpop.xlane.xlu0 %1464 }
 0x4e8   : > { %8597 = vrsqrt.f32 %v1502_v36  ;;  %v1486_v54 = vmul.f32 0.0625, %v1465_v44 }
 0x4e9   : > { %8599 = vrsqrt.f32 %v1501_v26 }
 0x4ea   : > { %v1503_v27 = vadd.f32 1e-05, %v1486_v54 }
 0x4ec   : > { %8601 = vrsqrt.f32 %v1503_v27 }
 0x4ee   : > { %v8596_v47 = vpop.eup %8595 }
 0x4ef   : > { %v1533_v38 = vmul.f32 %v8596_v47, %v10153_v0 }
 0x4f1   : > { %v1554_v24 = vmul.f32 %v10193_v50, %v1533_v38 }
 0x4f2   : > { %v8598_v6 = vpop.eup %8597 }
 0x4f3   : > { %v8600_v16 = vpop.eup %8599  ;;  %v1575_v14 = vadd.f32 %v10198_v60, %v1554_v24  ;;  %v1536_v18 = vmul.f32 %v8598_v6, %v10161_v8 }
 0x4f4   : > { %v1535_v22 = vmul.f32 %v8600_v16, %v10158_v17 }
 0x4f5   : > { %v1587_v51 = vpack.c.bf16 %v1576_v40, %v1575_v14  ;;  %v1557_v7 = vmul.f32 %v10193_v50, %v1536_v18 }
 0x4f6   : > { %v1556_v0 = vmul.f32 %v10193_v50, %v1535_v22  ;;  %v8602_v26 = vpop.eup %8601 }
 0x4f7   : > { %7637 = vmatmul.mubr.msk.bf16.gmra.mrb[20].mxu1 %vm866_vm2, %v1587_v51  ;;  %v1578_v42 = vadd.f32 %v10198_v60, %v1557_v7  ;;  %v1537_v57 = vmul.f32 %v8602_v26, %v10169_v63 }
 0x4f8   : > { %1730 = vmatprep.mubr.bf16.mxu1 %v14120_v5  ;;  %v1577_v2 = vadd.f32 %v10198_v60, %v1556_v0 }
 0x4f9   : > { %v1558_v38 = vmul.f32 %v10193_v50, %v1537_v57 }
 0x4fa   : > { %v1588_v8 = vpack.c.bf16 %v1578_v42, %v1577_v2 }
 0x4fb   : > { %v1579_v24 = vadd.f32 %v10198_v60, %v1558_v38 }
 0x4fd   : > { %v1468_v61 = vpop.xlane.xlu1 %1467 }
 0x4fe   : > { %v1487_v20 = vmul.f32 0.0625, %v1468_v61 }
 0x4ff   : > { %7638 = vmatmul.mubr.msk.bf16.gmra.mrb[24].mxu1 %vm866_vm2, %v1588_v8 }
 0x500   : > { %v1504_v17 = vadd.f32 1e-05, %v1487_v20  ;;  %1740 = vmatprep.mubr.bf16.mxu1 %v14120_v5 }
 0x501   : > { %v1471_v31 = vpop.xlane.xlu0 %1470 }
 0x502   : > { %8603 = vrsqrt.f32 %v1504_v17  ;;  %v1488_v43 = vmul.f32 0.0625, %v1471_v31 }
 0x504   : > { %v1505_v36 = vadd.f32 1e-05, %v1488_v43 }
 0x506   : > { %8605 = vrsqrt.f32 %v1505_v36 }
 0x50c   : > { %v8604_v46 = vpop.eup %8603 }
 0x50d   : > { %v1538_v47 = vmul.f32 %v8604_v46, %v10177_v34 }
 0x50f   : > { %v1559_v49 = vmul.f32 %v10193_v50, %v1538_v47 }
 0x510   : > { %v8606_v44 = vpop.eup %8605 }
 0x511   : > { %v1580_v6 = vadd.f32 %v10198_v60, %v1559_v49  ;;  %v1539_v16 = vmul.f32 %v8606_v44, %v10182_v15 }
 0x513   : > { %v1589_v14 = vpack.c.bf16 %v1580_v6, %v1579_v24  ;;  %v1560_v40 = vmul.f32 %v10193_v50, %v1539_v16 }
 0x515   : > { %7639 = vmatmul.mubr.msk.bf16.gmra.mrb[28].mxu1 %vm866_vm2, %v1589_v14  ;;  %v1581_v63 = vadd.f32 %v10198_v60, %v1560_v40 }
 0x516   : > { %1750 = vmatprep.mubr.bf16.mxu1 %v14120_v5 }
 0x517   : > { %v1590_v34 = vpack.c.bf16 %v1581_v63, %v1581_v63 }
 0x51d   : > { %7640 = vmatmul.mubr.msk.bf16.gmra.mrb[32].mxu1 %vm866_vm2, %v1590_v34 }
 0x51e   : > { %8034 = vmatprep.mubr.msk.bf16.mxu1 %vm9235_vm1, %v14118_v62 }
 0x525   : > { %8035 = vmatmul.mubr.msk.bf16.vlgmr.msra.gmra.mrb[36].mxu1 %vm866_vm2, %v10207_v12 }
 0x526   : > { %8038 = vmatprep.mubr.msk.bf16.mxu1 %vm9235_vm1, %v14118_v62 }
 0x52d   : > { %8039 = vmatmul.mubr.msk.bf16.gmra.mrb[40].mxu1 %vm866_vm2, %v10219_v33 }
 0x52e   : > { %8042 = vmatprep.mubr.msk.bf16.mxu1 %vm9235_vm1, %v14118_v62 }
 0x535   : > { %8043 = vmatmul.mubr.msk.bf16.gmra.mrb[44].mxu1 %vm866_vm2, %v10230_v21 }
 0x536   : > { %8046 = vmatprep.mubr.msk.bf16.mxu1 %vm9235_vm1, %v14118_v62 }
 0x53d   : > { %8047 = vmatmul.mubr.msk.bf16.gmra.mrb[48].mxu1 %vm866_vm2, %v10241_v56 }
 0x53e   : > { %8050 = vmatprep.mubr.msk.bf16.mxu1 %vm9235_vm1, %v14118_v62 }
 0x545   : > { %8051 = vmatmul.mubr.msk.bf16.gmra.mrb[52].mxu1 %vm866_vm2, %v10251_v13 }
 0x546   : > { %8054 = vmatprep.mubr.msk.bf16.mxu1 %vm9235_vm1, %v14118_v62 }
 0x54d   : > { %8055 = vmatmul.mubr.msk.bf16.gmra.mrb[56].mxu1 %vm866_vm2, %v1587_v51 }
 0x54e   : > { %8058 = vmatprep.mubr.msk.bf16.mxu1 %vm9235_vm1, %v14118_v62 }
 0x555   : > { %8059 = vmatmul.mubr.msk.bf16.gmra.mrb[60].mxu1 %vm866_vm2, %v1588_v8 }
 0x556   : > { %8062 = vmatprep.mubr.msk.bf16.mxu1 %vm9235_vm1, %v14118_v62 }
 0x55d   : > { %8063 = vmatmul.mubr.msk.bf16.gmra.mrb[64].mxu1 %vm866_vm2, %v1589_v14 }
 0x55e   : > { %8066 = vmatprep.mubr.msk.bf16.mxu1 %vm9235_vm1, %v14118_v62 }
 0x565   : > { %8067 = vmatmul.mubr.msk.bf16.gmra.mrb[68].mxu1 %vm866_vm2, %v1590_v34 }
 0x579   : > { %v1672_v15 = vpop.f32.mrb[0].mxu1 }
 0x57a   : > { %v1674_v50 = vpop.f32.mrb[1].mxu1  ;;  %v1879_v12 = vmul.f32 0.125, %v1672_v15 }
 0x57b   : > { %v1676_v60 = vpop.f32.mrb[2].mxu1 }
 0x57c   : > { %v1880_v33 = vmul.f32 0.125, %v1676_v60  ;;  %v1678_v21 = vpop.f32.mrb[3].mxu1 }
 0x57d   : > { %v1905_v56 = vpack.c.bf16 %v1678_v21, %v1674_v50 }
 0x57e   : > { %v10316_v13 = vpack.c.bf16 %v1880_v33, %v1879_v12 }
 0x57f   : > { %2587 = vrot.lane.b32.xlu1 %v1905_v56, %s9237_s14  ;;  %v1943_v18 = vsel %vm1914_vm3, %v1905_v56, 0 }
 0x580   : > { %1970 = vmatpush1.bf16.xpose.msra.mxu0 %v1943_v18 }
 0x581   : > { %v1682_v54 = vpop.f32.mrb[4].mxu1  ;;  %1971 = vmatprep.subr.bf16.mxu0 %v14120_v5 }
 0x582   : > { %v1684_v22 = vpop.f32.mrb[5].mxu1  ;;  %v1881_v7 = vmul.f32 0.125, %v1682_v54 }
 0x583   : > { %v1686_v51 = vpop.f32.mrb[6].mxu1 }
 0x584   : > { %v1882_v0 = vmul.f32 0.125, %v1686_v51  ;;  %v1688_v27 = vpop.f32.mrb[7].mxu1 }
 0x585   : > { %v1906_v2 = vpack.c.bf16 %v1688_v27, %v1684_v22 }
 0x586   : > { %v10321_v42 = vpack.c.bf16 %v1882_v0, %v1881_v7 }
 0x587   : > { %2589 = vrot.lane.b32.xlu0 %v1906_v2, %s9237_s14  ;;  %v1946_v61 = vsel %vm1914_vm3, %v1906_v2, 0 }
 0x588   : > { %1972 = vmatpush1.bf16.xpose.msra.mxu0 %v1946_v61 }
 0x589   : > { %v1692_v8 = vpop.f32.mrb[8].mxu1  ;;  %1973 = vmatprep.subr.bf16.mxu0 %v14120_v5 }
 0x58a   : > { %v1694_v20 = vpop.f32.mrb[9].mxu1  ;;  %v1883_v31 = vmul.f32 0.125, %v1692_v8 }
 0x58b   : > { %v1696_v17 = vpop.f32.mrb[10].mxu1 }
 0x58c   : > { %v1884_v43 = vmul.f32 0.125, %v1696_v17  ;;  %v1698_v36 = vpop.f32.mrb[11].mxu1 }
 0x58d   : > { %v1907_v26 = vpack.c.bf16 %v1698_v36, %v1694_v20 }
 0x58e   : > { %v10326_v57 = vpack.c.bf16 %v1884_v43, %v1883_v31 }
 0x58f   : > { %2591 = vrot.lane.b32.xlu1 %v1907_v26, %s9237_s14  ;;  %v1949_v46 = vsel %vm1914_vm3, %v1907_v26, 0 }
 0x590   : > { %1974 = vmatpush1.bf16.xpose.msra.mxu0 %v1949_v46 }
 0x591   : > { %v1702_v47 = vpop.f32.mrb[12].mxu1  ;;  %1975 = vmatprep.subr.bf16.mxu0 %v14120_v5 }
 0x592   : > { %v1704_v38 = vpop.f32.mrb[13].mxu1  ;;  %v1885_v44 = vmul.f32 0.125, %v1702_v47 }
 0x593   : > { %v1706_v49 = vpop.f32.mrb[14].mxu1 }
 0x594   : > { %v1886_v24 = vmul.f32 0.125, %v1706_v49  ;;  %v1708_v6 = vpop.f32.mrb[15].mxu1 }
 0x595   : > { %v1908_v16 = vpack.c.bf16 %v1708_v6, %v1704_v38 }
 0x596   : > { %v10331_v14 = vpack.c.bf16 %v1886_v24, %v1885_v44 }
 0x597   : > { %2593 = vrot.lane.b32.xlu1 %v1908_v16, %s9237_s14  ;;  %v1952_v40 = vsel %vm1914_vm3, %v1908_v16, 0 }
 0x598   : > { %1976 = vmatpush1.bf16.xpose.msra.mxu0 %v1952_v40 }
 0x599   : > { %v1712_v63 = vpop.f32.mrb[16].mxu1  ;;  %1977 = vmatprep.subr.bf16.mxu0 %v14120_v5 }
 0x59a   : > { %v1714_v34 = vpop.f32.mrb[17].mxu1  ;;  %v1887_v50 = vmul.f32 0.125, %v1712_v63 }
 0x59b   : > { %v1716_v15 = vpop.f32.mrb[18].mxu1 }
 0x59c   : > { %v1888_v60 = vmul.f32 0.125, %v1716_v15  ;;  %v1718_v12 = vpop.f32.mrb[19].mxu1 }
 0x59d   : > { %v1909_v33 = vpack.c.bf16 %v1718_v12, %v1714_v34 }
 0x59e   : > { %v10336_v21 = vpack.c.bf16 %v1888_v60, %v1887_v50 }
 0x59f   : > { %2595 = vrot.lane.b32.xlu0 %v1909_v33, %s9237_s14  ;;  %v1955_v56 = vsel %vm1914_vm3, %v1909_v33, 0 }
 0x5a0   : > { %1978 = vmatpush1.bf16.xpose.msra.mxu0 %v1955_v56 }
 0x5a1   : > { %1979 = vmatprep.subr.bf16.mxu0 %v14120_v5 }
 0x5ca   : > { %v1722_v18 = vpop.f32.mrb[20].mxu1 }
 0x5cb   : > { %v1724_v54 = vpop.f32.mrb[21].mxu1  ;;  %v1889_v51 = vmul.f32 0.125, %v1722_v18 }
 0x5cc   : > { %v1726_v22 = vpop.f32.mrb[22].mxu1 }
 0x5cd   : > { %v1890_v7 = vmul.f32 0.125, %v1726_v22  ;;  %v1728_v0 = vpop.f32.mrb[23].mxu1 }
 0x5ce   : > { %v1910_v27 = vpack.c.bf16 %v1728_v0, %v1724_v54 }
 0x5cf   : > { %v10341_v2 = vpack.c.bf16 %v1890_v7, %v1889_v51 }
 0x5d0   : > { %2597 = vrot.lane.b32.xlu1 %v1910_v27, %s9237_s14  ;;  %v1958_v61 = vsel %vm1914_vm3, %v1910_v27, 0 }
 0x5d1   : > { %1980 = vmatpush1.bf16.xpose.msra.mxu0 %v1958_v61 }
 0x5d2   : > { %v1732_v8 = vpop.f32.mrb[24].mxu1  ;;  %1981 = vmatprep.subr.bf16.mxu0 %v14120_v5 }
 0x5d3   : > { %v1734_v20 = vpop.f32.mrb[25].mxu1  ;;  %v1891_v31 = vmul.f32 0.125, %v1732_v8 }
 0x5d4   : > { %v1736_v17 = vpop.f32.mrb[26].mxu1 }
 0x5d5   : > { %v1892_v43 = vmul.f32 0.125, %v1736_v17  ;;  %v1738_v36 = vpop.f32.mrb[27].mxu1 }
 0x5d6   : > { %v1911_v26 = vpack.c.bf16 %v1738_v36, %v1734_v20 }
 0x5d7   : > { %v10346_v46 = vpack.c.bf16 %v1892_v43, %v1891_v31 }
 0x5d8   : > { %2599 = vrot.lane.b32.xlu0 %v1911_v26, %s9237_s14  ;;  %v1961_v47 = vsel %vm1914_vm3, %v1911_v26, 0 }
 0x5d9   : > { %1982 = vmatpush1.bf16.xpose.msra.mxu0 %v1961_v47 }
 0x5da   : > { %1983 = vmatprep.subr.bf16.mxu0 %v14120_v5 }
 0x5e8   : > { %v1742_v38 = vpop.f32.mrb[28].mxu1 }
 0x5e9   : > { %v1744_v49 = vpop.f32.mrb[29].mxu1  ;;  %v1893_v24 = vmul.f32 0.125, %v1742_v38 }
 0x5ea   : > { %v1746_v44 = vpop.f32.mrb[30].mxu1 }
 0x5eb   : > { %v1894_v6 = vmul.f32 0.125, %v1746_v44  ;;  %v1748_v16 = vpop.f32.mrb[31].mxu1 }
 0x5ec   : > { %v1912_v40 = vpack.c.bf16 %v1748_v16, %v1744_v49 }
 0x5ed   : > { %v10351_v63 = vpack.c.bf16 %v1894_v6, %v1893_v24 }
 0x5ee   : > { %2601 = vrot.lane.b32.xlu1 %v1912_v40, %s9237_s14  ;;  %v1964_v34 = vsel %vm1914_vm3, %v1912_v40, 0 }
 0x5ef   : > { %1984 = vmatpush1.bf16.xpose.msra.mxu0 %v1964_v34 }
 0x5f0   : > { %v1752_v15 = vpop.f32.mrb[32].mxu1  ;;  %1985 = vmatprep.subr.bf16.mxu0 %v14120_v5 }
 0x5f1   : > { %v1754_v50 = vpop.f32.mrb[33].mxu1  ;;  %v2588_v51 = vpop.permute.xlu1 %2587  ;;  %v1895_v27 = vmul.f32 0.125, %v1752_v15 }
 0x5f2   : > { %v1913_v60 = vpack.c.bf16 %v1754_v50, %v1754_v50  ;;  %2560 = vrot.lane.b32.xlu1 %v10316_v13, %s9237_s14  ;;  %v1756_v12 = vpop.f32.mrb[34].mxu1  ;;  %v2633_v61 = vsel %vm1914_vm3, %v2588_v51, 0 }
 0x5f3   : > { %v1757_v33 = vpop.f32.mrb[35].mxu1  ;;  %v10375_v8 = vpack.c.bf16 %v1895_v27, %v1895_v27 }
 0x5f4   : > { %2603 = vrot.lane.b32.xlu0 %v1913_v60, %s9237_s14  ;;  %v1967_v56 = vsel %vm1914_vm3, %v1913_v60, 0 }
 0x5f6   : > { %2564 = vrot.lane.b32.xlu1 %v10326_v57, %s9237_s14 }
 0x5f7   : > { %1986 = vmatpush1.bf16.xpose.msra.mxu0 %v1967_v56 }
 0x5f8   : > { %2562 = vrot.lane.b32.xlu0 %v10321_v42, %s9237_s14  ;;  %v1793_v18 = vpop.f32.mrb[36].mxu1  ;;  %2659 = vmatprep.subr.bf16.mxu0 %v14120_v5 }
 0x5f9   : > { %v8036_v54 = vpop.f32.mrb[37].mxu1  ;;  %v2590_v43 = vpop.permute.xlu0 %2589 }
 0x5fa   : > { %2568 = vrot.lane.b32.xlu1 %v10336_v21, %s9237_s14  ;;  %v1796_v22 = vpop.f32.mrb[38].mxu1  ;;  %v2636_v26 = vsel %vm1914_vm3, %v2590_v43, 0 }
 0x5fb   : > { %v2398_v7 = vpack.c.bf16 %v1796_v22, %v1793_v18  ;;  %v8037_v0 = vpop.f32.mrb[39].mxu1 }
 0x5fc   : > { %2566 = vrot.lane.b32.xlu0 %v10331_v14, %s9237_s14 }
 0x5fd   : > { %2439 = vmatpush1.bf16.msra.mxu1 %v2398_v7 }
 0x5fe   : > { %2572 = vrot.lane.b32.xlu1 %v10346_v46, %s9237_s14  ;;  %7650 = vmatmul.mubr.msk.bf16.vlgmr.msra.gmra.mrb[36].mxu0 %vm1914_vm3, %v10316_v13 }
 0x5ff   : > { %2660 = vmatpush1.bf16.xpose.msra.mxu0 %v2633_v61  ;;  %2440 = vmatprep.subr.bf16.mxu1 %v14120_v5 }
 0x600   : > { %2570 = vrot.lane.b32.xlu0 %v10341_v2, %s9237_s14  ;;  %v1801_v20 = vpop.f32.mrb[40].mxu1  ;;  %2011 = vmatprep.mubr.bf16.mxu0 %v14120_v5 }
 0x601   : > { %v8040_v17 = vpop.f32.mrb[41].mxu1  ;;  %2661 = vmatprep.subr.bf16.mxu0 %v14120_v5  ;;  %v2592_v44 = vpop.permute.xlu1 %2591 }
 0x602   : > { %2576 = vrot.lane.b32.xlu1 %v10375_v8, %s9237_s14  ;;  %v1804_v31 = vpop.f32.mrb[42].mxu1 }
 0x603   : > { %v2399_v13 = vpack.c.bf16 %v1804_v31, %v1801_v20  ;;  %v8041_v36 = vpop.f32.mrb[43].mxu1 }
 0x604   : > { %2574 = vrot.lane.b32.xlu0 %v10351_v63, %s9237_s14 }
 0x605   : > { %2441 = vmatpush1.bf16.msra.mxu1 %v2399_v13 }
 0x606   : > { %7651 = vmatmul.mubr.msk.bf16.gmra.mrb[40].mxu0 %vm1914_vm3, %v10321_v42  ;;  %3096 = vrot.lane.b32.xlu1 %v2398_v7, %s9237_s14  ;;  %v2639_v42 = vsel %vm1914_vm3, %v2592_v44, 0 }
 0x607   : > { %2662 = vmatpush1.bf16.xpose.msra.mxu0 %v2636_v26  ;;  %2442 = vmatprep.subr.bf16.mxu1 %v14120_v5 }
 0x608   : > { %3098 = vrot.lane.b32.xlu0 %v2399_v13, %s9237_s14  ;;  %v1809_v47 = vpop.f32.mrb[44].mxu1  ;;  %2021 = vmatprep.mubr.bf16.mxu0 %v14120_v5 }
 0x609   : > { %v8044_v38 = vpop.f32.mrb[45].mxu1  ;;  %2663 = vmatprep.subr.bf16.mxu0 %v14120_v5  ;;  %v2594_v15 = vpop.permute.xlu1 %2593 }
 0x60a   : > { %v1812_v49 = vpop.f32.mrb[46].mxu1  ;;  %v2642_v12 = vsel %vm1914_vm3, %v2594_v15, 0 }
 0x60b   : > { %v2400_v24 = vpack.c.bf16 %v1812_v49, %v1809_v47  ;;  %v8045_v6 = vpop.f32.mrb[47].mxu1 }
 0x60d   : > { %3100 = vrot.lane.b32.xlu1 %v2400_v24, %s9237_s14  ;;  %2443 = vmatpush1.bf16.msra.mxu1 %v2400_v24 }
 0x60e   : > { %7652 = vmatmul.mubr.msk.bf16.gmra.mrb[44].mxu0 %vm1914_vm3, %v10326_v57  ;;  %2444 = vmatprep.subr.bf16.mxu1 %v14120_v5 }
 0x60f   : > { %2664 = vmatpush1.bf16.xpose.msra.mxu0 %v2639_v42  ;;  %2031 = vmatprep.mubr.bf16.mxu0 %v14120_v5 }
 0x610   : > { %v1817_v16 = vpop.f32.mrb[48].mxu1  ;;  %2665 = vmatprep.subr.bf16.mxu0 %v14120_v5 }
 0x611   : > { %v8048_v40 = vpop.f32.mrb[49].mxu1  ;;  %v2596_v18 = vpop.permute.xlu0 %2595 }
 0x612   : > { %v1820_v34 = vpop.f32.mrb[50].mxu1  ;;  %v2645_v51 = vsel %vm1914_vm3, %v2596_v18, 0 }
 0x613   : > { %v2401_v50 = vpack.c.bf16 %v1820_v34, %v1817_v16  ;;  %v8049_v60 = vpop.f32.mrb[51].mxu1 }
 0x615   : > { %3102 = vrot.lane.b32.xlu0 %v2401_v50, %s9237_s14  ;;  %2445 = vmatpush1.bf16.msra.mxu1 %v2401_v50 }
 0x616   : > { %7653 = vmatmul.mubr.msk.bf16.gmra.mrb[48].mxu0 %vm1914_vm3, %v10331_v14  ;;  %2446 = vmatprep.subr.bf16.mxu1 %v14120_v5 }
 0x617   : > { %2666 = vmatpush1.bf16.xpose.msra.mxu0 %v2642_v12  ;;  %2041 = vmatprep.mubr.bf16.mxu0 %v14120_v5 }
 0x618   : > { %v1825_v57 = vpop.f32.mrb[52].mxu1  ;;  %2667 = vmatprep.subr.bf16.mxu0 %v14120_v5 }
 0x619   : > { %v8052_v33 = vpop.f32.mrb[53].mxu1 }
 0x61a   : > { %v1828_v56 = vpop.f32.mrb[54].mxu1 }
 0x61b   : > { %v10407_v54 = vpack.c.bf16 %v1828_v56, %v1825_v57  ;;  %v8053_v22 = vpop.f32.mrb[55].mxu1 }
 0x61d   : > { %2447 = vmatpush1.bf16.msra.mxu1 %v10407_v54 }
 0x61e   : > { %7654 = vmatmul.mubr.msk.bf16.gmra.mrb[52].mxu0 %vm1914_vm3, %v10336_v21  ;;  %2448 = vmatprep.subr.bf16.mxu1 %v14120_v5 }
 0x61f   : > { %2668 = vmatpush1.bf16.xpose.msra.mxu0 %v2645_v51  ;;  %2051 = vmatprep.mubr.bf16.mxu0 %v14120_v5 }
 0x620   : > { %v1833_v14 = vpop.f32.mrb[56].mxu1  ;;  %2669 = vmatprep.subr.bf16.mxu0 %v14120_v5 }
 0x621   : > { %v8056_v7 = vpop.f32.mrb[57].mxu1 }
 0x622   : > { %v1836_v0 = vpop.f32.mrb[58].mxu1 }
 0x623   : > { %v10416_v27 = vpack.c.bf16 %v1836_v0, %v1833_v14  ;;  %v8057_v61 = vpop.f32.mrb[59].mxu1 }
 0x625   : > { %2449 = vmatpush1.bf16.msra.mxu1 %v10416_v27 }
 0x626   : > { %7655 = vmatmul.mubr.msk.bf16.gmra.mrb[56].mxu0 %vm1914_vm3, %v10341_v2  ;;  %2450 = vmatprep.subr.bf16.mxu1 %v14120_v5 }
 0x627   : > { %2061 = vmatprep.mubr.bf16.mxu0 %v14120_v5 }
 0x628   : > { %v1841_v21 = vpop.f32.mrb[60].mxu1 }
 0x629   : > { %v8060_v20 = vpop.f32.mrb[61].mxu1 }
 0x62a   : > { %v1844_v17 = vpop.f32.mrb[62].mxu1  ;;  %v10489_v20 = vld [vmem:[%s14107_s3 + $0x8] sm:$0xff] }
 0x62b   : > { %v10423_v31 = vpack.c.bf16 %v1844_v17, %v1841_v21  ;;  %v8061_v43 = vpop.f32.mrb[63].mxu1  ;;  %v10494_v17 = vld [vmem:[%s14107_s3] sm:$0xff] }
 0x62d   : > { %2451 = vmatpush1.bf16.msra.mxu1 %v10423_v31 }
 0x62e   : > { %7656 = vmatmul.mubr.msk.bf16.gmra.mrb[60].mxu0 %vm1914_vm3, %v10346_v46  ;;  %2452 = vmatprep.subr.bf16.mxu1 %v14120_v5 }
 0x62f   : > { %2071 = vmatprep.mubr.bf16.mxu0 %v14120_v5 }
 0x630   : > { %v1849_v2 = vpop.f32.mrb[64].mxu1 }
 0x631   : > { %v8064_v13 = vpop.f32.mrb[65].mxu1 }
 0x632   : > { %v1852_v36 = vpop.f32.mrb[66].mxu1  ;;  %v10499_v13 = vld [vmem:[%s14107_s3 + $0x18] sm:$0xff] }
 0x633   : > { %v10430_v26 = vpack.c.bf16 %v1852_v36, %v1849_v2  ;;  %v8065_v47 = vpop.f32.mrb[67].mxu1 }
 0x634   : > { %v10507_v47 = vld [vmem:[%s14107_s3 + $0x10] sm:$0xff] }
 0x635   : > { %14297 = vst [vmem:[#allocation25_spill] sm:$0xff] %v10430_v26  ;;  %2453 = vmatpush1.bf16.msra.mxu1 %v10430_v26 }
 0x636   : > { %7657 = vmatmul.mubr.msk.bf16.gmra.mrb[64].mxu0 %vm1914_vm3, %v10351_v63  ;;  %2454 = vmatprep.subr.bf16.mxu1 %v14120_v5 }
 0x637   : > { %2081 = vmatprep.mubr.bf16.mxu0 %v14120_v5 }
 0x638   : > { %v1857_v46 = vpop.f32.mrb[68].mxu1 }
 0x639   : > { %v10437_v38 = vpack.c.bf16 %v1857_v46, %v1857_v46  ;;  %v8068_v49 = vpop.f32.mrb[69].mxu1 }
 0x63a   : > { %v1860_v44 = vpop.f32.mrb[70].mxu1 }
 0x63b   : > { %14298 = vst [vmem:[#allocation26_spill] sm:$0xff] %v10437_v38  ;;  %v8069_v24 = vpop.f32.mrb[71].mxu1  ;;  %v2436_v6 = vsel %vm2434_vm4, %v10437_v38, 0 }
 0x63c   : > { %2455 = vmatpush1.bf16.msra.mxu1 %v2436_v6 }
 0x63d   : > { %8442 = vmatprep.subr.bf16.mxu1 %v14120_v5 }
 0x63e   : > { %7658 = vmatmul.mubr.msk.bf16.gmra.mrb[68].mxu0 %vm1914_vm3, %v10375_v8 }
 0x63f   : > { %2691 = vmatprep.mubr.bf16.mxu0 %v14120_v5 }
 0x642   : > { %v2598_v63 = vpop.permute.xlu1 %2597 }
 0x643   : > { %v2648_v42 = vsel %vm1914_vm3, %v2598_v63, 0 }
 0x644   : > { %2670 = vmatpush1.bf16.xpose.msra.mxu0 %v2648_v42 }
 0x645   : > { %2671 = vmatprep.subr.bf16.mxu0 %v14120_v5 }
 0x64a   : > { %v2600_v16 = vpop.permute.xlu0 %2599 }
 0x64b   : > { %v2651_v40 = vsel %vm1914_vm3, %v2600_v16, 0 }
 0x64c   : > { %2672 = vmatpush1.bf16.xpose.msra.mxu0 %v2651_v40 }
 0x64d   : > { %2673 = vmatprep.subr.bf16.mxu0 %v14120_v5 }
 0x660   : > { %v2602_v34 = vpop.permute.xlu1 %2601 }
 0x661   : > { %v2654_v15 = vsel %vm1914_vm3, %v2602_v34, 0 }
 0x662   : > { %2674 = vmatpush1.bf16.xpose.msra.mxu0 %v2654_v15 }
 0x663   : > { %2675 = vmatprep.subr.bf16.mxu0 %v14120_v5 }
 0x664   : > { %v2561_v8 = vpop.permute.xlu1 %2560 }
 0x666   : > { %v2604_v50 = vpop.permute.xlu0 %2603 }
 0x667   : > { %v2657_v12 = vsel %vm1914_vm3, %v2604_v50, 0 }
 0x668   : > { %v2565_v60 = vpop.permute.xlu1 %2564 }
 0x66a   : > { %2676 = vmatpush1.bf16.xpose.msra.mxu0 %v2657_v12  ;;  %v2563_v57 = vpop.permute.xlu0 %2562 }
 0x66b   : > { %3152 = vmatprep.subr.bf16.mxu0 %v14120_v5 }
 0x66c   : > { %v2569_v33 = vpop.permute.xlu1 %2568 }
 0x66e   : > { %v2567_v56 = vpop.permute.xlu0 %2566 }
 0x670   : > { %v2573_v18 = vpop.permute.xlu1 %2572 }
 0x671   : > { %7668 = vmatmul.mubr.msk.bf16.vlgmr.msra.gmra.mrb[72].mxu0 %vm1914_vm3, %v2561_v8 }
 0x672   : > { %v2571_v22 = vpop.permute.xlu0 %2570  ;;  %2701 = vmatprep.mubr.bf16.mxu0 %v14120_v5 }
 0x674   : > { %v2577_v51 = vpop.permute.xlu1 %2576 }
 0x676   : > { %v2575_v14 = vpop.permute.xlu0 %2574 }
 0x678   : > { %v10455_v7 = vpop.permute.xlu1 %3096 }
 0x679   : > { %14299 = vst [vmem:[#allocation27_spill] sm:$0xff] %v10455_v7  ;;  %7669 = vmatmul.mubr.msk.bf16.gmra.mrb[76].mxu0 %vm1914_vm3, %v2563_v57 }
 0x67a   : > { %3153 = vmatpush1.bf16.msra.mxu0 %v10455_v7  ;;  %2711 = vmatprep.mubr.bf16.mxu0 %v14120_v5  ;;  %v10461_v0 = vpop.permute.xlu0 %3098 }
 0x67b   : > { %3154 = vmatprep.subr.bf16.mxu0 %v14120_v5  ;;  %14300 = vst [vmem:[#allocation28_spill] sm:$0xff] %v10461_v0 }
 0x67e   : > { %3155 = vmatpush1.bf16.msra.mxu0 %v10461_v0 }
 0x67f   : > { %v10464_v61 = vpop.permute.xlu1 %3100  ;;  %3156 = vmatprep.subr.bf16.mxu0 %v14120_v5 }
 0x680   : > { %14301 = vst [vmem:[#allocation29_spill] sm:$0xff] %v10464_v61 }
 0x681   : > { %7670 = vmatmul.mubr.msk.bf16.gmra.mrb[80].mxu0 %vm1914_vm3, %v2565_v60 }
 0x682   : > { %3157 = vmatpush1.bf16.msra.mxu0 %v10464_v61  ;;  %2721 = vmatprep.mubr.bf16.mxu0 %v14120_v5 }
 0x683   : > { %3158 = vmatprep.subr.bf16.mxu0 %v14120_v5 }
 0x687   : > { %v10471_v21 = vpop.permute.xlu0 %3102 }
 0x688   : > { %14302 = vst [vmem:[#allocation30_spill] sm:$0xff] %v10471_v21  ;;  %3159 = vmatpush1.bf16.msra.mxu0 %v10471_v21  ;;  %v10680_v21 = vld [vmem:[%s14107_s3 + $0x70] sm:$0xff] }
 0x689   : > { %7671 = vmatmul.mubr.msk.bf16.gmra.mrb[84].mxu0 %vm1914_vm3, %v2567_v56  ;;  %3160 = vmatprep.subr.bf16.mxu0 %v14120_v5 }
 0x68a   : > { %2731 = vmatprep.mubr.bf16.mxu0 %v14120_v5 }
 0x691   : > { %7672 = vmatmul.mubr.msk.bf16.gmra.mrb[88].mxu0 %vm1914_vm3, %v2569_v33 }
 0x692   : > { %2741 = vmatprep.mubr.bf16.mxu0 %v14120_v5 }
 0x699   : > { %7673 = vmatmul.mubr.msk.bf16.gmra.mrb[92].mxu0 %vm1914_vm3, %v2571_v22 }
 0x69a   : > { %2751 = vmatprep.mubr.bf16.mxu0 %v14120_v5 }
 0x6a1   : > { %7674 = vmatmul.mubr.msk.bf16.gmra.mrb[96].mxu0 %vm1914_vm3, %v2573_v18 }
 0x6a2   : > { %2761 = vmatprep.mubr.bf16.mxu0 %v14120_v5 }
 0x6a9   : > { %7675 = vmatmul.mubr.msk.bf16.gmra.mrb[100].mxu0 %vm1914_vm3, %v2575_v14 }
 0x6aa   : > { %2771 = vmatprep.mubr.bf16.mxu0 %v14120_v5 }
 0x6b1   : > { %7676 = vmatmul.mubr.msk.bf16.gmra.mrb[104].mxu0 %vm1914_vm3, %v2577_v51 }
 0x6d1   : > { %v2003_v43 = vpop.f32.mrb[36].mxu0 }
 0x6d2   : > { %v2005_v2 = vpop.f32.mrb[37].mxu0  ;;  %v10510_v49 = vadd.f32 %v2003_v43, %v10494_v17 }
 0x6d3   : > { %v10502_v36 = vadd.f32 %v2005_v2, %v10489_v20  ;;  %v2007_v46 = vpop.f32.mrb[38].mxu0 }
 0x6d4   : > { %v2009_v44 = vpop.f32.mrb[39].mxu0  ;;  %v10518_v63 = vadd.f32 %v2007_v46, %v10507_v47 }
 0x6d5   : > { %v10513_v24 = vadd.f32 %v2009_v44, %v10499_v13  ;;  %v2091_v6 = vsel %vm2090_vm5, %v10502_v36, -inf }
 0x6d6   : > { %v2092_v42 = vmax.f32 %v10510_v49, %v2091_v6 }
 0x6d7   : > { %v2095_v16 = vsel %vm2090_vm5, %v10513_v24, -inf }
 0x6d8   : > { %2093 = vmax.xlane.f32.xlu0 %v2092_v42  ;;  %v2096_v40 = vmax.f32 %v10518_v63, %v2095_v16 }
 0x6d9   : > { %v2013_v34 = vpop.f32.mrb[40].mxu0 }
 0x6da   : > { %v2015_v15 = vpop.f32.mrb[41].mxu0  ;;  %2097 = vmax.xlane.f32.xlu1 %v2096_v40  ;;  %v10588_v55 = vadd.f32 %v2013_v34, %v10567_v37 }
 0x6db   : > { %v2017_v8 = vpop.f32.mrb[42].mxu0 }
 0x6dc   : > { %v2019_v50 = vpop.f32.mrb[43].mxu0 }
 0x6dd   : > { %v10578_v9 = vadd.f32 %v2019_v50, %v10562_v45  ;;  %v10600_v50 = vld [vmem:[%s14107_s3 + $0x30] sm:$0xff] }
 0x6de   : > { %v10631_v35 = vadd.f32 %v2017_v8, %v10600_v50 }
 0x6e1   : > { %v2023_v60 = vpop.f32.mrb[44].mxu0 }
 0x6e2   : > { %v2025_v12 = vpop.f32.mrb[45].mxu0  ;;  %v10608_v23 = vadd.f32 %v2023_v60, %v10583_v4  ;;  %v2103_v60 = vsel %vm2090_vm5, %v10578_v9, -inf }
 0x6e3   : > { %v2027_v57 = vpop.f32.mrb[46].mxu0  ;;  %v10570_v53 = vadd.f32 %v2025_v12, %v10550_v30  ;;  %v10593_v12 = vld [vmem:[%s14107_s3 + $0x58] sm:$0xff] }
 0x6e4   : > { %v2029_v33 = vpop.f32.mrb[47].mxu0  ;;  %v10669_v25 = vadd.f32 %v2027_v57, %v10642_v28 }
 0x6e5   : > { %v2107_v34 = vsel %vm2090_vm5, %v10570_v53, -inf  ;;  %v10619_v52 = vadd.f32 %v2029_v33, %v10593_v12 }
 0x6e6   : > { %v2108_v33 = vmax.f32 %v10608_v23, %v2107_v34  ;;  %v2104_v34 = vmax.f32 %v10631_v35, %v2103_v60 }
 0x6e7   : > { %14303 = vst [vmem:[#allocation31_spill] sm:$0xff] %v10619_v52 }
 0x6e9   : > { %v2033_v56 = vpop.f32.mrb[48].mxu0 }
 0x6ea   : > { %v2035_v18 = vpop.f32.mrb[49].mxu0 }
 0x6eb   : > { %v10524_v22 = vpop.f32.mrb[50].mxu0  ;;  %3104 = vrot.lane.b32.xlu1 %v10407_v54, %s9237_s14  ;;  %v10541_v54 = vld [vmem:[%s14107_s3 + $0x28] sm:$0xff] }
 0x6ec   : > { %v2039_v51 = vpop.f32.mrb[51].mxu0  ;;  %v10555_v5 = vadd.f32 %v2015_v15, %v10541_v54  ;;  %v10575_v15 = vld [vmem:[%s14107_s3 + $0x68] sm:$0xff] }
 0x6ed   : > { %v10603_v59 = vadd.f32 %v2035_v18, %v10575_v15  ;;  %v10624_v18 = vld [vmem:[%s14107_s3 + $0x60] sm:$0xff] }
 0x6ee   : > { %3106 = vrot.lane.b32.xlu0 %v10416_v27, %s9237_s14  ;;  %v2099_v19 = vsel %vm2090_vm5, %v10555_v5, -inf  ;;  %v10650_v32 = vadd.f32 %v2033_v56, %v10624_v18  ;;  %v2111_v56 = vsel %vm2090_vm5, %v10619_v52, -inf  ;;  %v10708_v52 = vadd.f32 %v10524_v22, %v10680_v21 }
 0x6ef   : > { %v2100_v41 = vmax.f32 %v10588_v55, %v2099_v19  ;;  %v10636_v19 = vld [vmem:[%s14107_s3 + $0x78] sm:$0xff]  ;;  %v2115_v8 = vsel %vm2090_vm5, %v10603_v59, -inf  ;;  %v2112_v7 = vmax.f32 %v10669_v25, %v2111_v56 }
 0x6f0   : > { %v10659_v39 = vadd.f32 %v2039_v51, %v10636_v19  ;;  %v2116_v51 = vmax.f32 %v10650_v32, %v2115_v8  ;;  %14308 = vst [vmem:[#allocation36_spill] sm:$0xff] %v10708_v52  ;;  %v10713_v56 = vld [vmem:[%s14107_s3 + $0xb8] sm:$0xff] }
 0x6f1   : > { %v2043_v14 = vpop.f32.mrb[52].mxu0 }
 0x6f2   : > { %v2045_v43 = vpop.f32.mrb[53].mxu0 }
 0x6f3   : > { %v10530_v2 = vpop.f32.mrb[54].mxu0  ;;  %v10645_v48 = vadd.f32 %v2045_v43, %v10613_v11  ;;  %v10664_v43 = vld [vmem:[%s14107_s3 + $0x80] sm:$0xff] }
 0x6f4   : > { %v2049_v46 = vpop.f32.mrb[55].mxu0  ;;  %v10688_v0 = vadd.f32 %v2043_v14, %v10664_v43  ;;  %v2119_v14 = vsel %vm2090_vm5, %v10659_v39, -inf }
 0x6f5   : > { %14304 = vst [vmem:[#allocation32_spill] sm:$0xff] %v10645_v48  ;;  %v2123_v57 = vsel %vm2090_vm5, %v10645_v48, -inf }
 0x6f6   : > { %14306 = vst [vmem:[#allocation34_spill] sm:$0xff] %v10688_v0 }
 0x6f9   : > { %v10532_v44 = vpop.f32.mrb[56].mxu0 }
 0x6fa   : > { %v2055_v6 = vpop.f32.mrb[57].mxu0 }
 0x6fb   : > { %v10534_v42 = vpop.f32.mrb[58].mxu0 }
 0x6fc   : > { %v10536_v16 = vpop.f32.mrb[59].mxu0 }
 0x701   : > { %v10543_v40 = vpop.f32.mrb[60].mxu0 }
 0x702   : > { %v10545_v27 = vpop.f32.mrb[61].mxu0 }
 0x703   : > { %v10552_v62 = vpop.f32.mrb[62].mxu0 }
 0x704   : > { %v10557_v58 = vpop.f32.mrb[63].mxu0 }
 0x709   : > { %v10595_v10 = vpop.f32.mrb[64].mxu0 }
 0x70a   : > { %v2075_v29 = vpop.f32.mrb[65].mxu0 }
 0x70b   : > { %v10615_v3 = vpop.f32.mrb[66].mxu0 }
 0x70c   : > { %v10626_v1 = vpop.f32.mrb[67].mxu0 }
 0x70d   : > { %2101 = vmax.xlane.f32.xlu0 %v2100_v41  ;;  %v10655_v41 = vld [vmem:[%s14107_s3 + $0xa8] sm:$0xff] }
 0x70e   : > { %v10683_v38 = vadd.f32 %v2055_v6, %v10655_v41  ;;  %v10702_v6 = vld [vmem:[%s14107_s3 + $0xa0] sm:$0xff] }
 0x70f   : > { %2109 = vmax.xlane.f32.xlu1 %v2108_v33  ;;  %v10674_v33 = vld [vmem:[%s14107_s3 + $0x98] sm:$0xff] }
 0x710   : > { %14305 = vst [vmem:[#allocation33_spill] sm:$0xff] %v10683_v38  ;;  %v10697_v26 = vadd.f32 %v2049_v46, %v10674_v33  ;;  %v2124_v46 = vmax.f32 %v10688_v0, %v2123_v57  ;;  %v2131_v22 = vsel %vm2090_vm5, %v10683_v38, -inf  ;;  %v2120_v57 = vmax.f32 %v10708_v52, %v2119_v14  ;;  %v10755_v14 = vld [vmem:[%s14107_s3 + $0xd8] sm:$0xff] }
 0x711   : > { %v2083_v60 = vpop.f32.mrb[68].mxu0  ;;  %2105 = vmax.xlane.f32.xlu0 %v2104_v34  ;;  %v10693_v34 = vld [vmem:[%s14107_s3 + $0xc8] sm:$0xff]  ;;  %v10739_v0 = vadd.f32 %v10536_v16, %v10713_v56 }
 0x712   : > { %v2085_v61 = vpop.f32.mrb[69].mxu0  ;;  %14307 = vst [vmem:[#allocation35_spill] sm:$0xff] %v10697_v26 }
 0x713   : > { %v2087_v8 = vpop.f32.mrb[70].mxu0  ;;  %2117 = vmax.xlane.f32.xlu1 %v2116_v51  ;;  %v10719_v51 = vld [vmem:[%s14107_s3 + $0x90] sm:$0xff]  ;;  %14311 = vst [vmem:[#allocation39_spill] sm:$0xff] %v10739_v0 }
 0x714   : > { %v2088_v48 = vpop.f32.mrb[71].mxu0  ;;  %v10729_v8 = vadd.f32 %v10532_v44, %v10702_v6  ;;  %v2127_v44 = vsel %vm2090_vm5, %v10697_v26, -inf  ;;  %v10750_v38 = vadd.f32 %v10530_v2, %v10719_v51 }
 0x715   : > { %2113 = vmax.xlane.f32.xlu0 %v2112_v7  ;;  %v10723_v48 = vadd.f32 %v10545_v27, %v10693_v34  ;;  %v10734_v7 = vld [vmem:[%s14107_s3 + $0xe8] sm:$0xff]  ;;  %v10744_v27 = vld [vmem:[%s14107_s3 + $0xc0] sm:$0xff] }
 0x716   : > { %14310 = vst [vmem:[#allocation38_spill] sm:$0xff] %v10729_v8  ;;  %14312 = vst [vmem:[#allocation40_spill] sm:$0xff] %v10750_v38  ;;  %v2132_v16 = vmax.f32 %v10729_v8, %v2131_v22  ;;  %v10764_v52 = vadd.f32 %v2075_v29, %v10734_v7  ;;  %v10770_v26 = vadd.f32 %v10543_v40, %v10744_v27  ;;  %v10785_v29 = vld [vmem:[%s14107_s3 + $0xe0] sm:$0xff]  ;;  %v2135_v40 = vsel %vm2090_vm5, %v10739_v0, -inf }
 0x717   : > { %14309 = vst [vmem:[#allocation37_spill] sm:$0xff] %v10723_v48  ;;  %2125 = vmax.xlane.f32.xlu1 %v2124_v46  ;;  %v10761_v46 = vld [vmem:[%s14107_s3 + $0xb0] sm:$0xff]  ;;  %v2139_v2 = vsel %vm2090_vm5, %v10723_v48, -inf  ;;  %v2128_v22 = vmax.f32 %v10750_v38, %v2127_v44  ;;  %v10780_v8 = vadd.f32 %v10557_v58, %v10755_v14  ;;  %v10796_v44 = vld [vmem:[%s14107_s3 + $0xf8] sm:$0xff]  ;;  %v10811_v0 = vadd.f32 %v10595_v10, %v10785_v29 }
 0x718   : > { %14313 = vst [vmem:[#allocation41_spill] sm:$0xff] %v10764_v52  ;;  %14314 = vst [vmem:[#allocation42_spill] sm:$0xff] %v10770_v26  ;;  %v10791_v48 = vadd.f32 %v10534_v42, %v10761_v46  ;;  %v2140_v58 = vmax.f32 %v10770_v26, %v2139_v2  ;;  %v2147_v42 = vsel %vm2090_vm5, %v10764_v52, -inf  ;;  %v10816_v2 = vadd.f32 %v10626_v1, %v10796_v44  ;;  %v10821_v26 = vld [vmem:[%s14107_s3 + $0x100] sm:$0xff]  ;;  %v10833_v1 = vld [vmem:[%s14107_s3 + $0xf0] sm:$0xff] }
 0x719   : > { %2121 = vmax.xlane.f32.xlu0 %v2120_v57  ;;  %v10775_v57 = vld [vmem:[%s14107_s3 + $0x108] sm:$0xff]  ;;  %14315 = vst [vmem:[#allocation43_spill] sm:$0xff] %v10780_v8  ;;  %14317 = vst [vmem:[#allocation45_spill] sm:$0xff] %v10811_v0  ;;  %v2148_v10 = vmax.f32 %v10811_v0, %v2147_v42  ;;  %v10845_v42 = vadd.f32 %v10615_v3, %v10833_v1 }
 0x71a   : > { %v10805_v38 = vadd.f32 %v2085_v61, %v10775_v57  ;;  %14318 = vst [vmem:[#allocation46_spill] sm:$0xff] %v10816_v2  ;;  %14319 = vst [vmem:[#allocation47_spill] sm:$0xff] %v10821_v26  ;;  %v2143_v61 = vsel %vm2090_vm5, %v10780_v8, -inf }
 0x71b   : > { %2133 = vmax.xlane.f32.xlu1 %v2132_v16  ;;  %v10802_v16 = vld [vmem:[%s14107_s3 + $0xd0] sm:$0xff] }
 0x71c   : > { %14316 = vst [vmem:[#allocation44_spill] sm:$0xff] %v10805_v38  ;;  %v10827_v52 = vadd.f32 %v10552_v62, %v10802_v16  ;;  %v2151_v62 = vsel %vm2090_vm5, %v10816_v2, -inf }
 0x71d   : > { %2129 = vmax.xlane.f32.xlu0 %v2128_v22  ;;  %v2136_v22 = vmax.f32 %v10791_v48, %v2135_v40  ;;  %v2155_v40 = vsel %vm2090_vm5, %v10805_v38, -inf  ;;  %v2152_v0 = vmax.f32 %v10845_v42, %v2151_v62 }
 0x71e   : > { %v2144_v8 = vmax.f32 %v10827_v52, %v2143_v61 }
 0x71f   : > { %2141 = vmax.xlane.f32.xlu1 %v2140_v58  ;;  %v10838_v58 = vadd.f32 %v2083_v60, %v10821_v26 }
 0x721   : > { %2137 = vmax.xlane.f32.xlu0 %v2136_v22  ;;  %v2156_v22 = vmax.f32 %v10838_v58, %v2155_v40 }
 0x723   : > { %2149 = vmax.xlane.f32.xlu1 %v2148_v10 }
 0x725   : > { %2145 = vmax.xlane.f32.xlu0 %v2144_v8 }
 0x727   : > { %2157 = vmax.xlane.f32.xlu1 %v2156_v22 }
 0x729   : > { %2153 = vmax.xlane.f32.xlu0 %v2152_v0 }
 0x744   : > { %v2693_v38 = vpop.f32.mrb[72].mxu0 }
 0x745   : > { %v2695_v60 = vpop.f32.mrb[73].mxu0  ;;  %v10853_v26 = vadd.f32 %v2693_v38, %v10494_v17 }
 0x746   : > { %v10850_v10 = vadd.f32 %v2695_v60, %v10489_v20  ;;  %v2697_v61 = vpop.f32.mrb[74].mxu0 }
 0x747   : > { %v2699_v2 = vpop.f32.mrb[75].mxu0  ;;  %v10861_v40 = vadd.f32 %v2697_v61, %v10507_v47 }
 0x748   : > { %v10856_v3 = vadd.f32 %v2699_v2, %v10499_v13  ;;  %v2780_v8 = vsel %vm2090_vm5, %v10850_v10, -inf }
 0x749   : > { %v2781_v0 = vmax.f32 %v10853_v26, %v2780_v8 }
 0x74a   : > { %v2784_v20 = vsel %vm2090_vm5, %v10856_v3, -inf }
 0x74b   : > { %2782 = vmax.xlane.f32.xlu1 %v2781_v0  ;;  %v2785_v62 = vmax.f32 %v10861_v40, %v2784_v20 }
 0x74c   : > { %v2703_v38 = vpop.f32.mrb[76].mxu0 }
 0x74d   : > { %2786 = vmax.xlane.f32.xlu0 %v2785_v62  ;;  %v2705_v17 = vpop.f32.mrb[77].mxu0  ;;  %v10871_v22 = vadd.f32 %v2703_v38, %v10567_v37 }
 0x74e   : > { %v10868_v13 = vadd.f32 %v2705_v17, %v10541_v54  ;;  %v2707_v2 = vpop.f32.mrb[78].mxu0 }
 0x74f   : > { %v2709_v47 = vpop.f32.mrb[79].mxu0  ;;  %v10879_v8 = vadd.f32 %v2707_v2, %v10600_v50 }
 0x750   : > { %v10874_v60 = vadd.f32 %v2709_v47, %v10562_v45  ;;  %v2788_v61 = vsel %vm2090_vm5, %v10868_v13, -inf }
 0x751   : > { %14321 = vst [vmem:[#allocation49_spill] sm:$0xff] %v10879_v8  ;;  %v2789_v0 = vmax.f32 %v10871_v22, %v2788_v61 }
 0x752   : > { %14320 = vst [vmem:[#allocation48_spill] sm:$0xff] %v10874_v60  ;;  %v2792_v54 = vsel %vm2090_vm5, %v10874_v60, -inf }
 0x753   : > { %2790 = vmax.xlane.f32.xlu1 %v2789_v0  ;;  %v2793_v20 = vmax.f32 %v10879_v8, %v2792_v54 }
 0x754   : > { %v10885_v37 = vpop.f32.mrb[80].mxu0 }
 0x755   : > { %v10887_v62 = vpop.f32.mrb[81].mxu0  ;;  %2794 = vmax.xlane.f32.xlu0 %v2793_v20 }
 0x756   : > { %v2717_v45 = vpop.f32.mrb[82].mxu0 }
 0x757   : > { %v2719_v38 = vpop.f32.mrb[83].mxu0  ;;  %v10893_v50 = vadd.f32 %v2717_v45, %v10642_v28 }
 0x758   : > { %v10890_v17 = vadd.f32 %v2719_v38, %v10593_v12 }
 0x759   : > { %14323 = vst [vmem:[#allocation51_spill] sm:$0xff] %v10893_v50 }
 0x75a   : > { %14322 = vst [vmem:[#allocation50_spill] sm:$0xff] %v10890_v17  ;;  %v2800_v2 = vsel %vm2090_vm5, %v10890_v17, -inf }
 0x75b   : > { %v2801_v47 = vmax.f32 %v10893_v50, %v2800_v2 }
 0x75c   : > { %v10898_v61 = vpop.f32.mrb[84].mxu0 }
 0x75d   : > { %2802 = vmax.xlane.f32.xlu1 %v2801_v47  ;;  %v10900_v0 = vpop.f32.mrb[85].mxu0 }
 0x75e   : > { %v2727_v54 = vpop.f32.mrb[86].mxu0 }
 0x75f   : > { %v2729_v20 = vpop.f32.mrb[87].mxu0  ;;  %v10906_v12 = vadd.f32 %v2727_v54, %v10680_v21 }
 0x760   : > { %v10903_v60 = vadd.f32 %v2729_v20, %v10636_v19 }
 0x761   : > { %14325 = vst [vmem:[#allocation53_spill] sm:$0xff] %v10906_v12 }
 0x762   : > { %14324 = vst [vmem:[#allocation52_spill] sm:$0xff] %v10903_v60  ;;  %v2808_v28 = vsel %vm2090_vm5, %v10903_v60, -inf }
 0x763   : > { %v2809_v45 = vmax.f32 %v10906_v12, %v2808_v28 }
 0x764   : > { %v10911_v38 = vpop.f32.mrb[88].mxu0 }
 0x765   : > { %v10913_v2 = vpop.f32.mrb[89].mxu0  ;;  %2810 = vmax.xlane.f32.xlu1 %v2809_v45  ;;  %v2094_v20 = vpop.xlane.xlu0 %2093 }
 0x766   : > { %v2737_v47 = vpop.f32.mrb[90].mxu0 }
 0x767   : > { %v2098_v17 = vpop.xlane.xlu1 %2097  ;;  %v2739_v50 = vpop.f32.mrb[91].mxu0  ;;  %v10921_v54 = vadd.f32 %v2737_v47, %v10719_v51  ;;  %v14328_v51 = vmov 0  }
 0x768   : > { %v2161_v8 = vsub.f32 %v10518_v63, %v2098_v17  ;;  %v2162_v19 = vsub.f32 %v10513_v24, %v2098_v17  ;;  %v10918_v21 = vadd.f32 %v2739_v50, %v10674_v33 }
 0x769   : > { %14326 = vst [vmem:[#allocation54_spill] sm:$0xff] %v10921_v54  ;;  %v10932_v17 = vpop.permute.xlu0 %3106 }
 0x76a   : > { %v2197_v28 = vmul.f32 1.442695, %v2161_v8  ;;  %v2199_v12 = vmul.f32 1.442695, %v2162_v19  ;;  %v2816_v45 = vsel %vm2090_vm5, %v10918_v21, -inf  ;;  %14329 = vst [vmem:[#allocation56_spill] sm:$0xff] %v10932_v17 }
 0x76b   : > { %v10923_v60 = vpop.permute.xlu1 %3104  ;;  %3108 = vrot.lane.b32.xlu0 %v10423_v31, %s9237_s14  ;;  %v2817_v24 = vmax.f32 %v10921_v54, %v2816_v45 }
 0x76c   : > { %14327 = vst [vmem:[#allocation55_spill] sm:$0xff] %v10923_v60  ;;  %8607 = vpow2.f32 %v2197_v28  ;;  %v2743_v63 = vpop.f32.mrb[92].mxu0  ;;  %3161 = vmatpush1.bf16.msra.mxu0 %v10923_v60 }
 0x76d   : > { %8609 = vpow2.f32 %v2199_v12  ;;  %v2745_v33 = vpop.f32.mrb[93].mxu0  ;;  %3162 = vmatprep.subr.bf16.mxu0 %v14328_v51  ;;  %2818 = vmax.xlane.f32.xlu1 %v2817_v24 }
 0x76e   : > { %v2747_v8 = vpop.f32.mrb[94].mxu0 }
 0x76f   : > { %v2749_v50 = vpop.f32.mrb[95].mxu0  ;;  %v10939_v47 = vadd.f32 %v2747_v8, %v10761_v46 }
 0x770   : > { %v10935_v31 = vadd.f32 %v2749_v50, %v10713_v56  ;;  %3163 = vmatpush1.bf16.msra.mxu0 %v10932_v17 }
 0x771   : > { %14331 = vst [vmem:[#allocation58_spill] sm:$0xff] %v10939_v47  ;;  %3164 = vmatprep.subr.bf16.mxu0 %v14328_v51 }
 0x772   : > { %14330 = vst [vmem:[#allocation57_spill] sm:$0xff] %v10935_v31  ;;  %v2824_v12 = vsel %vm2090_vm5, %v10935_v31, -inf }
 0x773   : > { %v2825_v19 = vmax.f32 %v10939_v47, %v2824_v12 }
 0x774   : > { %v2753_v28 = vpop.f32.mrb[96].mxu0 }
 0x775   : > { %v2755_v45 = vpop.f32.mrb[97].mxu0  ;;  %2826 = vmax.xlane.f32.xlu1 %v2825_v19 }
 0x776   : > { %v10945_v24 = vpop.eup %8607  ;;  %v2757_v60 = vpop.f32.mrb[98].mxu0 }
 0x777   : > { %v10947_v56 = vpop.eup %8609  ;;  %v2759_v50 = vpop.f32.mrb[99].mxu0  ;;  %v10955_v8 = vadd.f32 %v2757_v60, %v10802_v16  ;;  %v2160_v16 = vsub.f32 %v10502_v36, %v2094_v20  ;;  %v10972_v60 = vadd.f32 %v10887_v62, %v10550_v30  ;;  %v10987_v36 = vadd.f32 %v10885_v37, %v10583_v4 }
 0x778   : > { %14332 = vst [vmem:[#allocation59_spill] sm:$0xff] %v10947_v56  ;;  %v10950_v17 = vadd.f32 %v2759_v50, %v10755_v14  ;;  %v2265_v46 = vsel %vm2090_vm5, %v10947_v56, 0.0  ;;  %v11002_v37 = vadd.f32 %v2745_v33, %v10655_v41 }
 0x779   : > { %14334 = vst [vmem:[#allocation61_spill] sm:$0xff] %v10955_v8  ;;  %v2266_v12 = vadd.f32 %v10945_v24, %v2265_v46  ;;  %v2159_v46 = vsub.f32 %v10510_v49, %v2094_v20  ;;  %v10992_v20 = vadd.f32 %v10913_v2, %v10613_v11  ;;  %v11008_v11 = vadd.f32 %v10911_v38, %v10664_v43 }
 0x77a   : > { %14333 = vst [vmem:[#allocation60_spill] sm:$0xff] %v10950_v17  ;;  %v2832_v19 = vsel %vm2090_vm5, %v10950_v17, -inf }
 0x77b   : > { %2267 = vadd.xlane.f32.xlu1 %v2266_v12  ;;  %v2833_v47 = vmax.f32 %v10955_v8, %v2832_v19  ;;  %v2195_v12 = vmul.f32 1.442695, %v2160_v16  ;;  %v10979_v19 = vadd.f32 %v10900_v0, %v10575_v15  ;;  %v2193_v62 = vmul.f32 1.442695, %v2159_v46 }
 0x77c   : > { %v10961_v31 = vpop.f32.mrb[100].mxu0  ;;  %v10998_v0 = vadd.f32 %v10898_v61, %v10624_v18  ;;  %v2820_v18 = vsel %vm2090_vm5, %v11002_v37, -inf  ;;  %v11016_v16 = vadd.f32 %v2743_v63, %v10702_v6  ;;  %v11022_v46 = vadd.f32 %v2755_v45, %v10693_v34 }
 0x77d   : > { %v10963_v54 = vpop.f32.mrb[101].mxu0  ;;  %8611 = vpow2.f32 %v2195_v12  ;;  %v2804_v15 = vsel %vm2090_vm5, %v10979_v19, -inf  ;;  %v11030_v6 = vadd.f32 %v2753_v28, %v10744_v27 }
 0x77e   : > { %v10965_v14 = vpop.f32.mrb[102].mxu0  ;;  %8613 = vpow2.f32 %v2193_v62  ;;  %v2805_v4 = vmax.f32 %v10998_v0, %v2804_v15  ;;  %v2821_v41 = vmax.f32 %v11016_v16, %v2820_v18  ;;  %v2828_v12 = vsel %vm2090_vm5, %v11022_v46, -inf }
 0x77f   : > { %2834 = vmax.xlane.f32.xlu1 %v2833_v47  ;;  %v10967_v50 = vpop.f32.mrb[103].mxu0  ;;  %v2796_v47 = vsel %vm2090_vm5, %v10972_v60, -inf  ;;  %v2829_v45 = vmax.f32 %v11030_v6, %v2828_v12 }
 0x780   : > { %v2797_v49 = vmax.f32 %v10987_v36, %v2796_v47 }
 0x784   : > { %v10975_v17 = vpop.f32.mrb[104].mxu0 }
 0x785   : > { %v10981_v8 = vpop.f32.mrb[105].mxu0 }
 0x786   : > { %v2777_v30 = vpop.f32.mrb[106].mxu0 }
 0x787   : > { %v2778_v56 = vpop.f32.mrb[107].mxu0  ;;  %v11013_v61 = vpop.eup %8611 }
 0x788   : > { %v2812_v56 = vsel %vm2090_vm5, %v10992_v20, -inf  ;;  %v11019_v33 = vpop.eup %8613  ;;  %v2261_v43 = vsel %vm2090_vm5, %v11013_v61, 0.0 }
 0x789   : > { %v2813_v2 = vmax.f32 %v11008_v11, %v2812_v56  ;;  %v2262_v38 = vadd.f32 %v11019_v33, %v2261_v43 }
 0x78a   : > { %2798 = vmax.xlane.f32.xlu0 %v2797_v49 }
 0x78e   : > { %2806 = vmax.xlane.f32.xlu0 %v2805_v4 }
 0x792   : > { %2814 = vmax.xlane.f32.xlu0 %v2813_v2 }
 0x796   : > { %2822 = vmax.xlane.f32.xlu0 %v2821_v41 }
 0x79a   : > { %2263 = vadd.xlane.f32.xlu0 %v2262_v38  ;;  %v2102_v63 = vpop.xlane.xlu0 %2101  ;;  %v14335_v38 = vld [vmem:[#allocation31_spill] sm:$0xff] }
 0x79b   : > { %v2163_v47 = vsub.f32 %v10588_v55, %v2102_v63  ;;  %v2164_v30 = vsub.f32 %v10555_v5, %v2102_v63 }
 0x79c   : > { %v2110_v34 = vpop.xlane.xlu1 %2109 }
 0x79d   : > { %v2201_v62 = vmul.f32 1.442695, %v2163_v47  ;;  %v2203_v49 = vmul.f32 1.442695, %v2164_v30  ;;  %v2168_v15 = vsub.f32 %v10570_v53, %v2110_v34  ;;  %v2167_v55 = vsub.f32 %v10608_v23, %v2110_v34 }
 0x79e   : > { %2830 = vmax.xlane.f32.xlu0 %v2829_v45  ;;  %v2106_v4 = vpop.xlane.xlu0 %2105  ;;  %v11045_v23 = vadd.f32 %v10963_v54, %v10734_v7  ;;  %v14336_v45 = vld [vmem:[#allocation32_spill] sm:$0xff] }
 0x79f   : > { %v2165_v56 = vsub.f32 %v10631_v35, %v2106_v4  ;;  %8615 = vpow2.f32 %v2203_v49  ;;  %v2166_v27 = vsub.f32 %v10578_v9, %v2106_v4  ;;  %v2211_v5 = vmul.f32 1.442695, %v2168_v15  ;;  %v14337_v4 = vld [vmem:[#allocation36_spill] sm:$0xff] }
 0x7a0   : > { %v2118_v28 = vpop.xlane.xlu1 %2117  ;;  %8617 = vpow2.f32 %v2201_v62  ;;  %v2209_v35 = vmul.f32 1.442695, %v2167_v55  ;;  %v14338_v55 = vld [vmem:[#allocation34_spill] sm:$0xff] }
 0x7a1   : > { %v2205_v2 = vmul.f32 1.442695, %v2165_v56  ;;  %v2207_v18 = vmul.f32 1.442695, %v2166_v27  ;;  %v2171_v43 = vsub.f32 %v10650_v32, %v2118_v28  ;;  %v2172_v53 = vsub.f32 %v10603_v59, %v2118_v28 }
 0x7a2   : > { %v2114_v41 = vpop.xlane.xlu0 %2113 }
 0x7a3   : > { %8619 = vpow2.f32 %v2207_v18  ;;  %v2170_v12 = vsub.f32 %v14335_v38, %v2114_v41  ;;  %v2169_v9 = vsub.f32 %v10669_v25, %v2114_v41  ;;  %v2217_v34 = vmul.f32 1.442695, %v2171_v43  ;;  %v14339_v18 = vld [vmem:[#allocation33_spill] sm:$0xff]  ;;  %v14340_v43 = vld [vmem:[#allocation35_spill] sm:$0xff] }
 0x7a4   : > { %v2126_v63 = vpop.xlane.xlu1 %2125  ;;  %8621 = vpow2.f32 %v2205_v2  ;;  %v2219_v62 = vmul.f32 1.442695, %v2172_v53  ;;  %v11054_v25 = vadd.f32 %v10961_v31, %v10785_v29  ;;  %v11067_v31 = vadd.f32 %v10967_v50, %v10796_v44  ;;  %v14342_v44 = vld [vmem:[#allocation38_spill] sm:$0xff] }
 0x7a5   : > { %8623 = vpow2.f32 %v2211_v5  ;;  %v2215_v47 = vmul.f32 1.442695, %v2170_v12  ;;  %v2176_v32 = vsub.f32 %v14336_v45, %v2126_v63  ;;  %v2213_v15 = vmul.f32 1.442695, %v2169_v9 }
 0x7a6   : > { %v2122_v30 = vpop.xlane.xlu0 %2121  ;;  %8625 = vpow2.f32 %v2209_v35  ;;  %v2175_v2 = vsub.f32 %v14338_v55, %v2126_v63  ;;  %v2836_v5 = vsel %vm2090_vm5, %v11045_v23, -inf  ;;  %v14341_v63 = vld [vmem:[#allocation40_spill] sm:$0xff] }
 0x7a7   : > { %v2174_v59 = vsub.f32 %v10659_v39, %v2122_v30  ;;  %v2173_v56 = vsub.f32 %v14337_v4, %v2122_v30  ;;  %8627 = vpow2.f32 %v2215_v47  ;;  %v2227_v39 = vmul.f32 1.442695, %v2176_v32 }
 0x7a8   : > { %v2134_v49 = vpop.xlane.xlu1 %2133  ;;  %8629 = vpow2.f32 %v2217_v34  ;;  %v11074_v47 = vadd.f32 %v10965_v14, %v10833_v1  ;;  %v14344_v1 = vld [vmem:[#allocation39_spill] sm:$0xff] }
 0x7a9   : > { %v11050_v27 = vpop.eup %8615  ;;  %v2223_v7 = vmul.f32 1.442695, %v2174_v59  ;;  %8631 = vpow2.f32 %v2219_v62  ;;  %v2180_v41 = vsub.f32 %v14339_v18, %v2134_v49  ;;  %v2221_v12 = vmul.f32 1.442695, %v2173_v56  ;;  %v14343_v56 = vld [vmem:[#allocation37_spill] sm:$0xff] }
 0x7aa   : > { %v2130_v54 = vpop.xlane.xlu0 %2129  ;;  %v11056_v28 = vpop.eup %8617  ;;  %v2269_v29 = vsel %vm2090_vm5, %v11050_v27, 0.0  ;;  %8633 = vpow2.f32 %v2213_v15  ;;  %v2225_v62 = vmul.f32 1.442695, %v2175_v2  ;;  %v2179_v50 = vsub.f32 %v14342_v44, %v2134_v49 }
 0x7ab   : > { %v2178_v53 = vsub.f32 %v14340_v43, %v2130_v54  ;;  %v2177_v35 = vsub.f32 %v14341_v63, %v2130_v54  ;;  %8635 = vpow2.f32 %v2223_v7  ;;  %v2270_v34 = vadd.f32 %v11056_v28, %v2269_v29 }
 0x7ac   : > { %v2142_v38 = vpop.xlane.xlu1 %2141  ;;  %8637 = vpow2.f32 %v2227_v39  ;;  %v2837_v59 = vmax.f32 %v11054_v25, %v2836_v5  ;;  %v2235_v4 = vmul.f32 1.442695, %v2180_v41  ;;  %v2840_v49 = vsel %vm2090_vm5, %v11067_v31, -inf }
 0x7ad   : > { %v11070_v9 = vpop.eup %8619  ;;  %v2231_v30 = vmul.f32 1.442695, %v2178_v53  ;;  %v2184_v54 = vsub.f32 %v14343_v56, %v2142_v38  ;;  %2271 = vadd.xlane.f32.xlu0 %v2270_v34  ;;  %8639 = vpow2.f32 %v2221_v12  ;;  %v2229_v55 = vmul.f32 1.442695, %v2177_v35  ;;  %v14346_v12 = vld [vmem:[#allocation42_spill] sm:$0xff] }
 0x7ae   : > { %v2138_v45 = vpop.xlane.xlu0 %2137  ;;  %v11077_v32 = vpop.eup %8621  ;;  %v2273_v7 = vsel %vm2090_vm5, %v11070_v9, 0.0  ;;  %v11092_v5 = vadd.f32 %v10981_v8, %v10775_v57  ;;  %v2233_v29 = vmul.f32 1.442695, %v2179_v50  ;;  %v2183_v63 = vsub.f32 %v14346_v12, %v2142_v38  ;;  %v14347_v57 = vld [vmem:[#allocation41_spill] sm:$0xff] }
 0x7af   : > { %v11081_v15 = vpop.eup %8623  ;;  %v2182_v14 = vsub.f32 %v14344_v1, %v2138_v45  ;;  %v2181_v2 = vsub.f32 %v10791_v48, %v2138_v45  ;;  %8641 = vpow2.f32 %v2231_v30  ;;  %v2274_v41 = vadd.f32 %v11077_v32, %v2273_v7  ;;  %v14348_v30 = vld [vmem:[#allocation43_spill] sm:$0xff] }
 0x7b0   : > { %v2150_v39 = vpop.xlane.xlu1 %2149  ;;  %v11095_v53 = vpop.eup %8625  ;;  %8643 = vpow2.f32 %v2225_v62  ;;  %v2277_v48 = vsel %vm2090_vm5, %v11081_v15, 0.0  ;;  %v2243_v34 = vmul.f32 1.442695, %v2184_v54  ;;  %v2841_v38 = vmax.f32 %v11074_v47, %v2840_v49  ;;  %v14349_v7 = vld [vmem:[#allocation47_spill] sm:$0xff] }
 0x7b1   : > { %v2239_v18 = vmul.f32 1.442695, %v2182_v14  ;;  %14345 = vst [vmem:[#allocation31_spill] sm:$0xff] %v11095_v53  ;;  %v11100_v35 = vpop.eup %8627  ;;  %8645 = vpow2.f32 %v2235_v4  ;;  %v2188_v8 = vsub.f32 %v14347_v57, %v2150_v39  ;;  %2838 = vmax.xlane.f32.xlu0 %v2837_v59  ;;  %2275 = vadd.xlane.f32.xlu1 %v2274_v41  ;;  %v2237_v62 = vmul.f32 1.442695, %v2181_v2  ;;  %v14350_v41 = vld [vmem:[#allocation45_spill] sm:$0xff] }
 0x7b2   : > { %v2146_v43 = vpop.xlane.xlu0 %2145  ;;  %v11104_v44 = vpop.eup %8629  ;;  %8647 = vpow2.f32 %v2229_v55  ;;  %v2278_v4 = vadd.f32 %v11095_v53, %v2277_v48  ;;  %v2844_v59 = vsel %vm2090_vm5, %v11092_v5, -inf  ;;  %v11117_v55 = vadd.f32 %v10975_v17, %v14349_v7  ;;  %v14351_v48 = vld [vmem:[#allocation46_spill] sm:$0xff] }
 0x7b3   : > { %v2186_v45 = vsub.f32 %v14348_v30, %v2146_v43  ;;  %v2185_v50 = vsub.f32 %v10827_v52, %v2146_v43  ;;  %v11108_v56 = vpop.eup %8631  ;;  %8649 = vpow2.f32 %v2239_v18  ;;  %v2241_v52 = vmul.f32 1.442695, %v2183_v63 }
 0x7b4   : > { %v11113_v14 = vpop.eup %8633  ;;  %8651 = vpow2.f32 %v2233_v29  ;;  %v2158_v2 = vpop.xlane.xlu1 %2157  ;;  %v2281_v49 = vsel %vm2090_vm5, %v11100_v35, 0.0  ;;  %v2187_v43 = vsub.f32 %v14350_v41, %v2150_v39  ;;  %v2251_v12 = vmul.f32 1.442695, %v2188_v8 }
 0x7b5   : > { %v2247_v1 = vmul.f32 1.442695, %v2186_v45  ;;  %v11121_v18 = vpop.eup %8635  ;;  %8653 = vpow2.f32 %v2243_v34  ;;  %2279 = vadd.xlane.f32.xlu0 %v2278_v4  ;;  %2842 = vmax.xlane.f32.xlu1 %v2841_v38  ;;  %v2245_v17 = vmul.f32 1.442695, %v2185_v50  ;;  %v2845_v63 = vmax.f32 %v11117_v55, %v2844_v59  ;;  %v14352_v45 = vld [vmem:[#allocation44_spill] sm:$0xff] }
 0x7b6   : > { %v2154_v54 = vpop.xlane.xlu0 %2153  ;;  %v11125_v30 = vpop.eup %8637  ;;  %8655 = vpow2.f32 %v2237_v62  ;;  %v2192_v7 = vsub.f32 %v14352_v45, %v2158_v2  ;;  %v2282_v34 = vadd.f32 %v11113_v14, %v2281_v49  ;;  %v2285_v8 = vsel %vm2090_vm5, %v11108_v56, 0.0 }
 0x7b7   : > { %v2190_v57 = vsub.f32 %v14351_v48, %v2154_v54  ;;  %v2189_v29 = vsub.f32 %v10845_v42, %v2154_v54  ;;  %8657 = vpow2.f32 %v2247_v1  ;;  %v11131_v39 = vpop.eup %8639  ;;  %v2289_v62 = vsel %vm2090_vm5, %v11121_v18, 0.0 }
 0x7b8   : > { %8659 = vpow2.f32 %v2241_v52  ;;  %v2249_v42 = vmul.f32 1.442695, %v2187_v43  ;;  %v2191_v1 = vsub.f32 %v10838_v58, %v2158_v2  ;;  %v2259_v59 = vmul.f32 1.442695, %v2192_v7 }
 0x7b9   : > { %v2255_v53 = vmul.f32 1.442695, %v2190_v57  ;;  %v11137_v50 = vpop.eup %8641  ;;  %8661 = vpow2.f32 %v2251_v12  ;;  %2846 = vmax.xlane.f32.xlu0 %v2845_v63  ;;  %2283 = vadd.xlane.f32.xlu1 %v2282_v34  ;;  %v2253_v4 = vmul.f32 1.442695, %v2189_v29  ;;  %v2286_v52 = vadd.f32 %v11104_v44, %v2285_v8 }
 0x7ba   : > { %v11139_v38 = vpop.eup %8643  ;;  %8663 = vpow2.f32 %v2245_v17  ;;  %v2290_v49 = vadd.f32 %v11131_v39, %v2289_v62  ;;  %v2293_v43 = vsel %vm2090_vm5, %v11125_v30, 0.0  ;;  %v2297_v12 = vsel %vm2090_vm5, %v11137_v50, 0.0 }
 0x7bb   : > { %v11142_v54 = vpop.eup %8645  ;;  %8665 = vpow2.f32 %v2255_v53  ;;  %v2257_v53 = vmul.f32 1.442695, %v2191_v1  ;;  %v2294_v57 = vadd.f32 %v11139_v38, %v2293_v43 }
 0x7bc   : > { %v11146_v41 = vpop.eup %8647  ;;  %8667 = vpow2.f32 %v2249_v42  ;;  %v2301_v63 = vsel %vm2090_vm5, %v11142_v54, 0.0 }
 0x7bd   : > { %v11152_v48 = vpop.eup %8649  ;;  %2287 = vadd.xlane.f32.xlu0 %v2286_v52  ;;  %2291 = vadd.xlane.f32.xlu1 %v2290_v49  ;;  %8669 = vpow2.f32 %v2253_v4  ;;  %v2298_v17 = vadd.f32 %v11146_v41, %v2297_v12 }
 0x7be   : > { %v11154_v58 = vpop.eup %8651  ;;  %8671 = vpow2.f32 %v2259_v59  ;;  %v2305_v45 = vsel %vm2090_vm5, %v11152_v48, 0.0 }
 0x7bf   : > { %v11156_v2 = vpop.eup %8653  ;;  %8673 = vpow2.f32 %v2257_v53  ;;  %v2302_v62 = vadd.f32 %v11154_v58, %v2301_v63 }
 0x7c0   : > { %v11160_v29 = vpop.eup %8655  ;;  %v2309_v4 = vsel %vm2090_vm5, %v11156_v2, 0.0 }
 0x7c1   : > { %v11166_v7 = vpop.eup %8657  ;;  %2295 = vadd.xlane.f32.xlu0 %v2294_v57  ;;  %2299 = vadd.xlane.f32.xlu1 %v2298_v17  ;;  %v2306_v42 = vadd.f32 %v11160_v29, %v2305_v45 }
 0x7c2   : > { %v11168_v34 = vpop.eup %8659  ;;  %v2313_v59 = vsel %vm2090_vm5, %v11166_v7, 0.0 }
 0x7c3   : > { %v11170_v8 = vpop.eup %8661  ;;  %v2310_v43 = vadd.f32 %v11168_v34, %v2309_v4 }
 0x7c4   : > { %14353 = vst [vmem:[#allocation32_spill] sm:$0xff] %v11170_v8  ;;  %v11174_v1 = vpop.eup %8663  ;;  %v2317_v57 = vsel %vm2090_vm5, %v11170_v8, 0.0 }
 0x7c5   : > { %14354 = vst [vmem:[#allocation36_spill] sm:$0xff] %v11174_v1  ;;  %v11180_v52 = vpop.eup %8665  ;;  %2303 = vadd.xlane.f32.xlu1 %v2302_v62  ;;  %2307 = vadd.xlane.f32.xlu0 %v2306_v42  ;;  %v2314_v12 = vadd.f32 %v11174_v1, %v2313_v59 }
 0x7c6   : > { %14355 = vst [vmem:[#allocation34_spill] sm:$0xff] %v11180_v52  ;;  %v11182_v49 = vpop.eup %8667  ;;  %v2321_v17 = vsel %vm2090_vm5, %v11180_v52, 0.0 }
 0x7c7   : > { %14356 = vst [vmem:[#allocation33_spill] sm:$0xff] %v11182_v49  ;;  %v11186_v53 = vpop.eup %8669  ;;  %v2318_v45 = vadd.f32 %v11182_v49, %v2317_v57 }
 0x7c8   : > { %14357 = vst [vmem:[#allocation35_spill] sm:$0xff] %v11186_v53  ;;  %v11192_v63 = vpop.eup %8671  ;;  %v2322_v62 = vadd.f32 %v11186_v53, %v2321_v17 }
 0x7c9   : > { %14358 = vst [vmem:[#allocation40_spill] sm:$0xff] %v11192_v63  ;;  %2311 = vadd.xlane.f32.xlu1 %v2310_v43  ;;  %2315 = vadd.xlane.f32.xlu0 %v2314_v12  ;;  %v11196_v42 = vpop.eup %8673  ;;  %v2325_v4 = vsel %vm2090_vm5, %v11192_v63, 0.0 }
 0x7ca   : > { %v2326_v59 = vadd.f32 %v11196_v42, %v2325_v4 }
 0x7cd   : > { %2319 = vadd.xlane.f32.xlu1 %v2318_v45  ;;  %2323 = vadd.xlane.f32.xlu0 %v2322_v62 }
 0x7d1   : > { %2327 = vadd.xlane.f32.xlu1 %v2326_v59 }
 0x7d8   : > { %v2783_v8 = vpop.xlane.xlu1 %2782 }
 0x7d9   : > { %v2848_v52 = vsub.f32 %v10853_v26, %v2783_v8  ;;  %v2849_v43 = vsub.f32 %v10850_v10, %v2783_v8 }
 0x7da   : > { %v2787_v12 = vpop.xlane.xlu0 %2786 }
 0x7db   : > { %v2882_v1 = vmul.f32 1.442695, %v2848_v52  ;;  %v2884_v57 = vmul.f32 1.442695, %v2849_v43  ;;  %v2850_v17 = vsub.f32 %v10861_v40, %v2787_v12  ;;  %v2851_v53 = vsub.f32 %v10856_v3, %v2787_v12  ;;  %v14359_v52 = vld [vmem:[#allocation49_spill] sm:$0xff]  ;;  %v14360_v43 = vld [vmem:[#allocation48_spill] sm:$0xff] }
 0x7dd   : > { %8675 = vpow2.f32 %v2882_v1  ;;  %v2886_v49 = vmul.f32 1.442695, %v2850_v17  ;;  %v2888_v63 = vmul.f32 1.442695, %v2851_v53 }
 0x7de   : > { %8677 = vpow2.f32 %v2884_v57 }
 0x7df   : > { %8679 = vpow2.f32 %v2886_v49 }
 0x7e0   : > { %8681 = vpow2.f32 %v2888_v63  ;;  %v2791_v45 = vpop.xlane.xlu1 %2790 }
 0x7e1   : > { %v2852_v62 = vsub.f32 %v10871_v22, %v2791_v45  ;;  %v2853_v26 = vsub.f32 %v10868_v13, %v2791_v45  ;;  %v14363_v45 = vld [vmem:[#allocation51_spill] sm:$0xff] }
 0x7e2   : > { %v2795_v4 = vpop.xlane.xlu0 %2794 }
 0x7e3   : > { %v2890_v10 = vmul.f32 1.442695, %v2852_v62  ;;  %v2892_v8 = vmul.f32 1.442695, %v2853_v26  ;;  %v2854_v59 = vsub.f32 %v14359_v52, %v2795_v4  ;;  %v2855_v40 = vsub.f32 %v14360_v43, %v2795_v4  ;;  %v14364_v26 = vld [vmem:[#allocation50_spill] sm:$0xff] }
 0x7e5   : > { %8683 = vpow2.f32 %v2890_v10  ;;  %v2894_v3 = vmul.f32 1.442695, %v2854_v59  ;;  %v2896_v1 = vmul.f32 1.442695, %v2855_v40 }
 0x7e6   : > { %8685 = vpow2.f32 %v2892_v8  ;;  %v11209_v53 = vpop.permute.xlu0 %3108 }
 0x7e7   : > { %v11211_v49 = vpop.eup %8675  ;;  %8687 = vpow2.f32 %v2894_v3  ;;  %3165 = vmatpush1.bf16.msra.mxu0 %v11209_v53 }
 0x7e8   : > { %v11214_v22 = vpop.eup %8677  ;;  %8689 = vpow2.f32 %v2896_v1  ;;  %3166 = vmatprep.subr.bf16.mxu0 %v14328_v51 }
 0x7e9   : > { %14361 = vst [vmem:[#allocation38_spill] sm:$0xff] %v11214_v22  ;;  %v11217_v13 = vpop.eup %8679  ;;  %v2950_v63 = vsel %vm2090_vm5, %v11214_v22, 0.0 }
 0x7ea   : > { %v11221_v12 = vpop.eup %8681  ;;  %v2803_v57 = vpop.xlane.xlu1 %2802  ;;  %v2951_v17 = vadd.f32 %v11211_v49, %v2950_v63 }
 0x7eb   : > { %14362 = vst [vmem:[#allocation37_spill] sm:$0xff] %v11221_v12  ;;  %v2858_v62 = vsub.f32 %v14363_v45, %v2803_v57  ;;  %v2859_v4 = vsub.f32 %v14364_v26, %v2803_v57  ;;  %v2954_v10 = vsel %vm2090_vm5, %v11221_v12, 0.0 }
 0x7ec   : > { %2952 = vadd.xlane.f32.xlu1 %v2951_v17  ;;  %v2955_v8 = vadd.f32 %v11217_v13, %v2954_v10 }
 0x7ed   : > { %v2902_v52 = vmul.f32 1.442695, %v2858_v62  ;;  %v2904_v59 = vmul.f32 1.442695, %v2859_v4 }
 0x7ee   : > { %2956 = vadd.xlane.f32.xlu0 %v2955_v8  ;;  %v14371_v8 = vld [vmem:[#allocation25_spill] sm:$0xff] }
 0x7ef   : > { %v11229_v43 = vpop.eup %8683  ;;  %8691 = vpow2.f32 %v2902_v52 }
 0x7f0   : > { %14365 = vst [vmem:[#allocation39_spill] sm:$0xff] %v11229_v43  ;;  %v11231_v40 = vpop.eup %8685  ;;  %8693 = vpow2.f32 %v2904_v59  ;;  %v14372_v59 = vld [vmem:[#allocation52_spill] sm:$0xff] }
 0x7f1   : > { %14366 = vst [vmem:[#allocation42_spill] sm:$0xff] %v11231_v40  ;;  %v11233_v3 = vpop.eup %8687  ;;  %v2958_v1 = vsel %vm2090_vm5, %v11231_v40, 0.0 }
 0x7f2   : > { %14367 = vst [vmem:[#allocation41_spill] sm:$0xff] %v11233_v3  ;;  %v11237_v63 = vpop.eup %8689  ;;  %v2959_v57 = vadd.f32 %v11229_v43, %v2958_v1  ;;  %v2811_v52 = vpop.xlane.xlu1 %2810 }
 0x7f3   : > { %14368 = vst [vmem:[#allocation43_spill] sm:$0xff] %v11237_v63  ;;  %v2962_v17 = vsel %vm2090_vm5, %v11237_v63, 0.0  ;;  %v2863_v1 = vsub.f32 %v14372_v59, %v2811_v52 }
 0x7f4   : > { %2960 = vadd.xlane.f32.xlu1 %v2959_v57  ;;  %v2963_v45 = vadd.f32 %v11233_v3, %v2962_v17  ;;  %v14373_v17 = vld [vmem:[#allocation53_spill] sm:$0xff] }
 0x7f5   : > { %v2912_v57 = vmul.f32 1.442695, %v2863_v1 }
 0x7f6   : > { %2964 = vadd.xlane.f32.xlu0 %v2963_v45  ;;  %v2862_v45 = vsub.f32 %v14373_v17, %v2811_v52 }
 0x7f7   : > { %8695 = vpow2.f32 %v2912_v57 }
 0x7f9   : > { %v11243_v62 = vpop.eup %8691 }
 0x7fa   : > { %14369 = vst [vmem:[#allocation47_spill] sm:$0xff] %v11243_v62  ;;  %v11245_v26 = vpop.eup %8693  ;;  %v2819_v63 = vpop.xlane.xlu1 %2818 }
 0x7fb   : > { %14370 = vst [vmem:[#allocation45_spill] sm:$0xff] %v11245_v26  ;;  %v2970_v4 = vsel %vm2090_vm5, %v11245_v26, 0.0 }
 0x7fc   : > { %v2971_v10 = vadd.f32 %v11243_v62, %v2970_v4 }
 0x7fe   : > { %2972 = vadd.xlane.f32.xlu1 %v2971_v10  ;;  %v2910_v10 = vmul.f32 1.442695, %v2862_v45 }
 0x802   : > { %v2827_v59 = vpop.xlane.xlu1 %2826 }
 0x80f   : > { %3110 = vrot.lane.b32.xlu1 %v14371_v8, %s9237_s14 }
 0x817   : > { %v2799_v43 = vpop.xlane.xlu0 %2798 }
 0x818   : > { %v2856_v3 = vsub.f32 %v10987_v36, %v2799_v43  ;;  %v2857_v40 = vsub.f32 %v10972_v60, %v2799_v43  ;;  %v2867_v43 = vsub.f32 %v10918_v21, %v2819_v63 }
 0x81a   : > { %v2898_v12 = vmul.f32 1.442695, %v2856_v3  ;;  %v2900_v26 = vmul.f32 1.442695, %v2857_v40 }
 0x81b   : > { %v2807_v4 = vpop.xlane.xlu0 %2806 }
 0x81c   : > { %8697 = vpow2.f32 %v2898_v12  ;;  %v2860_v8 = vsub.f32 %v10998_v0, %v2807_v4  ;;  %v2861_v62 = vsub.f32 %v10979_v19, %v2807_v4  ;;  %v14374_v12 = vld [vmem:[#allocation54_spill] sm:$0xff]  ;;  %v2268_v0 = vpop.xlane.xlu1 %2267  ;;  %v14375_v4 = vld [vmem:[#allocation57_spill] sm:$0xff] }
 0x81d   : > { %8699 = vpow2.f32 %v2900_v26  ;;  %v2866_v57 = vsub.f32 %v14374_v12, %v2819_v63  ;;  %v11262_v26 = vpop.eup %8695 }
 0x81e   : > { %v2908_v1 = vmul.f32 1.442695, %v2861_v62  ;;  %8701 = vpow2.f32 %v2910_v10  ;;  %v2906_v52 = vmul.f32 1.442695, %v2860_v8  ;;  %v2920_v62 = vmul.f32 1.442695, %v2867_v43 }
 0x81f   : > { %v2815_v22 = vpop.xlane.xlu0 %2814  ;;  %v2871_v10 = vsub.f32 %v14375_v4, %v2827_v59 }
 0x820   : > { %v2864_v36 = vsub.f32 %v11008_v11, %v2815_v22  ;;  %v2865_v60 = vsub.f32 %v10992_v20, %v2815_v22  ;;  %8703 = vpow2.f32 %v2908_v1  ;;  %v2918_v20 = vmul.f32 1.442695, %v2866_v57 }
 0x821   : > { %8705 = vpow2.f32 %v2906_v52  ;;  %v2978_v52 = vsel %vm2090_vm5, %v11262_v26, 0.0 }
 0x822   : > { %v2916_v40 = vmul.f32 1.442695, %v2865_v60  ;;  %v2914_v19 = vmul.f32 1.442695, %v2864_v36 }
 0x823   : > { %v2823_v3 = vpop.xlane.xlu0 %2822 }
 0x824   : > { %8707 = vpow2.f32 %v2916_v40  ;;  %v2869_v17 = vsub.f32 %v11002_v37, %v2823_v3  ;;  %v2868_v22 = vsub.f32 %v11016_v16, %v2823_v3  ;;  %v14376_v16 = vld [vmem:[#allocation58_spill] sm:$0xff]  ;;  %v2928_v3 = vmul.f32 1.442695, %v2871_v10 }
 0x825   : > { %8709 = vrcp.f32 %v2268_v0  ;;  %v2870_v43 = vsub.f32 %v14376_v16, %v2827_v59 }
 0x826   : > { %v11265_v45 = vpop.eup %8697  ;;  %8711 = vpow2.f32 %v2914_v19  ;;  %v2924_v8 = vmul.f32 1.442695, %v2869_v17  ;;  %v2922_v40 = vmul.f32 1.442695, %v2868_v22 }
 0x827   : > { %v11267_v11 = vpop.eup %8699  ;;  %v2264_v21 = vpop.xlane.xlu0 %2263  ;;  %8713 = vpow2.f32 %v2920_v62  ;;  %v2926_v17 = vmul.f32 1.442695, %v2870_v43 }
 0x828   : > { %v2966_v63 = vsel %vm2090_vm5, %v11267_v11, 0.0  ;;  %v11274_v37 = vpop.eup %8701  ;;  %8715 = vrcp.f32 %v2264_v21 }
 0x829   : > { %v2967_v1 = vadd.f32 %v11265_v45, %v2966_v63  ;;  %8717 = vpow2.f32 %v2918_v20  ;;  %v2979_v57 = vadd.f32 %v11274_v37, %v2978_v52  ;;  %v14377_v52 = vld [vmem:[#allocation59_spill] sm:$0xff] }
 0x82a   : > { %v11278_v36 = vpop.eup %8703  ;;  %8719 = vpow2.f32 %v2924_v8 }
 0x82b   : > { %2968 = vadd.xlane.f32.xlu0 %v2967_v1  ;;  %v2831_v60 = vpop.xlane.xlu0 %2830  ;;  %v11283_v0 = vpop.eup %8705  ;;  %v2974_v19 = vsel %vm2090_vm5, %v11278_v36, 0.0  ;;  %8721 = vpow2.f32 %v2922_v40 }
 0x82c   : > { %v2873_v12 = vsub.f32 %v11022_v46, %v2831_v60  ;;  %v2872_v21 = vsub.f32 %v11030_v6, %v2831_v60  ;;  %8723 = vpow2.f32 %v2928_v3  ;;  %v2975_v22 = vadd.f32 %v11283_v0, %v2974_v19 }
 0x82d   : > { %8725 = vpow2.f32 %v2926_v17 }
 0x82e   : > { %v11287_v62 = vpop.eup %8707  ;;  %v2932_v20 = vmul.f32 1.442695, %v2873_v12  ;;  %v2930_v1 = vmul.f32 1.442695, %v2872_v21  ;;  %v14378_v21 = vld [vmem:[#allocation27_spill] sm:$0xff] }
 0x82f   : > { %2980 = vadd.xlane.f32.xlu0 %v2979_v57  ;;  %v8710_v59 = vpop.eup %8709  ;;  %v2982_v63 = vsel %vm2090_vm5, %v11287_v62, 0.0 }
 0x830   : > { %v11291_v46 = vpop.eup %8711  ;;  %v2348_v8 = vmul.f32 %v8710_v59, %v10945_v24  ;;  %v2349_v6 = vmul.f32 %v8710_v59, %v14377_v52  ;;  %8727 = vpow2.f32 %v2932_v20  ;;  %v11318_v59 = vpop.xlane.xlu1 %2834  ;;  %v14380_v52 = vld [vmem:[#allocation60_spill] sm:$0xff] }
 0x831   : > { %v11295_v4 = vpop.eup %8713  ;;  %v2983_v16 = vadd.f32 %v11291_v46, %v2982_v63  ;;  %8729 = vpow2.f32 %v2930_v1  ;;  %v14379_v1 = vld [vmem:[#allocation28_spill] sm:$0xff] }
 0x832   : > { %v8716_v10 = vpop.eup %8715  ;;  %v2986_v3 = vsel %vm2090_vm5, %v11295_v4, 0.0 }
 0x833   : > { %2976 = vadd.xlane.f32.xlu1 %v2975_v22  ;;  %v2346_v60 = vmul.f32 %v8716_v10, %v11019_v33  ;;  %v2347_v43 = vmul.f32 %v8716_v10, %v11013_v61  ;;  %v11302_v40 = vpop.eup %8717 }
 0x834   : > { %v11306_v12 = vpop.eup %8719  ;;  %v2987_v33 = vadd.f32 %v11302_v40, %v2986_v3 }
 0x835   : > { %v2381_v57 = vpack.c.bf16 %v2349_v6, %v2347_v43  ;;  %v2380_v24 = vpack.c.bf16 %v2348_v8, %v2346_v60  ;;  %v11310_v19 = vpop.eup %8721  ;;  %v2990_v61 = vsel %vm2090_vm5, %v11306_v12, 0.0  ;;  %v2875_v6 = vsub.f32 %v14380_v52, %v11318_v59  ;;  %v14382_v52 = vld [vmem:[#allocation26_spill] sm:$0xff] }
 0x836   : > { %v11314_v17 = vpop.eup %8723  ;;  %v2991_v22 = vadd.f32 %v11310_v19, %v2990_v61  ;;  %v14381_v61 = vld [vmem:[#allocation29_spill] sm:$0xff] }
 0x837   : > { %2984 = vadd.xlane.f32.xlu1 %v2983_v16  ;;  %7659 = vmatprep.mubr.msk.bf16.mxu1 %vm2090_vm5, %v2381_v57  ;;  %v11321_v63 = vpop.eup %8725  ;;  %v2994_v10 = vsel %vm2090_vm5, %v11314_v17, 0.0 }
 0x838   : > { %2471 = vmatmul.mubr.bf16.vlgmr.msra.gmra.mrb[72].mxu1 %v2380_v24  ;;  %v2995_v43 = vadd.f32 %v11321_v63, %v2994_v10 }
 0x839   : > { %8451 = vmatpush1.bf16.msra.mxu1 %v14378_v21  ;;  %v2936_v21 = vmul.f32 1.442695, %v2875_v6 }
 0x83a   : > { %8443 = vmatprep.subr.bf16.mxu1 %v14328_v51  ;;  %v2272_v20 = vpop.xlane.xlu0 %2271  ;;  %v11325_v8 = vpop.eup %8727 }
 0x83b   : > { %2988 = vadd.xlane.f32.xlu1 %v2987_v33  ;;  %8731 = vrcp.f32 %v2272_v20  ;;  %v11332_v3 = vpop.eup %8729  ;;  %v2998_v33 = vsel %vm2090_vm5, %v11325_v8, 0.0 }
 0x83d   : > { %8452 = vmatpush1.bf16.msra.mxu1 %v14379_v1 }
 0x83e   : > { %8444 = vmatprep.subr.bf16.mxu1 %v14328_v51  ;;  %v2276_v60 = vpop.xlane.xlu1 %2275  ;;  %v2839_v16 = vpop.xlane.xlu0 %2838 }
 0x83f   : > { %2992 = vadd.xlane.f32.xlu1 %v2991_v22  ;;  %8733 = vrcp.f32 %v2276_v60  ;;  %v2876_v57 = vsub.f32 %v11054_v25, %v2839_v16  ;;  %v2877_v24 = vsub.f32 %v11045_v23, %v2839_v16  ;;  %v2999_v25 = vadd.f32 %v11332_v3, %v2998_v33  ;;  %v14383_v16 = vld [vmem:[#allocation30_spill] sm:$0xff] }
 0x841   : > { %8453 = vmatpush1.bf16.msra.mxu1 %v14381_v61  ;;  %v2938_v20 = vmul.f32 1.442695, %v2876_v57  ;;  %v2940_v22 = vmul.f32 1.442695, %v2877_v24 }
 0x842   : > { %8445 = vmatprep.subr.bf16.mxu1 %v14328_v51  ;;  %v2843_v1 = vpop.xlane.xlu1 %2842  ;;  %v2280_v10 = vpop.xlane.xlu0 %2279 }
 0x843   : > { %2996 = vadd.xlane.f32.xlu1 %v2995_v43  ;;  %8735 = vpow2.f32 %v2938_v20  ;;  %v2878_v23 = vsub.f32 %v11074_v47, %v2843_v1  ;;  %v2879_v60 = vsub.f32 %v11067_v31, %v2843_v1  ;;  %v14384_v31 = vld [vmem:[#allocation55_spill] sm:$0xff] }
 0x844   : > { %8737 = vpow2.f32 %v2940_v22  ;;  %v14385_v22 = vld [vmem:[#allocation61_spill] sm:$0xff] }
 0x845   : > { %3112 = vrot.lane.b32.xlu0 %v14382_v52, %s9237_s14  ;;  %8454 = vmatpush1.bf16.msra.mxu1 %v14383_v16  ;;  %8739 = vpow2.f32 %v2936_v21  ;;  %v2942_v6 = vmul.f32 1.442695, %v2878_v23  ;;  %v2944_v43 = vmul.f32 1.442695, %v2879_v60  ;;  %v8732_v61 = vpop.eup %8731  ;;  %v2874_v21 = vsub.f32 %v14385_v22, %v11318_v59  ;;  %v14386_v16 = vld [vmem:[#allocation56_spill] sm:$0xff] }
 0x846   : > { %8446 = vmatprep.subr.bf16.mxu1 %v14328_v51  ;;  %8741 = vrcp.f32 %v2280_v10  ;;  %v2284_v57 = vpop.xlane.xlu1 %2283  ;;  %v2847_v24 = vpop.xlane.xlu0 %2846  ;;  %v2351_v23 = vmul.f32 %v8732_v61, %v11050_v27 }
 0x847   : > { %3000 = vadd.xlane.f32.xlu1 %v2999_v25  ;;  %8743 = vpow2.f32 %v2942_v6  ;;  %v2880_v33 = vsub.f32 %v11117_v55, %v2847_v24  ;;  %v2881_v47 = vsub.f32 %v11092_v5, %v2847_v24  ;;  %v2350_v5 = vmul.f32 %v8732_v61, %v11056_v28 }
 0x848   : > { %8745 = vpow2.f32 %v2944_v43  ;;  %v2934_v27 = vmul.f32 1.442695, %v2874_v21 }
 0x849   : > { %8455 = vmatpush1.bf16.msra.mxu1 %v14384_v31  ;;  %v8734_v20 = vpop.eup %8733  ;;  %8747 = vrcp.f32 %v2284_v57  ;;  %v2946_v1 = vmul.f32 1.442695, %v2880_v33  ;;  %v2948_v52 = vmul.f32 1.442695, %v2881_v47 }
 0x84a   : > { %8447 = vmatprep.subr.bf16.mxu1 %v14328_v51  ;;  %v2292_v10 = vpop.xlane.xlu1 %2291  ;;  %v2288_v25 = vpop.xlane.xlu0 %2287  ;;  %v2353_v55 = vmul.f32 %v8734_v20, %v11070_v9  ;;  %v2352_v60 = vmul.f32 %v8734_v20, %v11077_v32 }
 0x84b   : > { %8749 = vpow2.f32 %v2946_v1 }
 0x84c   : > { %8751 = vpow2.f32 %v2948_v52  ;;  %v2383_v59 = vpack.c.bf16 %v2353_v55, %v2351_v23  ;;  %v2382_v6 = vpack.c.bf16 %v2352_v60, %v2350_v5 }
 0x84d   : > { %8456 = vmatpush1.bf16.msra.mxu1 %v14386_v16  ;;  %v11358_v43 = vpop.eup %8735  ;;  %8753 = vrcp.f32 %v2292_v10 }
 0x84e   : > { %8448 = vmatprep.subr.bf16.mxu1 %v14328_v51  ;;  %v11361_v57 = vpop.eup %8737  ;;  %8755 = vrcp.f32 %v2288_v25  ;;  %v2300_v9 = vpop.xlane.xlu1 %2299  ;;  %7660 = vmatprep.mubr.msk.bf16.mxu1 %vm2090_vm5, %v2383_v59  ;;  %v14387_v25 = vld [vmem:[#allocation31_spill] sm:$0xff] }
 0x84f   : > { %v2296_v28 = vpop.xlane.xlu0 %2295  ;;  %v11364_v32 = vpop.eup %8739  ;;  %8757 = vrcp.f32 %v2300_v9  ;;  %2479 = vmatmul.mubr.bf16.gmra.mrb[76].mxu1 %v2382_v6  ;;  %v3006_v24 = vsel %vm2090_vm5, %v11361_v57, 0.0 }
 0x850   : > { %v8742_v61 = vpop.eup %8741  ;;  %8759 = vrcp.f32 %v2296_v28  ;;  %v3007_v33 = vadd.f32 %v11358_v43, %v3006_v24 }
 0x851   : > { %8457 = vmatpush1.bf16.msra.mxu1 %v11209_v53  ;;  %v11370_v47 = vpop.eup %8743  ;;  %8761 = vpow2.f32 %v2934_v27  ;;  %v2355_v1 = vmul.f32 %v8742_v61, %v11081_v15  ;;  %v2354_v23 = vmul.f32 %v8742_v61, %v14387_v25 }
 0x852   : > { %8449 = vmatprep.subr.bf16.mxu1 %v14328_v51  ;;  %v11373_v31 = vpop.eup %8745  ;;  %3008 = vadd.xlane.f32.xlu1 %v3007_v33  ;;  %v2304_v22 = vpop.xlane.xlu1 %2303 }
 0x853   : > { %v8748_v20 = vpop.eup %8747  ;;  %v3010_v21 = vsel %vm2090_vm5, %v11373_v31, 0.0  ;;  %v2308_v52 = vpop.xlane.xlu0 %2307  ;;  %8763 = vrcp.f32 %v2304_v22 }
 0x854   : > { %v3011_v53 = vadd.f32 %v11370_v47, %v3010_v21  ;;  %v2357_v10 = vmul.f32 %v8748_v20, %v11100_v35  ;;  %v2356_v55 = vmul.f32 %v8748_v20, %v11113_v14  ;;  %8765 = vrcp.f32 %v2308_v52 }
 0x855   : > { %v11382_v5 = vpop.eup %8749 }
 0x856   : > { %v11384_v60 = vpop.eup %8751  ;;  %3012 = vadd.xlane.f32.xlu1 %v3011_v53  ;;  %v2385_v16 = vpack.c.bf16 %v2357_v10, %v2355_v1  ;;  %v2384_v59 = vpack.c.bf16 %v2356_v55, %v2354_v23  ;;  %v2312_v61 = vpop.xlane.xlu1 %2311 }
 0x857   : > { %v8754_v6 = vpop.eup %8753  ;;  %v3014_v15 = vsel %vm2090_vm5, %v11384_v60, 0.0  ;;  %v2316_v1 = vpop.xlane.xlu0 %2315  ;;  %8767 = vrcp.f32 %v2312_v61 }
 0x858   : > { %v8756_v27 = vpop.eup %8755  ;;  %7661 = vmatprep.mubr.msk.bf16.mxu1 %vm2090_vm5, %v2385_v16  ;;  %v3015_v35 = vadd.f32 %v11382_v5, %v3014_v15  ;;  %v2361_v14 = vmul.f32 %v8754_v6, %v11121_v18  ;;  %v2360_v22 = vmul.f32 %v8754_v6, %v11131_v39  ;;  %v3002_v18 = vsel %vm2090_vm5, %v11364_v32, 0.0 }
 0x859   : > { %v8758_v9 = vpop.eup %8757  ;;  %2487 = vmatmul.mubr.bf16.gmra.mrb[80].mxu1 %v2384_v59  ;;  %v2359_v28 = vmul.f32 %v8756_v27, %v11108_v56  ;;  %v2358_v20 = vmul.f32 %v8756_v27, %v11104_v44  ;;  %8769 = vrcp.f32 %v2316_v1 }
 0x85a   : > { %v8760_v24 = vpop.eup %8759  ;;  %3016 = vadd.xlane.f32.xlu1 %v3015_v35  ;;  %v2365_v53 = vmul.f32 %v8758_v9, %v11137_v50  ;;  %v2364_v23 = vmul.f32 %v8758_v9, %v11146_v41 }
 0x85b   : > { %v2387_v33 = vpack.c.bf16 %v2361_v14, %v2359_v28  ;;  %v11394_v21 = vpop.eup %8761  ;;  %v2363_v52 = vmul.f32 %v8760_v24, %v11125_v30  ;;  %v2386_v56 = vpack.c.bf16 %v2360_v22, %v2358_v20  ;;  %v2320_v30 = vpop.xlane.xlu1 %2319  ;;  %v2362_v50 = vmul.f32 %v8760_v24, %v11139_v38  ;;  %v14388_v20 = vld [vmem:[#allocation36_spill] sm:$0xff] }
 0x85c   : > { %v3003_v10 = vadd.f32 %v11394_v21, %v3002_v18  ;;  %v2324_v55 = vpop.xlane.xlu0 %2323  ;;  %8771 = vrcp.f32 %v2320_v30 }
 0x85d   : > { %7662 = vmatprep.mubr.msk.bf16.mxu1 %vm2090_vm5, %v2387_v33  ;;  %v8764_v44 = vpop.eup %8763  ;;  %v2389_v25 = vpack.c.bf16 %v2365_v53, %v2363_v52  ;;  %8773 = vrcp.f32 %v2324_v55  ;;  %v2388_v6 = vpack.c.bf16 %v2364_v23, %v2362_v50 }
 0x85e   : > { %v8766_v39 = vpop.eup %8765  ;;  %v2367_v16 = vmul.f32 %v8764_v44, %v11142_v54  ;;  %v2366_v14 = vmul.f32 %v8764_v44, %v11154_v58  ;;  %v14389_v58 = vld [vmem:[#allocation32_spill] sm:$0xff] }
 0x85f   : > { %v2369_v59 = vmul.f32 %v8766_v39, %v11152_v48  ;;  %v2368_v38 = vmul.f32 %v8766_v39, %v11160_v29  ;;  %v2328_v28 = vpop.xlane.xlu1 %2327  ;;  %v14390_v29 = vld [vmem:[#allocation34_spill] sm:$0xff]  ;;  %v14393_v39 = vld [vmem:[#allocation40_spill] sm:$0xff] }
 0x860   : > { %8775 = vrcp.f32 %v2328_v28 }
 0x861   : > { %2495 = vmatmul.mubr.bf16.gmra.mrb[84].mxu1 %v2386_v56  ;;  %v8768_v15 = vpop.eup %8767  ;;  %v2391_v27 = vpack.c.bf16 %v2369_v59, %v2367_v16  ;;  %v2390_v48 = vpack.c.bf16 %v2368_v38, %v2366_v14  ;;  %v14395_v38 = vld [vmem:[#allocation37_spill] sm:$0xff] }
 0x862   : > { %7663 = vmatprep.mubr.msk.bf16.mxu1 %vm2090_vm5, %v2389_v25  ;;  %v2371_v41 = vmul.f32 %v8768_v15, %v11156_v2  ;;  %v2370_v33 = vmul.f32 %v8768_v15, %v11168_v34  ;;  %v14392_v25 = vld [vmem:[#allocation35_spill] sm:$0xff] }
 0x863   : > { %v8770_v35 = vpop.eup %8769 }
 0x864   : > { %3004 = vadd.xlane.f32.xlu0 %v3003_v10  ;;  %v2373_v54 = vmul.f32 %v8770_v35, %v11166_v7  ;;  %v2372_v22 = vmul.f32 %v8770_v35, %v14388_v20  ;;  %v14391_v10 = vld [vmem:[#allocation33_spill] sm:$0xff]  ;;  %v14394_v35 = vld [vmem:[#allocation38_spill] sm:$0xff] }
 0x866   : > { %v8772_v9 = vpop.eup %8771  ;;  %v2393_v24 = vpack.c.bf16 %v2373_v54, %v2371_v41  ;;  %v2392_v2 = vpack.c.bf16 %v2372_v22, %v2370_v33 }
 0x867   : > { %v8774_v61 = vpop.eup %8773  ;;  %v2375_v1 = vmul.f32 %v8772_v9, %v14389_v58  ;;  %v2374_v44 = vmul.f32 %v8772_v9, %v14391_v10  ;;  %v14396_v58 = vld [vmem:[#allocation43_spill] sm:$0xff] }
 0x868   : > { %v2377_v52 = vmul.f32 %v8774_v61, %v14390_v29  ;;  %v2376_v34 = vmul.f32 %v8774_v61, %v14392_v25 }
 0x869   : > { %2503 = vmatmul.mubr.bf16.gmra.mrb[88].mxu1 %v2388_v6 }
 0x86a   : > { %7664 = vmatprep.mubr.msk.bf16.mxu1 %vm2090_vm5, %v2391_v27  ;;  %v2395_v7 = vpack.c.bf16 %v2377_v52, %v2375_v1  ;;  %v8776_v56 = vpop.eup %8775  ;;  %v2394_v50 = vpack.c.bf16 %v2376_v34, %v2374_v44  ;;  %v14397_v52 = vld [vmem:[#allocation42_spill] sm:$0xff]  ;;  %v14399_v44 = vld [vmem:[#allocation41_spill] sm:$0xff] }
 0x86b   : > { %v2379_v30 = vmul.f32 %v8776_v56, %v14393_v39  ;;  %v2378_v59 = vmul.f32 %v8776_v56, %v11196_v42 }
 0x86d   : > { %v2397_v23 = vpack.c.bf16 %v2379_v30, %v2379_v30 }
 0x871   : > { %2511 = vmatmul.mubr.bf16.gmra.mrb[92].mxu1 %v2390_v48  ;;  %v2396_v48 = vpack.c.bf16 %v2378_v59, %v2378_v59 }
 0x872   : > { %7665 = vmatprep.mubr.msk.bf16.mxu1 %vm2090_vm5, %v2393_v24 }
 0x879   : > { %v2953_v53 = vpop.xlane.xlu1 %2952  ;;  %2519 = vmatmul.mubr.bf16.gmra.mrb[96].mxu1 %v2392_v2  ;;  %v14398_v2 = vmov 0.0  }
 0x87a   : > { %8777 = vrcp.f32 %v2953_v53  ;;  %7666 = vmatprep.mubr.msk.bf16.mxu1 %vm2090_vm5, %v2395_v7 }
 0x87b   : > { %v2957_v18 = vpop.xlane.xlu0 %2956 }
 0x87c   : > { %8779 = vrcp.f32 %v2957_v18 }
 0x881   : > { %2527 = vmatmul.mubr.bf16.gmra.mrb[100].mxu1 %v2394_v50  ;;  %v2961_v27 = vpop.xlane.xlu1 %2960  ;;  %v14400_v50 = vld [vmem:[#allocation39_spill] sm:$0xff] }
 0x882   : > { %7667 = vmatprep.mubr.msk.bf16.mxu1 %vm2090_vm5, %v2397_v23 }
 0x883   : > { %v2965_v42 = vpop.xlane.xlu0 %2964 }
 0x884   : > { %v8778_v55 = vpop.eup %8777  ;;  %8781 = vrcp.f32 %v2965_v42 }
 0x885   : > { %v3035_v6 = vmul.f32 %v8778_v55, %v11211_v49  ;;  %v3036_v14 = vmul.f32 %v8778_v55, %v14394_v35  ;;  %8783 = vrcp.f32 %v2961_v27  ;;  %v14401_v55 = vld [vmem:[#allocation45_spill] sm:$0xff] }
 0x886   : > { %v8780_v16 = vpop.eup %8779 }
 0x887   : > { %v3037_v15 = vmul.f32 %v8780_v16, %v11217_v13  ;;  %v3038_v28 = vmul.f32 %v8780_v16, %v14395_v38 }
 0x889   : > { %v3070_v41 = vpack.c.bf16 %v3038_v28, %v3036_v14  ;;  %v3069_v54 = vpack.c.bf16 %v3037_v15, %v3035_v6  ;;  %2535 = vmatmul.mubr.bf16.gmra.mrb[104].mxu1 %v2396_v48 }
 0x88b   : > { %v2973_v9 = vpop.xlane.xlu1 %2972  ;;  %7677 = vmatprep.mubr.msk.bf16.mxu0 %vm2090_vm5, %v3070_v41 }
 0x88e   : > { %v8782_v61 = vpop.eup %8781 }
 0x88f   : > { %v3111_v24 = vpop.permute.xlu1 %3110  ;;  %v8784_v33 = vpop.eup %8783  ;;  %v3042_v1 = vmul.f32 %v8782_v61, %v14396_v58  ;;  %v3041_v25 = vmul.f32 %v8782_v61, %v14399_v44 }
 0x890   : > { %3167 = vmatpush1.bf16.msra.mxu0 %v3111_v24  ;;  %8458 = vmatpush1.bf16.msra.mxu1 %v3111_v24  ;;  %v3040_v53 = vmul.f32 %v8784_v33, %v14397_v52  ;;  %v3039_v23 = vmul.f32 %v8784_v33, %v14400_v50 }
 0x891   : > { %3168 = vmatprep.subr.bf16.mxu0 %v14328_v51  ;;  %8450 = vmatprep.subr.bf16.mxu1 %v14328_v51 }
 0x892   : > { %v3072_v56 = vpack.c.bf16 %v3042_v1, %v3040_v53  ;;  %v3071_v6 = vpack.c.bf16 %v3041_v25, %v3039_v23 }
 0x8b8   : > { %v2969_v49 = vpop.xlane.xlu0 %2968 }
 0x8b9   : > { %8785 = vrcp.f32 %v2969_v49 }
 0x8ba   : > { %8787 = vrcp.f32 %v2973_v9  ;;  %v8483_v9 = vld [vmem:[%s14112_s8 + $0x8] sm:$0xff]  }
 0x8bc   : > { %v2981_v13 = vpop.xlane.xlu0 %2980 }
 0x8bd   : > { %8789 = vrcp.f32 %v2981_v13 }
 0x8c0   : > { %v2977_v20 = vpop.xlane.xlu1 %2976  ;;  %v3113_v22 = vpop.permute.xlu0 %3112 }
 0x8c1   : > { %8791 = vrcp.f32 %v2977_v20  ;;  %v3150_v29 = vsel %vm2434_vm4, %v3113_v22, 0  ;;  %v8484_v22 = vld [vmem:[%s14112_s8 + $0x10] sm:$0xff]  }
 0x8c2   : > { %3169 = vmatpush1.bf16.msra.mxu0 %v3150_v29  ;;  %8459 = vmatpush1.bf16.msra.mxu1 %v3150_v29 }
 0x8c3   : > { %8114 = vmatprep.subr.bf16.mxu1 %v14398_v2  ;;  %8070 = vmatprep.subr.bf16.mxu0 %v14398_v2  ;;  %v8786_v7 = vpop.eup %8785 }
 0x8c4   : > { %v2985_v18 = vpop.xlane.xlu1 %2984  ;;  %v8788_v10 = vpop.eup %8787  ;;  %v3044_v34 = vmul.f32 %v8786_v7, %v11267_v11  ;;  %v3043_v48 = vmul.f32 %v8786_v7, %v11265_v45 }
 0x8c5   : > { %3185 = vmatmul.mubr.bf16.vlgmr.msra.gmra.mrb[108].mxu0 %v3069_v54  ;;  %8793 = vrcp.f32 %v2985_v18  ;;  %v3046_v16 = vmul.f32 %v8788_v10, %v14401_v55  ;;  %v8482_v54 = vld [vmem:[%s14112_s8] sm:$0xff]  }
 0x8c6   : > { %7678 = vmatprep.mubr.msk.bf16.mxu0 %vm2090_vm5, %v3072_v56  ;;  %v8486_v18 = vld [vmem:[%s14112_s8 + $0x20] sm:$0xff]  }
 0x8c7   : > { %v8790_v30 = vpop.eup %8789  ;;  %v3074_v15 = vpack.c.bf16 %v3046_v16, %v3044_v34  ;;  %8071 = vmatpush3.bf16.msra.mxu0 %v8486_v18 }
 0x8c8   : > { %v2989_v39 = vpop.xlane.xlu1 %2988  ;;  %v3049_v27 = vmul.f32 %v8790_v30, %v11274_v37  ;;  %v3050_v28 = vmul.f32 %v8790_v30, %v11262_v26  ;;  %8072 = vmatprep.subr.bf16.mxu0 %v14398_v2 }
 0x8c9   : > { %8795 = vrcp.f32 %v2989_v39 }
 0x8cb   : > { %v8792_v59 = vpop.eup %8791 }
 0x8cc   : > { %v3047_v35 = vmul.f32 %v8792_v59, %v11283_v0  ;;  %v2993_v14 = vpop.xlane.xlu1 %2992  ;;  %v3048_v38 = vmul.f32 %v8792_v59, %v11278_v36  ;;  %v14402_v36 = vld [vmem:[#allocation47_spill] sm:$0xff] }
 0x8cd   : > { %3193 = vmatmul.mubr.bf16.gmra.mrb[112].mxu0 %v3071_v6  ;;  %8797 = vrcp.f32 %v2993_v14  ;;  %v3045_v26 = vmul.f32 %v8788_v10, %v14402_v36 }
 0x8ce   : > { %7679 = vmatprep.mubr.msk.bf16.mxu0 %vm2090_vm5, %v3074_v15  ;;  %v3076_v11 = vpack.c.bf16 %v3050_v28, %v3048_v38  ;;  %v3075_v41 = vpack.c.bf16 %v3049_v27, %v3047_v35 }
 0x8cf   : > { %v8794_v0 = vpop.eup %8793  ;;  %v3073_v42 = vpack.c.bf16 %v3045_v26, %v3043_v48 }
 0x8d0   : > { %v2997_v37 = vpop.xlane.xlu1 %2996  ;;  %7680 = vmatprep.mubr.msk.bf16.mxu1 %vm2090_vm5, %v3076_v11  ;;  %v3052_v49 = vmul.f32 %v8794_v0, %v11287_v62  ;;  %v3051_v13 = vmul.f32 %v8794_v0, %v11291_v46  ;;  %v8485_v46 = vld [vmem:[%s14112_s8 + $0x18] sm:$0xff]  }
 0x8d1   : > { %8799 = vrcp.f32 %v2997_v37  ;;  %3209 = vmatmul.mubr.bf16.vlgmr.msra.gmra.mrb[108].mxu1 %v3075_v41 }
 0x8d2   : > { %8115 = vmatpush3.bf16.msra.mxu1 %v8482_v54 }
 0x8d3   : > { %v8796_v24 = vpop.eup %8795  ;;  %8116 = vmatprep.subr.bf16.mxu1 %v14398_v2 }
 0x8d4   : > { %v3054_v45 = vmul.f32 %v8796_v24, %v11295_v4  ;;  %v3053_v61 = vmul.f32 %v8796_v24, %v11302_v40  ;;  %v3001_v7 = vpop.xlane.xlu1 %3000 }
 0x8d5   : > { %3201 = vmatmul.mubr.bf16.gmra.mrb[116].mxu0 %v3073_v42  ;;  %8801 = vrcp.f32 %v3001_v7 }
 0x8d6   : > { %v3078_v33 = vpack.c.bf16 %v3054_v45, %v3052_v49  ;;  %v3077_v20 = vpack.c.bf16 %v3053_v61, %v3051_v13  ;;  %8117 = vmatpush3.bf16.msra.mxu1 %v8483_v9  ;;  %8078 = vmatprep.mubr.msk.bf16.mxu0 %vm9235_vm1, %v14398_v2 }
 0x8d7   : > { %8118 = vmatprep.subr.bf16.mxu1 %v14398_v2  ;;  %v8798_v62 = vpop.eup %8797 }
 0x8d8   : > { %7681 = vmatprep.mubr.msk.bf16.mxu1 %vm2090_vm5, %v3078_v33  ;;  %v3056_v40 = vmul.f32 %v8798_v62, %v11306_v12  ;;  %v3055_v1 = vmul.f32 %v8798_v62, %v11310_v19  ;;  %v8487_v12 = vld [vmem:[%s14112_s8 + $0x28] sm:$0xff]  }
 0x8d9   : > { %3217 = vmatmul.mubr.bf16.gmra.mrb[112].mxu1 %v3077_v20  ;;  %8073 = vmatpush3.bf16.msra.mxu0 %v8487_v12 }
 0x8da   : > { %8119 = vmatpush3.bf16.msra.mxu1 %v8484_v22  ;;  %8074 = vmatprep.subr.bf16.mxu0 %v14398_v2 }
 0x8db   : > { %v8800_v4 = vpop.eup %8799  ;;  %8120 = vmatprep.subr.bf16.mxu1 %v14398_v2 }
 0x8dc   : > { %v3058_v58 = vmul.f32 %v8800_v4, %v11314_v17  ;;  %v3057_v29 = vmul.f32 %v8800_v4, %v11321_v63  ;;  %v8488_v17 = vld [vmem:[%s14112_s8 + $0x30] sm:$0xff]  }
 0x8dd   : > { %8075 = vmatpush3.bf16.msra.mxu0 %v8488_v17 }
 0x8de   : > { %v3080_v52 = vpack.c.bf16 %v3058_v58, %v3056_v40  ;;  %v3079_v53 = vpack.c.bf16 %v3057_v29, %v3055_v1  ;;  %8121 = vmatpush3.bf16.msra.mxu1 %v8485_v46  ;;  %8076 = vmatprep.subr.bf16.mxu0 %v14398_v2 }
 0x8df   : > { %8196 = vmatprep.subr.bf16.mxu1 %v14398_v2  ;;  %v3009_v19 = vpop.xlane.xlu1 %3008  ;;  %v8802_v44 = vpop.eup %8801 }
 0x8e0   : > { %7682 = vmatprep.mubr.msk.bf16.mxu1 %vm2090_vm5, %v3080_v52  ;;  %v3060_v30 = vmul.f32 %v8802_v44, %v11325_v8  ;;  %v3059_v23 = vmul.f32 %v8802_v44, %v11332_v3 }
 0x8e1   : > { %3225 = vmatmul.mubr.bf16.gmra.mrb[116].mxu1 %v3079_v53 }
 0x8e3   : > { %v3013_v63 = vpop.xlane.xlu1 %3012 }
 0x8e4   : > { %8803 = vrcp.f32 %v3013_v63 }
 0x8e5   : > { %8805 = vrcp.f32 %v3009_v19 }
 0x8e7   : > { %v3017_v10 = vpop.xlane.xlu1 %3016 }
 0x8ee   : > { %v8804_v25 = vpop.eup %8803 }
 0x8ef   : > { %v8806_v34 = vpop.eup %8805  ;;  %v3066_v16 = vmul.f32 %v8804_v25, %v11373_v31  ;;  %v3065_v8 = vmul.f32 %v8804_v25, %v11370_v47 }
 0x8f0   : > { %v3064_v15 = vmul.f32 %v8806_v34, %v11361_v57  ;;  %v3063_v3 = vmul.f32 %v8806_v34, %v11358_v43  ;;  %v8489_v43 = vld [vmem:[%s14112_s8 + $0x38] sm:$0xff]  }
 0x8f1   : > { %v3005_v56 = vpop.xlane.xlu0 %3004  ;;  %8077 = vmatpush3.bf16.msra.mxu0 %v8489_v43 }
 0x8f2   : > { %8807 = vrcp.f32 %v3005_v56  ;;  %v3084_v27 = vpack.c.bf16 %v3066_v16, %v3064_v15  ;;  %8158 = vmatprep.subr.bf16.mxu0 %v14398_v2 }
 0x8f3   : > { %8809 = vrcp.f32 %v3017_v10 }
 0x8fc   : > { %v8808_v39 = vpop.eup %8807 }
 0x8fd   : > { %v3062_v50 = vmul.f32 %v8808_v39, %v11364_v32  ;;  %v3061_v55 = vmul.f32 %v8808_v39, %v11394_v21  ;;  %v8810_v35 = vpop.eup %8809  ;;  %v3083_v21 = vpack.c.bf16 %v3065_v8, %v3063_v3 }
 0x8fe   : > { %v3068_v32 = vmul.f32 %v8810_v35, %v11384_v60  ;;  %v3067_v57 = vmul.f32 %v8810_v35, %v11382_v5 }
 0x8ff   : > { %v3082_v59 = vpack.c.bf16 %v3062_v50, %v3060_v30  ;;  %v3081_v6 = vpack.c.bf16 %v3061_v55, %v3059_v23 }
 0x900   : > { %v3086_v14 = vpack.c.bf16 %v3068_v32, %v3068_v32  ;;  %v3085_v54 = vpack.c.bf16 %v3067_v57, %v3067_v57 }
 0x901   : > { %7683 = vmatprep.mubr.msk.bf16.mxu1 %vm2090_vm5, %v3082_v59 }
 0x902   : > { %3233 = vmatmul.mubr.bf16.gmra.mrb[120].mxu1 %v3081_v6 }
 0x903   : > { %7684 = vmatprep.mubr.msk.bf16.mxu1 %vm2090_vm5, %v3084_v27 }
 0x90a   : > { %3241 = vmatmul.mubr.bf16.gmra.mrb[124].mxu1 %v3083_v21 }
 0x90b   : > { %7685 = vmatprep.mubr.msk.bf16.mxu1 %vm2090_vm5, %v3086_v14  ;;  %v2472_v31 = vpop.f32.mrb[72].mxu1 }
 0x90c   : > { %v2474_v38 = vpop.f32.mrb[73].mxu1 }
 0x90d   : > { %v2475_v28 = vpop.f32.mrb[74].mxu1 }
 0x90e   : > { %v2542_v11 = vpack.c.bf16 %v2475_v28, %v2472_v31  ;;  %v2477_v41 = vpop.f32.mrb[75].mxu1 }
 0x912   : > { %3249 = vmatmul.mubr.bf16.gmra.mrb[128].mxu1 %v3085_v54 }
 0x913   : > { %8122 = vmatprep.mubr.msk.bf16.mxu1 %vm9235_vm1, %v14398_v2 }
 0x91a   : > { %8123 = vmatmul.mubr.msk.bf16.vlgmr.msra.gmra.mrb[132].mxu1 %vm1914_vm3, %v2542_v11 }
 0x91b   : > { %8126 = vmatprep.mubr.msk.bf16.mxu1 %vm9235_vm1, %v14398_v2 }
 0x922   : > { %v2480_v47 = vpop.f32.mrb[76].mxu1 }
 0x923   : > { %v2482_v5 = vpop.f32.mrb[77].mxu1 }
 0x924   : > { %v2483_v60 = vpop.f32.mrb[78].mxu1 }
 0x925   : > { %v2543_v48 = vpack.c.bf16 %v2483_v60, %v2480_v47  ;;  %v2485_v37 = vpop.f32.mrb[79].mxu1 }
 0x927   : > { %8127 = vmatmul.mubr.msk.bf16.gmra.mrb[136].mxu1 %vm1914_vm3, %v2543_v48 }
 0x928   : > { %8130 = vmatprep.mubr.msk.bf16.mxu1 %vm9235_vm1, %v14398_v2 }
 0x92c   : > { %v2488_v0 = vpop.f32.mrb[80].mxu1 }
 0x92d   : > { %v2490_v36 = vpop.f32.mrb[81].mxu1 }
 0x92e   : > { %v2491_v26 = vpop.f32.mrb[82].mxu1 }
 0x92f   : > { %v2544_v9 = vpack.c.bf16 %v2491_v26, %v2488_v0  ;;  %v2493_v24 = vpop.f32.mrb[83].mxu1 }
 0x931   : > { %8131 = vmatmul.mubr.msk.bf16.gmra.mrb[140].mxu1 %vm1914_vm3, %v2544_v9 }
 0x932   : > { %8134 = vmatprep.mubr.msk.bf16.mxu1 %vm9235_vm1, %v14398_v2 }
 0x934   : > { %v2496_v42 = vpop.f32.mrb[84].mxu1 }
 0x935   : > { %v2498_v49 = vpop.f32.mrb[85].mxu1 }
 0x936   : > { %v2499_v45 = vpop.f32.mrb[86].mxu1 }
 0x937   : > { %v2545_v13 = vpack.c.bf16 %v2499_v45, %v2496_v42  ;;  %v2501_v61 = vpop.f32.mrb[87].mxu1 }
 0x939   : > { %8135 = vmatmul.mubr.msk.bf16.gmra.mrb[144].mxu1 %vm1914_vm3, %v2545_v13 }
 0x93a   : > { %8138 = vmatprep.mubr.msk.bf16.mxu1 %vm9235_vm1, %v14398_v2 }
 0x93c   : > { %v2504_v33 = vpop.f32.mrb[88].mxu1 }
 0x93d   : > { %v2506_v20 = vpop.f32.mrb[89].mxu1 }
 0x93e   : > { %v2507_v22 = vpop.f32.mrb[90].mxu1 }
 0x93f   : > { %v2546_v62 = vpack.c.bf16 %v2507_v22, %v2504_v33  ;;  %v2509_v46 = vpop.f32.mrb[91].mxu1 }
 0x941   : > { %8139 = vmatmul.mubr.msk.bf16.gmra.mrb[148].mxu1 %vm1914_vm3, %v2546_v62 }
 0x942   : > { %8142 = vmatprep.mubr.msk.bf16.mxu1 %vm9235_vm1, %v14398_v2 }
 0x944   : > { %v2512_v4 = vpop.f32.mrb[92].mxu1 }
 0x945   : > { %v2514_v40 = vpop.f32.mrb[93].mxu1 }
 0x946   : > { %v2515_v58 = vpop.f32.mrb[94].mxu1 }
 0x947   : > { %v2547_v1 = vpack.c.bf16 %v2515_v58, %v2512_v4  ;;  %v2517_v29 = vpop.f32.mrb[95].mxu1 }
 0x949   : > { %8143 = vmatmul.mubr.msk.bf16.gmra.mrb[152].mxu1 %vm1914_vm3, %v2547_v1 }
 0x94a   : > { %8146 = vmatprep.mubr.msk.bf16.mxu1 %vm9235_vm1, %v14398_v2 }
 0x94c   : > { %v2520_v52 = vpop.f32.mrb[96].mxu1 }
 0x94d   : > { %v2522_v53 = vpop.f32.mrb[97].mxu1 }
 0x94e   : > { %v2523_v7 = vpop.f32.mrb[98].mxu1 }
 0x94f   : > { %v2548_v18 = vpack.c.bf16 %v2523_v7, %v2520_v52  ;;  %v2525_v12 = vpop.f32.mrb[99].mxu1 }
 0x951   : > { %8147 = vmatmul.mubr.msk.bf16.gmra.mrb[156].mxu1 %vm1914_vm3, %v2548_v18 }
 0x952   : > { %8150 = vmatprep.mubr.msk.bf16.mxu1 %vm9235_vm1, %v14398_v2 }
 0x954   : > { %v2528_v19 = vpop.f32.mrb[100].mxu1 }
 0x955   : > { %v2530_v17 = vpop.f32.mrb[101].mxu1 }
 0x956   : > { %v2531_v63 = vpop.f32.mrb[102].mxu1 }
 0x957   : > { %v2549_v56 = vpack.c.bf16 %v2531_v63, %v2528_v19  ;;  %v2533_v10 = vpop.f32.mrb[103].mxu1 }
 0x959   : > { %8151 = vmatmul.mubr.msk.bf16.gmra.mrb[160].mxu1 %vm1914_vm3, %v2549_v56 }
 0x95a   : > { %8154 = vmatprep.mubr.msk.bf16.mxu1 %vm9235_vm1, %v14398_v2 }
 0x95c   : > { %v2536_v44 = vpop.f32.mrb[104].mxu1 }
 0x95d   : > { %v2538_v25 = vpop.f32.mrb[105].mxu1  ;;  %v2550_v39 = vpack.c.bf16 %v2536_v44, %v2536_v44 }
 0x95e   : > { %v2539_v34 = vpop.f32.mrb[106].mxu1 }
 0x95f   : > { %v2540_v30 = vpop.f32.mrb[107].mxu1 }
 0x961   : > { %8155 = vmatmul.mubr.msk.bf16.gmra.mrb[164].mxu1 %vm1914_vm3, %v2550_v39 }
 0x962   : > { %8198 = vmatprep.mubr.msk.bf16.mxu1 %vm9235_vm1, %v14398_v2 }
 0x998   : > { %v3186_v50 = vpop.f32.mrb[108].mxu0 }
 0x999   : > { %v3188_v23 = vpop.f32.mrb[109].mxu0 }
 0x99a   : > { %v3189_v55 = vpop.f32.mrb[110].mxu0 }
 0x99b   : > { %v3256_v16 = vpack.c.bf16 %v3189_v55, %v3186_v50  ;;  %v3191_v59 = vpop.f32.mrb[111].mxu0 }
 0x99d   : > { %8079 = vmatmul.mubr.msk.bf16.vlgmr.msra.gmra.mrb[120].mxu0 %vm1914_vm3, %v3256_v16 }
 0x99e   : > { %8082 = vmatprep.mubr.msk.bf16.mxu0 %vm9235_vm1, %v14398_v2 }
 0x9a0   : > { %v3194_v6 = vpop.f32.mrb[112].mxu0 }
 0x9a1   : > { %v3196_v15 = vpop.f32.mrb[113].mxu0 }
 0x9a2   : > { %v3197_v27 = vpop.f32.mrb[114].mxu0 }
 0x9a3   : > { %v3257_v35 = vpack.c.bf16 %v3197_v27, %v3194_v6  ;;  %v3199_v8 = vpop.f32.mrb[115].mxu0 }
 0x9a4   : > { %v3210_v32 = vpop.f32.mrb[108].mxu1 }
 0x9a5   : > { %v3212_v3 = vpop.f32.mrb[109].mxu1  ;;  %8083 = vmatmul.mubr.msk.bf16.gmra.mrb[124].mxu0 %vm1914_vm3, %v3257_v35 }
 0x9a6   : > { %v3213_v21 = vpop.f32.mrb[110].mxu1  ;;  %8086 = vmatprep.mubr.msk.bf16.mxu0 %vm9235_vm1, %v14398_v2 }
 0x9a7   : > { %v3259_v14 = vpack.c.bf16 %v3213_v21, %v3210_v32  ;;  %v3215_v57 = vpop.f32.mrb[111].mxu1 }
 0x9a8   : > { %v3202_v31 = vpop.f32.mrb[116].mxu0 }
 0x9a9   : > { %v3204_v38 = vpop.f32.mrb[117].mxu0 }
 0x9aa   : > { %v3205_v28 = vpop.f32.mrb[118].mxu0 }
 0x9ab   : > { %v3258_v11 = vpack.c.bf16 %v3205_v28, %v3202_v31  ;;  %v3207_v41 = vpop.f32.mrb[119].mxu0 }
 0x9ac   : > { %v3218_v54 = vpop.f32.mrb[112].mxu1 }
 0x9ad   : > { %v3220_v43 = vpop.f32.mrb[113].mxu1  ;;  %8087 = vmatmul.mubr.msk.bf16.gmra.mrb[128].mxu0 %vm1914_vm3, %v3258_v11 }
 0x9ae   : > { %v3221_v47 = vpop.f32.mrb[114].mxu1  ;;  %8090 = vmatprep.mubr.msk.bf16.mxu0 %vm9235_vm1, %v14398_v2 }
 0x9af   : > { %v3260_v5 = vpack.c.bf16 %v3221_v47, %v3218_v54  ;;  %v3223_v60 = vpop.f32.mrb[115].mxu1  ;;  %v11586_v47 = vld [vmem:[%s14109_s5] sm:$0x7f] }
 0x9b4   : > { %v3226_v48 = vpop.f32.mrb[116].mxu1 }
 0x9b5   : > { %v3228_v37 = vpop.f32.mrb[117].mxu1  ;;  %8091 = vmatmul.mubr.msk.bf16.gmra.mrb[132].mxu0 %vm1914_vm3, %v3259_v14 }
 0x9b6   : > { %v3229_v0 = vpop.f32.mrb[118].mxu1  ;;  %8094 = vmatprep.mubr.msk.bf16.mxu0 %vm9235_vm1, %v14398_v2  ;;  %v14404_v37 = vld [vmem:[#allocation8_spill] sm:$0xff] }
 0x9b7   : > { %v3261_v36 = vpack.c.bf16 %v3229_v0, %v3226_v48  ;;  %v3231_v26 = vpop.f32.mrb[119].mxu1 }
 0x9bd   : > { %8095 = vmatmul.mubr.msk.bf16.gmra.mrb[136].mxu0 %vm1914_vm3, %v3260_v5  ;;  %v14403_v5 = vld [vmem:[#allocation5_spill] sm:$0xff] }
 0x9be   : > { %8098 = vmatprep.mubr.msk.bf16.mxu0 %vm9235_vm1, %v14398_v2  ;;  %v11590_v60 = vrot.slane %v11586_v47, %v14403_v5 }
 0x9c5   : > { %8099 = vmatmul.mubr.msk.bf16.gmra.mrb[140].mxu0 %vm1914_vm3, %v3261_v36 }
 0x9c6   : > { %8102 = vmatprep.mubr.msk.bf16.mxu0 %vm9235_vm1, %v14398_v2 }
 0x9d5   : > { %v3234_v9 = vpop.f32.mrb[120].mxu1 }
 0x9d6   : > { %v3236_v24 = vpop.f32.mrb[121].mxu1 }
 0x9d7   : > { %v3237_v42 = vpop.f32.mrb[122].mxu1 }
 0x9d8   : > { %v3262_v49 = vpack.c.bf16 %v3237_v42, %v3234_v9  ;;  %v3239_v45 = vpop.f32.mrb[123].mxu1  ;;  %v14405_v9 = vld [vmem:[#allocation9_spill] sm:$0xff] }
 0x9da   : > { %8103 = vmatmul.mubr.msk.bf16.gmra.mrb[144].mxu0 %vm1914_vm3, %v3262_v49 }
 0x9db   : > { %8106 = vmatprep.mubr.msk.bf16.mxu0 %vm9235_vm1, %v14398_v2 }
 0x9dd   : > { %v3242_v13 = vpop.f32.mrb[124].mxu1 }
 0x9de   : > { %v3244_v61 = vpop.f32.mrb[125].mxu1 }
 0x9df   : > { %v3245_v33 = vpop.f32.mrb[126].mxu1 }
 0x9e0   : > { %v3263_v20 = vpack.c.bf16 %v3245_v33, %v3242_v13  ;;  %v3247_v22 = vpop.f32.mrb[127].mxu1 }
 0x9e1   : > { %v14406_v22 = vld [vmem:[#allocation10_spill] sm:$0xff] }
 0x9e2   : > { %8107 = vmatmul.mubr.msk.bf16.gmra.mrb[148].mxu0 %vm1914_vm3, %v3263_v20 }
 0x9e3   : > { %8110 = vmatprep.mubr.msk.bf16.mxu0 %vm9235_vm1, %v14398_v2 }
 0x9e5   : > { %v3250_v62 = vpop.f32.mrb[128].mxu1 }
 0x9e6   : > { %v3252_v46 = vpop.f32.mrb[129].mxu1  ;;  %v3264_v40 = vpack.c.bf16 %v3250_v62, %v3250_v62 }
 0x9e7   : > { %v3253_v4 = vpop.f32.mrb[130].mxu1 }
 0x9e8   : > { %v3254_v58 = vpop.f32.mrb[131].mxu1 }
 0x9ea   : > { %8111 = vmatmul.mubr.msk.bf16.gmra.mrb[152].mxu0 %vm1914_vm3, %v3264_v40 }
 0x9eb   : > { %8160 = vmatprep.mubr.msk.bf16.mxu0 %vm9235_vm1, %v14398_v2 }
 0x9ed   : > { %v3505_v1 = vpop.f32.mrb[132].mxu1 }
 0x9ee   : > { %v8124_v29 = vpop.f32.mrb[133].mxu1 }
 0x9ef   : > { %v3508_v52 = vpop.f32.mrb[134].mxu1 }
 0x9f0   : > { %v8125_v53 = vpop.f32.mrb[135].mxu1 }
 0x9fa   : > { %v3513_v7 = vpop.f32.mrb[136].mxu1 }
 0x9fb   : > { %v8128_v18 = vpop.f32.mrb[137].mxu1 }
 0x9fc   : > { %v3516_v12 = vpop.f32.mrb[138].mxu1 }
 0x9fd   : > { %v8129_v19 = vpop.f32.mrb[139].mxu1 }
 0xa04   : > { %v3521_v17 = vpop.f32.mrb[140].mxu1 }
 0xa05   : > { %v8132_v63 = vpop.f32.mrb[141].mxu1 }
 0xa06   : > { %v3524_v56 = vpop.f32.mrb[142].mxu1  ;;  %v14408_v63 = vld [vmem:[#allocation12_spill] sm:$0xff] }
 0xa07   : > { %v8133_v10 = vpop.f32.mrb[143].mxu1 }
 0xa0c   : > { %v11561_v44 = vpop.f32.mrb[144].mxu1 }
 0xa0d   : > { %v8136_v25 = vpop.f32.mrb[145].mxu1 }
 0xa0e   : > { %v11563_v34 = vpop.f32.mrb[146].mxu1 }
 0xa0f   : > { %v8137_v39 = vpop.f32.mrb[147].mxu1 }
 0xa14   : > { %v11565_v30 = vpop.f32.mrb[148].mxu1 }
 0xa15   : > { %v8140_v50 = vpop.f32.mrb[149].mxu1 }
 0xa16   : > { %v11567_v23 = vpop.f32.mrb[150].mxu1 }
 0xa17   : > { %v8141_v55 = vpop.f32.mrb[151].mxu1 }
 0xa1c   : > { %v11569_v16 = vpop.f32.mrb[152].mxu1 }
 0xa1d   : > { %v8144_v59 = vpop.f32.mrb[153].mxu1 }
 0xa1e   : > { %v11571_v6 = vpop.f32.mrb[154].mxu1  ;;  %v14409_v59 = vld [vmem:[#allocation13_spill] sm:$0xff] }
 0xa1f   : > { %v8145_v15 = vpop.f32.mrb[155].mxu1 }
 0xa24   : > { %v11573_v27 = vpop.f32.mrb[156].mxu1 }
 0xa25   : > { %v8148_v35 = vpop.f32.mrb[157].mxu1 }
 0xa26   : > { %v11575_v8 = vpop.f32.mrb[158].mxu1 }
 0xa27   : > { %v8149_v32 = vpop.f32.mrb[159].mxu1 }
 0xa2c   : > { %v11577_v3 = vpop.f32.mrb[160].mxu1 }
 0xa2d   : > { %v8152_v21 = vpop.f32.mrb[161].mxu1 }
 0xa2e   : > { %v11579_v14 = vpop.f32.mrb[162].mxu1 }
 0xa2f   : > { %v8153_v57 = vpop.f32.mrb[163].mxu1 }
 0xa34   : > { %v11581_v31 = vpop.f32.mrb[164].mxu1 }
 0xa35   : > { %v8156_v38 = vpop.f32.mrb[165].mxu1 }
 0xa36   : > { %v3572_v28 = vpop.f32.mrb[166].mxu1 }
 0xa37   : > { %v8157_v11 = vpop.f32.mrb[167].mxu1  ;;  %v14410_v28 = vld [vmem:[#allocation14_spill] sm:$0xff] }
 0xa70   : > { %v3350_v41 = vpop.f32.mrb[120].mxu0 }
 0xa71   : > { %v3506_v54 = vadd.f32 %v3505_v1, %v3350_v41  ;;  %v8080_v43 = vpop.f32.mrb[121].mxu0  ;;  %v14407_v1 = vld [vmem:[#allocation11_spill] sm:$0xff] }
 0xa72   : > { %v3353_v48 = vpop.f32.mrb[122].mxu0 }
 0xa73   : > { %v3575_v0 = vadd.f32 %v3506_v54, %v14404_v37  ;;  %v3509_v36 = vadd.f32 %v3508_v52, %v3353_v48  ;;  %v8081_v26 = vpop.f32.mrb[123].mxu0  ;;  %v14411_v48 = vld [vmem:[#allocation15_spill] sm:$0xff] }
 0xa75   : > { %v3576_v24 = vadd.f32 %v3509_v36, %v14405_v9  ;;  %v11595_v42 = vadd.f32 %v11590_v60, %v3575_v0 }
 0xa77   : > { %v3613_v49 = vsel %vm866_vm2, %v11595_v42, 0.0  ;;  %v11600_v45 = vadd.f32 %v11590_v60, %v3576_v24 }
 0xa78   : > { %v3358_v13 = vpop.f32.mrb[124].mxu0  ;;  %3614 = vadd.xlane.f32.xlu1 %v3613_v49  ;;  %v14412_v49 = vld [vmem:[#allocation16_spill] sm:$0xff] }
 0xa79   : > { %v3514_v61 = vadd.f32 %v3513_v7, %v3358_v13  ;;  %v8084_v33 = vpop.f32.mrb[125].mxu0  ;;  %v3616_v40 = vsel %vm866_vm2, %v11600_v45, 0.0 }
 0xa7a   : > { %v3361_v20 = vpop.f32.mrb[126].mxu0 }
 0xa7b   : > { %v3577_v62 = vadd.f32 %v3514_v61, %v14406_v22  ;;  %v3517_v46 = vadd.f32 %v3516_v12, %v3361_v20  ;;  %v8085_v4 = vpop.f32.mrb[127].mxu0  ;;  %v14413_v22 = vld [vmem:[#allocation17_spill] sm:$0xff] }
 0xa7c   : > { %3617 = vadd.xlane.f32.xlu1 %v3616_v40 }
 0xa7d   : > { %v11606_v58 = vadd.f32 %v11590_v60, %v3577_v62  ;;  %v3578_v29 = vadd.f32 %v3517_v46, %v14407_v1 }
 0xa7f   : > { %v11610_v52 = vadd.f32 %v11590_v60, %v3578_v29  ;;  %v3619_v53 = vsel %vm866_vm2, %v11606_v58, 0.0 }
 0xa80   : > { %v3366_v7 = vpop.f32.mrb[128].mxu0  ;;  %3620 = vadd.xlane.f32.xlu1 %v3619_v53  ;;  %v14414_v53 = vld [vmem:[#allocation19_spill] sm:$0xff] }
 0xa81   : > { %v3522_v18 = vadd.f32 %v3521_v17, %v3366_v7  ;;  %v8088_v12 = vpop.f32.mrb[129].mxu0  ;;  %v3622_v50 = vsel %vm866_vm2, %v11610_v52, 0.0 }
 0xa82   : > { %v3369_v19 = vpop.f32.mrb[130].mxu0 }
 0xa83   : > { %v3579_v10 = vadd.f32 %v3522_v18, %v14408_v63  ;;  %v3525_v25 = vadd.f32 %v3524_v56, %v3369_v19  ;;  %v8089_v39 = vpop.f32.mrb[131].mxu0  ;;  %v14415_v63 = vld [vmem:[#allocation18_spill] sm:$0xff] }
 0xa84   : > { %3623 = vadd.xlane.f32.xlu1 %v3622_v50 }
 0xa85   : > { %v11618_v55 = vadd.f32 %v11590_v60, %v3579_v10  ;;  %v3580_v15 = vadd.f32 %v3525_v25, %v14409_v59 }
 0xa87   : > { %v11622_v35 = vadd.f32 %v11590_v60, %v3580_v15  ;;  %v3625_v17 = vsel %vm866_vm2, %v11618_v55, 0.0 }
 0xa88   : > { %v3374_v32 = vpop.f32.mrb[132].mxu0  ;;  %3626 = vadd.xlane.f32.xlu1 %v3625_v17  ;;  %v14416_v17 = vld [vmem:[#allocation20_spill] sm:$0xff] }
 0xa89   : > { %v3530_v56 = vadd.f32 %v11561_v44, %v3374_v32  ;;  %v8092_v21 = vpop.f32.mrb[133].mxu0  ;;  %v3628_v57 = vsel %vm866_vm2, %v11622_v35, 0.0 }
 0xa8a   : > { %v3377_v38 = vpop.f32.mrb[134].mxu0  ;;  %3629 = vadd.xlane.f32.xlu0 %v3628_v57 }
 0xa8b   : > { %v3581_v11 = vadd.f32 %v3530_v56, %v14410_v28  ;;  %v3533_v41 = vadd.f32 %v11563_v34, %v3377_v38  ;;  %v8093_v54 = vpop.f32.mrb[135].mxu0  ;;  %v14417_v38 = vld [vmem:[#allocation21_spill] sm:$0xff] }
 0xa8d   : > { %v11632_v43 = vadd.f32 %v11590_v60, %v3581_v11  ;;  %v3582_v37 = vadd.f32 %v3533_v41, %v14411_v48 }
 0xa8f   : > { %v11636_v0 = vadd.f32 %v11590_v60, %v3582_v37  ;;  %v3631_v44 = vsel %vm866_vm2, %v11632_v43, 0.0 }
 0xa90   : > { %v3382_v36 = vpop.f32.mrb[136].mxu0  ;;  %3632 = vadd.xlane.f32.xlu1 %v3631_v44  ;;  %v14418_v44 = vld [vmem:[#allocation22_spill] sm:$0xff] }
 0xa91   : > { %v3538_v26 = vadd.f32 %v11565_v30, %v3382_v36  ;;  %v8096_v9 = vpop.f32.mrb[137].mxu0  ;;  %v3634_v34 = vsel %vm866_vm2, %v11636_v0, 0.0 }
 0xa92   : > { %v3385_v24 = vpop.f32.mrb[138].mxu0  ;;  %3635 = vadd.xlane.f32.xlu0 %v3634_v34 }
 0xa93   : > { %v3583_v13 = vadd.f32 %v3538_v26, %v14412_v49  ;;  %v3541_v61 = vadd.f32 %v11567_v23, %v3385_v24  ;;  %v8097_v33 = vpop.f32.mrb[139].mxu0  ;;  %v14419_v24 = vld [vmem:[#allocation23_spill] sm:$0xff] }
 0xa95   : > { %v11646_v20 = vadd.f32 %v11590_v60, %v3583_v13  ;;  %v3584_v62 = vadd.f32 %v3541_v61, %v14413_v22 }
 0xa97   : > { %v11650_v46 = vadd.f32 %v11590_v60, %v3584_v62  ;;  %v3637_v30 = vsel %vm866_vm2, %v11646_v20, 0.0 }
 0xa98   : > { %v3390_v4 = vpop.f32.mrb[140].mxu0  ;;  %3638 = vadd.xlane.f32.xlu1 %v3637_v30  ;;  %v14420_v30 = vld [vmem:[#allocation24_spill] sm:$0xff] }
 0xa99   : > { %v3546_v40 = vadd.f32 %v11569_v16, %v3390_v4  ;;  %v8100_v1 = vpop.f32.mrb[141].mxu0  ;;  %v3640_v23 = vsel %vm866_vm2, %v11650_v46, 0.0 }
 0xa9a   : > { %v3393_v29 = vpop.f32.mrb[142].mxu0  ;;  %3641 = vadd.xlane.f32.xlu0 %v3640_v23 }
 0xa9b   : > { %v3585_v7 = vadd.f32 %v3546_v40, %v14414_v53  ;;  %v3549_v18 = vadd.f32 %v11571_v6, %v3393_v29  ;;  %v8101_v12 = vpop.f32.mrb[143].mxu0 }
 0xa9d   : > { %v11660_v19 = vadd.f32 %v11590_v60, %v3585_v7  ;;  %v3586_v10 = vadd.f32 %v3549_v18, %v14415_v63 }
 0xa9f   : > { %v11664_v25 = vadd.f32 %v11590_v60, %v3586_v10  ;;  %v3643_v16 = vsel %vm866_vm2, %v11660_v19, 0.0 }
 0xaa0   : > { %3644 = vadd.xlane.f32.xlu1 %v3643_v16 }
 0xaa1   : > { %v3646_v39 = vsel %vm866_vm2, %v11664_v25, 0.0 }
 0xaa2   : > { %3647 = vadd.xlane.f32.xlu0 %v3646_v39 }
 0xaad   : > { %v3398_v50 = vpop.f32.mrb[144].mxu0 }
 0xaae   : > { %v3554_v6 = vadd.f32 %v11573_v27, %v3398_v50  ;;  %v8104_v59 = vpop.f32.mrb[145].mxu0 }
 0xaaf   : > { %v3401_v15 = vpop.f32.mrb[146].mxu0 }
 0xab0   : > { %v3587_v32 = vadd.f32 %v3554_v6, %v14416_v17  ;;  %v3557_v56 = vadd.f32 %v11575_v8, %v3401_v15  ;;  %v8105_v21 = vpop.f32.mrb[147].mxu0 }
 0xab2   : > { %v11674_v57 = vadd.f32 %v11590_v60, %v3587_v32  ;;  %v3588_v28 = vadd.f32 %v3557_v56, %v14417_v38 }
 0xab4   : > { %v11678_v11 = vadd.f32 %v11590_v60, %v3588_v28  ;;  %v3649_v41 = vsel %vm866_vm2, %v11674_v57, 0.0 }
 0xab5   : > { %v3406_v54 = vpop.f32.mrb[148].mxu0  ;;  %3650 = vadd.xlane.f32.xlu1 %v3649_v41 }
 0xab6   : > { %v3562_v27 = vadd.f32 %v11577_v3, %v3406_v54  ;;  %v8108_v48 = vpop.f32.mrb[149].mxu0  ;;  %v3652_v8 = vsel %vm866_vm2, %v11678_v11, 0.0 }
 0xab7   : > { %v3409_v37 = vpop.f32.mrb[150].mxu0  ;;  %3653 = vadd.xlane.f32.xlu0 %v3652_v8 }
 0xab8   : > { %v3589_v36 = vadd.f32 %v3562_v27, %v14418_v44  ;;  %v3565_v26 = vadd.f32 %v11579_v14, %v3409_v37  ;;  %v8109_v9 = vpop.f32.mrb[151].mxu0 }
 0xaba   : > { %v11688_v34 = vadd.f32 %v11590_v60, %v3589_v36  ;;  %v3590_v49 = vadd.f32 %v3565_v26, %v14419_v24 }
 0xabc   : > { %v11692_v13 = vadd.f32 %v11590_v60, %v3590_v49  ;;  %v3655_v3 = vsel %vm866_vm2, %v11688_v34, 0.0 }
 0xabd   : > { %v3414_v61 = vpop.f32.mrb[152].mxu0  ;;  %3656 = vadd.xlane.f32.xlu1 %v3655_v3 }
 0xabe   : > { %v3570_v33 = vadd.f32 %v11581_v31, %v3414_v61  ;;  %v8112_v22 = vpop.f32.mrb[153].mxu0  ;;  %v3658_v14 = vsel %vm866_vm2, %v11692_v13, 0.0  ;;  %v8490_v31 = vld [vmem:[%s14113_s9] sm:$0xff]  }
 0xabf   : > { %v3417_v62 = vpop.f32.mrb[154].mxu0  ;;  %3659 = vadd.xlane.f32.xlu0 %v3658_v14  ;;  %8159 = vmatpush3.bf16.msra.mxu0 %v8490_v31 }
 0xac0   : > { %v3591_v4 = vadd.f32 %v3570_v33, %v14420_v30  ;;  %v8113_v40 = vpop.f32.mrb[155].mxu0 }
 0xac2   : > { %v11701_v1 = vadd.f32 %v11590_v60, %v3591_v4 }
 0xac4   : > { %v3661_v23 = vsel %vm866_vm2, %v11701_v1, 0.0 }
 0xac5   : > { %3662 = vadd.xlane.f32.xlu1 %v3661_v23 }
 0xb05   : > { %v3615_v29 = vpop.xlane.xlu1 %3614 }
 0xb06   : > { %v3664_v53 = vmul.f32 0.0625, %v3615_v29 }
 0xb08   : > { %v11709_v7 = vsub.f32 %v11595_v42, %v3664_v53 }
 0xb09   : > { %v3618_v18 = vpop.xlane.xlu1 %3617 }
 0xb0a   : > { %v3665_v12 = vmul.f32 0.0625, %v3618_v18  ;;  %v3698_v60 = vmul.f32 %v11709_v7, %v11709_v7 }
 0xb0c   : > { %v11714_v63 = vsub.f32 %v11600_v45, %v3665_v12  ;;  %v3715_v10 = vsel %vm866_vm2, %v3698_v60, 0.0 }
 0xb0d   : > { %v3621_v16 = vpop.xlane.xlu1 %3620  ;;  %3716 = vadd.xlane.f32.xlu0 %v3715_v10 }
 0xb0e   : > { %v3666_v39 = vmul.f32 0.0625, %v3621_v16  ;;  %v3699_v50 = vmul.f32 %v11714_v63, %v11714_v63 }
 0xb10   : > { %v11720_v6 = vsub.f32 %v11606_v58, %v3666_v39  ;;  %v3718_v59 = vsel %vm866_vm2, %v3699_v50, 0.0 }
 0xb11   : > { %v3624_v15 = vpop.xlane.xlu1 %3623  ;;  %3719 = vadd.xlane.f32.xlu1 %v3718_v59 }
 0xb12   : > { %v3667_v17 = vmul.f32 0.0625, %v3624_v15  ;;  %v3700_v32 = vmul.f32 %v11720_v6, %v11720_v6 }
 0xb14   : > { %v11726_v56 = vsub.f32 %v11610_v52, %v3667_v17  ;;  %v3721_v21 = vsel %vm866_vm2, %v3700_v32, 0.0 }
 0xb15   : > { %v3627_v38 = vpop.xlane.xlu1 %3626  ;;  %3722 = vadd.xlane.f32.xlu0 %v3721_v21 }
 0xb16   : > { %v3668_v28 = vmul.f32 0.0625, %v3627_v38  ;;  %v3701_v41 = vmul.f32 %v11726_v56, %v11726_v56 }
 0xb17   : > { %v3630_v54 = vpop.xlane.xlu0 %3629 }
 0xb18   : > { %v11732_v27 = vsub.f32 %v11618_v55, %v3668_v28  ;;  %v3669_v48 = vmul.f32 0.0625, %v3630_v54  ;;  %v3724_v8 = vsel %vm866_vm2, %v3701_v41, 0.0 }
 0xb19   : > { %3725 = vadd.xlane.f32.xlu1 %v3724_v8 }
 0xb1a   : > { %v11736_v37 = vsub.f32 %v11622_v35, %v3669_v48  ;;  %v3702_v44 = vmul.f32 %v11732_v27, %v11732_v27 }
 0xb1c   : > { %v3727_v36 = vsel %vm866_vm2, %v3702_v44, 0.0  ;;  %v3703_v26 = vmul.f32 %v11736_v37, %v11736_v37 }
 0xb1d   : > { %v3633_v9 = vpop.xlane.xlu1 %3632  ;;  %3728 = vadd.xlane.f32.xlu0 %v3727_v36 }
 0xb1e   : > { %v3670_v24 = vmul.f32 0.0625, %v3633_v9  ;;  %v3730_v49 = vsel %vm866_vm2, %v3703_v26, 0.0 }
 0xb1f   : > { %v3636_v3 = vpop.xlane.xlu0 %3635  ;;  %3731 = vadd.xlane.f32.xlu1 %v3730_v49 }
 0xb20   : > { %v11745_v61 = vsub.f32 %v11632_v43, %v3670_v24  ;;  %v3671_v33 = vmul.f32 0.0625, %v3636_v3 }
 0xb22   : > { %v11748_v22 = vsub.f32 %v11636_v0, %v3671_v33  ;;  %v3704_v14 = vmul.f32 %v11745_v61, %v11745_v61 }
 0xb24   : > { %v3733_v62 = vsel %vm866_vm2, %v3704_v14, 0.0  ;;  %v3705_v30 = vmul.f32 %v11748_v22, %v11748_v22 }
 0xb25   : > { %v3639_v4 = vpop.xlane.xlu1 %3638  ;;  %3734 = vadd.xlane.f32.xlu0 %v3733_v62 }
 0xb26   : > { %v3672_v40 = vmul.f32 0.0625, %v3639_v4  ;;  %v3736_v23 = vsel %vm866_vm2, %v3705_v30, 0.0 }
 0xb27   : > { %v3642_v31 = vpop.xlane.xlu0 %3641  ;;  %3737 = vadd.xlane.f32.xlu1 %v3736_v23 }
 0xb28   : > { %v11757_v29 = vsub.f32 %v11646_v20, %v3672_v40  ;;  %v3673_v53 = vmul.f32 0.0625, %v3642_v31 }
 0xb2a   : > { %v11760_v18 = vsub.f32 %v11650_v46, %v3673_v53  ;;  %v3706_v12 = vmul.f32 %v11757_v29, %v11757_v29 }
 0xb2c   : > { %v3739_v60 = vsel %vm866_vm2, %v3706_v12, 0.0  ;;  %v3707_v10 = vmul.f32 %v11760_v18, %v11760_v18 }
 0xb2d   : > { %v3645_v16 = vpop.xlane.xlu1 %3644  ;;  %3740 = vadd.xlane.f32.xlu0 %v3739_v60 }
 0xb2e   : > { %v3674_v39 = vmul.f32 0.0625, %v3645_v16  ;;  %v3742_v50 = vsel %vm866_vm2, %v3707_v10, 0.0 }
 0xb2f   : > { %v3648_v59 = vpop.xlane.xlu0 %3647  ;;  %3743 = vadd.xlane.f32.xlu1 %v3742_v50 }
 0xb30   : > { %v11769_v15 = vsub.f32 %v11660_v19, %v3674_v39  ;;  %v3675_v17 = vmul.f32 0.0625, %v3648_v59  ;;  %v4190_v59 = vld [vmem:[%s14114_s10] sm:$0xf] }
 0xb32   : > { %v11772_v32 = vsub.f32 %v11664_v25, %v3675_v17  ;;  %v3708_v21 = vmul.f32 %v11769_v15, %v11769_v15  ;;  %v4219_v17 = vsel %vm2434_vm4, %v4190_v59, 0 }
 0xb33   : > { %8197 = vmatpush3.bf16.msra.mxu1 %v4219_v17 }
 0xb34   : > { %v3745_v38 = vsel %vm866_vm2, %v3708_v21, 0.0  ;;  %v3709_v28 = vmul.f32 %v11772_v32, %v11772_v32  ;;  %8234 = vmatprep.subr.bf16.mxu1 %v14398_v2 }
 0xb35   : > { %3746 = vadd.xlane.f32.xlu0 %v3745_v38 }
 0xb36   : > { %v3748_v41 = vsel %vm866_vm2, %v3709_v28, 0.0 }
 0xb37   : > { %3749 = vadd.xlane.f32.xlu1 %v3748_v41 }
 0xb42   : > { %v3651_v54 = vpop.xlane.xlu1 %3650 }
 0xb43   : > { %v3676_v48 = vmul.f32 0.0625, %v3651_v54 }
 0xb44   : > { %v3654_v8 = vpop.xlane.xlu0 %3653 }
 0xb45   : > { %v11781_v44 = vsub.f32 %v11674_v57, %v3676_v48  ;;  %v3677_v36 = vmul.f32 0.0625, %v3654_v8 }
 0xb47   : > { %v11784_v26 = vsub.f32 %v11678_v11, %v3677_v36  ;;  %v3710_v9 = vmul.f32 %v11781_v44, %v11781_v44 }
 0xb49   : > { %v3751_v24 = vsel %vm866_vm2, %v3710_v9, 0.0  ;;  %v3711_v49 = vmul.f32 %v11784_v26, %v11784_v26 }
 0xb4a   : > { %v3657_v3 = vpop.xlane.xlu1 %3656  ;;  %3752 = vadd.xlane.f32.xlu0 %v3751_v24 }
 0xb4b   : > { %v3678_v33 = vmul.f32 0.0625, %v3657_v3  ;;  %v3754_v14 = vsel %vm866_vm2, %v3711_v49, 0.0 }
 0xb4c   : > { %v3660_v62 = vpop.xlane.xlu0 %3659  ;;  %3755 = vadd.xlane.f32.xlu1 %v3754_v14  ;;  %v14421_v14 = vld [vmem:[#allocation6_spill] sm:$0xff] }
 0xb4d   : > { %v11793_v30 = vsub.f32 %v11688_v34, %v3678_v33  ;;  %v3679_v4 = vmul.f32 0.0625, %v3660_v62  ;;  %v11817_v62 = vrot.slane %v11586_v47, %v14421_v14 }
 0xb4f   : > { %v11796_v40 = vsub.f32 %v11692_v13, %v3679_v4  ;;  %v3712_v23 = vmul.f32 %v11793_v30, %v11793_v30 }
 0xb51   : > { %v3757_v31 = vsel %vm866_vm2, %v3712_v23, 0.0  ;;  %v3713_v53 = vmul.f32 %v11796_v40, %v11796_v40 }
 0xb52   : > { %3758 = vadd.xlane.f32.xlu0 %v3757_v31  ;;  %v3663_v12 = vpop.xlane.xlu1 %3662 }
 0xb53   : > { %v3680_v60 = vmul.f32 0.0625, %v3663_v12  ;;  %v3760_v10 = vsel %vm866_vm2, %v3713_v53, 0.0 }
 0xb54   : > { %3761 = vadd.xlane.f32.xlu1 %v3760_v10 }
 0xb55   : > { %v11805_v16 = vsub.f32 %v11701_v1, %v3680_v60 }
 0xb57   : > { %v3714_v39 = vmul.f32 %v11805_v16, %v11805_v16 }
 0xb59   : > { %v3763_v50 = vsel %vm866_vm2, %v3714_v39, 0.0  ;;  %v14422_v39 = vld [vmem:[#allocation7_spill] sm:$0xff] }
 0xb5a   : > { %3764 = vadd.xlane.f32.xlu0 %v3763_v50  ;;  %v11822_v50 = vrot.slane %v11586_v47, %v14422_v39 }
 0xb9a   : > { %v3717_v21 = vpop.xlane.xlu0 %3716 }
 0xb9b   : > { %v3766_v38 = vmul.f32 0.0625, %v3717_v21 }
 0xb9d   : > { %v3783_v28 = vadd.f32 1e-05, %v3766_v38 }
 0xb9e   : > { %v3720_v41 = vpop.xlane.xlu1 %3719 }
 0xb9f   : > { %8811 = vrsqrt.f32 %v3783_v28  ;;  %v3767_v54 = vmul.f32 0.0625, %v3720_v41 }
 0xba1   : > { %v3784_v48 = vadd.f32 1e-05, %v3767_v54 }
 0xba2   : > { %v3723_v8 = vpop.xlane.xlu0 %3722 }
 0xba3   : > { %8813 = vrsqrt.f32 %v3784_v48  ;;  %v3768_v36 = vmul.f32 0.0625, %v3723_v8 }
 0xba5   : > { %v3785_v9 = vadd.f32 1e-05, %v3768_v36 }
 0xba6   : > { %v3726_v24 = vpop.xlane.xlu1 %3725 }
 0xba7   : > { %8815 = vrsqrt.f32 %v3785_v9  ;;  %v3769_v49 = vmul.f32 0.0625, %v3726_v24 }
 0xba9   : > { %v8812_v3 = vpop.eup %8811  ;;  %v3786_v33 = vadd.f32 1e-05, %v3769_v49 }
 0xbaa   : > { %v3817_v4 = vmul.f32 %v8812_v3, %v11709_v7  ;;  %v3729_v23 = vpop.xlane.xlu0 %3728 }
 0xbab   : > { %8817 = vrsqrt.f32 %v3786_v33  ;;  %v3770_v31 = vmul.f32 0.0625, %v3729_v23 }
 0xbac   : > { %v3732_v53 = vpop.xlane.xlu1 %3731  ;;  %v3838_v59 = vmul.f32 %v11817_v62, %v3817_v4 }
 0xbad   : > { %v8814_v12 = vpop.eup %8813  ;;  %v3787_v60 = vadd.f32 1e-05, %v3770_v31  ;;  %v3771_v10 = vmul.f32 0.0625, %v3732_v53 }
 0xbae   : > { %v3818_v17 = vmul.f32 %v8814_v12, %v11714_v63  ;;  %v3859_v28 = vadd.f32 %v11822_v50, %v3838_v59 }
 0xbaf   : > { %8819 = vrsqrt.f32 %v3787_v60  ;;  %v3788_v21 = vadd.f32 1e-05, %v3771_v10 }
 0xbb0   : > { %v3839_v38 = vmul.f32 %v11817_v62, %v3818_v17 }
 0xbb1   : > { %v8816_v7 = vpop.eup %8815  ;;  %8821 = vrsqrt.f32 %v3788_v21 }
 0xbb2   : > { %v3860_v41 = vadd.f32 %v11822_v50, %v3839_v38  ;;  %v3735_v54 = vpop.xlane.xlu0 %3734  ;;  %v3819_v48 = vmul.f32 %v8816_v7, %v11720_v6 }
 0xbb3   : > { %v3772_v8 = vmul.f32 0.0625, %v3735_v54 }
 0xbb4   : > { %v3738_v36 = vpop.xlane.xlu1 %3737  ;;  %v3876_v9 = vpack.c.bf16 %v3860_v41, %v3859_v28  ;;  %v3840_v33 = vmul.f32 %v11817_v62, %v3819_v48 }
 0xbb5   : > { %v8818_v24 = vpop.eup %8817  ;;  %v3789_v49 = vadd.f32 1e-05, %v3772_v8  ;;  %v3773_v3 = vmul.f32 0.0625, %v3738_v36 }
 0xbb6   : > { %8161 = vmatmul.mubr.msk.bf16.vlgmr.msra.gmra.mrb[156].mxu0 %vm866_vm2, %v3876_v9  ;;  %v3820_v63 = vmul.f32 %v8818_v24, %v11726_v56  ;;  %v3861_v53 = vadd.f32 %v11822_v50, %v3840_v33 }
 0xbb7   : > { %8823 = vrsqrt.f32 %v3789_v49  ;;  %v3790_v4 = vadd.f32 1e-05, %v3773_v3  ;;  %8164 = vmatprep.mubr.msk.bf16.mxu0 %vm9235_vm1, %v14398_v2 }
 0xbb8   : > { %v3841_v23 = vmul.f32 %v11817_v62, %v3820_v63 }
 0xbb9   : > { %v8820_v6 = vpop.eup %8819  ;;  %8825 = vrsqrt.f32 %v3790_v4 }
 0xbba   : > { %v3741_v31 = vpop.xlane.xlu0 %3740  ;;  %v3862_v12 = vadd.f32 %v11822_v50, %v3841_v23  ;;  %v3821_v60 = vmul.f32 %v8820_v6, %v11732_v27 }
 0xbbb   : > { %v8822_v10 = vpop.eup %8821  ;;  %v3774_v56 = vmul.f32 0.0625, %v3741_v31 }
 0xbbc   : > { %v3744_v59 = vpop.xlane.xlu1 %3743  ;;  %v3877_v17 = vpack.c.bf16 %v3862_v12, %v3861_v53  ;;  %v3822_v21 = vmul.f32 %v8822_v10, %v11736_v37  ;;  %v3842_v28 = vmul.f32 %v11817_v62, %v3821_v60 }
 0xbbd   : > { %v3791_v38 = vadd.f32 1e-05, %v3774_v56  ;;  %v3775_v7 = vmul.f32 0.0625, %v3744_v59 }
 0xbbe   : > { %8165 = vmatmul.mubr.msk.bf16.gmra.mrb[160].mxu0 %vm866_vm2, %v3877_v17  ;;  %v3843_v41 = vmul.f32 %v11817_v62, %v3822_v21  ;;  %v3863_v37 = vadd.f32 %v11822_v50, %v3842_v28 }
 0xbbf   : > { %8827 = vrsqrt.f32 %v3791_v38  ;;  %v3792_v54 = vadd.f32 1e-05, %v3775_v7  ;;  %8168 = vmatprep.mubr.msk.bf16.mxu0 %vm9235_vm1, %v14398_v2 }
 0xbc0   : > { %v3864_v27 = vadd.f32 %v11822_v50, %v3843_v41 }
 0xbc1   : > { %v8824_v48 = vpop.eup %8823  ;;  %8829 = vrsqrt.f32 %v3792_v54 }
 0xbc2   : > { %v3747_v8 = vpop.xlane.xlu0 %3746  ;;  %v3823_v36 = vmul.f32 %v8824_v48, %v11745_v61  ;;  %v3878_v3 = vpack.c.bf16 %v3864_v27, %v3863_v37 }
 0xbc3   : > { %v8826_v9 = vpop.eup %8825  ;;  %v3776_v24 = vmul.f32 0.0625, %v3747_v8 }
 0xbc4   : > { %v3750_v49 = vpop.xlane.xlu1 %3749  ;;  %v3824_v63 = vmul.f32 %v8826_v9, %v11748_v22  ;;  %v3844_v23 = vmul.f32 %v11817_v62, %v3823_v36 }
 0xbc5   : > { %v3793_v33 = vadd.f32 1e-05, %v3776_v24  ;;  %v3777_v4 = vmul.f32 0.0625, %v3750_v49 }
 0xbc6   : > { %8169 = vmatmul.mubr.msk.bf16.gmra.mrb[164].mxu0 %vm866_vm2, %v3878_v3  ;;  %v3845_v6 = vmul.f32 %v11817_v62, %v3824_v63  ;;  %v3865_v12 = vadd.f32 %v11822_v50, %v3844_v23 }
 0xbc7   : > { %8831 = vrsqrt.f32 %v3793_v33  ;;  %v3794_v31 = vadd.f32 1e-05, %v3777_v4  ;;  %8172 = vmatprep.mubr.msk.bf16.mxu0 %vm9235_vm1, %v14398_v2 }
 0xbc8   : > { %v3866_v61 = vadd.f32 %v11822_v50, %v3845_v6 }
 0xbc9   : > { %v8828_v53 = vpop.eup %8827  ;;  %8833 = vrsqrt.f32 %v3794_v31 }
 0xbca   : > { %v3825_v22 = vmul.f32 %v8828_v53, %v11757_v29  ;;  %v3879_v10 = vpack.c.bf16 %v3866_v61, %v3865_v12 }
 0xbcb   : > { %v8830_v60 = vpop.eup %8829 }
 0xbcc   : > { %v3826_v56 = vmul.f32 %v8830_v60, %v11760_v18  ;;  %v3846_v59 = vmul.f32 %v11817_v62, %v3825_v22 }
 0xbce   : > { %8173 = vmatmul.mubr.msk.bf16.gmra.mrb[168].mxu0 %vm866_vm2, %v3879_v10  ;;  %v3847_v17 = vmul.f32 %v11817_v62, %v3826_v56  ;;  %v3867_v7 = vadd.f32 %v11822_v50, %v3846_v59 }
 0xbcf   : > { %8176 = vmatprep.mubr.msk.bf16.mxu0 %vm9235_vm1, %v14398_v2 }
 0xbd0   : > { %v3868_v21 = vadd.f32 %v11822_v50, %v3847_v17 }
 0xbd1   : > { %v8832_v38 = vpop.eup %8831 }
 0xbd2   : > { %v3827_v29 = vmul.f32 %v8832_v38, %v11769_v15  ;;  %v3880_v41 = vpack.c.bf16 %v3868_v21, %v3867_v7 }
 0xbd3   : > { %v8834_v28 = vpop.eup %8833 }
 0xbd4   : > { %v3828_v18 = vmul.f32 %v8834_v28, %v11772_v32  ;;  %v3848_v54 = vmul.f32 %v11817_v62, %v3827_v29 }
 0xbd6   : > { %8177 = vmatmul.mubr.msk.bf16.gmra.mrb[172].mxu0 %vm866_vm2, %v3880_v41  ;;  %v3849_v27 = vmul.f32 %v11817_v62, %v3828_v18  ;;  %v3869_v24 = vadd.f32 %v11822_v50, %v3848_v54 }
 0xbd7   : > { %v3753_v48 = vpop.xlane.xlu0 %3752  ;;  %8180 = vmatprep.mubr.msk.bf16.mxu0 %vm9235_vm1, %v14398_v2 }
 0xbd8   : > { %v3778_v8 = vmul.f32 0.0625, %v3753_v48  ;;  %v3870_v37 = vadd.f32 %v11822_v50, %v3849_v27 }
 0xbd9   : > { %v3756_v36 = vpop.xlane.xlu1 %3755 }
 0xbda   : > { %v3795_v9 = vadd.f32 1e-05, %v3778_v8  ;;  %v3779_v15 = vmul.f32 0.0625, %v3756_v36  ;;  %v3881_v49 = vpack.c.bf16 %v3870_v37, %v3869_v24  ;;  %v14423_v36 = vld [vmem:[#allocation2_spill] sm:$0xff] }
 0xbdc   : > { %8835 = vrsqrt.f32 %v3795_v9  ;;  %v3796_v32 = vadd.f32 1e-05, %v3779_v15  ;;  %v11901_v9 = vsub.s32 5, %v14423_v36 }
 0xbde   : > { %8837 = vrsqrt.f32 %v3796_v32  ;;  %8181 = vmatmul.mubr.msk.bf16.gmra.mrb[176].mxu0 %vm866_vm2, %v3881_v49  ;;  %14424 = vst [vmem:[#allocation46_spill] sm:$0xff] %v11901_v9 }
 0xbdf   : > { %v3759_v3 = vpop.xlane.xlu0 %3758  ;;  %8184 = vmatprep.mubr.msk.bf16.mxu0 %vm9235_vm1, %v14398_v2 }
 0xbe0   : > { %v3780_v63 = vmul.f32 0.0625, %v3759_v3 }
 0xbe1   : > { %v3762_v33 = vpop.xlane.xlu1 %3761 }
 0xbe2   : > { %v3797_v4 = vadd.f32 1e-05, %v3780_v63  ;;  %v3781_v23 = vmul.f32 0.0625, %v3762_v33 }
 0xbe4   : > { %8839 = vrsqrt.f32 %v3797_v4  ;;  %v3798_v6 = vadd.f32 1e-05, %v3781_v23 }
 0xbe6   : > { %v8836_v31 = vpop.eup %8835  ;;  %8841 = vrsqrt.f32 %v3798_v6 }
 0xbe7   : > { %v3765_v61 = vpop.xlane.xlu0 %3764  ;;  %v3829_v53 = vmul.f32 %v8836_v31, %v11781_v44 }
 0xbe8   : > { %v8838_v12 = vpop.eup %8837  ;;  %v3782_v22 = vmul.f32 0.0625, %v3765_v61 }
 0xbe9   : > { %v3830_v60 = vmul.f32 %v8838_v12, %v11784_v26  ;;  %v3850_v10 = vmul.f32 %v11817_v62, %v3829_v53 }
 0xbea   : > { %v3799_v56 = vadd.f32 1e-05, %v3782_v22 }
 0xbeb   : > { %v3851_v59 = vmul.f32 %v11817_v62, %v3830_v60  ;;  %v3871_v17 = vadd.f32 %v11822_v50, %v3850_v10 }
 0xbec   : > { %8843 = vrsqrt.f32 %v3799_v56 }
 0xbed   : > { %v3872_v21 = vadd.f32 %v11822_v50, %v3851_v59 }
 0xbee   : > { %v8840_v38 = vpop.eup %8839 }
 0xbef   : > { %v3882_v7 = vpack.c.bf16 %v3872_v21, %v3871_v17  ;;  %v3831_v29 = vmul.f32 %v8840_v38, %v11793_v30 }
 0xbf0   : > { %v8842_v28 = vpop.eup %8841 }
 0xbf1   : > { %8185 = vmatmul.mubr.msk.bf16.gmra.mrb[180].mxu0 %vm866_vm2, %v3882_v7  ;;  %v3832_v44 = vmul.f32 %v8842_v28, %v11796_v40  ;;  %v3852_v26 = vmul.f32 %v11817_v62, %v3831_v29 }
 0xbf2   : > { %8188 = vmatprep.mubr.msk.bf16.mxu0 %vm9235_vm1, %v14398_v2 }
 0xbf3   : > { %v3853_v41 = vmul.f32 %v11817_v62, %v3832_v44  ;;  %v3873_v18 = vadd.f32 %v11822_v50, %v3852_v26 }
 0xbf5   : > { %v3874_v54 = vadd.f32 %v11822_v50, %v3853_v41 }
 0xbf6   : > { %v8844_v27 = vpop.eup %8843 }
 0xbf7   : > { %v3883_v48 = vpack.c.bf16 %v3874_v54, %v3873_v18  ;;  %v3833_v30 = vmul.f32 %v8844_v27, %v11805_v16  ;;  %v11905_v16 = vrot.slane %v11586_v47, %v11901_v9 }
 0xbf9   : > { %8189 = vmatmul.mubr.msk.bf16.gmra.mrb[184].mxu0 %vm866_vm2, %v3883_v48  ;;  %v3854_v8 = vmul.f32 %v11817_v62, %v3833_v30 }
 0xbfa   : > { %8192 = vmatprep.mubr.msk.bf16.mxu0 %vm9235_vm1, %v14398_v2 }
 0xbfb   : > { %v3875_v40 = vadd.f32 %v11822_v50, %v3854_v8 }
 0xbfd   : > { %v3884_v37 = vpack.c.bf16 %v3875_v40, %v3875_v40 }
 0xc01   : > { %8193 = vmatmul.mubr.msk.bf16.gmra.mrb[188].mxu0 %vm866_vm2, %v3884_v37 }
 0xc02   : > { %4717 = vmatprep.mubr.bf16.mxu0 %v14328_v51 }
 0xc89   : > { %v3958_v15 = vpop.f32.mrb[156].mxu0 }
 0xc8a   : > { %v11908_v62 = vadd.f32 %v3958_v15, %v11905_v16  ;;  %v8162_v24 = vpop.f32.mrb[157].mxu0 }
 0xc8b   : > { %v3961_v32 = vpop.f32.mrb[158].mxu0 }
 0xc8c   : > { %v4028_v50 = vmul.f32 %v11908_v62, %v11908_v62  ;;  %v11913_v49 = vadd.f32 %v3961_v32, %v11905_v16  ;;  %v8163_v3 = vpop.f32.mrb[159].mxu0 }
 0xc8e   : > { %v4045_v63 = vmul.f32 %v4028_v50, %v11908_v62  ;;  %v4029_v33 = vmul.f32 %v11913_v49, %v11913_v49 }
 0xc90   : > { %v4062_v47 = vmul.f32 0.044715, %v4045_v63  ;;  %v4046_v4 = vmul.f32 %v4029_v33, %v11913_v49 }
 0xc91   : > { %v3966_v23 = vpop.f32.mrb[160].mxu0 }
 0xc92   : > { %v4079_v6 = vadd.f32 %v4062_v47, %v11908_v62  ;;  %v4063_v31 = vmul.f32 0.044715, %v4046_v4  ;;  %v11921_v61 = vadd.f32 %v3966_v23, %v11905_v16  ;;  %v8166_v53 = vpop.f32.mrb[161].mxu0 }
 0xc93   : > { %v3969_v12 = vpop.f32.mrb[162].mxu0 }
 0xc94   : > { %v4096_v22 = vmul.f32 0.7978846, %v4079_v6  ;;  %v4080_v60 = vadd.f32 %v4063_v31, %v11913_v49  ;;  %v4030_v10 = vmul.f32 %v11921_v61, %v11921_v61  ;;  %v11927_v56 = vadd.f32 %v3969_v12, %v11905_v16  ;;  %v8167_v59 = vpop.f32.mrb[163].mxu0 }
 0xc96   : > { %8845 = vtanh.f32 %v4096_v22  ;;  %v4097_v17 = vmul.f32 0.7978846, %v4080_v60  ;;  %v4047_v21 = vmul.f32 %v4030_v10, %v11921_v61  ;;  %v4031_v38 = vmul.f32 %v11927_v56, %v11927_v56 }
 0xc98   : > { %8847 = vtanh.f32 %v4097_v17  ;;  %v4064_v7 = vmul.f32 0.044715, %v4047_v21  ;;  %v4048_v29 = vmul.f32 %v4031_v38, %v11927_v56 }
 0xc99   : > { %v3974_v28 = vpop.f32.mrb[164].mxu0 }
 0xc9a   : > { %v4081_v44 = vadd.f32 %v4064_v7, %v11921_v61  ;;  %v4065_v26 = vmul.f32 0.044715, %v4048_v29  ;;  %v11935_v41 = vadd.f32 %v3974_v28, %v11905_v16  ;;  %v8170_v18 = vpop.f32.mrb[165].mxu0 }
 0xc9b   : > { %v3977_v54 = vpop.f32.mrb[166].mxu0 }
 0xc9c   : > { %v4098_v27 = vmul.f32 0.7978846, %v4081_v44  ;;  %v4082_v48 = vadd.f32 %v4065_v26, %v11927_v56  ;;  %v4032_v30 = vmul.f32 %v11935_v41, %v11935_v41  ;;  %v11941_v8 = vadd.f32 %v3977_v54, %v11905_v16  ;;  %v8171_v40 = vpop.f32.mrb[167].mxu0 }
 0xc9e   : > { %8849 = vtanh.f32 %v4098_v27  ;;  %v4099_v37 = vmul.f32 0.7978846, %v4082_v48  ;;  %v4049_v15 = vmul.f32 %v4032_v30, %v11935_v41  ;;  %v4033_v24 = vmul.f32 %v11941_v8, %v11941_v8 }
 0xca0   : > { %v8846_v32 = vpop.eup %8845  ;;  %8851 = vtanh.f32 %v4099_v37  ;;  %v4066_v50 = vmul.f32 0.044715, %v4049_v15  ;;  %v4050_v3 = vmul.f32 %v4033_v24, %v11941_v8 }
 0xca1   : > { %v4130_v63 = vadd.f32 1.0, %v8846_v32  ;;  %v3982_v33 = vpop.f32.mrb[168].mxu0 }
 0xca2   : > { %v8848_v47 = vpop.eup %8847  ;;  %v4083_v4 = vadd.f32 %v4066_v50, %v11935_v41  ;;  %v4067_v23 = vmul.f32 0.044715, %v4050_v3  ;;  %v11949_v6 = vadd.f32 %v3982_v33, %v11905_v16  ;;  %v8174_v31 = vpop.f32.mrb[169].mxu0 }
 0xca3   : > { %v4147_v53 = vmul.f32 0.5, %v4130_v63  ;;  %v4131_v12 = vadd.f32 1.0, %v8848_v47  ;;  %v3985_v22 = vpop.f32.mrb[170].mxu0 }
 0xca4   : > { %v4100_v60 = vmul.f32 0.7978846, %v4083_v4  ;;  %v4084_v10 = vadd.f32 %v4067_v23, %v11941_v8  ;;  %v4034_v59 = vmul.f32 %v11949_v6, %v11949_v6  ;;  %v11955_v17 = vadd.f32 %v3985_v22, %v11905_v16  ;;  %v8175_v21 = vpop.f32.mrb[171].mxu0 }
 0xca5   : > { %v4148_v38 = vmul.f32 0.5, %v4131_v12  ;;  %v4164_v44 = vmul.f32 %v4147_v53, %v11908_v62 }
 0xca6   : > { %8853 = vtanh.f32 %v4100_v60  ;;  %v4101_v7 = vmul.f32 0.7978846, %v4084_v10  ;;  %v4051_v29 = vmul.f32 %v4034_v59, %v11949_v6  ;;  %v4035_v28 = vmul.f32 %v11955_v17, %v11955_v17 }
 0xca7   : > { %v4165_v26 = vmul.f32 %v4148_v38, %v11913_v49 }
 0xca8   : > { %v8850_v18 = vpop.eup %8849  ;;  %8855 = vtanh.f32 %v4101_v7  ;;  %v4068_v54 = vmul.f32 0.044715, %v4051_v29  ;;  %v4052_v27 = vmul.f32 %v4035_v28, %v11955_v17 }
 0xca9   : > { %v4181_v48 = vpack.c.bf16 %v4165_v26, %v4164_v44  ;;  %v4132_v30 = vadd.f32 1.0, %v8850_v18  ;;  %v3990_v40 = vpop.f32.mrb[172].mxu0 }
 0xcaa   : > { %v8852_v37 = vpop.eup %8851  ;;  %v4085_v15 = vadd.f32 %v4068_v54, %v11949_v6  ;;  %v4069_v24 = vmul.f32 0.044715, %v4052_v27  ;;  %v11965_v32 = vadd.f32 %v3990_v40, %v11905_v16  ;;  %v8178_v50 = vpop.f32.mrb[173].mxu0 }
 0xcab   : > { %v4149_v3 = vmul.f32 0.5, %v4132_v30  ;;  %v4133_v62 = vadd.f32 1.0, %v8852_v37  ;;  %v3993_v63 = vpop.f32.mrb[174].mxu0  ;;  %8199 = vmatmul.mubr.msk.bf16.vlgmr.msra.gmra.mrb[168].mxu1 %vm2090_vm5, %v4181_v48 }
 0xcac   : > { %v4102_v49 = vmul.f32 0.7978846, %v4085_v15  ;;  %v4086_v33 = vadd.f32 %v4069_v24, %v11955_v17  ;;  %v4036_v47 = vmul.f32 %v11965_v32, %v11965_v32  ;;  %v11972_v4 = vadd.f32 %v3993_v63, %v11905_v16  ;;  %v8179_v23 = vpop.f32.mrb[175].mxu0  ;;  %8202 = vmatprep.mubr.msk.bf16.mxu1 %vm9235_vm1, %v14398_v2 }
 0xcad   : > { %v4150_v31 = vmul.f32 0.5, %v4133_v62  ;;  %v4166_v60 = vmul.f32 %v4149_v3, %v11921_v61 }
 0xcae   : > { %8857 = vtanh.f32 %v4102_v49  ;;  %v4103_v53 = vmul.f32 0.7978846, %v4086_v33  ;;  %v4053_v12 = vmul.f32 %v4036_v47, %v11965_v32  ;;  %v4037_v22 = vmul.f32 %v11972_v4, %v11972_v4 }
 0xcaf   : > { %v4167_v10 = vmul.f32 %v4150_v31, %v11927_v56 }
 0xcb0   : > { %v8854_v59 = vpop.eup %8853  ;;  %8859 = vtanh.f32 %v4103_v53  ;;  %v4070_v21 = vmul.f32 0.044715, %v4053_v12  ;;  %v4054_v38 = vmul.f32 %v4037_v22, %v11972_v4 }
 0xcb1   : > { %v4134_v7 = vadd.f32 1.0, %v8854_v59  ;;  %v3998_v29 = vpop.f32.mrb[176].mxu0  ;;  %v4182_v28 = vpack.c.bf16 %v4167_v10, %v4166_v60 }
 0xcb2   : > { %v8856_v44 = vpop.eup %8855  ;;  %v4087_v26 = vadd.f32 %v4070_v21, %v11965_v32  ;;  %v4071_v18 = vmul.f32 0.044715, %v4054_v38  ;;  %v11984_v54 = vadd.f32 %v3998_v29, %v11905_v16  ;;  %v8182_v27 = vpop.f32.mrb[177].mxu0 }
 0xcb3   : > { %v4151_v48 = vmul.f32 0.5, %v4134_v7  ;;  %v4135_v61 = vadd.f32 1.0, %v8856_v44  ;;  %v4001_v30 = vpop.f32.mrb[178].mxu0  ;;  %8203 = vmatmul.mubr.msk.bf16.gmra.mrb[172].mxu1 %vm2090_vm5, %v4182_v28 }
 0xcb4   : > { %v4104_v56 = vmul.f32 0.7978846, %v4087_v26  ;;  %v4088_v40 = vadd.f32 %v4071_v18, %v11972_v4  ;;  %v4038_v37 = vmul.f32 %v11984_v54, %v11984_v54  ;;  %v11991_v15 = vadd.f32 %v4001_v30, %v11905_v16  ;;  %v8183_v24 = vpop.f32.mrb[179].mxu0  ;;  %8206 = vmatprep.mubr.msk.bf16.mxu1 %vm9235_vm1, %v14398_v2 }
 0xcb5   : > { %v4152_v50 = vmul.f32 0.5, %v4135_v61  ;;  %v4168_v49 = vmul.f32 %v4151_v48, %v11935_v41 }
 0xcb6   : > { %8861 = vtanh.f32 %v4104_v56  ;;  %v4105_v3 = vmul.f32 0.7978846, %v4088_v40  ;;  %v4055_v62 = vmul.f32 %v4038_v37, %v11984_v54  ;;  %v4039_v63 = vmul.f32 %v11991_v15, %v11991_v15 }
 0xcb7   : > { %v4169_v33 = vmul.f32 %v4152_v50, %v11941_v8 }
 0xcb8   : > { %v8858_v47 = vpop.eup %8857  ;;  %8863 = vtanh.f32 %v4105_v3  ;;  %v4072_v23 = vmul.f32 0.044715, %v4055_v62  ;;  %v4056_v31 = vmul.f32 %v4039_v63, %v11991_v15 }
 0xcb9   : > { %v4136_v53 = vadd.f32 1.0, %v8858_v47  ;;  %v4183_v12 = vpack.c.bf16 %v4169_v33, %v4168_v49 }
 0xcba   : > { %v8860_v22 = vpop.eup %8859  ;;  %v4089_v60 = vadd.f32 %v4072_v23, %v11984_v54  ;;  %v4073_v10 = vmul.f32 0.044715, %v4056_v31 }
 0xcbb   : > { %v4153_v59 = vmul.f32 0.5, %v4136_v53  ;;  %v4137_v21 = vadd.f32 1.0, %v8860_v22  ;;  %8207 = vmatmul.mubr.msk.bf16.gmra.mrb[176].mxu1 %vm2090_vm5, %v4183_v12 }
 0xcbc   : > { %v4106_v38 = vmul.f32 0.7978846, %v4089_v60  ;;  %v4090_v41 = vadd.f32 %v4073_v10, %v11991_v15  ;;  %8210 = vmatprep.mubr.msk.bf16.mxu1 %vm9235_vm1, %v14398_v2 }
 0xcbd   : > { %v4154_v8 = vmul.f32 0.5, %v4137_v21  ;;  %v4170_v29 = vmul.f32 %v4153_v59, %v11949_v6 }
 0xcbe   : > { %8865 = vtanh.f32 %v4106_v38  ;;  %v4107_v7 = vmul.f32 0.7978846, %v4090_v41 }
 0xcbf   : > { %v4171_v28 = vmul.f32 %v4154_v8, %v11955_v17 }
 0xcc0   : > { %v8862_v44 = vpop.eup %8861  ;;  %8867 = vtanh.f32 %v4107_v7 }
 0xcc1   : > { %v4138_v26 = vadd.f32 1.0, %v8862_v44  ;;  %v4184_v18 = vpack.c.bf16 %v4171_v28, %v4170_v29 }
 0xcc2   : > { %v8864_v27 = vpop.eup %8863 }
 0xcc3   : > { %v4155_v48 = vmul.f32 0.5, %v4138_v26  ;;  %v4139_v61 = vadd.f32 1.0, %v8864_v27  ;;  %8211 = vmatmul.mubr.msk.bf16.gmra.mrb[180].mxu1 %vm2090_vm5, %v4184_v18 }
 0xcc4   : > { %v4006_v30 = vpop.f32.mrb[180].mxu0  ;;  %8214 = vmatprep.mubr.msk.bf16.mxu1 %vm9235_vm1, %v14398_v2 }
 0xcc5   : > { %v4156_v56 = vmul.f32 0.5, %v4139_v61  ;;  %v12012_v40 = vadd.f32 %v4006_v30, %v11905_v16  ;;  %v8186_v6 = vpop.f32.mrb[181].mxu0  ;;  %v4172_v17 = vmul.f32 %v4155_v48, %v11965_v32 }
 0xcc6   : > { %v4009_v37 = vpop.f32.mrb[182].mxu0 }
 0xcc7   : > { %v4173_v24 = vmul.f32 %v4156_v56, %v11972_v4  ;;  %v4040_v50 = vmul.f32 %v12012_v40, %v12012_v40  ;;  %v12019_v3 = vadd.f32 %v4009_v37, %v11905_v16  ;;  %v8187_v62 = vpop.f32.mrb[183].mxu0 }
 0xcc8   : > { %v8866_v63 = vpop.eup %8865 }
 0xcc9   : > { %v4140_v49 = vadd.f32 1.0, %v8866_v63  ;;  %v4057_v33 = vmul.f32 %v4040_v50, %v12012_v40  ;;  %v4041_v47 = vmul.f32 %v12019_v3, %v12019_v3  ;;  %v4185_v23 = vpack.c.bf16 %v4173_v24, %v4172_v17 }
 0xcca   : > { %v8868_v31 = vpop.eup %8867 }
 0xccb   : > { %v4157_v53 = vmul.f32 0.5, %v4140_v49  ;;  %v4141_v32 = vadd.f32 1.0, %v8868_v31  ;;  %v4074_v12 = vmul.f32 0.044715, %v4057_v33  ;;  %v4058_v4 = vmul.f32 %v4041_v47, %v12019_v3  ;;  %8215 = vmatmul.mubr.msk.bf16.gmra.mrb[184].mxu1 %vm2090_vm5, %v4185_v23 }
 0xccc   : > { %v4014_v22 = vpop.f32.mrb[184].mxu0  ;;  %8218 = vmatprep.mubr.msk.bf16.mxu1 %vm9235_vm1, %v14398_v2 }
 0xccd   : > { %v4158_v60 = vmul.f32 0.5, %v4141_v32  ;;  %v4091_v10 = vadd.f32 %v4074_v12, %v12012_v40  ;;  %v4075_v59 = vmul.f32 0.044715, %v4058_v4  ;;  %v8190_v21 = vpop.f32.mrb[185].mxu0  ;;  %v4174_v38 = vmul.f32 %v4157_v53, %v11984_v54 }
 0xcce   : > { %v4015_v41 = vadd.f32 %v4014_v22, %v11905_v16  ;;  %v4017_v8 = vpop.f32.mrb[186].mxu0 }
 0xccf   : > { %v4175_v7 = vmul.f32 %v4158_v60, %v11991_v15  ;;  %v4108_v29 = vmul.f32 0.7978846, %v4091_v10  ;;  %v4092_v28 = vadd.f32 %v4075_v59, %v12019_v3  ;;  %v4018_v44 = vadd.f32 %v4017_v8, %v11905_v16  ;;  %v8191_v26 = vpop.f32.mrb[187].mxu0 }
 0xcd0   : > { %v4042_v18 = vmul.f32 %v4015_v41, %v4015_v41 }
 0xcd1   : > { %8869 = vtanh.f32 %v4108_v29  ;;  %v4109_v27 = vmul.f32 0.7978846, %v4092_v28  ;;  %v4043_v48 = vmul.f32 %v4018_v44, %v4018_v44  ;;  %v4186_v61 = vpack.c.bf16 %v4175_v7, %v4174_v38 }
 0xcd2   : > { %v4059_v30 = vmul.f32 %v4042_v18, %v4015_v41 }
 0xcd3   : > { %8871 = vtanh.f32 %v4109_v27  ;;  %v4060_v56 = vmul.f32 %v4043_v48, %v4018_v44  ;;  %8219 = vmatmul.mubr.msk.bf16.gmra.mrb[188].mxu1 %vm2090_vm5, %v4186_v61 }
 0xcd4   : > { %v4076_v54 = vmul.f32 0.044715, %v4059_v30  ;;  %v4022_v6 = vpop.f32.mrb[188].mxu0  ;;  %8222 = vmatprep.mubr.msk.bf16.mxu1 %vm9235_vm1, %v14398_v2 }
 0xcd5   : > { %v4077_v15 = vmul.f32 0.044715, %v4060_v56  ;;  %v4023_v37 = vadd.f32 %v4022_v6, %v11905_v16  ;;  %v8194_v17 = vpop.f32.mrb[189].mxu0  ;;  %v12050_v6 = vsub.s32 6, %v14423_v36 }
 0xcd6   : > { %v4093_v24 = vadd.f32 %v4076_v54, %v4015_v41  ;;  %v4025_v50 = vpop.f32.mrb[190].mxu0 }
 0xcd7   : > { %v4094_v62 = vadd.f32 %v4077_v15, %v4018_v44  ;;  %v4044_v63 = vmul.f32 %v4023_v37, %v4023_v37  ;;  %v8195_v49 = vpop.f32.mrb[191].mxu0  ;;  %14425 = vst [vmem:[#allocation44_spill] sm:$0xff] %v12050_v6 }
 0xcd8   : > { %v4110_v33 = vmul.f32 0.7978846, %v4093_v24 }
 0xcd9   : > { %v4111_v47 = vmul.f32 0.7978846, %v4094_v62  ;;  %v4061_v23 = vmul.f32 %v4044_v63, %v4023_v37 }
 0xcda   : > { %8873 = vtanh.f32 %v4110_v33 }
 0xcdb   : > { %v8870_v31 = vpop.eup %8869  ;;  %8875 = vtanh.f32 %v4111_v47  ;;  %v4078_v53 = vmul.f32 0.044715, %v4061_v23 }
 0xcdc   : > { %v4142_v32 = vadd.f32 1.0, %v8870_v31 }
 0xcdd   : > { %v8872_v12 = vpop.eup %8871  ;;  %v4095_v4 = vadd.f32 %v4078_v53, %v4023_v37 }
 0xcde   : > { %v4159_v22 = vmul.f32 0.5, %v4142_v32  ;;  %v4143_v60 = vadd.f32 1.0, %v8872_v12 }
 0xcdf   : > { %v4112_v10 = vmul.f32 0.7978846, %v4095_v4 }
 0xce0   : > { %v4160_v16 = vmul.f32 0.5, %v4143_v60  ;;  %v4176_v59 = vmul.f32 %v4159_v22, %v12012_v40 }
 0xce1   : > { %8877 = vtanh.f32 %v4112_v10 }
 0xce2   : > { %v4177_v21 = vmul.f32 %v4160_v16, %v12019_v3 }
 0xce4   : > { %v8874_v38 = vpop.eup %8873  ;;  %v4187_v8 = vpack.c.bf16 %v4177_v21, %v4176_v59 }
 0xce5   : > { %v8876_v7 = vpop.eup %8875  ;;  %v4144_v29 = vadd.f32 1.0, %v8874_v38 }
 0xce6   : > { %v4145_v28 = vadd.f32 1.0, %v8876_v7  ;;  %8223 = vmatmul.mubr.msk.bf16.gmra.mrb[192].mxu1 %vm2090_vm5, %v4187_v8 }
 0xce7   : > { %v4161_v26 = vmul.f32 0.5, %v4144_v29  ;;  %8226 = vmatprep.mubr.msk.bf16.mxu1 %vm9235_vm1, %v14398_v2 }
 0xce8   : > { %v4162_v18 = vmul.f32 0.5, %v4145_v28 }
 0xce9   : > { %v4178_v27 = vmul.f32 %v4161_v26, %v4015_v41  ;;  %v9188_v41 = vld [vmem:[%s14109_s5] sm:$0x7f] }
 0xcea   : > { %v4179_v48 = vmul.f32 %v4162_v18, %v4018_v44  ;;  %v12056_v44 = vrot.slane %v9188_v41, %v12050_v6  ;;  %v12690_v6 = vld [vmem:[%s14107_s3 + $0x70] sm:$0xff] }
 0xceb   : > { %v8878_v61 = vpop.eup %8877 }
 0xcec   : > { %v4188_v30 = vpack.c.bf16 %v4179_v48, %v4178_v27  ;;  %v4146_v56 = vadd.f32 1.0, %v8878_v61 }
 0xcee   : > { %8227 = vmatmul.mubr.msk.bf16.gmra.mrb[196].mxu1 %vm2090_vm5, %v4188_v30  ;;  %v4163_v40 = vmul.f32 0.5, %v4146_v56 }
 0xcef   : > { %8230 = vmatprep.mubr.msk.bf16.mxu1 %vm9235_vm1, %v14398_v2 }
 0xcf0   : > { %v4180_v3 = vmul.f32 %v4163_v40, %v4023_v37 }
 0xcf2   : > { %v4189_v54 = vpack.c.bf16 %v4180_v3, %v4180_v3 }
 0xcf6   : > { %8231 = vmatmul.mubr.msk.bf16.gmra.mrb[200].mxu1 %vm2090_vm5, %v4189_v54 }
 0xcf7   : > { %8236 = vmatprep.mubr.msk.bf16.mxu1 %vm9235_vm1, %v14398_v2 }
 0xd7e   : > { %v4255_v15 = vpop.f32.mrb[168].mxu1 }
 0xd7f   : > { %v4325_v17 = vadd.f32 %v4255_v15, %v11595_v42  ;;  %v8200_v37 = vpop.f32.mrb[169].mxu1 }
 0xd80   : > { %v4258_v24 = vpop.f32.mrb[170].mxu1 }
 0xd81   : > { %v12060_v50 = vadd.f32 %v12056_v44, %v4325_v17  ;;  %v4326_v62 = vadd.f32 %v4258_v24, %v11600_v45  ;;  %v8201_v63 = vpop.f32.mrb[171].mxu1 }
 0xd83   : > { %14426 = vst [vmem:[#allocation49_spill] sm:$0xff] %v12060_v50  ;;  %v12064_v49 = vadd.f32 %v12056_v44, %v4326_v62  ;;  %v4365_v33 = vsel %vm866_vm2, %v12060_v50, 0.0 }
 0xd84   : > { %4366 = vadd.xlane.f32.xlu1 %v4365_v33 }
 0xd85   : > { %14427 = vst [vmem:[#allocation48_spill] sm:$0xff] %v12064_v49  ;;  %v4368_v47 = vsel %vm866_vm2, %v12064_v49, 0.0 }
 0xd86   : > { %4369 = vadd.xlane.f32.xlu0 %v4368_v47  ;;  %v4263_v42 = vpop.f32.mrb[172].mxu1 }
 0xd87   : > { %v4327_v23 = vadd.f32 %v4263_v42, %v11606_v58  ;;  %v8204_v31 = vpop.f32.mrb[173].mxu1 }
 0xd88   : > { %v4266_v53 = vpop.f32.mrb[174].mxu1 }
 0xd89   : > { %v12072_v32 = vadd.f32 %v12056_v44, %v4327_v23  ;;  %v4328_v45 = vadd.f32 %v4266_v53, %v11610_v52  ;;  %v8205_v12 = vpop.f32.mrb[175].mxu1 }
 0xd8b   : > { %14428 = vst [vmem:[#allocation51_spill] sm:$0xff] %v12072_v32  ;;  %v12076_v4 = vadd.f32 %v12056_v44, %v4328_v45  ;;  %v4371_v22 = vsel %vm866_vm2, %v12072_v32, 0.0 }
 0xd8c   : > { %4372 = vadd.xlane.f32.xlu1 %v4371_v22 }
 0xd8d   : > { %14429 = vst [vmem:[#allocation50_spill] sm:$0xff] %v12076_v4  ;;  %v4374_v60 = vsel %vm866_vm2, %v12076_v4, 0.0 }
 0xd8e   : > { %4375 = vadd.xlane.f32.xlu0 %v4374_v60  ;;  %v4271_v58 = vpop.f32.mrb[176].mxu1 }
 0xd8f   : > { %v4329_v10 = vadd.f32 %v4271_v58, %v11618_v55  ;;  %v8208_v16 = vpop.f32.mrb[177].mxu1 }
 0xd90   : > { %v4274_v59 = vpop.f32.mrb[178].mxu1 }
 0xd91   : > { %v12084_v21 = vadd.f32 %v12056_v44, %v4329_v10  ;;  %v4330_v52 = vadd.f32 %v4274_v59, %v11622_v35  ;;  %v8209_v38 = vpop.f32.mrb[179].mxu1 }
 0xd93   : > { %14430 = vst [vmem:[#allocation25_spill] sm:$0xff] %v12084_v21  ;;  %v12088_v8 = vadd.f32 %v12056_v44, %v4330_v52  ;;  %v4377_v7 = vsel %vm866_vm2, %v12084_v21, 0.0 }
 0xd94   : > { %4378 = vadd.xlane.f32.xlu1 %v4377_v7 }
 0xd95   : > { %14431 = vst [vmem:[#allocation52_spill] sm:$0xff] %v12088_v8  ;;  %v4380_v29 = vsel %vm866_vm2, %v12088_v8, 0.0 }
 0xd96   : > { %4381 = vadd.xlane.f32.xlu0 %v4380_v29  ;;  %v4279_v55 = vpop.f32.mrb[180].mxu1 }
 0xd97   : > { %v4331_v28 = vadd.f32 %v4279_v55, %v11632_v43  ;;  %v8212_v26 = vpop.f32.mrb[181].mxu1 }
 0xd98   : > { %v4282_v18 = vpop.f32.mrb[182].mxu1 }
 0xd99   : > { %v12096_v27 = vadd.f32 %v12056_v44, %v4331_v28  ;;  %v4332_v35 = vadd.f32 %v4282_v18, %v11636_v0  ;;  %v8213_v48 = vpop.f32.mrb[183].mxu1 }
 0xd9b   : > { %14432 = vst [vmem:[#allocation53_spill] sm:$0xff] %v12096_v27  ;;  %v12100_v61 = vadd.f32 %v12056_v44, %v4332_v35  ;;  %v4383_v30 = vsel %vm866_vm2, %v12096_v27, 0.0 }
 0xd9c   : > { %4384 = vadd.xlane.f32.xlu1 %v4383_v30 }
 0xd9d   : > { %14433 = vst [vmem:[#allocation54_spill] sm:$0xff] %v12100_v61  ;;  %v4386_v56 = vsel %vm866_vm2, %v12100_v61, 0.0 }
 0xd9e   : > { %4387 = vadd.xlane.f32.xlu0 %v4386_v56  ;;  %v4287_v43 = vpop.f32.mrb[184].mxu1 }
 0xd9f   : > { %v4333_v40 = vadd.f32 %v4287_v43, %v11646_v20  ;;  %v8216_v3 = vpop.f32.mrb[185].mxu1 }
 0xda0   : > { %v4290_v54 = vpop.f32.mrb[186].mxu1  ;;  %v8493_v3 = vld [vmem:[%s14111_s7 + $0x1c] ss:$12 sps:$4 sm:$0xff]  }
 0xda1   : > { %v12108_v41 = vadd.f32 %v12056_v44, %v4333_v40  ;;  %v4334_v0 = vadd.f32 %v4290_v54, %v11650_v46  ;;  %v8217_v15 = vpop.f32.mrb[187].mxu1  ;;  %v8491_v40 = vld [vmem:[%s14111_s7 + $0x18] ss:$12 sps:$4 sm:$0xff]   ;;  %4685 = vmatprep.subr.bf16.mxu0 %v8493_v3 }
 0xda2   : > { %4686 = vmatpush1.bf16.msra.mxu0 %v8491_v40 }
 0xda3   : > { %14434 = vst [vmem:[#allocation57_spill] sm:$0xff] %v12108_v41  ;;  %v12112_v17 = vadd.f32 %v12056_v44, %v4334_v0  ;;  %v4389_v37 = vsel %vm866_vm2, %v12108_v41, 0.0  ;;  %5016 = vmatprep.subr.bf16.mxu0 %v14328_v51 }
 0xda4   : > { %4390 = vadd.xlane.f32.xlu1 %v4389_v37 }
 0xda5   : > { %14435 = vst [vmem:[#allocation58_spill] sm:$0xff] %v12112_v17  ;;  %v4392_v24 = vsel %vm866_vm2, %v12112_v17, 0.0 }
 0xda6   : > { %4393 = vadd.xlane.f32.xlu0 %v4392_v24  ;;  %v4295_v20 = vpop.f32.mrb[188].mxu1 }
 0xda7   : > { %v4335_v62 = vadd.f32 %v4295_v20, %v11660_v19  ;;  %v8220_v63 = vpop.f32.mrb[189].mxu1 }
 0xda8   : > { %v4298_v33 = vpop.f32.mrb[190].mxu1 }
 0xda9   : > { %v12120_v47 = vadd.f32 %v12056_v44, %v4335_v62  ;;  %v4336_v46 = vadd.f32 %v4298_v33, %v11664_v25  ;;  %v8221_v42 = vpop.f32.mrb[191].mxu1 }
 0xdab   : > { %14436 = vst [vmem:[#allocation59_spill] sm:$0xff] %v12120_v47  ;;  %v12124_v23 = vadd.f32 %v12056_v44, %v4336_v46  ;;  %v4395_v31 = vsel %vm866_vm2, %v12120_v47, 0.0 }
 0xdac   : > { %4396 = vadd.xlane.f32.xlu1 %v4395_v31 }
 0xdad   : > { %14437 = vst [vmem:[#allocation27_spill] sm:$0xff] %v12124_v23  ;;  %v4398_v53 = vsel %vm866_vm2, %v12124_v23, 0.0 }
 0xdae   : > { %4399 = vadd.xlane.f32.xlu0 %v4398_v53 }
 0xdb9   : > { %v4303_v19 = vpop.f32.mrb[192].mxu1 }
 0xdba   : > { %v4337_v45 = vadd.f32 %v4303_v19, %v11674_v57  ;;  %v8224_v12 = vpop.f32.mrb[193].mxu1 }
 0xdbb   : > { %v4306_v22 = vpop.f32.mrb[194].mxu1 }
 0xdbc   : > { %v12132_v60 = vadd.f32 %v12056_v44, %v4337_v45  ;;  %v4338_v25 = vadd.f32 %v4306_v22, %v11678_v11  ;;  %v8225_v58 = vpop.f32.mrb[195].mxu1 }
 0xdbe   : > { %14438 = vst [vmem:[#allocation28_spill] sm:$0xff] %v12132_v60  ;;  %v12136_v10 = vadd.f32 %v12056_v44, %v4338_v25  ;;  %v4401_v16 = vsel %vm866_vm2, %v12132_v60, 0.0 }
 0xdbf   : > { %4402 = vadd.xlane.f32.xlu1 %v4401_v16 }
 0xdc0   : > { %14439 = vst [vmem:[#allocation60_spill] sm:$0xff] %v12136_v10  ;;  %v4404_v59 = vsel %vm866_vm2, %v12136_v10, 0.0 }
 0xdc1   : > { %4405 = vadd.xlane.f32.xlu0 %v4404_v59  ;;  %v4311_v57 = vpop.f32.mrb[196].mxu1 }
 0xdc2   : > { %v4339_v52 = vadd.f32 %v4311_v57, %v11688_v34  ;;  %v8228_v38 = vpop.f32.mrb[197].mxu1 }
 0xdc3   : > { %v4314_v7 = vpop.f32.mrb[198].mxu1 }
 0xdc4   : > { %v12144_v29 = vadd.f32 %v12056_v44, %v4339_v52  ;;  %v4340_v11 = vadd.f32 %v4314_v7, %v11692_v13  ;;  %v8229_v55 = vpop.f32.mrb[199].mxu1 }
 0xdc6   : > { %14440 = vst [vmem:[#allocation29_spill] sm:$0xff] %v12144_v29  ;;  %v12148_v28 = vadd.f32 %v12056_v44, %v4340_v11  ;;  %v4407_v26 = vsel %vm866_vm2, %v12144_v29, 0.0 }
 0xdc7   : > { %4408 = vadd.xlane.f32.xlu1 %v4407_v26 }
 0xdc8   : > { %14441 = vst [vmem:[#allocation26_spill] sm:$0xff] %v12148_v28  ;;  %v4410_v18 = vsel %vm866_vm2, %v12148_v28, 0.0 }
 0xdc9   : > { %4411 = vadd.xlane.f32.xlu0 %v4410_v18  ;;  %v4319_v34 = vpop.f32.mrb[200].mxu1 }
 0xdca   : > { %v4341_v35 = vadd.f32 %v4319_v34, %v11701_v1  ;;  %v8232_v48 = vpop.f32.mrb[201].mxu1 }
 0xdcb   : > { %v4322_v30 = vpop.f32.mrb[202].mxu1 }
 0xdcc   : > { %v12156_v56 = vadd.f32 %v12056_v44, %v4341_v35  ;;  %v8233_v13 = vpop.f32.mrb[203].mxu1 }
 0xdce   : > { %14442 = vst [vmem:[#allocation30_spill] sm:$0xff] %v12156_v56  ;;  %v4413_v43 = vsel %vm866_vm2, %v12156_v56, 0.0 }
 0xdcf   : > { %4414 = vadd.xlane.f32.xlu1 %v4413_v43 }
 0xe11   : > { %v4367_v1 = vpop.xlane.xlu1 %4366 }
 0xe12   : > { %v4416_v44 = vmul.f32 0.0625, %v4367_v1 }
 0xe13   : > { %v4370_v54 = vpop.xlane.xlu0 %4369 }
 0xe14   : > { %v12168_v0 = vsub.f32 %v12060_v50, %v4416_v44  ;;  %v4417_v15 = vmul.f32 0.0625, %v4370_v54 }
 0xe16   : > { %v12171_v37 = vsub.f32 %v12064_v49, %v4417_v15  ;;  %v4450_v24 = vmul.f32 %v12168_v0, %v12168_v0 }
 0xe18   : > { %v4467_v20 = vsel %vm866_vm2, %v4450_v24, 0.0  ;;  %v4451_v62 = vmul.f32 %v12171_v37, %v12171_v37 }
 0xe19   : > { %v4373_v63 = vpop.xlane.xlu1 %4372  ;;  %4468 = vadd.xlane.f32.xlu0 %v4467_v20 }
 0xe1a   : > { %v4418_v33 = vmul.f32 0.0625, %v4373_v63  ;;  %v4470_v46 = vsel %vm866_vm2, %v4451_v62, 0.0 }
 0xe1b   : > { %v4376_v42 = vpop.xlane.xlu0 %4375  ;;  %4471 = vadd.xlane.f32.xlu1 %v4470_v46 }
 0xe1c   : > { %v12180_v31 = vsub.f32 %v12072_v32, %v4418_v33  ;;  %v4419_v53 = vmul.f32 0.0625, %v4376_v42 }
 0xe1e   : > { %v12183_v19 = vsub.f32 %v12076_v4, %v4419_v53  ;;  %v4452_v45 = vmul.f32 %v12180_v31, %v12180_v31 }
 0xe20   : > { %v4473_v12 = vsel %vm866_vm2, %v4452_v45, 0.0  ;;  %v4453_v22 = vmul.f32 %v12183_v19, %v12183_v19 }
 0xe21   : > { %v4379_v25 = vpop.xlane.xlu1 %4378  ;;  %4474 = vadd.xlane.f32.xlu0 %v4473_v12 }
 0xe22   : > { %v4420_v58 = vmul.f32 0.0625, %v4379_v25  ;;  %v4476_v16 = vsel %vm866_vm2, %v4453_v22, 0.0 }
 0xe23   : > { %v4382_v59 = vpop.xlane.xlu0 %4381  ;;  %4477 = vadd.xlane.f32.xlu1 %v4476_v16 }
 0xe24   : > { %v12192_v57 = vsub.f32 %v12084_v21, %v4420_v58  ;;  %v4421_v52 = vmul.f32 0.0625, %v4382_v59  ;;  %v8494_v58 = vld [vmem:[%s14111_s7 + $0x20] ss:$12 sps:$4 sm:$0xff]  }
 0xe25   : > { %8235 = vmatpush3.bf16.msra.mxu1 %v8494_v58 }
 0xe26   : > { %v12195_v38 = vsub.f32 %v12088_v8, %v4421_v52  ;;  %v4454_v7 = vmul.f32 %v12192_v57, %v12192_v57  ;;  %5483 = vmatprep.subr.bf16.mxu1 %v14328_v51  ;;  %v12766_v8 = vld [vmem:[%s14107_s3 + $0xb0] sm:$0xff] }
 0xe28   : > { %v4479_v11 = vsel %vm866_vm2, %v4454_v7, 0.0  ;;  %v4455_v55 = vmul.f32 %v12195_v38, %v12195_v38 }
 0xe29   : > { %v4385_v26 = vpop.xlane.xlu1 %4384  ;;  %4480 = vadd.xlane.f32.xlu0 %v4479_v11 }
 0xe2a   : > { %v4422_v18 = vmul.f32 0.0625, %v4385_v26  ;;  %v4482_v34 = vsel %vm866_vm2, %v4455_v55, 0.0 }
 0xe2b   : > { %v4388_v35 = vpop.xlane.xlu0 %4387  ;;  %4483 = vadd.xlane.f32.xlu1 %v4482_v34 }
 0xe2c   : > { %v12204_v48 = vsub.f32 %v12096_v27, %v4422_v18  ;;  %v4423_v30 = vmul.f32 0.0625, %v4388_v35 }
 0xe2e   : > { %v12207_v13 = vsub.f32 %v12100_v61, %v4423_v30  ;;  %v4456_v43 = vmul.f32 %v12204_v48, %v12204_v48  ;;  %v12757_v61 = vld [vmem:[%s14107_s3 + $0xb8] sm:$0xff] }
 0xe30   : > { %v4485_v40 = vsel %vm866_vm2, %v4456_v43, 0.0  ;;  %v4457_v3 = vmul.f32 %v12207_v13, %v12207_v13 }
 0xe31   : > { %v4391_v1 = vpop.xlane.xlu1 %4390  ;;  %4486 = vadd.xlane.f32.xlu0 %v4485_v40 }
 0xe32   : > { %v4424_v44 = vmul.f32 0.0625, %v4391_v1  ;;  %v4488_v54 = vsel %vm866_vm2, %v4457_v3, 0.0 }
 0xe33   : > { %v4394_v15 = vpop.xlane.xlu0 %4393  ;;  %4489 = vadd.xlane.f32.xlu1 %v4488_v54 }
 0xe34   : > { %v12216_v24 = vsub.f32 %v12108_v41, %v4424_v44  ;;  %v4425_v20 = vmul.f32 0.0625, %v4394_v15 }
 0xe36   : > { %v12219_v62 = vsub.f32 %v12112_v17, %v4425_v20  ;;  %v4458_v63 = vmul.f32 %v12216_v24, %v12216_v24 }
 0xe38   : > { %v4491_v33 = vsel %vm866_vm2, %v4458_v63, 0.0  ;;  %v4459_v46 = vmul.f32 %v12219_v62, %v12219_v62 }
 0xe39   : > { %v4397_v42 = vpop.xlane.xlu1 %4396  ;;  %4492 = vadd.xlane.f32.xlu0 %v4491_v33 }
 0xe3a   : > { %v4426_v53 = vmul.f32 0.0625, %v4397_v42  ;;  %v4494_v45 = vsel %vm866_vm2, %v4459_v46, 0.0 }
 0xe3b   : > { %v4400_v12 = vpop.xlane.xlu0 %4399  ;;  %4495 = vadd.xlane.f32.xlu1 %v4494_v45 }
 0xe3c   : > { %v12228_v22 = vsub.f32 %v12120_v47, %v4426_v53  ;;  %v4427_v25 = vmul.f32 0.0625, %v4400_v12 }
 0xe3e   : > { %v12234_v16 = vsub.f32 %v12124_v23, %v4427_v25  ;;  %v4460_v59 = vmul.f32 %v12228_v22, %v12228_v22 }
 0xe40   : > { %v4497_v52 = vsel %vm866_vm2, %v4460_v59, 0.0  ;;  %v4461_v7 = vmul.f32 %v12234_v16, %v12234_v16 }
 0xe41   : > { %4498 = vadd.xlane.f32.xlu0 %v4497_v52 }
 0xe42   : > { %v4500_v11 = vsel %vm866_vm2, %v4461_v7, 0.0 }
 0xe43   : > { %4501 = vadd.xlane.f32.xlu1 %v4500_v11 }
 0xe4c   : > { %v4403_v55 = vpop.xlane.xlu1 %4402 }
 0xe4d   : > { %v4428_v26 = vmul.f32 0.0625, %v4403_v55 }
 0xe4e   : > { %v4406_v18 = vpop.xlane.xlu0 %4405 }
 0xe4f   : > { %v12244_v34 = vsub.f32 %v12132_v60, %v4428_v26  ;;  %v4429_v35 = vmul.f32 0.0625, %v4406_v18 }
 0xe51   : > { %v12247_v30 = vsub.f32 %v12136_v10, %v4429_v35  ;;  %v4462_v43 = vmul.f32 %v12244_v34, %v12244_v34  ;;  %v12728_v10 = vld [vmem:[%s14107_s3 + $0x90] sm:$0xff] }
 0xe53   : > { %v4503_v40 = vsel %vm866_vm2, %v4462_v43, 0.0  ;;  %v4463_v3 = vmul.f32 %v12247_v30, %v12247_v30 }
 0xe54   : > { %v4409_v1 = vpop.xlane.xlu1 %4408  ;;  %4504 = vadd.xlane.f32.xlu0 %v4503_v40 }
 0xe55   : > { %v4430_v44 = vmul.f32 0.0625, %v4409_v1  ;;  %v4506_v54 = vsel %vm866_vm2, %v4463_v3, 0.0  ;;  %v7731_v1 = vld [vmem:[%s14109_s5 + $0x8] sm:$0x7f] }
 0xe56   : > { %v4412_v15 = vpop.xlane.xlu0 %4411  ;;  %4507 = vadd.xlane.f32.xlu1 %v4506_v54 }
 0xe57   : > { %v12256_v20 = vsub.f32 %v12144_v29, %v4430_v44  ;;  %v4431_v63 = vmul.f32 0.0625, %v4412_v15 }
 0xe59   : > { %v12259_v33 = vsub.f32 %v12148_v28, %v4431_v63  ;;  %v4464_v46 = vmul.f32 %v12256_v20, %v12256_v20  ;;  %v14443_v63 = vld [vmem:[#allocation3_spill] sm:$0xff]  ;;  %v12719_v28 = vld [vmem:[%s14107_s3 + $0x98] sm:$0xff] }
 0xe5b   : > { %v4509_v42 = vsel %vm866_vm2, %v4464_v46, 0.0  ;;  %v4465_v53 = vmul.f32 %v12259_v33, %v12259_v33  ;;  %v12277_v46 = vrot.slane %v7731_v1, %v14443_v63 }
 0xe5c   : > { %4510 = vadd.xlane.f32.xlu0 %v4509_v42  ;;  %v4415_v45 = vpop.xlane.xlu1 %4414 }
 0xe5d   : > { %v4432_v12 = vmul.f32 0.0625, %v4415_v45  ;;  %v4512_v25 = vsel %vm866_vm2, %v4465_v53, 0.0 }
 0xe5e   : > { %4513 = vadd.xlane.f32.xlu1 %v4512_v25 }
 0xe5f   : > { %v12268_v58 = vsub.f32 %v12156_v56, %v4432_v12 }
 0xe61   : > { %v4466_v59 = vmul.f32 %v12268_v58, %v12268_v58 }
 0xe63   : > { %v4515_v52 = vsel %vm866_vm2, %v4466_v59, 0.0  ;;  %v14444_v59 = vld [vmem:[#allocation4_spill] sm:$0xff] }
 0xe64   : > { %4516 = vadd.xlane.f32.xlu0 %v4515_v52  ;;  %v12281_v52 = vrot.slane %v7731_v1, %v14444_v59 }
 0xea6   : > { %v4469_v7 = vpop.xlane.xlu0 %4468 }
 0xea7   : > { %v4518_v11 = vmul.f32 0.0625, %v4469_v7 }
 0xea8   : > { %v4472_v55 = vpop.xlane.xlu1 %4471 }
 0xea9   : > { %v4535_v26 = vadd.f32 1e-05, %v4518_v11  ;;  %v4519_v18 = vmul.f32 0.0625, %v4472_v55 }
 0xeab   : > { %8879 = vrsqrt.f32 %v4535_v26  ;;  %v4536_v35 = vadd.f32 1e-05, %v4519_v18 }
 0xead   : > { %8881 = vrsqrt.f32 %v4536_v35 }
 0xeae   : > { %v4475_v43 = vpop.xlane.xlu0 %4474 }
 0xeaf   : > { %v4520_v40 = vmul.f32 0.0625, %v4475_v43 }
 0xeb0   : > { %v4478_v3 = vpop.xlane.xlu1 %4477 }
 0xeb1   : > { %v4537_v44 = vadd.f32 1e-05, %v4520_v40  ;;  %v4521_v54 = vmul.f32 0.0625, %v4478_v3 }
 0xeb3   : > { %8883 = vrsqrt.f32 %v4537_v44  ;;  %v4538_v15 = vadd.f32 1e-05, %v4521_v54 }
 0xeb5   : > { %v8880_v42 = vpop.eup %8879  ;;  %8885 = vrsqrt.f32 %v4538_v15 }
 0xeb6   : > { %v4569_v53 = vmul.f32 %v8880_v42, %v12168_v0  ;;  %v4481_v45 = vpop.xlane.xlu0 %4480 }
 0xeb7   : > { %v8882_v12 = vpop.eup %8881  ;;  %v4522_v25 = vmul.f32 0.0625, %v4481_v45 }
 0xeb8   : > { %v4590_v7 = vmul.f32 %v12277_v46, %v4569_v53  ;;  %v4570_v11 = vmul.f32 %v8882_v12, %v12171_v37  ;;  %v4484_v55 = vpop.xlane.xlu1 %4483 }
 0xeb9   : > { %v4539_v26 = vadd.f32 1e-05, %v4522_v25  ;;  %v4523_v18 = vmul.f32 0.0625, %v4484_v55 }
 0xeba   : > { %v4591_v35 = vmul.f32 %v12277_v46, %v4570_v11  ;;  %v4611_v40 = vadd.f32 %v12281_v52, %v4590_v7 }
 0xebb   : > { %8887 = vrsqrt.f32 %v4539_v26  ;;  %v4540_v43 = vadd.f32 1e-05, %v4523_v18 }
 0xebc   : > { %v4612_v0 = vadd.f32 %v12281_v52, %v4591_v35 }
 0xebd   : > { %v8884_v3 = vpop.eup %8883  ;;  %8889 = vrsqrt.f32 %v4540_v43 }
 0xebe   : > { %v4487_v44 = vpop.xlane.xlu0 %4486  ;;  %v4628_v1 = vpack.c.bf16 %v4612_v0, %v4611_v40  ;;  %v4571_v54 = vmul.f32 %v8884_v3, %v12180_v31 }
 0xebf   : > { %v8886_v15 = vpop.eup %8885  ;;  %v4524_v63 = vmul.f32 0.0625, %v4487_v44 }
 0xec0   : > { %7739 = vmatmul.mubr.msk.bf16.vlgmr.msra.gmra.mrb[192].mxu0 %vm866_vm2, %v4628_v1  ;;  %8237 = vmatmul.mubr.msk.bf16.vlgmr.msra.gmra.mrb[204].mxu1 %vm866_vm2, %v4628_v1  ;;  %v4490_v37 = vpop.xlane.xlu1 %4489  ;;  %v4572_v42 = vmul.f32 %v8886_v15, %v12183_v19  ;;  %v4592_v53 = vmul.f32 %v12277_v46, %v4571_v54 }
 0xec1   : > { %v4541_v45 = vadd.f32 1e-05, %v4524_v63  ;;  %v4525_v12 = vmul.f32 0.0625, %v4490_v37  ;;  %4727 = vmatprep.mubr.bf16.mxu0 %v14328_v51  ;;  %8240 = vmatprep.mubr.msk.bf16.mxu1 %vm9235_vm1, %v14398_v2 }
 0xec2   : > { %v4593_v31 = vmul.f32 %v12277_v46, %v4572_v42  ;;  %v4613_v59 = vadd.f32 %v12281_v52, %v4592_v53 }
 0xec3   : > { %8891 = vrsqrt.f32 %v4541_v45  ;;  %v4542_v25 = vadd.f32 1e-05, %v4525_v12 }
 0xec4   : > { %v4614_v7 = vadd.f32 %v12281_v52, %v4593_v31 }
 0xec5   : > { %v8888_v11 = vpop.eup %8887  ;;  %8893 = vrsqrt.f32 %v4542_v25 }
 0xec6   : > { %v4493_v19 = vpop.xlane.xlu0 %4492  ;;  %v4629_v55 = vpack.c.bf16 %v4614_v7, %v4613_v59  ;;  %v4573_v26 = vmul.f32 %v8888_v11, %v12192_v57 }
 0xec7   : > { %v8890_v18 = vpop.eup %8889  ;;  %v4526_v35 = vmul.f32 0.0625, %v4493_v19 }
 0xec8   : > { %7740 = vmatmul.mubr.msk.bf16.gmra.mrb[196].mxu0 %vm866_vm2, %v4629_v55  ;;  %8241 = vmatmul.mubr.msk.bf16.gmra.mrb[208].mxu1 %vm866_vm2, %v4629_v55  ;;  %v4496_v43 = vpop.xlane.xlu1 %4495  ;;  %v4574_v40 = vmul.f32 %v8890_v18, %v12195_v38  ;;  %v4594_v0 = vmul.f32 %v12277_v46, %v4573_v26 }
 0xec9   : > { %v4543_v3 = vadd.f32 1e-05, %v4526_v35  ;;  %v4527_v44 = vmul.f32 0.0625, %v4496_v43  ;;  %4737 = vmatprep.mubr.bf16.mxu0 %v14328_v51  ;;  %8244 = vmatprep.mubr.msk.bf16.mxu1 %vm9235_vm1, %v14398_v2 }
 0xeca   : > { %v4595_v57 = vmul.f32 %v12277_v46, %v4574_v40  ;;  %v4615_v54 = vadd.f32 %v12281_v52, %v4594_v0 }
 0xecb   : > { %8895 = vrsqrt.f32 %v4543_v3  ;;  %v4544_v1 = vadd.f32 1e-05, %v4527_v44 }
 0xecc   : > { %v4616_v15 = vadd.f32 %v12281_v52, %v4595_v57 }
 0xecd   : > { %v8892_v63 = vpop.eup %8891  ;;  %8897 = vrsqrt.f32 %v4544_v1 }
 0xece   : > { %v4499_v38 = vpop.xlane.xlu0 %4498  ;;  %v4630_v37 = vpack.c.bf16 %v4616_v15, %v4615_v54  ;;  %v4575_v42 = vmul.f32 %v8892_v63, %v12204_v48 }
 0xecf   : > { %v8894_v53 = vpop.eup %8893  ;;  %v4528_v45 = vmul.f32 0.0625, %v4499_v38 }
 0xed0   : > { %7741 = vmatmul.mubr.msk.bf16.gmra.mrb[200].mxu0 %vm866_vm2, %v4630_v37  ;;  %8245 = vmatmul.mubr.msk.bf16.gmra.mrb[212].mxu1 %vm866_vm2, %v4630_v37  ;;  %v4502_v12 = vpop.xlane.xlu1 %4501  ;;  %v4576_v31 = vmul.f32 %v8894_v53, %v12207_v13  ;;  %v4596_v25 = vmul.f32 %v12277_v46, %v4575_v42 }
 0xed1   : > { %v4545_v59 = vadd.f32 1e-05, %v4528_v45  ;;  %v4529_v7 = vmul.f32 0.0625, %v4502_v12  ;;  %4747 = vmatprep.mubr.bf16.mxu0 %v14328_v51  ;;  %8248 = vmatprep.mubr.msk.bf16.mxu1 %vm9235_vm1, %v14398_v2 }
 0xed2   : > { %v4597_v48 = vmul.f32 %v12277_v46, %v4576_v31  ;;  %v4617_v19 = vadd.f32 %v12281_v52, %v4596_v25 }
 0xed3   : > { %8899 = vrsqrt.f32 %v4545_v59  ;;  %v4546_v11 = vadd.f32 1e-05, %v4529_v7 }
 0xed4   : > { %v4618_v55 = vadd.f32 %v12281_v52, %v4597_v48 }
 0xed5   : > { %v8896_v26 = vpop.eup %8895  ;;  %8901 = vrsqrt.f32 %v4546_v11 }
 0xed6   : > { %v4631_v13 = vpack.c.bf16 %v4618_v55, %v4617_v19  ;;  %v4577_v18 = vmul.f32 %v8896_v26, %v12216_v24 }
 0xed7   : > { %v8898_v35 = vpop.eup %8897 }
 0xed8   : > { %7742 = vmatmul.mubr.msk.bf16.gmra.mrb[204].mxu0 %vm866_vm2, %v4631_v13  ;;  %8249 = vmatmul.mubr.msk.bf16.gmra.mrb[216].mxu1 %vm866_vm2, %v4631_v13  ;;  %v4578_v43 = vmul.f32 %v8898_v35, %v12219_v62  ;;  %v4598_v40 = vmul.f32 %v12277_v46, %v4577_v18 }
 0xed9   : > { %4757 = vmatprep.mubr.bf16.mxu0 %v14328_v51  ;;  %8252 = vmatprep.mubr.msk.bf16.mxu1 %vm9235_vm1, %v14398_v2 }
 0xeda   : > { %v4599_v0 = vmul.f32 %v12277_v46, %v4578_v43  ;;  %v4619_v3 = vadd.f32 %v12281_v52, %v4598_v40 }
 0xedc   : > { %v4620_v24 = vadd.f32 %v12281_v52, %v4599_v0 }
 0xedd   : > { %v8900_v44 = vpop.eup %8899 }
 0xede   : > { %v4632_v57 = vpack.c.bf16 %v4620_v24, %v4619_v3  ;;  %v4579_v1 = vmul.f32 %v8900_v44, %v12228_v22 }
 0xedf   : > { %v8902_v54 = vpop.eup %8901 }
 0xee0   : > { %7743 = vmatmul.mubr.msk.bf16.gmra.mrb[208].mxu0 %vm866_vm2, %v4632_v57  ;;  %8253 = vmatmul.mubr.msk.bf16.gmra.mrb[220].mxu1 %vm866_vm2, %v4632_v57  ;;  %v4580_v62 = vmul.f32 %v8902_v54, %v12234_v16  ;;  %v4600_v15 = vmul.f32 %v12277_v46, %v4579_v1 }
 0xee1   : > { %v4505_v63 = vpop.xlane.xlu0 %4504  ;;  %4767 = vmatprep.mubr.bf16.mxu0 %v14328_v51  ;;  %8256 = vmatprep.mubr.msk.bf16.mxu1 %vm9235_vm1, %v14398_v2 }
 0xee2   : > { %v4530_v38 = vmul.f32 0.0625, %v4505_v63  ;;  %v4601_v37 = vmul.f32 %v12277_v46, %v4580_v62  ;;  %v4621_v45 = vadd.f32 %v12281_v52, %v4600_v15 }
 0xee3   : > { %v4508_v42 = vpop.xlane.xlu1 %4507 }
 0xee4   : > { %v4547_v22 = vadd.f32 1e-05, %v4530_v38  ;;  %v4531_v53 = vmul.f32 0.0625, %v4508_v42  ;;  %v4622_v12 = vadd.f32 %v12281_v52, %v4601_v37 }
 0xee6   : > { %8903 = vrsqrt.f32 %v4547_v22  ;;  %v4548_v16 = vadd.f32 1e-05, %v4531_v53  ;;  %v4633_v31 = vpack.c.bf16 %v4622_v12, %v4621_v45 }
 0xee8   : > { %8905 = vrsqrt.f32 %v4548_v16  ;;  %7744 = vmatmul.mubr.msk.bf16.gmra.mrb[212].mxu0 %vm866_vm2, %v4633_v31  ;;  %8257 = vmatmul.mubr.msk.bf16.gmra.mrb[224].mxu1 %vm866_vm2, %v4633_v31 }
 0xee9   : > { %v4511_v25 = vpop.xlane.xlu0 %4510  ;;  %4777 = vmatprep.mubr.bf16.mxu0 %v14328_v51  ;;  %8260 = vmatprep.mubr.msk.bf16.mxu1 %vm9235_vm1, %v14398_v2 }
 0xeea   : > { %v4532_v59 = vmul.f32 0.0625, %v4511_v25 }
 0xeeb   : > { %v4514_v7 = vpop.xlane.xlu1 %4513 }
 0xeec   : > { %v4549_v48 = vadd.f32 1e-05, %v4532_v59  ;;  %v4533_v11 = vmul.f32 0.0625, %v4514_v7 }
 0xeee   : > { %8907 = vrsqrt.f32 %v4549_v48  ;;  %v4550_v19 = vadd.f32 1e-05, %v4533_v11 }
 0xef0   : > { %v8904_v55 = vpop.eup %8903  ;;  %8909 = vrsqrt.f32 %v4550_v19 }
 0xef1   : > { %v4517_v26 = vpop.xlane.xlu0 %4516  ;;  %v4581_v13 = vmul.f32 %v8904_v55, %v12244_v34 }
 0xef2   : > { %v8906_v18 = vpop.eup %8905  ;;  %v4534_v35 = vmul.f32 0.0625, %v4517_v26 }
 0xef3   : > { %v4582_v43 = vmul.f32 %v8906_v18, %v12247_v30  ;;  %v4602_v40 = vmul.f32 %v12277_v46, %v4581_v13 }
 0xef4   : > { %v4551_v0 = vadd.f32 1e-05, %v4534_v35 }
 0xef5   : > { %v4603_v3 = vmul.f32 %v12277_v46, %v4582_v43  ;;  %v4623_v24 = vadd.f32 %v12281_v52, %v4602_v40 }
 0xef6   : > { %8911 = vrsqrt.f32 %v4551_v0 }
 0xef7   : > { %v4624_v44 = vadd.f32 %v12281_v52, %v4603_v3 }
 0xef8   : > { %v8908_v57 = vpop.eup %8907 }
 0xef9   : > { %v4634_v1 = vpack.c.bf16 %v4624_v44, %v4623_v24  ;;  %v4583_v54 = vmul.f32 %v8908_v57, %v12256_v20 }
 0xefa   : > { %v8910_v62 = vpop.eup %8909 }
 0xefb   : > { %7745 = vmatmul.mubr.msk.bf16.gmra.mrb[216].mxu0 %vm866_vm2, %v4634_v1  ;;  %8261 = vmatmul.mubr.msk.bf16.gmra.mrb[228].mxu1 %vm866_vm2, %v4634_v1  ;;  %v4584_v34 = vmul.f32 %v8910_v62, %v12259_v33  ;;  %v4604_v30 = vmul.f32 %v12277_v46, %v4583_v54 }
 0xefc   : > { %4787 = vmatprep.mubr.bf16.mxu0 %v14328_v51  ;;  %8264 = vmatprep.mubr.msk.bf16.mxu1 %vm9235_vm1, %v14398_v2 }
 0xefd   : > { %v4605_v15 = vmul.f32 %v12277_v46, %v4584_v34  ;;  %v4625_v63 = vadd.f32 %v12281_v52, %v4604_v30 }
 0xeff   : > { %v4626_v20 = vadd.f32 %v12281_v52, %v4605_v15 }
 0xf00   : > { %v8912_v38 = vpop.eup %8911 }
 0xf01   : > { %v4635_v37 = vpack.c.bf16 %v4626_v20, %v4625_v63  ;;  %v4585_v42 = vmul.f32 %v8912_v38, %v12268_v58 }
 0xf03   : > { %7746 = vmatmul.mubr.msk.bf16.gmra.mrb[220].mxu0 %vm866_vm2, %v4635_v37  ;;  %8265 = vmatmul.mubr.msk.bf16.gmra.mrb[232].mxu1 %vm866_vm2, %v4635_v37  ;;  %v4606_v33 = vmul.f32 %v12277_v46, %v4585_v42 }
 0xf04   : > { %4797 = vmatprep.mubr.bf16.mxu0 %v14328_v51  ;;  %8268 = vmatprep.mubr.msk.bf16.mxu1 %vm9235_vm1, %v14398_v2 }
 0xf05   : > { %v4627_v22 = vadd.f32 %v12281_v52, %v4606_v33 }
 0xf07   : > { %v4636_v53 = vpack.c.bf16 %v4627_v22, %v4627_v22 }
 0xf0b   : > { %7747 = vmatmul.mubr.msk.bf16.gmra.mrb[224].mxu0 %vm866_vm2, %v4636_v53  ;;  %8269 = vmatmul.mubr.msk.bf16.gmra.mrb[236].mxu1 %vm866_vm2, %v4636_v53 }
 0xf0c   : > { %5048 = vmatprep.mubr.bf16.mxu0 %v14328_v51 }
 0xf93   : > { %v4719_v58 = vpop.f32.mrb[192].mxu0  ;;  %v4840_v45 = vpop.f32.mrb[204].mxu1 }
 0xf94   : > { %v4721_v12 = vpop.f32.mrb[193].mxu0  ;;  %v8238_v16 = vpop.f32.mrb[205].mxu1  ;;  %v4927_v25 = vmul.f32 0.125, %v4719_v58 }
 0xf95   : > { %v4723_v31 = vpop.f32.mrb[194].mxu0  ;;  %v4843_v46 = vpop.f32.mrb[206].mxu1 }
 0xf96   : > { %v4928_v59 = vmul.f32 0.125, %v4723_v31  ;;  %v12376_v7 = vpack.c.bf16 %v4843_v46, %v4840_v45  ;;  %v4725_v48 = vpop.f32.mrb[195].mxu0  ;;  %v8239_v11 = vpop.f32.mrb[207].mxu1 }
 0xf97   : > { %v4953_v52 = vpack.c.bf16 %v4725_v48, %v4721_v12 }
 0xf98   : > { %v12378_v19 = vpack.c.bf16 %v4928_v59, %v4927_v25  ;;  %5484 = vmatpush1.bf16.msra.mxu1 %v12376_v7 }
 0xf99   : > { %v4990_v55 = vsel %vm1914_vm3, %v4953_v52, 0  ;;  %5632 = vrot.lane.b32.xlu1 %v4953_v52, %s9237_s14  ;;  %5485 = vmatprep.subr.bf16.mxu1 %v14328_v51 }
 0xf9a   : > { %5017 = vmatpush1.bf16.xpose.msra.mxu0 %v4990_v55 }
 0xf9b   : > { %v4729_v26 = vpop.f32.mrb[196].mxu0  ;;  %v4848_v13 = vpop.f32.mrb[208].mxu1  ;;  %5018 = vmatprep.subr.bf16.mxu0 %v14328_v51 }
 0xf9c   : > { %v4731_v18 = vpop.f32.mrb[197].mxu0  ;;  %v8242_v35 = vpop.f32.mrb[209].mxu1  ;;  %v4929_v0 = vmul.f32 0.125, %v4729_v26 }
 0xf9d   : > { %v4733_v43 = vpop.f32.mrb[198].mxu0  ;;  %v4851_v40 = vpop.f32.mrb[210].mxu1 }
 0xf9e   : > { %v4930_v3 = vmul.f32 0.125, %v4733_v43  ;;  %v12385_v24 = vpack.c.bf16 %v4851_v40, %v4848_v13  ;;  %v4735_v44 = vpop.f32.mrb[199].mxu0  ;;  %v8243_v57 = vpop.f32.mrb[211].mxu1 }
 0xf9f   : > { %v4954_v1 = vpack.c.bf16 %v4735_v44, %v4731_v18 }
 0xfa0   : > { %v12387_v54 = vpack.c.bf16 %v4930_v3, %v4929_v0  ;;  %5486 = vmatpush1.bf16.msra.mxu1 %v12385_v24 }
 0xfa1   : > { %v4993_v62 = vsel %vm1914_vm3, %v4954_v1, 0  ;;  %5634 = vrot.lane.b32.xlu0 %v4954_v1, %s9237_s14  ;;  %5487 = vmatprep.subr.bf16.mxu1 %v14328_v51 }
 0xfa2   : > { %5019 = vmatpush1.bf16.xpose.msra.mxu0 %v4993_v62 }
 0xfa3   : > { %v4739_v34 = vpop.f32.mrb[200].mxu0  ;;  %v4856_v30 = vpop.f32.mrb[212].mxu1  ;;  %5020 = vmatprep.subr.bf16.mxu0 %v14328_v51 }
 0xfa4   : > { %v4741_v15 = vpop.f32.mrb[201].mxu0  ;;  %v8246_v63 = vpop.f32.mrb[213].mxu1  ;;  %v4931_v37 = vmul.f32 0.125, %v4739_v34 }
 0xfa5   : > { %v4743_v20 = vpop.f32.mrb[202].mxu0  ;;  %v4859_v38 = vpop.f32.mrb[214].mxu1 }
 0xfa6   : > { %v4932_v42 = vmul.f32 0.125, %v4743_v20  ;;  %v12394_v33 = vpack.c.bf16 %v4859_v38, %v4856_v30  ;;  %v4745_v22 = vpop.f32.mrb[203].mxu0  ;;  %v8247_v53 = vpop.f32.mrb[215].mxu1 }
 0xfa7   : > { %v4955_v58 = vpack.c.bf16 %v4745_v22, %v4741_v15 }
 0xfa8   : > { %v12396_v45 = vpack.c.bf16 %v4932_v42, %v4931_v37  ;;  %5488 = vmatpush1.bf16.msra.mxu1 %v12394_v33 }
 0xfa9   : > { %v4996_v12 = vsel %vm1914_vm3, %v4955_v58, 0  ;;  %5636 = vrot.lane.b32.xlu1 %v4955_v58, %s9237_s14  ;;  %5489 = vmatprep.subr.bf16.mxu1 %v14328_v51 }
 0xfaa   : > { %5021 = vmatpush1.bf16.xpose.msra.mxu0 %v4996_v12 }
 0xfab   : > { %v4749_v16 = vpop.f32.mrb[204].mxu0  ;;  %v4864_v31 = vpop.f32.mrb[216].mxu1  ;;  %5022 = vmatprep.subr.bf16.mxu0 %v14328_v51 }
 0xfac   : > { %v4751_v46 = vpop.f32.mrb[205].mxu0  ;;  %v8250_v25 = vpop.f32.mrb[217].mxu1  ;;  %v4933_v11 = vmul.f32 0.125, %v4749_v16 }
 0xfad   : > { %v4753_v59 = vpop.f32.mrb[206].mxu0  ;;  %v4867_v48 = vpop.f32.mrb[218].mxu1 }
 0xfae   : > { %v4934_v52 = vmul.f32 0.125, %v4753_v59  ;;  %v12403_v55 = vpack.c.bf16 %v4867_v48, %v4864_v31  ;;  %v4755_v26 = vpop.f32.mrb[207].mxu0  ;;  %v8251_v13 = vpop.f32.mrb[219].mxu1 }
 0xfaf   : > { %v4956_v18 = vpack.c.bf16 %v4755_v26, %v4751_v46 }
 0xfb0   : > { %v12405_v35 = vpack.c.bf16 %v4934_v52, %v4933_v11  ;;  %5490 = vmatpush1.bf16.msra.mxu1 %v12403_v55 }
 0xfb1   : > { %v4999_v43 = vsel %vm1914_vm3, %v4956_v18, 0  ;;  %5638 = vrot.lane.b32.xlu1 %v4956_v18, %s9237_s14  ;;  %5491 = vmatprep.subr.bf16.mxu1 %v14328_v51 }
 0xfb2   : > { %5023 = vmatpush1.bf16.xpose.msra.mxu0 %v4999_v43 }
 0xfb3   : > { %v4759_v40 = vpop.f32.mrb[208].mxu0  ;;  %v4872_v0 = vpop.f32.mrb[220].mxu1  ;;  %5024 = vmatprep.subr.bf16.mxu0 %v14328_v51 }
 0xfb4   : > { %v4761_v3 = vpop.f32.mrb[209].mxu0  ;;  %v8254_v44 = vpop.f32.mrb[221].mxu1  ;;  %v4935_v62 = vmul.f32 0.125, %v4759_v40 }
 0xfb5   : > { %v4763_v57 = vpop.f32.mrb[210].mxu0  ;;  %v4875_v1 = vpop.f32.mrb[222].mxu1 }
 0xfb6   : > { %v4936_v34 = vmul.f32 0.125, %v4763_v57  ;;  %v12412_v30 = vpack.c.bf16 %v4875_v1, %v4872_v0  ;;  %v4765_v15 = vpop.f32.mrb[211].mxu0  ;;  %v8255_v63 = vpop.f32.mrb[223].mxu1 }
 0xfb7   : > { %v4957_v20 = vpack.c.bf16 %v4765_v15, %v4761_v3 }
 0xfb8   : > { %v12414_v38 = vpack.c.bf16 %v4936_v34, %v4935_v62  ;;  %5492 = vmatpush1.bf16.msra.mxu1 %v12412_v30 }
 0xfb9   : > { %v5002_v37 = vsel %vm1914_vm3, %v4957_v20, 0  ;;  %5640 = vrot.lane.b32.xlu0 %v4957_v20, %s9237_s14  ;;  %5493 = vmatprep.subr.bf16.mxu1 %v14328_v51 }
 0xfba   : > { %5025 = vmatpush1.bf16.xpose.msra.mxu0 %v5002_v37 }
 0xfbb   : > { %v4769_v42 = vpop.f32.mrb[212].mxu0  ;;  %v4880_v22 = vpop.f32.mrb[224].mxu1  ;;  %5026 = vmatprep.subr.bf16.mxu0 %v14328_v51 }
 0xfbc   : > { %v4771_v53 = vpop.f32.mrb[213].mxu0  ;;  %v8258_v58 = vpop.f32.mrb[225].mxu1  ;;  %v4937_v31 = vmul.f32 0.125, %v4769_v42 }
 0xfbd   : > { %v4773_v12 = vpop.f32.mrb[214].mxu0  ;;  %v4883_v16 = vpop.f32.mrb[226].mxu1 }
 0xfbe   : > { %v4938_v46 = vmul.f32 0.125, %v4773_v12  ;;  %v12421_v25 = vpack.c.bf16 %v4883_v16, %v4880_v22  ;;  %v4775_v59 = vpop.f32.mrb[215].mxu0  ;;  %v8259_v48 = vpop.f32.mrb[227].mxu1 }
 0xfbf   : > { %v4958_v11 = vpack.c.bf16 %v4775_v59, %v4771_v53 }
 0xfc0   : > { %v12423_v52 = vpack.c.bf16 %v4938_v46, %v4937_v31  ;;  %5494 = vmatpush1.bf16.msra.mxu1 %v12421_v25 }
 0xfc1   : > { %v5005_v26 = vsel %vm1914_vm3, %v4958_v11, 0  ;;  %5642 = vrot.lane.b32.xlu1 %v4958_v11, %s9237_s14  ;;  %5495 = vmatprep.subr.bf16.mxu1 %v14328_v51 }
 0xfc2   : > { %5027 = vmatpush1.bf16.xpose.msra.mxu0 %v5005_v26 }
 0xfc3   : > { %5028 = vmatprep.subr.bf16.mxu0 %v14328_v51 }
 0xfce   : > { %v4779_v13 = vpop.f32.mrb[216].mxu0  ;;  %v4888_v18 = vpop.f32.mrb[228].mxu1 }
 0xfcf   : > { %v4781_v43 = vpop.f32.mrb[217].mxu0  ;;  %v8262_v40 = vpop.f32.mrb[229].mxu1  ;;  %v4939_v44 = vmul.f32 0.125, %v4779_v13 }
 0xfd0   : > { %v4783_v0 = vpop.f32.mrb[218].mxu0  ;;  %v4891_v3 = vpop.f32.mrb[230].mxu1 }
 0xfd1   : > { %v4940_v57 = vmul.f32 0.125, %v4783_v0  ;;  %v12430_v1 = vpack.c.bf16 %v4891_v3, %v4888_v18  ;;  %v4785_v62 = vpop.f32.mrb[219].mxu0  ;;  %v8263_v34 = vpop.f32.mrb[231].mxu1 }
 0xfd2   : > { %v4959_v15 = vpack.c.bf16 %v4785_v62, %v4781_v43 }
 0xfd3   : > { %14445 = vst [vmem:[#allocation55_spill] sm:$0xff] %v12430_v1  ;;  %v12432_v63 = vpack.c.bf16 %v4940_v57, %v4939_v44  ;;  %5496 = vmatpush1.bf16.msra.mxu1 %v12430_v1 }
 0xfd4   : > { %v5008_v20 = vsel %vm1914_vm3, %v4959_v15, 0  ;;  %5644 = vrot.lane.b32.xlu0 %v4959_v15, %s9237_s14  ;;  %5497 = vmatprep.subr.bf16.mxu1 %v14328_v51 }
 0xfd5   : > { %5029 = vmatpush1.bf16.xpose.msra.mxu0 %v5008_v20 }
 0xfd6   : > { %v4789_v37 = vpop.f32.mrb[220].mxu0  ;;  %v4896_v42 = vpop.f32.mrb[232].mxu1  ;;  %5030 = vmatprep.subr.bf16.mxu0 %v14328_v51 }
 0xfd7   : > { %v4791_v22 = vpop.f32.mrb[221].mxu0  ;;  %v8266_v53 = vpop.f32.mrb[233].mxu1  ;;  %v4941_v16 = vmul.f32 0.125, %v4789_v37 }
 0xfd8   : > { %v4793_v58 = vpop.f32.mrb[222].mxu0  ;;  %v4899_v12 = vpop.f32.mrb[234].mxu1 }
 0xfd9   : > { %v4942_v31 = vmul.f32 0.125, %v4793_v58  ;;  %v12439_v46 = vpack.c.bf16 %v4899_v12, %v4896_v42  ;;  %v4795_v59 = vpop.f32.mrb[223].mxu0  ;;  %v8267_v48 = vpop.f32.mrb[235].mxu1 }
 0xfda   : > { %v4960_v11 = vpack.c.bf16 %v4795_v59, %v4791_v22 }
 0xfdb   : > { %14446 = vst [vmem:[#allocation61_spill] sm:$0xff] %v12439_v46  ;;  %v12441_v26 = vpack.c.bf16 %v4942_v31, %v4941_v16  ;;  %5498 = vmatpush1.bf16.msra.mxu1 %v12439_v46 }
 0xfdc   : > { %v5011_v13 = vsel %vm1914_vm3, %v4960_v11, 0  ;;  %5646 = vrot.lane.b32.xlu1 %v4960_v11, %s9237_s14  ;;  %5499 = vmatprep.subr.bf16.mxu1 %v14328_v51 }
 0xfdd   : > { %5031 = vmatpush1.bf16.xpose.msra.mxu0 %v5011_v13 }
 0xfde   : > { %v4799_v18 = vpop.f32.mrb[224].mxu0  ;;  %v4904_v43 = vpop.f32.mrb[236].mxu1  ;;  %5032 = vmatprep.subr.bf16.mxu0 %v14328_v51 }
 0xfdf   : > { %v12448_v40 = vpack.c.bf16 %v4904_v43, %v4904_v43  ;;  %v4801_v0 = vpop.f32.mrb[225].mxu0  ;;  %v8270_v3 = vpop.f32.mrb[237].mxu1  ;;  %v4943_v42 = vmul.f32 0.125, %v4799_v18 }
 0xfe0   : > { %v4961_v44 = vpack.c.bf16 %v4801_v0, %v4801_v0  ;;  %5605 = vrot.lane.b32.xlu1 %v12378_v19, %s9237_s14  ;;  %v4803_v57 = vpop.f32.mrb[226].mxu0  ;;  %v4907_v62 = vpop.f32.mrb[238].mxu1 }
 0xfe1   : > { %14447 = vst [vmem:[#allocation56_spill] sm:$0xff] %v12448_v40  ;;  %v5481_v34 = vsel %vm2434_vm4, %v12448_v40, 0  ;;  %v4804_v15 = vpop.f32.mrb[227].mxu0  ;;  %v8271_v20 = vpop.f32.mrb[239].mxu1  ;;  %v4952_v22 = vpack.c.bf16 %v4943_v42, %v4943_v42 }
 0xfe2   : > { %5648 = vrot.lane.b32.xlu0 %v4961_v44, %s9237_s14  ;;  %5500 = vmatpush1.bf16.msra.mxu1 %v5481_v34  ;;  %v5014_v37 = vsel %vm1914_vm3, %v4961_v44, 0  ;;  %v12549_v34 = vld [vmem:[%s14107_s3 + $0x8] sm:$0xff] }
 0xfe3   : > { %6197 = vmatprep.subr.bf16.mxu1 %v14328_v51 }
 0xfe4   : > { %5609 = vrot.lane.b32.xlu1 %v12396_v45, %s9237_s14 }
 0xfe5   : > { %5033 = vmatpush1.bf16.xpose.msra.mxu0 %v5014_v37  ;;  %v12557_v37 = vld [vmem:[%s14107_s3] sm:$0xff] }
 0xfe6   : > { %5607 = vrot.lane.b32.xlu0 %v12387_v54, %s9237_s14  ;;  %5704 = vmatprep.subr.bf16.mxu0 %v14328_v51 }
 0xfe8   : > { %5613 = vrot.lane.b32.xlu1 %v12414_v38, %s9237_s14 }
 0xfea   : > { %5611 = vrot.lane.b32.xlu0 %v12405_v35, %s9237_s14 }
 0xfec   : > { %5617 = vrot.lane.b32.xlu1 %v12432_v63, %s9237_s14  ;;  %7773 = vmatmul.mubr.msk.bf16.vlgmr.msra.gmra.mrb[228].mxu0 %vm1914_vm3, %v12378_v19 }
 0xfed   : > { %5058 = vmatprep.mubr.bf16.mxu0 %v14328_v51 }
 0xfee   : > { %5615 = vrot.lane.b32.xlu0 %v12423_v52, %s9237_s14 }
 0xff0   : > { %5621 = vrot.lane.b32.xlu1 %v4952_v22, %s9237_s14 }
 0xff2   : > { %5619 = vrot.lane.b32.xlu0 %v12441_v26, %s9237_s14 }
 0xff4   : > { %7774 = vmatmul.mubr.msk.bf16.gmra.mrb[232].mxu0 %vm1914_vm3, %v12387_v54  ;;  %6143 = vrot.lane.b32.xlu1 %v12385_v24, %s9237_s14 }
 0xff5   : > { %5068 = vmatprep.mubr.bf16.mxu0 %v14328_v51 }
 0xff6   : > { %6141 = vrot.lane.b32.xlu0 %v12376_v7, %s9237_s14 }
 0xff8   : > { %6147 = vrot.lane.b32.xlu1 %v12403_v55, %s9237_s14 }
 0xffa   : > { %6145 = vrot.lane.b32.xlu0 %v12394_v33, %s9237_s14 }
 0xffc   : > { %7775 = vmatmul.mubr.msk.bf16.gmra.mrb[236].mxu0 %vm1914_vm3, %v12396_v45 }
 0xffd   : > { %5078 = vmatprep.mubr.bf16.mxu0 %v14328_v51 }
 0xffe   : > { %6149 = vrot.lane.b32.xlu0 %v12412_v30, %s9237_s14 }
0x1004   : > { %7776 = vmatmul.mubr.msk.bf16.gmra.mrb[240].mxu0 %vm1914_vm3, %v12405_v35 }
0x1005   : > { %5088 = vmatprep.mubr.bf16.mxu0 %v14328_v51 }
0x100b   : > { %v5633_v7 = vpop.permute.xlu1 %5632 }
0x100c   : > { %v5678_v19 = vsel %vm1914_vm3, %v5633_v7, 0  ;;  %7777 = vmatmul.mubr.msk.bf16.gmra.mrb[244].mxu0 %vm1914_vm3, %v12414_v38 }
0x100d   : > { %5705 = vmatpush1.bf16.xpose.msra.mxu0 %v5678_v19  ;;  %5098 = vmatprep.mubr.bf16.mxu0 %v14328_v51  ;;  %v12567_v19 = vld [vmem:[%s14107_s3 + $0x18] sm:$0xff] }
0x100e   : > { %5706 = vmatprep.subr.bf16.mxu0 %v14328_v51 }
0x1013   : > { %v5635_v24 = vpop.permute.xlu0 %5634 }
0x1014   : > { %v5681_v54 = vsel %vm1914_vm3, %v5635_v24, 0  ;;  %7778 = vmatmul.mubr.msk.bf16.gmra.mrb[248].mxu0 %vm1914_vm3, %v12423_v52 }
0x1015   : > { %5707 = vmatpush1.bf16.xpose.msra.mxu0 %v5681_v54  ;;  %5108 = vmatprep.mubr.bf16.mxu0 %v14328_v51 }
0x1016   : > { %5708 = vmatprep.subr.bf16.mxu0 %v14328_v51 }
0x101b   : > { %v5637_v33 = vpop.permute.xlu1 %5636 }
0x101c   : > { %v5684_v45 = vsel %vm1914_vm3, %v5637_v33, 0  ;;  %7779 = vmatmul.mubr.msk.bf16.gmra.mrb[252].mxu0 %vm1914_vm3, %v12432_v63  ;;  %v12576_v33 = vld [vmem:[%s14107_s3 + $0x10] sm:$0xff] }
0x101d   : > { %5709 = vmatpush1.bf16.xpose.msra.mxu0 %v5684_v45  ;;  %5118 = vmatprep.mubr.bf16.mxu0 %v14328_v51 }
0x101e   : > { %5710 = vmatprep.subr.bf16.mxu0 %v14328_v51 }
0x1023   : > { %v5639_v55 = vpop.permute.xlu1 %5638 }
0x1024   : > { %v5687_v35 = vsel %vm1914_vm3, %v5639_v55, 0  ;;  %7780 = vmatmul.mubr.msk.bf16.gmra.mrb[0].mxu0 %vm1914_vm3, %v12441_v26 }
0x1025   : > { %5711 = vmatpush1.bf16.xpose.msra.mxu0 %v5687_v35  ;;  %5128 = vmatprep.mubr.bf16.mxu0 %v14328_v51 }
0x1026   : > { %5712 = vmatprep.subr.bf16.mxu0 %v14328_v51 }
0x102b   : > { %v5641_v30 = vpop.permute.xlu0 %5640 }
0x102c   : > { %v5690_v38 = vsel %vm1914_vm3, %v5641_v30, 0  ;;  %7781 = vmatmul.mubr.msk.bf16.gmra.mrb[4].mxu0 %vm1914_vm3, %v4952_v22 }
0x102d   : > { %5713 = vmatpush1.bf16.xpose.msra.mxu0 %v5690_v38  ;;  %5736 = vmatprep.mubr.bf16.mxu0 %v14328_v51 }
0x102e   : > { %5714 = vmatprep.subr.bf16.mxu0 %v14328_v51 }
0x1033   : > { %v5643_v52 = vpop.permute.xlu1 %5642 }
0x1034   : > { %v5693_v63 = vsel %vm1914_vm3, %v5643_v52, 0  ;;  %v12587_v52 = vld [vmem:[%s14107_s3 + $0x28] sm:$0xff] }
0x1035   : > { %5715 = vmatpush1.bf16.xpose.msra.mxu0 %v5693_v63 }
0x1036   : > { %5716 = vmatprep.subr.bf16.mxu0 %v14328_v51 }
0x1046   : > { %v5645_v53 = vpop.permute.xlu0 %5644 }
0x1047   : > { %v5696_v58 = vsel %vm1914_vm3, %v5645_v53, 0 }
0x1048   : > { %5717 = vmatpush1.bf16.xpose.msra.mxu0 %v5696_v58  ;;  %v12595_v58 = vld [vmem:[%s14107_s3 + $0x20] sm:$0xff] }
0x1049   : > { %5718 = vmatprep.subr.bf16.mxu0 %v14328_v51 }
0x104e   : > { %v5647_v12 = vpop.permute.xlu1 %5646 }
0x104f   : > { %v5699_v16 = vsel %vm1914_vm3, %v5647_v12, 0 }
0x1050   : > { %5719 = vmatpush1.bf16.xpose.msra.mxu0 %v5699_v16 }
0x1051   : > { %5720 = vmatprep.subr.bf16.mxu0 %v14328_v51 }
0x1052   : > { %v5606_v48 = vpop.permute.xlu1 %5605 }
0x1054   : > { %v5649_v31 = vpop.permute.xlu0 %5648 }
0x1055   : > { %v5702_v59 = vsel %vm1914_vm3, %v5649_v31, 0 }
0x1056   : > { %v5610_v26 = vpop.permute.xlu1 %5609 }
0x1058   : > { %5721 = vmatpush1.bf16.xpose.msra.mxu0 %v5702_v59  ;;  %v5608_v11 = vpop.permute.xlu0 %5607  ;;  %v12605_v59 = vld [vmem:[%s14107_s3 + $0x38] sm:$0xff] }
0x1059   : > { %8272 = vmatprep.subr.bf16.mxu0 %v14398_v2 }
0x105a   : > { %v5614_v18 = vpop.permute.xlu1 %5613 }
0x105c   : > { %v5612_v13 = vpop.permute.xlu0 %5611 }
0x105e   : > { %v5618_v0 = vpop.permute.xlu1 %5617 }
0x105f   : > { %7791 = vmatmul.mubr.msk.bf16.vlgmr.msra.gmra.mrb[8].mxu0 %vm1914_vm3, %v5606_v48 }
0x1060   : > { %5746 = vmatprep.mubr.bf16.mxu0 %v14328_v51  ;;  %v5616_v43 = vpop.permute.xlu0 %5615 }
0x1062   : > { %v5622_v44 = vpop.permute.xlu1 %5621 }
0x1064   : > { %v5620_v3 = vpop.permute.xlu0 %5619 }
0x1067   : > { %7792 = vmatmul.mubr.msk.bf16.gmra.mrb[12].mxu0 %vm1914_vm3, %v5608_v11 }
0x1068   : > { %5756 = vmatprep.mubr.bf16.mxu0 %v14328_v51 }
0x106f   : > { %7793 = vmatmul.mubr.msk.bf16.gmra.mrb[16].mxu0 %vm1914_vm3, %v5610_v26 }
0x1070   : > { %5766 = vmatprep.mubr.bf16.mxu0 %v14328_v51 }
0x1077   : > { %7794 = vmatmul.mubr.msk.bf16.gmra.mrb[20].mxu0 %vm1914_vm3, %v5612_v13  ;;  %v12616_v13 = vld [vmem:[%s14107_s3 + $0x30] sm:$0xff] }
0x1078   : > { %5776 = vmatprep.mubr.bf16.mxu0 %v14328_v51 }
0x107f   : > { %7795 = vmatmul.mubr.msk.bf16.gmra.mrb[24].mxu0 %vm1914_vm3, %v5614_v18 }
0x1080   : > { %5786 = vmatprep.mubr.bf16.mxu0 %v14328_v51 }
0x1087   : > { %7796 = vmatmul.mubr.msk.bf16.gmra.mrb[28].mxu0 %vm1914_vm3, %v5616_v43 }
0x1088   : > { %5796 = vmatprep.mubr.bf16.mxu0 %v14328_v51 }
0x108f   : > { %7797 = vmatmul.mubr.msk.bf16.gmra.mrb[32].mxu0 %vm1914_vm3, %v5618_v0 }
0x1090   : > { %5806 = vmatprep.mubr.bf16.mxu0 %v14328_v51 }
0x1097   : > { %7798 = vmatmul.mubr.msk.bf16.gmra.mrb[36].mxu0 %vm1914_vm3, %v5620_v3 }
0x1098   : > { %5816 = vmatprep.mubr.bf16.mxu0 %v14328_v51 }
0x109f   : > { %7799 = vmatmul.mubr.msk.bf16.gmra.mrb[40].mxu0 %vm1914_vm3, %v5622_v44  ;;  %v12625_v44 = vld [vmem:[%s14107_s3 + $0x48] sm:$0xff] }
0x10a0   : > { %8280 = vmatprep.mubr.msk.bf16.mxu0 %vm9235_vm1, %v14398_v2 }
0x10bf   : > { %v5050_v57 = vpop.f32.mrb[228].mxu0 }
0x10c0   : > { %v5052_v62 = vpop.f32.mrb[229].mxu0  ;;  %v12560_v42 = vadd.f32 %v12557_v37, %v5050_v57 }
0x10c1   : > { %v12552_v15 = vadd.f32 %v12549_v34, %v5052_v62  ;;  %v5054_v20 = vpop.f32.mrb[230].mxu0 }
0x10c2   : > { %v5056_v22 = vpop.f32.mrb[231].mxu0  ;;  %v12579_v45 = vadd.f32 %v12576_v33, %v5054_v20  ;;  %v12633_v20 = vld [vmem:[%s14107_s3 + $0x40] sm:$0xff] }
0x10c3   : > { %v5137_v7 = vsel %vm2090_vm5, %v12552_v15, -inf  ;;  %v12570_v24 = vadd.f32 %v12567_v19, %v5056_v22 }
0x10c4   : > { %v5138_v54 = vmax.f32 %v12560_v42, %v5137_v7 }
0x10c5   : > { %v5141_v55 = vsel %vm2090_vm5, %v12570_v24, -inf }
0x10c6   : > { %v5142_v35 = vmax.f32 %v12579_v45, %v5141_v55  ;;  %5139 = vmax.xlane.f32.xlu0 %v5138_v54  ;;  %v12643_v55 = vld [vmem:[%s14107_s3 + $0x58] sm:$0xff] }
0x10c7   : > { %v5060_v30 = vpop.f32.mrb[232].mxu0 }
0x10c8   : > { %v5062_v38 = vpop.f32.mrb[233].mxu0  ;;  %5143 = vmax.xlane.f32.xlu1 %v5142_v35  ;;  %v12598_v12 = vadd.f32 %v12595_v58, %v5060_v30 }
0x10c9   : > { %v12590_v63 = vadd.f32 %v12587_v52, %v5062_v38  ;;  %v5064_v53 = vpop.f32.mrb[234].mxu0  ;;  %v12652_v38 = vld [vmem:[%s14107_s3 + $0x50] sm:$0xff] }
0x10ca   : > { %v5066_v16 = vpop.f32.mrb[235].mxu0  ;;  %v12619_v18 = vadd.f32 %v12616_v13, %v5064_v53 }
0x10cb   : > { %v5145_v31 = vsel %vm2090_vm5, %v12590_v63, -inf  ;;  %v12608_v48 = vadd.f32 %v12605_v59, %v5066_v16 }
0x10cc   : > { %v5146_v11 = vmax.f32 %v12598_v12, %v5145_v31 }
0x10cd   : > { %v5149_v26 = vsel %vm2090_vm5, %v12608_v48, -inf }
0x10ce   : > { %5147 = vmax.xlane.f32.xlu0 %v5146_v11  ;;  %v5150_v0 = vmax.f32 %v12619_v18, %v5149_v26 }
0x10cf   : > { %v5070_v43 = vpop.f32.mrb[236].mxu0 }
0x10d0   : > { %v5072_v3 = vpop.f32.mrb[237].mxu0  ;;  %v12636_v22 = vadd.f32 %v12633_v20, %v5070_v43  ;;  %v12663_v43 = vld [vmem:[%s14107_s3 + $0x68] sm:$0xff] }
0x10d1   : > { %v12628_v57 = vadd.f32 %v12625_v44, %v5072_v3  ;;  %v5074_v62 = vpop.f32.mrb[238].mxu0 }
0x10d2   : > { %v5076_v7 = vpop.f32.mrb[239].mxu0  ;;  %5151 = vmax.xlane.f32.xlu0 %v5150_v0  ;;  %v12655_v53 = vadd.f32 %v12652_v38, %v5074_v62  ;;  %v12671_v62 = vld [vmem:[%s14107_s3 + $0x60] sm:$0xff] }
0x10d3   : > { %v5153_v54 = vsel %vm2090_vm5, %v12628_v57, -inf  ;;  %v12646_v35 = vadd.f32 %v12643_v55, %v5076_v7 }
0x10d4   : > { %v5154_v30 = vmax.f32 %v12636_v22, %v5153_v54 }
0x10d5   : > { %v5157_v16 = vsel %vm2090_vm5, %v12646_v35, -inf }
0x10d6   : > { %v5158_v31 = vmax.f32 %v12655_v53, %v5157_v16  ;;  %5155 = vmax.xlane.f32.xlu1 %v5154_v30  ;;  %v12681_v16 = vld [vmem:[%s14107_s3 + $0x78] sm:$0xff] }
0x10d7   : > { %v5080_v11 = vpop.f32.mrb[240].mxu0 }
0x10d8   : > { %v5082_v26 = vpop.f32.mrb[241].mxu0  ;;  %5159 = vmax.xlane.f32.xlu0 %v5158_v31  ;;  %v12674_v7 = vadd.f32 %v12671_v62, %v5080_v11 }
0x10d9   : > { %v12666_v0 = vadd.f32 %v12663_v43, %v5082_v26  ;;  %v5084_v3 = vpop.f32.mrb[242].mxu0 }
0x10da   : > { %v5086_v54 = vpop.f32.mrb[243].mxu0  ;;  %v12693_v11 = vadd.f32 %v12690_v6, %v5084_v3  ;;  %v12709_v3 = vld [vmem:[%s14107_s3 + $0x80] sm:$0xff] }
0x10db   : > { %v5161_v30 = vsel %vm2090_vm5, %v12666_v0, -inf  ;;  %v12684_v31 = vadd.f32 %v12681_v16, %v5086_v54  ;;  %v12701_v54 = vld [vmem:[%s14107_s3 + $0x88] sm:$0xff] }
0x10dc   : > { %v5162_v26 = vmax.f32 %v12674_v7, %v5161_v30 }
0x10dd   : > { %v5165_v36 = vsel %vm2090_vm5, %v12684_v31, -inf }
0x10de   : > { %v5166_v9 = vmax.f32 %v12693_v11, %v5165_v36  ;;  %5163 = vmax.xlane.f32.xlu1 %v5162_v26 }
0x10df   : > { %v5090_v39 = vpop.f32.mrb[244].mxu0 }
0x10e0   : > { %v5092_v14 = vpop.f32.mrb[245].mxu0  ;;  %5167 = vmax.xlane.f32.xlu0 %v5166_v9  ;;  %v12712_v36 = vadd.f32 %v12709_v3, %v5090_v39 }
0x10e1   : > { %v12704_v30 = vadd.f32 %v12701_v54, %v5092_v14  ;;  %v5094_v56 = vpop.f32.mrb[246].mxu0 }
0x10e2   : > { %v5096_v26 = vpop.f32.mrb[247].mxu0  ;;  %v12731_v39 = vadd.f32 %v12728_v10, %v5094_v56  ;;  %v12747_v56 = vld [vmem:[%s14107_s3 + $0xa0] sm:$0xff] }
0x10e3   : > { %v5169_v9 = vsel %vm2090_vm5, %v12704_v30, -inf  ;;  %v12722_v14 = vadd.f32 %v12719_v28, %v5096_v26  ;;  %v12739_v26 = vld [vmem:[%s14107_s3 + $0xa8] sm:$0xff] }
0x10e4   : > { %v5170_v29 = vmax.f32 %v12712_v36, %v5169_v9  ;;  %14449 = vst [vmem:[#allocation36_spill] sm:$0xff] %v12731_v39 }
0x10e5   : > { %14448 = vst [vmem:[#allocation31_spill] sm:$0xff] %v12722_v14  ;;  %v5173_v60 = vsel %vm2090_vm5, %v12722_v14, -inf }
0x10e6   : > { %v5174_v23 = vmax.f32 %v12731_v39, %v5173_v60  ;;  %5171 = vmax.xlane.f32.xlu1 %v5170_v29 }
0x10e7   : > { %v5100_v47 = vpop.f32.mrb[248].mxu0 }
0x10e8   : > { %v5102_v17 = vpop.f32.mrb[249].mxu0  ;;  %5175 = vmax.xlane.f32.xlu0 %v5174_v23  ;;  %v12750_v60 = vadd.f32 %v12747_v56, %v5100_v47 }
0x10e9   : > { %v12742_v9 = vadd.f32 %v12739_v26, %v5102_v17  ;;  %v5104_v41 = vpop.f32.mrb[250].mxu0 }
0x10ea   : > { %14451 = vst [vmem:[#allocation34_spill] sm:$0xff] %v12750_v60  ;;  %v5106_v29 = vpop.f32.mrb[251].mxu0  ;;  %v12769_v47 = vadd.f32 %v12766_v8, %v5104_v41  ;;  %v12785_v41 = vld [vmem:[%s14107_s3 + $0xd0] sm:$0xff] }
0x10eb   : > { %14450 = vst [vmem:[#allocation32_spill] sm:$0xff] %v12742_v9  ;;  %v5177_v23 = vsel %vm2090_vm5, %v12742_v9, -inf  ;;  %v12760_v17 = vadd.f32 %v12757_v61, %v5106_v29  ;;  %v12817_v9 = vld [vmem:[%s14107_s3 + $0xc8] sm:$0xff] }
0x10ec   : > { %v5178_v27 = vmax.f32 %v12750_v60, %v5177_v23  ;;  %14453 = vst [vmem:[#allocation35_spill] sm:$0xff] %v12769_v47  ;;  %v12777_v23 = vld [vmem:[%s14107_s3 + $0xd8] sm:$0xff] }
0x10ed   : > { %14452 = vst [vmem:[#allocation33_spill] sm:$0xff] %v12760_v17  ;;  %v5181_v21 = vsel %vm2090_vm5, %v12760_v17, -inf }
0x10ee   : > { %v5182_v4 = vmax.f32 %v12769_v47, %v5181_v21  ;;  %5179 = vmax.xlane.f32.xlu1 %v5178_v27 }
0x10ef   : > { %v5110_v32 = vpop.f32.mrb[252].mxu0 }
0x10f0   : > { %v5112_v49 = vpop.f32.mrb[253].mxu0  ;;  %5183 = vmax.xlane.f32.xlu0 %v5182_v4 }
0x10f1   : > { %v5114_v29 = vpop.f32.mrb[254].mxu0 }
0x10f2   : > { %v5116_v50 = vpop.f32.mrb[255].mxu0  ;;  %v12788_v21 = vadd.f32 %v12785_v41, %v5114_v29  ;;  %v12804_v29 = vld [vmem:[%s14107_s3 + $0xf0] sm:$0xff] }
0x10f3   : > { %v12780_v5 = vadd.f32 %v12777_v23, %v5116_v50  ;;  %v12796_v50 = vld [vmem:[%s14107_s3 + $0xf8] sm:$0xff] }
0x10f4   : > { %14455 = vst [vmem:[#allocation38_spill] sm:$0xff] %v12788_v21 }
0x10f5   : > { %14454 = vst [vmem:[#allocation40_spill] sm:$0xff] %v12780_v5  ;;  %v5189_v4 = vsel %vm2090_vm5, %v12780_v5, -inf }
0x10f6   : > { %v5190_v27 = vmax.f32 %v12788_v21, %v5189_v4 }
0x10f7   : > { %v5120_v2 = vpop.f32.mrb[0].mxu0 }
0x10f8   : > { %v5122_v51 = vpop.f32.mrb[1].mxu0  ;;  %5191 = vmax.xlane.f32.xlu0 %v5190_v27 }
0x10f9   : > { %v5124_v40 = vpop.f32.mrb[2].mxu0 }
0x10fa   : > { %v5126_v46 = vpop.f32.mrb[3].mxu0  ;;  %v12807_v4 = vadd.f32 %v12804_v29, %v5124_v40  ;;  %v12820_v40 = vadd.f32 %v12817_v9, %v5112_v49 }
0x10fb   : > { %v12799_v1 = vadd.f32 %v12796_v50, %v5126_v46 }
0x10fc   : > { %14457 = vst [vmem:[#allocation43_spill] sm:$0xff] %v12807_v4  ;;  %14458 = vst [vmem:[#allocation42_spill] sm:$0xff] %v12820_v40 }
0x10fd   : > { %14456 = vst [vmem:[#allocation37_spill] sm:$0xff] %v12799_v1  ;;  %v5197_v27 = vsel %vm2090_vm5, %v12799_v1, -inf  ;;  %v5185_v1 = vsel %vm2090_vm5, %v12820_v40, -inf  ;;  %v12846_v40 = vld [vmem:[%s14107_s3 + $0x108] sm:$0xff] }
0x10fe   : > { %v5198_v5 = vmax.f32 %v12807_v4, %v5197_v27  ;;  %v12827_v27 = vld [vmem:[%s14107_s3 + $0xe8] sm:$0xff]  ;;  %v12854_v4 = vld [vmem:[%s14107_s3 + $0xe0] sm:$0xff] }
0x10ff   : > { %v5130_v21 = vpop.f32.mrb[4].mxu0  ;;  %6151 = vrot.lane.b32.xlu1 %v12421_v25, %s9237_s14  ;;  %v12835_v25 = vld [vmem:[%s14107_s3 + $0xc0] sm:$0xff] }
0x1100   : > { %v5132_v17 = vpop.f32.mrb[5].mxu0  ;;  %5199 = vmax.xlane.f32.xlu0 %v5198_v5  ;;  %v12830_v5 = vadd.f32 %v12827_v27, %v5122_v51 }
0x1101   : > { %v5134_v46 = vpop.f32.mrb[6].mxu0  ;;  %v12849_v51 = vadd.f32 %v12846_v40, %v5132_v17 }
0x1102   : > { %v5135_v47 = vpop.f32.mrb[7].mxu0  ;;  %14459 = vst [vmem:[#allocation41_spill] sm:$0xff] %v12830_v5  ;;  %v5193_v46 = vsel %vm2090_vm5, %v12830_v5, -inf }
0x1103   : > { %v12838_v47 = vadd.f32 %v12835_v25, %v5110_v32  ;;  %14461 = vst [vmem:[#allocation45_spill] sm:$0xff] %v12849_v51  ;;  %v12857_v32 = vadd.f32 %v12854_v4, %v5120_v2  ;;  %v5201_v5 = vsel %vm2090_vm5, %v12849_v51, -inf }
0x1105   : > { %14460 = vst [vmem:[#allocation39_spill] sm:$0xff] %v12838_v47  ;;  %v5186_v49 = vmax.f32 %v12838_v47, %v5185_v1  ;;  %14462 = vst [vmem:[#allocation47_spill] sm:$0xff] %v12857_v32  ;;  %v5194_v1 = vmax.f32 %v12857_v32, %v5193_v46  ;;  %v12865_v47 = vld [vmem:[%s14107_s3 + $0x100] sm:$0xff] }
0x1106   : > { %v12868_v17 = vadd.f32 %v12865_v47, %v5130_v21 }
0x1108   : > { %v5202_v60 = vmax.f32 %v12868_v17, %v5201_v5 }
0x1123   : > { %5187 = vmax.xlane.f32.xlu1 %v5186_v49 }
0x1127   : > { %5195 = vmax.xlane.f32.xlu1 %v5194_v1 }
0x112b   : > { %5203 = vmax.xlane.f32.xlu1 %v5202_v60 }
0x1132   : > { %v5738_v2 = vpop.f32.mrb[8].mxu0 }
0x1133   : > { %v5740_v14 = vpop.f32.mrb[9].mxu0  ;;  %v12875_v51 = vadd.f32 %v12557_v37, %v5738_v2 }
0x1134   : > { %v12872_v49 = vadd.f32 %v12549_v34, %v5740_v14  ;;  %v5742_v46 = vpop.f32.mrb[10].mxu0 }
0x1135   : > { %v5744_v32 = vpop.f32.mrb[11].mxu0  ;;  %v12884_v60 = vadd.f32 %v12576_v33, %v5742_v46 }
0x1136   : > { %14463 = vst [vmem:[#allocation8_spill] sm:$0xff] %v12872_v49  ;;  %v5825_v39 = vsel %vm2090_vm5, %v12872_v49, -inf  ;;  %v12880_v21 = vadd.f32 %v12567_v19, %v5744_v32 }
0x1137   : > { %v5826_v1 = vmax.f32 %v12875_v51, %v5825_v39 }
0x1138   : > { %v5829_v34 = vsel %vm2090_vm5, %v12880_v21, -inf }
0x1139   : > { %v5830_v14 = vmax.f32 %v12884_v60, %v5829_v34  ;;  %5827 = vmax.xlane.f32.xlu0 %v5826_v1 }
0x113a   : > { %v5748_v37 = vpop.f32.mrb[12].mxu0 }
0x113b   : > { %v5750_v5 = vpop.f32.mrb[13].mxu0  ;;  %5831 = vmax.xlane.f32.xlu1 %v5830_v14  ;;  %v12893_v19 = vadd.f32 %v12595_v58, %v5748_v37  ;;  %v12907_v14 = vpop.permute.xlu0 %6141 }
0x113c   : > { %v12890_v2 = vadd.f32 %v12587_v52, %v5750_v5  ;;  %v5752_v49 = vpop.f32.mrb[14].mxu0  ;;  %14464 = vst [vmem:[#allocation9_spill] sm:$0xff] %v12907_v14 }
0x113d   : > { %v5754_v39 = vpop.f32.mrb[15].mxu0  ;;  %v12902_v1 = vadd.f32 %v12616_v13, %v5752_v49 }
0x113e   : > { %v5833_v33 = vsel %vm2090_vm5, %v12890_v2, -inf  ;;  %v12898_v32 = vadd.f32 %v12605_v59, %v5754_v39 }
0x113f   : > { %v5834_v46 = vmax.f32 %v12893_v19, %v5833_v33 }
0x1140   : > { %v5837_v52 = vsel %vm2090_vm5, %v12898_v32, -inf }
0x1141   : > { %v5838_v34 = vmax.f32 %v12902_v1, %v5837_v52  ;;  %5835 = vmax.xlane.f32.xlu0 %v5834_v46 }
0x1142   : > { %v5758_v58 = vpop.f32.mrb[16].mxu0 }
0x1143   : > { %v5760_v37 = vpop.f32.mrb[17].mxu0  ;;  %5839 = vmax.xlane.f32.xlu1 %v5838_v34  ;;  %v12913_v39 = vadd.f32 %v12633_v20, %v5758_v58  ;;  %v12926_v34 = vpop.permute.xlu0 %6145 }
0x1144   : > { %v12910_v5 = vadd.f32 %v12625_v44, %v5760_v37  ;;  %v5762_v59 = vpop.f32.mrb[18].mxu0  ;;  %14465 = vst [vmem:[#allocation10_spill] sm:$0xff] %v12926_v34  ;;  %v12929_v37 = vpop.permute.xlu1 %6143 }
0x1145   : > { %v5764_v13 = vpop.f32.mrb[19].mxu0  ;;  %v12922_v52 = vadd.f32 %v12652_v38, %v5762_v59  ;;  %14466 = vst [vmem:[#allocation11_spill] sm:$0xff] %v12929_v37 }
0x1146   : > { %v5841_v49 = vsel %vm2090_vm5, %v12910_v5, -inf  ;;  %v12918_v33 = vadd.f32 %v12643_v55, %v5764_v13 }
0x1147   : > { %v5842_v46 = vmax.f32 %v12913_v39, %v5841_v49 }
0x1148   : > { %v5845_v44 = vsel %vm2090_vm5, %v12918_v33, -inf }
0x1149   : > { %v5846_v20 = vmax.f32 %v12922_v52, %v5845_v44  ;;  %5843 = vmax.xlane.f32.xlu0 %v5842_v46  ;;  %v12942_v46 = vpop.permute.xlu0 %6149 }
0x114a   : > { %v5768_v58 = vpop.f32.mrb[20].mxu0  ;;  %14469 = vst [vmem:[#allocation14_spill] sm:$0xff] %v12942_v46 }
0x114b   : > { %v5770_v14 = vpop.f32.mrb[21].mxu0  ;;  %5847 = vmax.xlane.f32.xlu1 %v5846_v20  ;;  %v12935_v38 = vadd.f32 %v12671_v62, %v5768_v58 }
0x114c   : > { %v12932_v55 = vadd.f32 %v12663_v43, %v5770_v14  ;;  %v5772_v13 = vpop.f32.mrb[22].mxu0  ;;  %v12950_v14 = vpop.permute.xlu1 %6147 }
0x114d   : > { %14468 = vst [vmem:[#allocation13_spill] sm:$0xff] %v12935_v38  ;;  %v5774_v59 = vpop.f32.mrb[23].mxu0  ;;  %v12946_v20 = vadd.f32 %v12690_v6, %v5772_v13  ;;  %14470 = vst [vmem:[#allocation15_spill] sm:$0xff] %v12950_v14 }
0x114e   : > { %14467 = vst [vmem:[#allocation12_spill] sm:$0xff] %v12932_v55  ;;  %v5849_v49 = vsel %vm2090_vm5, %v12932_v55, -inf  ;;  %v12940_v34 = vadd.f32 %v12681_v16, %v5774_v59 }
0x114f   : > { %v5850_v44 = vmax.f32 %v12935_v38, %v5849_v49 }
0x1150   : > { %v5853_v43 = vsel %vm2090_vm5, %v12940_v34, -inf }
0x1151   : > { %v5854_v62 = vmax.f32 %v12946_v20, %v5853_v43  ;;  %5851 = vmax.xlane.f32.xlu0 %v5850_v44 }
0x1152   : > { %v5778_v58 = vpop.f32.mrb[24].mxu0 }
0x1153   : > { %v5780_v37 = vpop.f32.mrb[25].mxu0  ;;  %v5140_v55 = vpop.xlane.xlu0 %5139  ;;  %5855 = vmax.xlane.f32.xlu1 %v5854_v62  ;;  %v12959_v49 = vadd.f32 %v12709_v3, %v5778_v58 }
0x1154   : > { %v12954_v16 = vadd.f32 %v12701_v54, %v5780_v37  ;;  %v5205_v59 = vsub.f32 %v12560_v42, %v5140_v55  ;;  %v5206_v6 = vsub.f32 %v12552_v15, %v5140_v55  ;;  %v5782_v13 = vpop.f32.mrb[26].mxu0 }
0x1155   : > { %v5784_v46 = vpop.f32.mrb[27].mxu0  ;;  %v5144_v14 = vpop.xlane.xlu1 %5143  ;;  %v12968_v42 = vadd.f32 %v12728_v10, %v5782_v13 }
0x1156   : > { %v5857_v44 = vsel %vm2090_vm5, %v12954_v16, -inf  ;;  %v5239_v43 = vmul.f32 1.442695, %v5205_v59  ;;  %v5241_v38 = vmul.f32 1.442695, %v5206_v6  ;;  %v12964_v62 = vadd.f32 %v12719_v28, %v5784_v46 }
0x1157   : > { %v5858_v54 = vmax.f32 %v12959_v49, %v5857_v44  ;;  %v5207_v15 = vsub.f32 %v12579_v45, %v5144_v14  ;;  %v5208_v3 = vsub.f32 %v12570_v24, %v5144_v14 }
0x1158   : > { %v5861_v37 = vsel %vm2090_vm5, %v12964_v62, -inf  ;;  %8913 = vpow2.f32 %v5241_v38 }
0x1159   : > { %v5862_v55 = vmax.f32 %v12968_v42, %v5861_v37  ;;  %v5243_v58 = vmul.f32 1.442695, %v5207_v15  ;;  %v5245_v59 = vmul.f32 1.442695, %v5208_v3  ;;  %5859 = vmax.xlane.f32.xlu0 %v5858_v54  ;;  %8915 = vpow2.f32 %v5239_v43 }
0x115a   : > { %v5788_v28 = vpop.f32.mrb[28].mxu0 }
0x115b   : > { %v5790_v46 = vpop.f32.mrb[29].mxu0  ;;  %v5148_v6 = vpop.xlane.xlu0 %5147  ;;  %5863 = vmax.xlane.f32.xlu1 %v5862_v55  ;;  %8917 = vpow2.f32 %v5245_v59  ;;  %v12981_v38 = vadd.f32 %v12747_v56, %v5788_v28 }
0x115c   : > { %v12976_v10 = vadd.f32 %v12739_v26, %v5790_v46  ;;  %v5209_v24 = vsub.f32 %v12598_v12, %v5148_v6  ;;  %v5210_v45 = vsub.f32 %v12590_v63, %v5148_v6  ;;  %v5792_v14 = vpop.f32.mrb[30].mxu0  ;;  %8919 = vpow2.f32 %v5243_v58 }
0x115d   : > { %v5794_v13 = vpop.f32.mrb[31].mxu0  ;;  %v12990_v12 = vadd.f32 %v12766_v8, %v5792_v14 }
0x115e   : > { %v5865_v44 = vsel %vm2090_vm5, %v12976_v10, -inf  ;;  %v5247_v43 = vmul.f32 1.442695, %v5209_v24  ;;  %v5249_v54 = vmul.f32 1.442695, %v5210_v45  ;;  %v12986_v15 = vadd.f32 %v12757_v61, %v5794_v13 }
0x115f   : > { %v5866_v26 = vmax.f32 %v12981_v38, %v5865_v44  ;;  %v5152_v63 = vpop.xlane.xlu0 %5151 }
0x1160   : > { %v5869_v3 = vsel %vm2090_vm5, %v12986_v15, -inf  ;;  %v5211_v56 = vsub.f32 %v12619_v18, %v5152_v63  ;;  %v5212_v37 = vsub.f32 %v12608_v48, %v5152_v63  ;;  %8921 = vpow2.f32 %v5249_v54 }
0x1161   : > { %v5870_v55 = vmax.f32 %v12990_v12, %v5869_v3  ;;  %5867 = vmax.xlane.f32.xlu0 %v5866_v26  ;;  %8923 = vpow2.f32 %v5247_v43 }
0x1162   : > { %v5251_v61 = vmul.f32 1.442695, %v5211_v56  ;;  %v5253_v58 = vmul.f32 1.442695, %v5212_v37  ;;  %v5798_v59 = vpop.f32.mrb[32].mxu0  ;;  %v12997_v28 = vpop.eup %8913 }
0x1163   : > { %v5800_v8 = vpop.f32.mrb[33].mxu0  ;;  %v5156_v46 = vpop.xlane.xlu1 %5155  ;;  %5871 = vmax.xlane.f32.xlu1 %v5870_v55  ;;  %v5307_v44 = vsel %vm2090_vm5, %v12997_v28, 0.0 }
0x1164   : > { %v12999_v6 = vpop.eup %8915  ;;  %8925 = vpow2.f32 %v5251_v61  ;;  %v13002_v18 = vadd.f32 %v12817_v9, %v5800_v8  ;;  %v5213_v48 = vsub.f32 %v12636_v22, %v5156_v46  ;;  %v5214_v24 = vsub.f32 %v12628_v57, %v5156_v46  ;;  %v5802_v45 = vpop.f32.mrb[34].mxu0 }
0x1165   : > { %8927 = vpow2.f32 %v5253_v58  ;;  %v5804_v14 = vpop.f32.mrb[35].mxu0  ;;  %v5160_v13 = vpop.xlane.xlu0 %5159  ;;  %v13018_v57 = vadd.f32 %v12835_v25, %v5798_v59  ;;  %v5308_v37 = vadd.f32 %v12999_v6, %v5307_v44  ;;  %v13024_v55 = vadd.f32 %v12785_v41, %v5802_v45 }
0x1166   : > { %v13008_v43 = vpop.eup %8917  ;;  %v5873_v54 = vsel %vm2090_vm5, %v13002_v18, -inf  ;;  %v5255_v26 = vmul.f32 1.442695, %v5213_v48  ;;  %v5257_v63 = vmul.f32 1.442695, %v5214_v24  ;;  %v13013_v9 = vadd.f32 %v12777_v23, %v5804_v14 }
0x1167   : > { %v13015_v22 = vpop.eup %8919  ;;  %v5215_v3 = vsub.f32 %v12655_v53, %v5160_v13  ;;  %v5216_v56 = vsub.f32 %v12646_v35, %v5160_v13  ;;  %v5311_v23 = vsel %vm2090_vm5, %v13008_v43, 0.0  ;;  %v5874_v58 = vmax.f32 %v13018_v57, %v5873_v54  ;;  %5309 = vadd.xlane.f32.xlu0 %v5308_v37 }
0x1168   : > { %v5877_v61 = vsel %vm2090_vm5, %v13013_v9, -inf  ;;  %8929 = vpow2.f32 %v5257_v63  ;;  %v5312_v35 = vadd.f32 %v13015_v22, %v5311_v23 }
0x1169   : > { %v5259_v25 = vmul.f32 1.442695, %v5215_v3  ;;  %v5261_v59 = vmul.f32 1.442695, %v5216_v56  ;;  %8931 = vpow2.f32 %v5255_v26  ;;  %v5878_v41 = vmax.f32 %v13024_v55, %v5877_v61 }
0x116a   : > { %v5808_v53 = vpop.f32.mrb[36].mxu0  ;;  %v13032_v8 = vpop.eup %8921  ;;  %5313 = vadd.xlane.f32.xlu1 %v5312_v35 }
0x116b   : > { %v5810_v46 = vpop.f32.mrb[37].mxu0  ;;  %v5164_v48 = vpop.xlane.xlu1 %5163  ;;  %8933 = vpow2.f32 %v5261_v59  ;;  %5875 = vmax.xlane.f32.xlu0 %v5874_v58  ;;  %v5315_v63 = vsel %vm2090_vm5, %v13032_v8, 0.0 }
0x116c   : > { %v13035_v24 = vpop.eup %8923  ;;  %v13038_v45 = vadd.f32 %v12827_v27, %v5810_v46  ;;  %v5217_v14 = vsub.f32 %v12674_v7, %v5164_v48  ;;  %v5218_v13 = vsub.f32 %v12666_v0, %v5164_v48  ;;  %v5812_v44 = vpop.f32.mrb[38].mxu0  ;;  %8935 = vpow2.f32 %v5259_v25 }
0x116d   : > { %v5814_v54 = vpop.f32.mrb[39].mxu0  ;;  %v5168_v26 = vpop.xlane.xlu0 %5167  ;;  %v13054_v0 = vadd.f32 %v12854_v4, %v5808_v53  ;;  %v5316_v25 = vadd.f32 %v13035_v24, %v5315_v63  ;;  %v13068_v48 = vadd.f32 %v12804_v29, %v5812_v44 }
0x116e   : > { %v13044_v3 = vpop.eup %8925  ;;  %v5881_v56 = vsel %vm2090_vm5, %v13038_v45, -inf  ;;  %v5263_v37 = vmul.f32 1.442695, %v5217_v14  ;;  %v5265_v27 = vmul.f32 1.442695, %v5218_v13  ;;  %v13049_v61 = vadd.f32 %v12796_v50, %v5814_v54  ;;  %5879 = vmax.xlane.f32.xlu1 %v5878_v41 }
0x116f   : > { %v13051_v7 = vpop.eup %8927  ;;  %v5219_v23 = vsub.f32 %v12693_v11, %v5168_v26  ;;  %v5220_v58 = vsub.f32 %v12684_v31, %v5168_v26  ;;  %v5882_v35 = vmax.f32 %v13054_v0, %v5881_v56  ;;  %5317 = vadd.xlane.f32.xlu0 %v5316_v25  ;;  %14472 = vst [vmem:[#allocation17_spill] sm:$0xff] %v13068_v48 }
0x1170   : > { %14471 = vst [vmem:[#allocation16_spill] sm:$0xff] %v13049_v61  ;;  %8937 = vpow2.f32 %v5263_v37  ;;  %v5319_v59 = vsel %vm2090_vm5, %v13051_v7, 0.0  ;;  %v5885_v4 = vsel %vm2090_vm5, %v13049_v61, -inf }
0x1171   : > { %8939 = vpow2.f32 %v5265_v27  ;;  %v5267_v50 = vmul.f32 1.442695, %v5219_v23  ;;  %v5269_v46 = vmul.f32 1.442695, %v5220_v58  ;;  %v5320_v11 = vadd.f32 %v13044_v3, %v5319_v59  ;;  %v14474_v59 = vld [vmem:[#allocation36_spill] sm:$0xff] }
0x1172   : > { %v5818_v53 = vpop.f32.mrb[40].mxu0  ;;  %v13065_v31 = vpop.eup %8929  ;;  %v5886_v37 = vmax.f32 %v13068_v48, %v5885_v4 }
0x1173   : > { %8941 = vpow2.f32 %v5267_v50  ;;  %v5820_v41 = vpop.f32.mrb[41].mxu0  ;;  %v5172_v14 = vpop.xlane.xlu1 %5171  ;;  %5321 = vadd.xlane.f32.xlu1 %v5320_v11  ;;  %5883 = vmax.xlane.f32.xlu0 %v5882_v35  ;;  %v5323_v27 = vsel %vm2090_vm5, %v13065_v31, 0.0  ;;  %v14476_v35 = vld [vmem:[#allocation31_spill] sm:$0xff] }
0x1174   : > { %v13070_v13 = vpop.eup %8931  ;;  %8943 = vpow2.f32 %v5269_v46  ;;  %v13073_v54 = vadd.f32 %v12846_v40, %v5820_v41  ;;  %v5221_v26 = vsub.f32 %v12712_v36, %v5172_v14  ;;  %v5222_v63 = vsub.f32 %v12704_v30, %v5172_v14  ;;  %v5822_v56 = vpop.f32.mrb[42].mxu0 }
0x1175   : > { %v5823_v29 = vpop.f32.mrb[43].mxu0  ;;  %v5176_v44 = vpop.xlane.xlu0 %5175  ;;  %v13088_v30 = vadd.f32 %v12865_v47, %v5818_v53  ;;  %v5324_v4 = vadd.f32 %v13070_v13, %v5323_v27  ;;  %v14479_v27 = vld [vmem:[#allocation32_spill] sm:$0xff] }
0x1176   : > { %14473 = vst [vmem:[#allocation19_spill] sm:$0xff] %v13073_v54  ;;  %v13080_v23 = vpop.eup %8933  ;;  %v5889_v58 = vsel %vm2090_vm5, %v13073_v54, -inf  ;;  %v5271_v40 = vmul.f32 1.442695, %v5221_v26  ;;  %v5273_v25 = vmul.f32 1.442695, %v5222_v63  ;;  %v5223_v36 = vsub.f32 %v14474_v59, %v5176_v44 }
0x1177   : > { %v13085_v50 = vpop.eup %8935  ;;  %14475 = vst [vmem:[#allocation18_spill] sm:$0xff] %v13088_v30  ;;  %v5224_v46 = vsub.f32 %v14476_v35, %v5176_v44  ;;  %v5327_v11 = vsel %vm2090_vm5, %v13080_v23, 0.0  ;;  %5887 = vmax.xlane.f32.xlu1 %v5886_v37  ;;  %v5890_v14 = vmax.f32 %v13088_v30, %v5889_v58  ;;  %5325 = vadd.xlane.f32.xlu0 %v5324_v4  ;;  %v14478_v29 = vld [vmem:[#allocation34_spill] sm:$0xff]  ;;  %v14480_v4 = vld [vmem:[#allocation35_spill] sm:$0xff] }
0x1178   : > { %8945 = vpow2.f32 %v5271_v40  ;;  %v5275_v41 = vmul.f32 1.442695, %v5223_v36  ;;  %v5328_v47 = vadd.f32 %v13085_v50, %v5327_v11  ;;  %v14498_v54 = vld [vmem:[#allocation42_spill] sm:$0xff] }
0x1179   : > { %8947 = vpow2.f32 %v5273_v25  ;;  %v5277_v26 = vmul.f32 1.442695, %v5224_v46 }
0x117a   : > { %v13095_v63 = vpop.eup %8937  ;;  %8949 = vpow2.f32 %v5275_v41  ;;  %v14481_v41 = vld [vmem:[#allocation33_spill] sm:$0xff] }
0x117b   : > { %14477 = vst [vmem:[#allocation20_spill] sm:$0xff] %v13095_v63  ;;  %v13098_v53 = vpop.eup %8939  ;;  %8951 = vpow2.f32 %v5277_v26  ;;  %v5180_v56 = vpop.xlane.xlu1 %5179  ;;  %5329 = vadd.xlane.f32.xlu1 %v5328_v47  ;;  %5891 = vmax.xlane.f32.xlu0 %v5890_v14 }
0x117c   : > { %v5225_v44 = vsub.f32 %v14478_v29, %v5180_v56  ;;  %v5226_v40 = vsub.f32 %v14479_v27, %v5180_v56  ;;  %v5331_v37 = vsel %vm2090_vm5, %v13098_v53, 0.0 }
0x117d   : > { %v13104_v58 = vpop.eup %8941  ;;  %v5184_v25 = vpop.xlane.xlu0 %5183  ;;  %v5332_v59 = vadd.f32 %v13095_v63, %v5331_v37 }
0x117e   : > { %v13107_v36 = vpop.eup %8943  ;;  %v5279_v35 = vmul.f32 1.442695, %v5225_v44  ;;  %v5281_v46 = vmul.f32 1.442695, %v5226_v40  ;;  %v5227_v11 = vsub.f32 %v14480_v4, %v5184_v25  ;;  %v5228_v26 = vsub.f32 %v14481_v41, %v5184_v25 }
0x117f   : > { %v5335_v47 = vsel %vm2090_vm5, %v13107_v36, 0.0  ;;  %5333 = vadd.xlane.f32.xlu0 %v5332_v59  ;;  %v14487_v59 = vld [vmem:[#allocation40_spill] sm:$0xff] }
0x1180   : > { %8953 = vpow2.f32 %v5279_v35  ;;  %v5283_v56 = vmul.f32 1.442695, %v5227_v11  ;;  %v5285_v29 = vmul.f32 1.442695, %v5228_v26  ;;  %v5336_v27 = vadd.f32 %v13104_v58, %v5335_v47  ;;  %v14486_v11 = vld [vmem:[#allocation38_spill] sm:$0xff] }
0x1181   : > { %8955 = vpow2.f32 %v5281_v46 }
0x1182   : > { %v13114_v14 = vpop.eup %8945  ;;  %8957 = vpow2.f32 %v5283_v56  ;;  %5337 = vadd.xlane.f32.xlu1 %v5336_v27 }
0x1183   : > { %14482 = vst [vmem:[#allocation21_spill] sm:$0xff] %v13114_v14  ;;  %v13116_v44 = vpop.eup %8947  ;;  %8959 = vpow2.f32 %v5285_v29 }
0x1184   : > { %14483 = vst [vmem:[#allocation22_spill] sm:$0xff] %v13116_v44  ;;  %v13118_v40 = vpop.eup %8949  ;;  %v5339_v37 = vsel %vm2090_vm5, %v13116_v44, 0.0  ;;  %v14500_v44 = vld [vmem:[#allocation41_spill] sm:$0xff] }
0x1185   : > { %14484 = vst [vmem:[#allocation23_spill] sm:$0xff] %v13118_v40  ;;  %v13122_v25 = vpop.eup %8951  ;;  %v5192_v35 = vpop.xlane.xlu0 %5191  ;;  %v5340_v4 = vadd.f32 %v13114_v14, %v5339_v37  ;;  %v14497_v14 = vld [vmem:[#allocation39_spill] sm:$0xff] }
0x1186   : > { %14485 = vst [vmem:[#allocation24_spill] sm:$0xff] %v13122_v25  ;;  %v5231_v46 = vsub.f32 %v14486_v11, %v5192_v35  ;;  %v5232_v41 = vsub.f32 %v14487_v59, %v5192_v35  ;;  %v5343_v26 = vsel %vm2090_vm5, %v13122_v25, 0.0 }
0x1187   : > { %5341 = vadd.xlane.f32.xlu0 %v5340_v4  ;;  %v5344_v47 = vadd.f32 %v13118_v40, %v5343_v26 }
0x1188   : > { %v5291_v56 = vmul.f32 1.442695, %v5231_v46  ;;  %v5293_v29 = vmul.f32 1.442695, %v5232_v41 }
0x1189   : > { %5345 = vadd.xlane.f32.xlu1 %v5344_v47 }
0x118a   : > { %v13130_v27 = vpop.eup %8953  ;;  %8961 = vpow2.f32 %v5291_v56 }
0x118b   : > { %14488 = vst [vmem:[#allocation3_spill] sm:$0xff] %v13130_v27  ;;  %v13132_v30 = vpop.eup %8955  ;;  %8963 = vpow2.f32 %v5293_v29  ;;  %v14494_v29 = vld [vmem:[#allocation55_spill] sm:$0xff] }
0x118c   : > { %14489 = vst [vmem:[#allocation4_spill] sm:$0xff] %v13132_v30  ;;  %v13134_v37 = vpop.eup %8957  ;;  %v5347_v35 = vsel %vm2090_vm5, %v13132_v30, 0.0 }
0x118d   : > { %14490 = vst [vmem:[#allocation36_spill] sm:$0xff] %v13134_v37  ;;  %v13138_v11 = vpop.eup %8959  ;;  %v5348_v4 = vadd.f32 %v13130_v27, %v5347_v35  ;;  %v5200_v35 = vpop.xlane.xlu0 %5199 }
0x118e   : > { %14491 = vst [vmem:[#allocation31_spill] sm:$0xff] %v13138_v11  ;;  %v5351_v46 = vsel %vm2090_vm5, %v13138_v11, 0.0  ;;  %v13153_v27 = vpop.permute.xlu1 %6151 }
0x118f   : > { %5349 = vadd.xlane.f32.xlu0 %v5348_v4  ;;  %v5352_v59 = vadd.f32 %v13134_v37, %v5351_v46  ;;  %v14495_v4 = vld [vmem:[#allocation37_spill] sm:$0xff]  ;;  %v14496_v46 = vld [vmem:[#allocation43_spill] sm:$0xff] }
0x1190   : > { %v5236_v11 = vsub.f32 %v14495_v4, %v5200_v35 }
0x1191   : > { %5353 = vadd.xlane.f32.xlu1 %v5352_v59  ;;  %v5235_v59 = vsub.f32 %v14496_v46, %v5200_v35  ;;  %v14501_v35 = vld [vmem:[#allocation45_spill] sm:$0xff] }
0x1192   : > { %v5301_v37 = vmul.f32 1.442695, %v5236_v11 }
0x1194   : > { %v13144_v41 = vpop.eup %8961  ;;  %8965 = vpow2.f32 %v5301_v37 }
0x1195   : > { %14492 = vst [vmem:[#allocation34_spill] sm:$0xff] %v13144_v41  ;;  %v13146_v26 = vpop.eup %8963 }
0x1196   : > { %14493 = vst [vmem:[#allocation32_spill] sm:$0xff] %v13146_v26  ;;  %v5359_v47 = vsel %vm2090_vm5, %v13146_v26, 0.0 }
0x1197   : > { %v5360_v56 = vadd.f32 %v13144_v41, %v5359_v47  ;;  %v5299_v47 = vmul.f32 1.442695, %v5235_v59 }
0x1199   : > { %5361 = vadd.xlane.f32.xlu1 %v5360_v56 }
0x11a5   : > { %6153 = vrot.lane.b32.xlu0 %v14494_v29, %s9237_s14  ;;  %v14499_v29 = vld [vmem:[#allocation47_spill] sm:$0xff] }
0x11b0   : > { %v5188_v30 = vpop.xlane.xlu1 %5187 }
0x11b1   : > { %v5229_v40 = vsub.f32 %v14497_v14, %v5188_v30  ;;  %v5230_v48 = vsub.f32 %v14498_v54, %v5188_v30 }
0x11b3   : > { %v5287_v26 = vmul.f32 1.442695, %v5229_v40  ;;  %v5289_v25 = vmul.f32 1.442695, %v5230_v48  ;;  %v13163_v40 = vpop.eup %8965 }
0x11b4   : > { %v5196_v56 = vpop.xlane.xlu1 %5195 }
0x11b5   : > { %8967 = vpow2.f32 %v5287_v26  ;;  %v5233_v41 = vsub.f32 %v14499_v29, %v5196_v56  ;;  %v5234_v61 = vsub.f32 %v14500_v44, %v5196_v56 }
0x11b6   : > { %8969 = vpow2.f32 %v5289_v25 }
0x11b7   : > { %v5295_v4 = vmul.f32 1.442695, %v5233_v41  ;;  %v5297_v63 = vmul.f32 1.442695, %v5234_v61  ;;  %8971 = vpow2.f32 %v5299_v47 }
0x11b8   : > { %v5204_v11 = vpop.xlane.xlu1 %5203 }
0x11b9   : > { %8973 = vpow2.f32 %v5295_v4  ;;  %v5237_v14 = vsub.f32 %v12868_v17, %v5204_v11  ;;  %v5238_v54 = vsub.f32 %v14501_v35, %v5204_v11  ;;  %v14503_v11 = vld [vmem:[#allocation8_spill] sm:$0xff] }
0x11ba   : > { %8975 = vpow2.f32 %v5297_v63  ;;  %v5367_v63 = vsel %vm2090_vm5, %v13163_v40, 0.0 }
0x11bb   : > { %v5303_v48 = vmul.f32 1.442695, %v5237_v14  ;;  %v5305_v30 = vmul.f32 1.442695, %v5238_v54 }
0x11bd   : > { %8977 = vpow2.f32 %v5303_v48 }
0x11be   : > { %8979 = vpow2.f32 %v5305_v30 }
0x11bf   : > { %v13165_v37 = vpop.eup %8967 }
0x11c0   : > { %v13167_v44 = vpop.eup %8969 }
0x11c1   : > { %v5355_v61 = vsel %vm2090_vm5, %v13167_v44, 0.0  ;;  %v13171_v25 = vpop.eup %8971 }
0x11c2   : > { %14502 = vst [vmem:[#allocation35_spill] sm:$0xff] %v13171_v25  ;;  %v5356_v17 = vadd.f32 %v13165_v37, %v5355_v61  ;;  %v5368_v56 = vadd.f32 %v13171_v25, %v5367_v63 }
0x11c3   : > { %v13174_v41 = vpop.eup %8973 }
0x11c4   : > { %v13178_v26 = vpop.eup %8975  ;;  %5357 = vadd.xlane.f32.xlu0 %v5356_v17 }
0x11c5   : > { %v5363_v46 = vsel %vm2090_vm5, %v13178_v26, 0.0 }
0x11c6   : > { %v5828_v59 = vpop.xlane.xlu0 %5827  ;;  %v5364_v47 = vadd.f32 %v13174_v41, %v5363_v46 }
0x11c7   : > { %v13184_v29 = vpop.eup %8977  ;;  %v5893_v4 = vsub.f32 %v12875_v51, %v5828_v59  ;;  %v5894_v14 = vsub.f32 %v14503_v11, %v5828_v59 }
0x11c8   : > { %v13188_v35 = vpop.eup %8979  ;;  %5365 = vadd.xlane.f32.xlu1 %v5364_v47  ;;  %5369 = vadd.xlane.f32.xlu0 %v5368_v56  ;;  %v5832_v54 = vpop.xlane.xlu1 %5831 }
0x11c9   : > { %v5927_v48 = vmul.f32 1.442695, %v5893_v4  ;;  %v5929_v30 = vmul.f32 1.442695, %v5894_v14  ;;  %v5895_v61 = vsub.f32 %v12884_v60, %v5832_v54  ;;  %v5896_v17 = vsub.f32 %v12880_v21, %v5832_v54 }
0x11ca   : > { %v5371_v63 = vsel %vm2090_vm5, %v13188_v35, 0.0 }
0x11cb   : > { %8981 = vpow2.f32 %v5927_v48  ;;  %v5931_v46 = vmul.f32 1.442695, %v5895_v61  ;;  %v5933_v25 = vmul.f32 1.442695, %v5896_v17  ;;  %v5372_v51 = vadd.f32 %v13184_v29, %v5371_v63 }
0x11cc   : > { %8983 = vpow2.f32 %v5929_v30 }
0x11cd   : > { %8985 = vpow2.f32 %v5931_v46  ;;  %5373 = vadd.xlane.f32.xlu1 %v5372_v51 }
0x11ce   : > { %8987 = vpow2.f32 %v5933_v25  ;;  %v5836_v59 = vpop.xlane.xlu0 %5835 }
0x11cf   : > { %v5897_v47 = vsub.f32 %v12893_v19, %v5836_v59  ;;  %v5898_v56 = vsub.f32 %v12890_v2, %v5836_v59 }
0x11d0   : > { %v5840_v60 = vpop.xlane.xlu1 %5839 }
0x11d1   : > { %v5935_v4 = vmul.f32 1.442695, %v5897_v47  ;;  %v5937_v21 = vmul.f32 1.442695, %v5898_v56  ;;  %v5899_v11 = vsub.f32 %v12902_v1, %v5840_v60  ;;  %v5900_v14 = vsub.f32 %v12898_v32, %v5840_v60 }
0x11d3   : > { %8989 = vpow2.f32 %v5935_v4  ;;  %v5939_v54 = vmul.f32 1.442695, %v5899_v11  ;;  %v5941_v48 = vmul.f32 1.442695, %v5900_v14 }
0x11d4   : > { %8991 = vpow2.f32 %v5937_v21 }
0x11d5   : > { %v13199_v30 = vpop.eup %8981  ;;  %8993 = vpow2.f32 %v5939_v54 }
0x11d6   : > { %14504 = vst [vmem:[#allocation33_spill] sm:$0xff] %v13199_v30  ;;  %v13201_v25 = vpop.eup %8983  ;;  %8995 = vpow2.f32 %v5941_v48  ;;  %v5844_v19 = vpop.xlane.xlu0 %5843 }
0x11d7   : > { %v13203_v61 = vpop.eup %8985  ;;  %v5901_v2 = vsub.f32 %v12913_v39, %v5844_v19  ;;  %v5902_v17 = vsub.f32 %v12910_v5, %v5844_v19  ;;  %v5995_v32 = vsel %vm2090_vm5, %v13201_v25, 0.0 }
0x11d8   : > { %14505 = vst [vmem:[#allocation38_spill] sm:$0xff] %v13203_v61  ;;  %v13209_v1 = vpop.eup %8987  ;;  %v5848_v63 = vpop.xlane.xlu1 %5847  ;;  %v5996_v46 = vadd.f32 %v13199_v30, %v5995_v32 }
0x11d9   : > { %v5943_v51 = vmul.f32 1.442695, %v5901_v2  ;;  %v5945_v59 = vmul.f32 1.442695, %v5902_v17  ;;  %v5903_v47 = vsub.f32 %v12922_v52, %v5848_v63  ;;  %v5904_v56 = vsub.f32 %v12918_v33, %v5848_v63 }
0x11da   : > { %5997 = vadd.xlane.f32.xlu1 %v5996_v46  ;;  %v5999_v39 = vsel %vm2090_vm5, %v13209_v1, 0.0 }
0x11db   : > { %8997 = vpow2.f32 %v5943_v51  ;;  %v5947_v5 = vmul.f32 1.442695, %v5903_v47  ;;  %v5949_v60 = vmul.f32 1.442695, %v5904_v56  ;;  %v6000_v4 = vadd.f32 %v13203_v61, %v5999_v39 }
0x11dc   : > { %8999 = vpow2.f32 %v5945_v59 }
0x11dd   : > { %v13217_v21 = vpop.eup %8989  ;;  %9001 = vpow2.f32 %v5947_v5  ;;  %6001 = vadd.xlane.f32.xlu0 %v6000_v4 }
0x11de   : > { %14506 = vst [vmem:[#allocation40_spill] sm:$0xff] %v13217_v21  ;;  %v13219_v11 = vpop.eup %8991  ;;  %9003 = vpow2.f32 %v5949_v60  ;;  %v5852_v56 = vpop.xlane.xlu0 %5851 }
0x11df   : > { %14507 = vst [vmem:[#allocation55_spill] sm:$0xff] %v13219_v11  ;;  %v13221_v52 = vpop.eup %8993  ;;  %v6003_v33 = vsel %vm2090_vm5, %v13219_v11, 0.0 }
0x11e0   : > { %14508 = vst [vmem:[#allocation37_spill] sm:$0xff] %v13221_v52  ;;  %v13225_v14 = vpop.eup %8995  ;;  %v5856_v54 = vpop.xlane.xlu1 %5855  ;;  %v6004_v48 = vadd.f32 %v13217_v21, %v6003_v33 }
0x11e1   : > { %14509 = vst [vmem:[#allocation43_spill] sm:$0xff] %v13225_v14  ;;  %v5907_v19 = vsub.f32 %v12946_v20, %v5856_v54  ;;  %v5908_v2 = vsub.f32 %v12940_v34, %v5856_v54  ;;  %v6007_v17 = vsel %vm2090_vm5, %v13225_v14, 0.0 }
0x11e2   : > { %6005 = vadd.xlane.f32.xlu1 %v6004_v48  ;;  %v6008_v46 = vadd.f32 %v13221_v52, %v6007_v17 }
0x11e3   : > { %v5955_v32 = vmul.f32 1.442695, %v5907_v19  ;;  %v5957_v63 = vmul.f32 1.442695, %v5908_v2 }
0x11e4   : > { %6009 = vadd.xlane.f32.xlu0 %v6008_v46 }
0x11e5   : > { %v13233_v51 = vpop.eup %8997  ;;  %9005 = vpow2.f32 %v5955_v32 }
0x11e6   : > { %14510 = vst [vmem:[#allocation39_spill] sm:$0xff] %v13233_v51  ;;  %v13235_v59 = vpop.eup %8999  ;;  %9007 = vpow2.f32 %v5957_v63  ;;  %v5860_v4 = vpop.xlane.xlu0 %5859 }
0x11e7   : > { %14511 = vst [vmem:[#allocation42_spill] sm:$0xff] %v13235_v59  ;;  %v13237_v47 = vpop.eup %9001  ;;  %v6011_v34 = vsel %vm2090_vm5, %v13235_v59, 0.0  ;;  %v14517_v59 = vld [vmem:[#allocation12_spill] sm:$0xff]  ;;  %v5909_v61 = vsub.f32 %v12959_v49, %v5860_v4 }
0x11e8   : > { %14512 = vst [vmem:[#allocation47_spill] sm:$0xff] %v13237_v47  ;;  %v13241_v20 = vpop.eup %9003  ;;  %v6012_v39 = vadd.f32 %v13233_v51, %v6011_v34  ;;  %v5864_v54 = vpop.xlane.xlu1 %5863 }
0x11e9   : > { %14513 = vst [vmem:[#allocation41_spill] sm:$0xff] %v13241_v20  ;;  %v6015_v5 = vsel %vm2090_vm5, %v13241_v20, 0.0  ;;  %v5912_v49 = vsub.f32 %v12964_v62, %v5864_v54 }
0x11ea   : > { %6013 = vadd.xlane.f32.xlu1 %v6012_v39  ;;  %v6016_v60 = vadd.f32 %v13237_v47, %v6015_v5  ;;  %v14516_v39 = vld [vmem:[#allocation61_spill] sm:$0xff] }
0x11eb   : > { %v5965_v62 = vmul.f32 1.442695, %v5912_v49 }
0x11ec   : > { %6017 = vadd.xlane.f32.xlu0 %v6016_v60 }
0x11ee   : > { %v13251_v19 = vpop.xlane.xlu0 %5867 }
0x11ef   : > { %v13247_v33 = vpop.eup %9005 }
0x11f0   : > { %14514 = vst [vmem:[#allocation45_spill] sm:$0xff] %v13247_v33  ;;  %v13249_v48 = vpop.eup %9007  ;;  %v13255_v17 = vpop.xlane.xlu1 %5871 }
0x11f1   : > { %14515 = vst [vmem:[#allocation8_spill] sm:$0xff] %v13249_v48  ;;  %v6023_v2 = vsel %vm2090_vm5, %v13249_v48, 0.0 }
0x11f2   : > { %v6024_v32 = vadd.f32 %v13247_v33, %v6023_v2  ;;  %v5906_v2 = vsub.f32 %v14517_v59, %v5852_v56  ;;  %v14518_v33 = vld [vmem:[#allocation13_spill] sm:$0xff] }
0x11f4   : > { %6025 = vadd.xlane.f32.xlu0 %v6024_v32  ;;  %v5310_v63 = vpop.xlane.xlu0 %5309  ;;  %v5953_v30 = vmul.f32 1.442695, %v5906_v2 }
0x11f5   : > { %9009 = vrcp.f32 %v5310_v63  ;;  %v5905_v63 = vsub.f32 %v14518_v33, %v5852_v56 }
0x11f7   : > { %v5314_v46 = vpop.xlane.xlu1 %5313  ;;  %v5951_v56 = vmul.f32 1.442695, %v5905_v63  ;;  %v5914_v63 = vsub.f32 %v12976_v10, %v13251_v19  ;;  %v5916_v10 = vsub.f32 %v12986_v15, %v13255_v17  ;;  %v14524_v15 = vld [vmem:[#allocation15_spill] sm:$0xff] }
0x11f8   : > { %9011 = vrcp.f32 %v5314_v46  ;;  %v13258_v34 = vpop.xlane.xlu0 %5875 }
0x11f9   : > { %v5973_v49 = vmul.f32 1.442695, %v5916_v10  ;;  %v14527_v10 = vld [vmem:[#allocation16_spill] sm:$0xff] }
0x11fb   : > { %6155 = vrot.lane.b32.xlu1 %v14516_v39, %s9237_s14  ;;  %v13262_v5 = vpop.xlane.xlu1 %5879 }
0x11fc   : > { %v5318_v60 = vpop.xlane.xlu0 %5317 }
0x11fd   : > { %9013 = vrcp.f32 %v5318_v60  ;;  %v5910_v60 = vsub.f32 %v12954_v16, %v5860_v4  ;;  %v14520_v16 = vld [vmem:[#allocation56_spill] sm:$0xff]  ;;  %v14522_v4 = vld [vmem:[#allocation11_spill] sm:$0xff] }
0x11ff   : > { %v9010_v47 = vpop.eup %9009 }
0x1200   : > { %v5322_v51 = vpop.xlane.xlu1 %5321  ;;  %v13264_v48 = vpop.xlane.xlu0 %5883  ;;  %v5392_v46 = vmul.f32 %v9010_v47, %v12999_v6  ;;  %v5393_v39 = vmul.f32 %v9010_v47, %v12997_v28 }
0x1201   : > { %9015 = vrcp.f32 %v5322_v51  ;;  %v5911_v51 = vsub.f32 %v12968_v42, %v5864_v54  ;;  %v5922_v54 = vsub.f32 %v13038_v45, %v13264_v48 }
0x1202   : > { %v9012_v32 = vpop.eup %9011 }
0x1203   : > { %v5394_v21 = vmul.f32 %v9012_v32, %v13015_v22  ;;  %v5395_v52 = vmul.f32 %v9012_v32, %v13008_v43  ;;  %v5961_v22 = vmul.f32 1.442695, %v5910_v60  ;;  %v14519_v43 = vld [vmem:[#allocation9_spill] sm:$0xff]  ;;  %v5963_v42 = vmul.f32 1.442695, %v5911_v51 }
0x1204   : > { %v13270_v20 = vpop.xlane.xlu1 %5887  ;;  %v5326_v11 = vpop.xlane.xlu0 %5325  ;;  %v5985_v45 = vmul.f32 1.442695, %v5922_v54 }
0x1205   : > { %v5427_v14 = vpack.c.bf16 %v5395_v52, %v5393_v39  ;;  %v5426_v59 = vpack.c.bf16 %v5394_v21, %v5392_v46  ;;  %9017 = vrcp.f32 %v5326_v11  ;;  %v5959_v52 = vmul.f32 1.442695, %v5909_v61 }
0x1206   : > { %9019 = vpow2.f32 %v5953_v30  ;;  %v14521_v11 = vmov 0  }
0x1207   : > { %7782 = vmatprep.mubr.msk.bf16.mxu1 %vm2090_vm5, %v5427_v14  ;;  %v9014_v21 = vpop.eup %9013 }
0x1208   : > { %v5330_v6 = vpop.xlane.xlu1 %5329  ;;  %5516 = vmatmul.mubr.bf16.vlgmr.msra.gmra.mrb[240].mxu1 %v5426_v59  ;;  %v13278_v28 = vpop.xlane.xlu0 %5891  ;;  %v5397_v33 = vmul.f32 %v9014_v21, %v13032_v8  ;;  %v5396_v32 = vmul.f32 %v9014_v21, %v13035_v24  ;;  %v5913_v8 = vsub.f32 %v12981_v38, %v13251_v19  ;;  %v5921_v24 = vsub.f32 %v13054_v0, %v13264_v48 }
0x1209   : > { %6198 = vmatpush1.bf16.msra.mxu1 %v14519_v43  ;;  %9021 = vrcp.f32 %v5330_v6  ;;  %v5969_v19 = vmul.f32 1.442695, %v5914_v63  ;;  %v5915_v59 = vsub.f32 %v12990_v12, %v13255_v17  ;;  %v5918_v12 = vsub.f32 %v13002_v18, %v13258_v34 }
0x120a   : > { %6157 = vrot.lane.b32.xlu0 %v14520_v16, %s9237_s14  ;;  %6199 = vmatprep.subr.bf16.mxu1 %v14521_v11  ;;  %9023 = vpow2.f32 %v5951_v56  ;;  %v5967_v48 = vmul.f32 1.442695, %v5913_v8  ;;  %v5983_v56 = vmul.f32 1.442695, %v5921_v24 }
0x120b   : > { %v9016_v14 = vpop.eup %9015  ;;  %9025 = vpow2.f32 %v5961_v22 }
0x120c   : > { %v5334_v47 = vpop.xlane.xlu0 %5333  ;;  %v5399_v2 = vmul.f32 %v9016_v14, %v13051_v7  ;;  %v5398_v61 = vmul.f32 %v9016_v14, %v13044_v3  ;;  %9027 = vpow2.f32 %v5959_v52  ;;  %v14523_v7 = vld [vmem:[#allocation10_spill] sm:$0xff] }
0x120d   : > { %6200 = vmatpush1.bf16.msra.mxu1 %v14522_v4  ;;  %9029 = vrcp.f32 %v5334_v47  ;;  %v5917_v4 = vsub.f32 %v13018_v57, %v13258_v34 }
0x120e   : > { %6201 = vmatprep.subr.bf16.mxu1 %v14521_v11  ;;  %v5429_v46 = vpack.c.bf16 %v5399_v2, %v5397_v33  ;;  %v5428_v39 = vpack.c.bf16 %v5398_v61, %v5396_v32  ;;  %v5920_v61 = vsub.f32 %v13013_v9, %v13262_v5 }
0x120f   : > { %v5338_v30 = vpop.xlane.xlu1 %5337  ;;  %v9018_v3 = vpop.eup %9017  ;;  %v5975_v9 = vmul.f32 1.442695, %v5917_v4 }
0x1210   : > { %9031 = vrcp.f32 %v5338_v30  ;;  %7783 = vmatprep.mubr.msk.bf16.mxu1 %vm2090_vm5, %v5429_v46  ;;  %v13304_v38 = vpop.eup %9019  ;;  %v5401_v22 = vmul.f32 %v9018_v3, %v13065_v31  ;;  %v5400_v16 = vmul.f32 %v9018_v3, %v13070_v13  ;;  %v5977_v30 = vmul.f32 1.442695, %v5918_v12  ;;  %v14531_v12 = vld [vmem:[#allocation19_spill] sm:$0xff] }
0x1211   : > { %9033 = vpow2.f32 %v5963_v42  ;;  %6202 = vmatpush1.bf16.msra.mxu1 %v14523_v7  ;;  %v6019_v31 = vsel %vm2090_vm5, %v13304_v38, 0.0  ;;  %v14525_v42 = vld [vmem:[#allocation14_spill] sm:$0xff] }
0x1212   : > { %9035 = vpow2.f32 %v5965_v62  ;;  %5524 = vmatmul.mubr.bf16.gmra.mrb[244].mxu1 %v5428_v39  ;;  %6203 = vmatprep.subr.bf16.mxu1 %v14521_v11  ;;  %v5919_v39 = vsub.f32 %v13024_v55, %v13262_v5  ;;  %v5924_v55 = vsub.f32 %v14527_v10, %v13270_v20 }
0x1213   : > { %v9022_v0 = vpop.eup %9021 }
0x1214   : > { %v5342_v60 = vpop.xlane.xlu0 %5341  ;;  %v13309_v51 = vpop.eup %9023  ;;  %v5403_v43 = vmul.f32 %v9022_v0, %v13080_v23  ;;  %v5402_v21 = vmul.f32 %v9022_v0, %v13085_v50  ;;  %v5971_v50 = vmul.f32 1.442695, %v5915_v59  ;;  %v14529_v0 = vld [vmem:[#allocation24_spill] sm:$0xff] }
0x1215   : > { %9037 = vrcp.f32 %v5342_v60  ;;  %6204 = vmatpush1.bf16.msra.mxu1 %v14524_v15  ;;  %v13315_v52 = vpop.eup %9025  ;;  %v6020_v18 = vadd.f32 %v13309_v51, %v6019_v31  ;;  %v14528_v60 = vld [vmem:[#allocation22_spill] sm:$0xff]  ;;  %v5926_v31 = vsub.f32 %v14531_v12, %v13278_v28 }
0x1216   : > { %v5346_v6 = vpop.xlane.xlu1 %5345  ;;  %6205 = vmatprep.subr.bf16.mxu1 %v14521_v11  ;;  %v5431_v17 = vpack.c.bf16 %v5403_v43, %v5401_v22  ;;  %v5430_v14 = vpack.c.bf16 %v5402_v21, %v5400_v16  ;;  %v13322_v23 = vpop.eup %9027  ;;  %v6027_v2 = vsel %vm2090_vm5, %v13315_v52, 0.0  ;;  %v14530_v22 = vld [vmem:[#allocation17_spill] sm:$0xff] }
0x1217   : > { %9039 = vrcp.f32 %v5346_v6  ;;  %v9030_v13 = vpop.eup %9029  ;;  %v6028_v3 = vadd.f32 %v13322_v23, %v6027_v2  ;;  %v5923_v15 = vsub.f32 %v14530_v22, %v13270_v20 }
0x1218   : > { %9041 = vpow2.f32 %v5985_v45  ;;  %7784 = vmatprep.mubr.msk.bf16.mxu1 %vm2090_vm5, %v5431_v17  ;;  %v5405_v62 = vmul.f32 %v9030_v13, %v13098_v53  ;;  %v14526_v53 = vld [vmem:[#allocation20_spill] sm:$0xff] }
0x1219   : > { %9043 = vpow2.f32 %v5969_v19  ;;  %6206 = vmatpush1.bf16.msra.mxu1 %v14525_v42 }
0x121a   : > { %9045 = vpow2.f32 %v5967_v48  ;;  %v9032_v47 = vpop.eup %9031  ;;  %5532 = vmatmul.mubr.bf16.gmra.mrb[248].mxu1 %v5430_v14  ;;  %6207 = vmatprep.subr.bf16.mxu1 %v14521_v11 }
0x121b   : > { %9047 = vpow2.f32 %v5983_v56  ;;  %v13332_v32 = vpop.eup %9033  ;;  %v5407_v54 = vmul.f32 %v9032_v47, %v13107_v36  ;;  %v5406_v34 = vmul.f32 %v9032_v47, %v13104_v58  ;;  %v5404_v36 = vmul.f32 %v9030_v13, %v14526_v53  ;;  %v14532_v13 = vld [vmem:[#allocation23_spill] sm:$0xff]  ;;  %v14533_v47 = vld [vmem:[#allocation18_spill] sm:$0xff] }
0x121c   : > { %9049 = vpow2.f32 %v5973_v49  ;;  %v5350_v33 = vpop.xlane.xlu0 %5349  ;;  %v13338_v63 = vpop.eup %9035  ;;  %v5981_v58 = vmul.f32 1.442695, %v5920_v61  ;;  %v5979_v56 = vmul.f32 1.442695, %v5919_v39  ;;  %v5989_v49 = vmul.f32 1.442695, %v5924_v55 }
0x121d   : > { %9051 = vrcp.f32 %v5350_v33  ;;  %6208 = vmatpush1.bf16.msra.mxu1 %v13153_v27  ;;  %v5433_v8 = vpack.c.bf16 %v5407_v54, %v5405_v62  ;;  %v6031_v27 = vsel %vm2090_vm5, %v13338_v63, 0.0  ;;  %v5432_v45 = vpack.c.bf16 %v5406_v34, %v5404_v36  ;;  %v14535_v39 = vld [vmem:[#allocation4_spill] sm:$0xff] }
0x121e   : > { %v5354_v57 = vpop.xlane.xlu1 %5353  ;;  %6209 = vmatprep.subr.bf16.mxu1 %v14521_v11  ;;  %v6032_v16 = vadd.f32 %v13332_v32, %v6031_v27  ;;  %v5925_v4 = vsub.f32 %v14533_v47, %v13278_v28  ;;  %v5993_v62 = vmul.f32 1.442695, %v5926_v31 }
0x121f   : > { %v9038_v46 = vpop.eup %9037  ;;  %9053 = vrcp.f32 %v5354_v57  ;;  %6021 = vadd.xlane.f32.xlu1 %v6020_v18  ;;  %7785 = vmatprep.mubr.msk.bf16.mxu1 %vm2090_vm5, %v5433_v8  ;;  %v5987_v18 = vmul.f32 1.442695, %v5923_v15 }
0x1220   : > { %9055 = vpow2.f32 %v5971_v50  ;;  %v6154_v24 = vpop.permute.xlu0 %6153  ;;  %v5409_v19 = vmul.f32 %v9038_v46, %v14528_v60 }
0x1221   : > { %v9040_v7 = vpop.eup %9039  ;;  %9057 = vpow2.f32 %v5977_v30  ;;  %6210 = vmatpush1.bf16.msra.mxu1 %v6154_v24  ;;  %v14534_v30 = vld [vmem:[#allocation21_spill] sm:$0xff] }
0x1222   : > { %v13352_v5 = vpop.eup %9041  ;;  %v5411_v48 = vmul.f32 %v9040_v7, %v14529_v0  ;;  %9059 = vpow2.f32 %v5975_v9  ;;  %5540 = vmatmul.mubr.bf16.gmra.mrb[252].mxu1 %v5432_v45  ;;  %6211 = vmatprep.subr.bf16.mxu1 %v14521_v11  ;;  %v5410_v20 = vmul.f32 %v9040_v7, %v14532_v13  ;;  %v5408_v33 = vmul.f32 %v9038_v46, %v14534_v30  ;;  %v14536_v9 = vld [vmem:[#allocation31_spill] sm:$0xff] }
0x1223   : > { %v13356_v59 = vpop.eup %9043  ;;  %6029 = vadd.xlane.f32.xlu1 %v6028_v3  ;;  %9061 = vpow2.f32 %v5981_v58  ;;  %v6051_v17 = vsel %vm2090_vm5, %v13352_v5, 0.0  ;;  %v5991_v46 = vmul.f32 1.442695, %v5925_v4  ;;  %v14537_v58 = vld [vmem:[#allocation36_spill] sm:$0xff]  ;;  %v14538_v45 = vld [vmem:[#allocation3_spill] sm:$0xff] }
0x1224   : > { %v13358_v6 = vpop.eup %9045  ;;  %v5435_v43 = vpack.c.bf16 %v5411_v48, %v5409_v19  ;;  %v6035_v50 = vsel %vm2090_vm5, %v13356_v59, 0.0  ;;  %9063 = vpow2.f32 %v5979_v56  ;;  %v5434_v34 = vpack.c.bf16 %v5410_v20, %v5408_v33  ;;  %v14539_v33 = vld [vmem:[#allocation34_spill] sm:$0xff] }
0x1225   : > { %v13364_v21 = vpop.eup %9047  ;;  %9065 = vpow2.f32 %v5989_v49  ;;  %v6036_v54 = vadd.f32 %v13358_v6, %v6035_v50 }
0x1226   : > { %v13370_v14 = vpop.eup %9049  ;;  %7786 = vmatprep.mubr.msk.bf16.mxu1 %vm2090_vm5, %v5435_v43  ;;  %v6052_v2 = vadd.f32 %v13364_v21, %v6051_v17  ;;  %9067 = vpow2.f32 %v5987_v18  ;;  %v5362_v20 = vpop.xlane.xlu1 %5361 }
0x1227   : > { %v9052_v42 = vpop.eup %9051  ;;  %6033 = vadd.xlane.f32.xlu1 %v6032_v16  ;;  %v6039_v28 = vsel %vm2090_vm5, %v13370_v14, 0.0  ;;  %9069 = vpow2.f32 %v5993_v62 }
0x1228   : > { %v5413_v8 = vmul.f32 %v9052_v42, %v14535_v39  ;;  %9071 = vpow2.f32 %v5991_v46  ;;  %v5412_v60 = vmul.f32 %v9052_v42, %v14538_v45 }
0x1229   : > { %v9054_v61 = vpop.eup %9053  ;;  %6053 = vadd.xlane.f32.xlu0 %v6052_v2  ;;  %9073 = vrcp.f32 %v5362_v20 }
0x122a   : > { %v13381_v57 = vpop.eup %9055  ;;  %v5415_v24 = vmul.f32 %v9054_v61, %v14536_v9  ;;  %5548 = vmatmul.mubr.bf16.gmra.mrb[0].mxu1 %v5434_v34  ;;  %v5414_v10 = vmul.f32 %v9054_v61, %v14537_v58 }
0x122b   : > { %v13387_v53 = vpop.eup %9057  ;;  %6037 = vadd.xlane.f32.xlu1 %v6036_v54  ;;  %v6040_v3 = vadd.f32 %v13381_v57, %v6039_v28  ;;  %v14540_v54 = vld [vmem:[#allocation32_spill] sm:$0xff] }
0x122c   : > { %v5437_v36 = vpack.c.bf16 %v5415_v24, %v5413_v8  ;;  %v13390_v7 = vpop.eup %9059  ;;  %v6043_v55 = vsel %vm2090_vm5, %v13387_v53, 0.0  ;;  %v5436_v48 = vpack.c.bf16 %v5414_v10, %v5412_v60 }
0x122d   : > { %v13396_v27 = vpop.eup %9061  ;;  %v6044_v0 = vadd.f32 %v13390_v7, %v6043_v55 }
0x122e   : > { %7787 = vmatprep.mubr.msk.bf16.mxu1 %vm2090_vm5, %v5437_v36  ;;  %v13399_v19 = vpop.eup %9063  ;;  %v6047_v56 = vsel %vm2090_vm5, %v13396_v27, 0.0 }
0x122f   : > { %6041 = vadd.xlane.f32.xlu1 %v6040_v3  ;;  %v13404_v22 = vpop.eup %9065  ;;  %v6048_v15 = vadd.f32 %v13399_v19, %v6047_v56  ;;  %v14541_v3 = vld [vmem:[#allocation35_spill] sm:$0xff] }
0x1230   : > { %v13407_v43 = vpop.eup %9067  ;;  %v6055_v16 = vsel %vm2090_vm5, %v13404_v22, 0.0 }
0x1231   : > { %v13411_v49 = vpop.eup %9069  ;;  %v6056_v12 = vadd.f32 %v13407_v43, %v6055_v16 }
0x1232   : > { %5556 = vmatmul.mubr.bf16.gmra.mrb[4].mxu1 %v5436_v48  ;;  %v13414_v31 = vpop.eup %9071  ;;  %v6059_v17 = vsel %vm2090_vm5, %v13411_v49, 0.0 }
0x1233   : > { %6045 = vadd.xlane.f32.xlu1 %v6044_v0  ;;  %v6060_v13 = vadd.f32 %v13414_v31, %v6059_v17  ;;  %v9074_v47 = vpop.eup %9073 }
0x1234   : > { %v5418_v2 = vmul.f32 %v9074_v47, %v14539_v33  ;;  %v5419_v34 = vmul.f32 %v9074_v47, %v14540_v54  ;;  %v8495_v54 = vld [vmem:[%s14112_s8 + $0x40] sm:$0xff]  }
0x1237   : > { %6049 = vadd.xlane.f32.xlu1 %v6048_v15 }
0x123b   : > { %6057 = vadd.xlane.f32.xlu1 %v6056_v12 }
0x123f   : > { %6061 = vadd.xlane.f32.xlu1 %v6060_v13 }
0x1251   : > { %v5358_v50 = vpop.xlane.xlu0 %5357 }
0x1252   : > { %9075 = vrcp.f32 %v5358_v50 }
0x1255   : > { %v5366_v42 = vpop.xlane.xlu1 %5365  ;;  %v5370_v18 = vpop.xlane.xlu0 %5369 }
0x1256   : > { %9077 = vrcp.f32 %v5366_v42 }
0x1257   : > { %9079 = vrcp.f32 %v5370_v18  ;;  %v14542_v18 = vld [vmem:[#allocation38_spill] sm:$0xff] }
0x125a   : > { %v5374_v4 = vpop.xlane.xlu1 %5373 }
0x125b   : > { %9081 = vrcp.f32 %v5374_v4 }
0x125c   : > { %v9076_v30 = vpop.eup %9075 }
0x125d   : > { %v5416_v61 = vmul.f32 %v9076_v30, %v13165_v37  ;;  %v5417_v62 = vmul.f32 %v9076_v30, %v13167_v44  ;;  %v14544_v30 = vld [vmem:[#allocation33_spill] sm:$0xff] }
0x125f   : > { %v5438_v39 = vpack.c.bf16 %v5418_v2, %v5416_v61  ;;  %v5439_v8 = vpack.c.bf16 %v5419_v34, %v5417_v62  ;;  %v14545_v61 = vld [vmem:[#allocation55_spill] sm:$0xff] }
0x1260   : > { %v9078_v9 = vpop.eup %9077 }
0x1261   : > { %v9080_v24 = vpop.eup %9079  ;;  %7788 = vmatprep.mubr.msk.bf16.mxu1 %vm2090_vm5, %v5439_v8  ;;  %v5421_v28 = vmul.f32 %v9078_v9, %v13178_v26  ;;  %v5420_v36 = vmul.f32 %v9078_v9, %v13174_v41 }
0x1262   : > { %5564 = vmatmul.mubr.bf16.gmra.mrb[8].mxu1 %v5438_v39  ;;  %v5423_v46 = vmul.f32 %v9080_v24, %v13163_v40  ;;  %v5422_v58 = vmul.f32 %v9080_v24, %v14541_v3  ;;  %v14546_v39 = vmov 0.0   ;;  %v8496_v24 = vld [vmem:[%s14112_s8 + $0x48] sm:$0xff]   ;;  %v14548_v3 = vld [vmem:[#allocation41_spill] sm:$0xff] }
0x1264   : > { %v5441_v37 = vpack.c.bf16 %v5423_v46, %v5421_v28  ;;  %v5440_v45 = vpack.c.bf16 %v5422_v58, %v5420_v36  ;;  %v14547_v46 = vld [vmem:[#allocation37_spill] sm:$0xff] }
0x1265   : > { %v9082_v10 = vpop.eup %9081 }
0x1266   : > { %7789 = vmatprep.mubr.msk.bf16.mxu1 %vm2090_vm5, %v5441_v37  ;;  %v5425_v44 = vmul.f32 %v9082_v10, %v13188_v35  ;;  %v5424_v40 = vmul.f32 %v9082_v10, %v13184_v29  ;;  %v14549_v37 = vld [vmem:[#allocation40_spill] sm:$0xff] }
0x1267   : > { %v5998_v55 = vpop.xlane.xlu1 %5997 }
0x1268   : > { %9083 = vrcp.f32 %v5998_v55  ;;  %v5443_v60 = vpack.c.bf16 %v5425_v44, %v5425_v44  ;;  %v5442_v41 = vpack.c.bf16 %v5424_v40, %v5424_v40  ;;  %v14550_v44 = vld [vmem:[#allocation42_spill] sm:$0xff]  ;;  %v8498_v40 = vld [vmem:[%s14112_s8 + $0x58] sm:$0xff]  }
0x126a   : > { %v6002_v0 = vpop.xlane.xlu0 %6001  ;;  %5572 = vmatmul.mubr.bf16.gmra.mrb[12].mxu1 %v5440_v45  ;;  %v8497_v45 = vld [vmem:[%s14112_s8 + $0x50] sm:$0xff]  }
0x126b   : > { %9085 = vrcp.f32 %v6002_v0  ;;  %7790 = vmatprep.mubr.msk.bf16.mxu1 %vm2090_vm5, %v5443_v60 }
0x126f   : > { %v6006_v48 = vpop.xlane.xlu1 %6005 }
0x1271   : > { %v6010_v15 = vpop.xlane.xlu0 %6009 }
0x1272   : > { %5580 = vmatmul.mubr.bf16.gmra.mrb[16].mxu1 %v5442_v41  ;;  %v9084_v26 = vpop.eup %9083  ;;  %9087 = vrcp.f32 %v6010_v15  ;;  %v14551_v41 = vld [vmem:[#allocation47_spill] sm:$0xff] }
0x1273   : > { %v6081_v16 = vmul.f32 %v9084_v26, %v13201_v25  ;;  %9089 = vrcp.f32 %v6006_v48  ;;  %v6080_v33 = vmul.f32 %v9084_v26, %v14544_v30  ;;  %v14552_v48 = vld [vmem:[#allocation39_spill] sm:$0xff] }
0x1275   : > { %v9086_v56 = vpop.eup %9085 }
0x1276   : > { %v6083_v35 = vmul.f32 %v9086_v56, %v13209_v1  ;;  %v6082_v25 = vmul.f32 %v9086_v56, %v14542_v18  ;;  %v14543_v1 = vld [vmem:[#allocation43_spill] sm:$0xff] }
0x1277   : > { %v6014_v12 = vpop.xlane.xlu1 %6013 }
0x1278   : > { %v6115_v17 = vpack.c.bf16 %v6083_v35, %v6081_v16  ;;  %v6114_v34 = vpack.c.bf16 %v6082_v25, %v6080_v33 }
0x1279   : > { %v6018_v29 = vpop.xlane.xlu0 %6017 }
0x127a   : > { %7800 = vmatprep.mubr.msk.bf16.mxu1 %vm2090_vm5, %v6115_v17  ;;  %9091 = vrcp.f32 %v6018_v29  ;;  %v14553_v29 = vld [vmem:[#allocation45_spill] sm:$0xff] }
0x127b   : > { %v6156_v13 = vpop.permute.xlu1 %6155  ;;  %9093 = vrcp.f32 %v6014_v12 }
0x127c   : > { %6212 = vmatpush1.bf16.msra.mxu1 %v6156_v13  ;;  %v9088_v50 = vpop.eup %9087 }
0x127d   : > { %6213 = vmatprep.subr.bf16.mxu1 %v14521_v11  ;;  %v9090_v42 = vpop.eup %9089  ;;  %v6087_v4 = vmul.f32 %v9088_v50, %v14543_v1  ;;  %v6086_v36 = vmul.f32 %v9088_v50, %v14547_v46 }
0x127e   : > { %v6085_v62 = vmul.f32 %v9090_v42, %v14545_v61  ;;  %v6084_v10 = vmul.f32 %v9090_v42, %v14549_v37 }
0x1280   : > { %v6117_v8 = vpack.c.bf16 %v6087_v4, %v6085_v62  ;;  %v6116_v60 = vpack.c.bf16 %v6086_v36, %v6084_v10  ;;  %v8500_v10 = vld [vmem:[%s14112_s8 + $0x68] sm:$0xff]  }
0x1281   : > { %v6026_v20 = vpop.xlane.xlu0 %6025 }
0x1282   : > { %9095 = vrcp.f32 %v6026_v20  ;;  %v8499_v20 = vld [vmem:[%s14112_s8 + $0x60] sm:$0xff]  }
0x1283   : > { %8273 = vmatpush3.bf16.msra.mxu0 %v8499_v20 }
0x1284   : > { %v9092_v9 = vpop.eup %9091  ;;  %8274 = vmatprep.subr.bf16.mxu0 %v14546_v39 }
0x1285   : > { %v6158_v47 = vpop.permute.xlu0 %6157  ;;  %v9094_v28 = vpop.eup %9093  ;;  %v6091_v58 = vmul.f32 %v9092_v9, %v14548_v3  ;;  %v6090_v26 = vmul.f32 %v9092_v9, %v14551_v41 }
0x1286   : > { %v6195_v2 = vsel %vm2434_vm4, %v6158_v47, 0  ;;  %v6089_v55 = vmul.f32 %v9094_v28, %v14550_v44  ;;  %v6088_v56 = vmul.f32 %v9094_v28, %v14552_v48  ;;  %v14554_v47 = vld [vmem:[#allocation8_spill] sm:$0xff] }
0x1287   : > { %6214 = vmatpush1.bf16.msra.mxu1 %v6195_v2  ;;  %8275 = vmatpush3.bf16.msra.mxu0 %v8500_v10 }
0x1288   : > { %8316 = vmatprep.subr.bf16.mxu1 %v14546_v39  ;;  %v6119_v0 = vpack.c.bf16 %v6091_v58, %v6089_v55  ;;  %v6118_v15 = vpack.c.bf16 %v6090_v26, %v6088_v56  ;;  %8276 = vmatprep.subr.bf16.mxu0 %v14546_v39 }
0x128a   : > { %6230 = vmatmul.mubr.bf16.vlgmr.msra.gmra.mrb[20].mxu1 %v6114_v34 }
0x128b   : > { %7801 = vmatprep.mubr.msk.bf16.mxu1 %vm2090_vm5, %v6117_v8  ;;  %8317 = vmatpush3.bf16.msra.mxu1 %v8495_v54 }
0x128c   : > { %8318 = vmatprep.subr.bf16.mxu1 %v14546_v39  ;;  %v9096_v17 = vpop.eup %9095 }
0x128d   : > { %v6094_v50 = vmul.f32 %v9096_v17, %v14553_v29  ;;  %v6095_v1 = vmul.f32 %v9096_v17, %v14554_v47 }
0x128f   : > { %8319 = vmatpush3.bf16.msra.mxu1 %v8496_v24 }
0x1290   : > { %8320 = vmatprep.subr.bf16.mxu1 %v14546_v39 }
0x1292   : > { %6238 = vmatmul.mubr.bf16.gmra.mrb[24].mxu1 %v6116_v60 }
0x1293   : > { %7802 = vmatprep.mubr.msk.bf16.mxu1 %vm2090_vm5, %v6119_v0  ;;  %8321 = vmatpush3.bf16.msra.mxu1 %v8497_v45 }
0x1294   : > { %8322 = vmatprep.subr.bf16.mxu1 %v14546_v39 }
0x1297   : > { %8323 = vmatpush3.bf16.msra.mxu1 %v8498_v40 }
0x1298   : > { %8398 = vmatprep.subr.bf16.mxu1 %v14546_v39 }
0x129a   : > { %6246 = vmatmul.mubr.bf16.gmra.mrb[28].mxu1 %v6118_v15 }
0x12ac   : > { %v6022_v16 = vpop.xlane.xlu1 %6021 }
0x12ad   : > { %9097 = vrcp.f32 %v6022_v16 }
0x12b0   : > { %v6030_v35 = vpop.xlane.xlu1 %6029 }
0x12b1   : > { %9099 = vrcp.f32 %v6030_v35 }
0x12b4   : > { %v6034_v12 = vpop.xlane.xlu1 %6033 }
0x12b5   : > { %9101 = vrcp.f32 %v6034_v12 }
0x12b6   : > { %v6054_v24 = vpop.xlane.xlu0 %6053 }
0x12b7   : > { %v9098_v13 = vpop.eup %9097 }
0x12b8   : > { %v6092_v42 = vmul.f32 %v9098_v13, %v13309_v51  ;;  %v6038_v18 = vpop.xlane.xlu1 %6037  ;;  %v6093_v25 = vmul.f32 %v9098_v13, %v13304_v38 }
0x12b9   : > { %9103 = vrcp.f32 %v6038_v18 }
0x12ba   : > { %v6120_v4 = vpack.c.bf16 %v6094_v50, %v6092_v42  ;;  %v6121_v30 = vpack.c.bf16 %v6095_v1, %v6093_v25 }
0x12bb   : > { %v9100_v2 = vpop.eup %9099 }
0x12bc   : > { %v6042_v33 = vpop.xlane.xlu1 %6041  ;;  %7803 = vmatprep.mubr.msk.bf16.mxu1 %vm2090_vm5, %v6121_v30  ;;  %v6096_v38 = vmul.f32 %v9100_v2, %v13322_v23  ;;  %v6097_v54 = vmul.f32 %v9100_v2, %v13315_v52 }
0x12bd   : > { %9105 = vrcp.f32 %v6042_v33  ;;  %6254 = vmatmul.mubr.bf16.gmra.mrb[32].mxu1 %v6120_v4 }
0x12bf   : > { %v9102_v51 = vpop.eup %9101 }
0x12c0   : > { %v6098_v61 = vmul.f32 %v9102_v51, %v13332_v32  ;;  %v6046_v62 = vpop.xlane.xlu1 %6045  ;;  %v6099_v34 = vmul.f32 %v9102_v51, %v13338_v63 }
0x12c1   : > { %9107 = vrcp.f32 %v6046_v62 }
0x12c2   : > { %v6122_v8 = vpack.c.bf16 %v6098_v61, %v6096_v38  ;;  %v6123_v9 = vpack.c.bf16 %v6099_v34, %v6097_v54 }
0x12c3   : > { %v9104_v46 = vpop.eup %9103 }
0x12c4   : > { %v6050_v28 = vpop.xlane.xlu1 %6049  ;;  %7804 = vmatprep.mubr.msk.bf16.mxu1 %vm2090_vm5, %v6123_v9  ;;  %v6100_v23 = vmul.f32 %v9104_v46, %v13358_v6  ;;  %v6101_v52 = vmul.f32 %v9104_v46, %v13356_v59  ;;  %v8501_v6 = vld [vmem:[%s14112_s8 + $0x70] sm:$0xff]  }
0x12c5   : > { %9109 = vrcp.f32 %v6050_v28  ;;  %6262 = vmatmul.mubr.bf16.gmra.mrb[36].mxu1 %v6122_v8  ;;  %8277 = vmatpush3.bf16.msra.mxu0 %v8501_v6 }
0x12c6   : > { %9111 = vrcp.f32 %v6054_v24  ;;  %8278 = vmatprep.subr.bf16.mxu0 %v14546_v39 }
0x12c7   : > { %v9106_v36 = vpop.eup %9105 }
0x12c8   : > { %v6102_v32 = vmul.f32 %v9106_v36, %v13381_v57  ;;  %v6058_v3 = vpop.xlane.xlu1 %6057  ;;  %v6103_v63 = vmul.f32 %v9106_v36, %v13370_v14 }
0x12c9   : > { %9113 = vrcp.f32 %v6058_v3 }
0x12ca   : > { %v6124_v58 = vpack.c.bf16 %v6102_v32, %v6100_v23  ;;  %v6125_v37 = vpack.c.bf16 %v6103_v63, %v6101_v52 }
0x12cb   : > { %v9108_v57 = vpop.eup %9107 }
0x12cc   : > { %v6062_v44 = vpop.xlane.xlu1 %6061  ;;  %7805 = vmatprep.mubr.msk.bf16.mxu1 %vm2090_vm5, %v6125_v37  ;;  %v6104_v14 = vmul.f32 %v9108_v57, %v13390_v7  ;;  %v6105_v45 = vmul.f32 %v9108_v57, %v13387_v53 }
0x12cd   : > { %9115 = vrcp.f32 %v6062_v44  ;;  %6270 = vmatmul.mubr.bf16.gmra.mrb[40].mxu1 %v6124_v58 }
0x12cf   : > { %v9110_v59 = vpop.eup %9109 }
0x12d0   : > { %v6106_v55 = vmul.f32 %v9110_v59, %v13399_v19  ;;  %v6107_v60 = vmul.f32 %v9110_v59, %v13396_v27  ;;  %v9112_v0 = vpop.eup %9111 }
0x12d1   : > { %v6109_v48 = vmul.f32 %v9112_v0, %v13352_v5  ;;  %v6108_v15 = vmul.f32 %v9112_v0, %v13364_v21 }
0x12d2   : > { %v6126_v40 = vpack.c.bf16 %v6106_v55, %v6104_v14  ;;  %v6127_v41 = vpack.c.bf16 %v6107_v60, %v6105_v45 }
0x12d3   : > { %v9114_v26 = vpop.eup %9113 }
0x12d4   : > { %7806 = vmatprep.mubr.msk.bf16.mxu1 %vm2090_vm5, %v6127_v41  ;;  %v6111_v56 = vmul.f32 %v9114_v26, %v13404_v22  ;;  %v6110_v53 = vmul.f32 %v9114_v26, %v13407_v43  ;;  %v8502_v43 = vld [vmem:[%s14112_s8 + $0x78] sm:$0xff]  }
0x12d5   : > { %6278 = vmatmul.mubr.bf16.gmra.mrb[44].mxu1 %v6126_v40  ;;  %8279 = vmatpush3.bf16.msra.mxu0 %v8502_v43 }
0x12d6   : > { %v6129_v7 = vpack.c.bf16 %v6111_v56, %v6109_v48  ;;  %v6128_v16 = vpack.c.bf16 %v6110_v53, %v6108_v15  ;;  %8360 = vmatprep.subr.bf16.mxu0 %v14546_v39 }
0x12d7   : > { %v9116_v19 = vpop.eup %9115 }
0x12d8   : > { %7807 = vmatprep.mubr.msk.bf16.mxu1 %vm2090_vm5, %v6129_v7  ;;  %v6113_v27 = vmul.f32 %v9116_v19, %v13411_v49  ;;  %v6112_v5 = vmul.f32 %v9116_v19, %v13414_v31 }
0x12da   : > { %v6131_v35 = vpack.c.bf16 %v6113_v27, %v6113_v27  ;;  %v6130_v50 = vpack.c.bf16 %v6112_v5, %v6112_v5 }
0x12db   : > { %v5517_v12 = vpop.f32.mrb[240].mxu1 }
0x12dc   : > { %v5519_v17 = vpop.f32.mrb[241].mxu1 }
0x12dd   : > { %6286 = vmatmul.mubr.bf16.gmra.mrb[48].mxu1 %v6128_v16  ;;  %v5520_v22 = vpop.f32.mrb[242].mxu1 }
0x12de   : > { %7808 = vmatprep.mubr.msk.bf16.mxu1 %vm2090_vm5, %v6131_v35  ;;  %v5587_v13 = vpack.c.bf16 %v5520_v22, %v5517_v12  ;;  %v5522_v29 = vpop.f32.mrb[243].mxu1 }
0x12e5   : > { %6294 = vmatmul.mubr.bf16.gmra.mrb[52].mxu1 %v6130_v50  ;;  %v5525_v21 = vpop.f32.mrb[244].mxu1 }
0x12e6   : > { %8324 = vmatprep.mubr.msk.bf16.mxu1 %vm9235_vm1, %v14546_v39  ;;  %v5527_v49 = vpop.f32.mrb[245].mxu1 }
0x12e7   : > { %v5528_v42 = vpop.f32.mrb[246].mxu1 }
0x12e8   : > { %v5588_v18 = vpack.c.bf16 %v5528_v42, %v5525_v21  ;;  %v5530_v31 = vpop.f32.mrb[247].mxu1 }
0x12ed   : > { %8325 = vmatmul.mubr.msk.bf16.vlgmr.msra.gmra.mrb[56].mxu1 %vm1914_vm3, %v5587_v13  ;;  %v5533_v25 = vpop.f32.mrb[248].mxu1 }
0x12ee   : > { %8328 = vmatprep.mubr.msk.bf16.mxu1 %vm9235_vm1, %v14546_v39  ;;  %v5535_v47 = vpop.f32.mrb[249].mxu1 }
0x12ef   : > { %v5536_v1 = vpop.f32.mrb[250].mxu1 }
0x12f0   : > { %v5589_v20 = vpack.c.bf16 %v5536_v1, %v5533_v25  ;;  %v5538_v4 = vpop.f32.mrb[251].mxu1 }
0x12f5   : > { %8329 = vmatmul.mubr.msk.bf16.gmra.mrb[60].mxu1 %vm1914_vm3, %v5588_v18  ;;  %v5541_v30 = vpop.f32.mrb[252].mxu1 }
0x12f6   : > { %8332 = vmatprep.mubr.msk.bf16.mxu1 %vm9235_vm1, %v14546_v39  ;;  %v5543_v33 = vpop.f32.mrb[253].mxu1 }
0x12f7   : > { %v5544_v2 = vpop.f32.mrb[254].mxu1 }
0x12f8   : > { %v5590_v51 = vpack.c.bf16 %v5544_v2, %v5541_v30  ;;  %v5546_v38 = vpop.f32.mrb[255].mxu1 }
0x12fd   : > { %8333 = vmatmul.mubr.msk.bf16.gmra.mrb[64].mxu1 %vm1914_vm3, %v5589_v20  ;;  %v5549_v61 = vpop.f32.mrb[0].mxu1 }
0x12fe   : > { %8336 = vmatprep.mubr.msk.bf16.mxu1 %vm9235_vm1, %v14546_v39  ;;  %v5551_v62 = vpop.f32.mrb[1].mxu1 }
0x12ff   : > { %v5552_v54 = vpop.f32.mrb[2].mxu1 }
0x1300   : > { %v5591_v34 = vpack.c.bf16 %v5552_v54, %v5549_v61  ;;  %v5554_v8 = vpop.f32.mrb[3].mxu1 }
0x1305   : > { %8337 = vmatmul.mubr.msk.bf16.gmra.mrb[68].mxu1 %vm1914_vm3, %v5590_v51  ;;  %v5557_v9 = vpop.f32.mrb[4].mxu1 }
0x1306   : > { %8340 = vmatprep.mubr.msk.bf16.mxu1 %vm9235_vm1, %v14546_v39  ;;  %v5559_v24 = vpop.f32.mrb[5].mxu1 }
0x1307   : > { %v5560_v28 = vpop.f32.mrb[6].mxu1 }
0x1308   : > { %v5592_v46 = vpack.c.bf16 %v5560_v28, %v5557_v9  ;;  %v5562_v36 = vpop.f32.mrb[7].mxu1 }
0x130d   : > { %8341 = vmatmul.mubr.msk.bf16.gmra.mrb[72].mxu1 %vm1914_vm3, %v5591_v34 }
0x130e   : > { %8344 = vmatprep.mubr.msk.bf16.mxu1 %vm9235_vm1, %v14546_v39 }
0x1315   : > { %8345 = vmatmul.mubr.msk.bf16.gmra.mrb[76].mxu1 %vm1914_vm3, %v5592_v46 }
0x1316   : > { %8348 = vmatprep.mubr.msk.bf16.mxu1 %vm9235_vm1, %v14546_v39 }
0x1335   : > { %v5565_v23 = vpop.f32.mrb[8].mxu1 }
0x1336   : > { %v5567_v32 = vpop.f32.mrb[9].mxu1 }
0x1337   : > { %v5568_v3 = vpop.f32.mrb[10].mxu1 }
0x1338   : > { %v5593_v52 = vpack.c.bf16 %v5568_v3, %v5565_v23  ;;  %v5570_v63 = vpop.f32.mrb[11].mxu1 }
0x133a   : > { %8349 = vmatmul.mubr.msk.bf16.gmra.mrb[80].mxu1 %vm1914_vm3, %v5593_v52 }
0x133b   : > { %8352 = vmatprep.mubr.msk.bf16.mxu1 %vm9235_vm1, %v14546_v39 }
0x133d   : > { %v5573_v58 = vpop.f32.mrb[12].mxu1 }
0x133e   : > { %v5575_v37 = vpop.f32.mrb[13].mxu1 }
0x133f   : > { %v5576_v10 = vpop.f32.mrb[14].mxu1 }
0x1340   : > { %v5594_v44 = vpack.c.bf16 %v5576_v10, %v5573_v58  ;;  %v5578_v6 = vpop.f32.mrb[15].mxu1 }
0x1342   : > { %8353 = vmatmul.mubr.msk.bf16.gmra.mrb[84].mxu1 %vm1914_vm3, %v5594_v44 }
0x1343   : > { %8356 = vmatprep.mubr.msk.bf16.mxu1 %vm9235_vm1, %v14546_v39 }
0x1345   : > { %v5581_v57 = vpop.f32.mrb[16].mxu1 }
0x1346   : > { %v5583_v59 = vpop.f32.mrb[17].mxu1  ;;  %v5595_v55 = vpack.c.bf16 %v5581_v57, %v5581_v57 }
0x1347   : > { %v5584_v14 = vpop.f32.mrb[18].mxu1 }
0x1348   : > { %v5585_v45 = vpop.f32.mrb[19].mxu1 }
0x134a   : > { %8357 = vmatmul.mubr.msk.bf16.gmra.mrb[88].mxu1 %vm1914_vm3, %v5595_v55 }
0x134b   : > { %8400 = vmatprep.mubr.msk.bf16.mxu1 %vm9235_vm1, %v14546_v39 }
0x135d   : > { %v6231_v60 = vpop.f32.mrb[20].mxu1 }
0x135e   : > { %v6233_v0 = vpop.f32.mrb[21].mxu1 }
0x135f   : > { %v6234_v40 = vpop.f32.mrb[22].mxu1 }
0x1360   : > { %v6301_v41 = vpack.c.bf16 %v6234_v40, %v6231_v60  ;;  %v6236_v26 = vpop.f32.mrb[23].mxu1 }
0x1362   : > { %8281 = vmatmul.mubr.msk.bf16.vlgmr.msra.gmra.mrb[44].mxu0 %vm1914_vm3, %v6301_v41 }
0x1363   : > { %8284 = vmatprep.mubr.msk.bf16.mxu0 %vm9235_vm1, %v14546_v39 }
0x1365   : > { %v6239_v48 = vpop.f32.mrb[24].mxu1 }
0x1366   : > { %v6241_v56 = vpop.f32.mrb[25].mxu1 }
0x1367   : > { %v6242_v7 = vpop.f32.mrb[26].mxu1 }
0x1368   : > { %v6302_v19 = vpack.c.bf16 %v6242_v7, %v6239_v48  ;;  %v6244_v53 = vpop.f32.mrb[27].mxu1 }
0x136a   : > { %8285 = vmatmul.mubr.msk.bf16.gmra.mrb[48].mxu0 %vm1914_vm3, %v6302_v19 }
0x136b   : > { %8288 = vmatprep.mubr.msk.bf16.mxu0 %vm9235_vm1, %v14546_v39 }
0x136d   : > { %v6247_v27 = vpop.f32.mrb[28].mxu1 }
0x136e   : > { %v6249_v15 = vpop.f32.mrb[29].mxu1 }
0x136f   : > { %v6250_v16 = vpop.f32.mrb[30].mxu1 }
0x1370   : > { %v6303_v35 = vpack.c.bf16 %v6250_v16, %v6247_v27  ;;  %v6252_v12 = vpop.f32.mrb[31].mxu1 }
0x1372   : > { %8289 = vmatmul.mubr.msk.bf16.gmra.mrb[52].mxu0 %vm1914_vm3, %v6303_v35 }
0x1373   : > { %8292 = vmatprep.mubr.msk.bf16.mxu0 %vm9235_vm1, %v14546_v39 }
0x1390   : > { %v6255_v17 = vpop.f32.mrb[32].mxu1 }
0x1391   : > { %v6257_v5 = vpop.f32.mrb[33].mxu1 }
0x1392   : > { %v6258_v22 = vpop.f32.mrb[34].mxu1 }
0x1393   : > { %v6304_v13 = vpack.c.bf16 %v6258_v22, %v6255_v17  ;;  %v6260_v29 = vpop.f32.mrb[35].mxu1 }
0x1395   : > { %8293 = vmatmul.mubr.msk.bf16.gmra.mrb[56].mxu0 %vm1914_vm3, %v6304_v13 }
0x1396   : > { %8296 = vmatprep.mubr.msk.bf16.mxu0 %vm9235_vm1, %v14546_v39 }
0x1398   : > { %v6263_v43 = vpop.f32.mrb[36].mxu1 }
0x1399   : > { %v6265_v50 = vpop.f32.mrb[37].mxu1 }
0x139a   : > { %v6266_v21 = vpop.f32.mrb[38].mxu1  ;;  %v13591_v50 = vld [vmem:[%s14109_s5 + $0x8] sm:$0x7f] }
0x139b   : > { %v6305_v49 = vpack.c.bf16 %v6266_v21, %v6263_v43  ;;  %v6268_v42 = vpop.f32.mrb[39].mxu1  ;;  %v14555_v21 = vld [vmem:[#allocation5_spill] sm:$0xff] }
0x139d   : > { %8297 = vmatmul.mubr.msk.bf16.gmra.mrb[60].mxu0 %vm1914_vm3, %v6305_v49  ;;  %v13595_v49 = vrot.slane %v13591_v50, %v14555_v21 }
0x139e   : > { %8300 = vmatprep.mubr.msk.bf16.mxu0 %vm9235_vm1, %v14546_v39 }
0x13a0   : > { %v6271_v18 = vpop.f32.mrb[40].mxu1 }
0x13a1   : > { %v6273_v31 = vpop.f32.mrb[41].mxu1 }
0x13a2   : > { %v6274_v25 = vpop.f32.mrb[42].mxu1  ;;  %v14556_v31 = vld [vmem:[#allocation49_spill] sm:$0xff] }
0x13a3   : > { %v6306_v47 = vpack.c.bf16 %v6274_v25, %v6271_v18  ;;  %v6276_v1 = vpop.f32.mrb[43].mxu1 }
0x13a5   : > { %8301 = vmatmul.mubr.msk.bf16.gmra.mrb[64].mxu0 %vm1914_vm3, %v6306_v47 }
0x13a6   : > { %8304 = vmatprep.mubr.msk.bf16.mxu0 %vm9235_vm1, %v14546_v39 }
0x13a8   : > { %v6279_v20 = vpop.f32.mrb[44].mxu1 }
0x13a9   : > { %v6281_v4 = vpop.f32.mrb[45].mxu1 }
0x13aa   : > { %v6282_v30 = vpop.f32.mrb[46].mxu1  ;;  %v14557_v4 = vld [vmem:[#allocation48_spill] sm:$0xff] }
0x13ab   : > { %v6307_v33 = vpack.c.bf16 %v6282_v30, %v6279_v20  ;;  %v6284_v2 = vpop.f32.mrb[47].mxu1 }
0x13ad   : > { %8305 = vmatmul.mubr.msk.bf16.gmra.mrb[68].mxu0 %vm1914_vm3, %v6307_v33 }
0x13ae   : > { %8308 = vmatprep.mubr.msk.bf16.mxu0 %vm9235_vm1, %v14546_v39 }
0x13b0   : > { %v6287_v51 = vpop.f32.mrb[48].mxu1 }
0x13b1   : > { %v6289_v38 = vpop.f32.mrb[49].mxu1 }
0x13b2   : > { %v6290_v61 = vpop.f32.mrb[50].mxu1 }
0x13b3   : > { %v6308_v62 = vpack.c.bf16 %v6290_v61, %v6287_v51  ;;  %v6292_v54 = vpop.f32.mrb[51].mxu1 }
0x13b4   : > { %v14558_v54 = vld [vmem:[#allocation51_spill] sm:$0xff] }
0x13b5   : > { %8309 = vmatmul.mubr.msk.bf16.gmra.mrb[72].mxu0 %vm1914_vm3, %v6308_v62 }
0x13b6   : > { %8312 = vmatprep.mubr.msk.bf16.mxu0 %vm9235_vm1, %v14546_v39 }
0x13b8   : > { %v6295_v34 = vpop.f32.mrb[52].mxu1 }
0x13b9   : > { %v6297_v8 = vpop.f32.mrb[53].mxu1  ;;  %v6309_v24 = vpack.c.bf16 %v6295_v34, %v6295_v34 }
0x13ba   : > { %v6298_v9 = vpop.f32.mrb[54].mxu1 }
0x13bb   : > { %v6299_v28 = vpop.f32.mrb[55].mxu1 }
0x13bd   : > { %8313 = vmatmul.mubr.msk.bf16.gmra.mrb[76].mxu0 %vm1914_vm3, %v6309_v24 }
0x13be   : > { %8362 = vmatprep.mubr.msk.bf16.mxu0 %vm9235_vm1, %v14546_v39 }
0x13c0   : > { %v6550_v46 = vpop.f32.mrb[56].mxu1 }
0x13c1   : > { %v8326_v36 = vpop.f32.mrb[57].mxu1 }
0x13c2   : > { %v6553_v23 = vpop.f32.mrb[58].mxu1 }
0x13c3   : > { %v8327_v32 = vpop.f32.mrb[59].mxu1 }
0x13c8   : > { %v6558_v3 = vpop.f32.mrb[60].mxu1 }
0x13c9   : > { %v8330_v52 = vpop.f32.mrb[61].mxu1 }
0x13ca   : > { %v6561_v63 = vpop.f32.mrb[62].mxu1 }
0x13cb   : > { %v8331_v58 = vpop.f32.mrb[63].mxu1 }
0x13d0   : > { %v6566_v37 = vpop.f32.mrb[64].mxu1 }
0x13d1   : > { %v8334_v10 = vpop.f32.mrb[65].mxu1 }
0x13d2   : > { %v6569_v44 = vpop.f32.mrb[66].mxu1  ;;  %v14560_v10 = vld [vmem:[#allocation25_spill] sm:$0xff] }
0x13d3   : > { %v8335_v6 = vpop.f32.mrb[67].mxu1 }
0x13d8   : > { %v13566_v57 = vpop.f32.mrb[68].mxu1 }
0x13d9   : > { %v8338_v59 = vpop.f32.mrb[69].mxu1 }
0x13da   : > { %v13568_v14 = vpop.f32.mrb[70].mxu1 }
0x13db   : > { %v8339_v55 = vpop.f32.mrb[71].mxu1 }
0x13e0   : > { %v13570_v45 = vpop.f32.mrb[72].mxu1 }
0x13e1   : > { %v8342_v60 = vpop.f32.mrb[73].mxu1 }
0x13e2   : > { %v13572_v0 = vpop.f32.mrb[74].mxu1 }
0x13e3   : > { %v8343_v40 = vpop.f32.mrb[75].mxu1 }
0x13e8   : > { %v13574_v41 = vpop.f32.mrb[76].mxu1 }
0x13e9   : > { %v8346_v26 = vpop.f32.mrb[77].mxu1 }
0x13ea   : > { %v13576_v48 = vpop.f32.mrb[78].mxu1  ;;  %v14561_v26 = vld [vmem:[#allocation52_spill] sm:$0xff] }
0x13eb   : > { %v8347_v56 = vpop.f32.mrb[79].mxu1 }
0x140d   : > { %v13578_v7 = vpop.f32.mrb[80].mxu1 }
0x140e   : > { %v8350_v19 = vpop.f32.mrb[81].mxu1 }
0x140f   : > { %v13580_v53 = vpop.f32.mrb[82].mxu1 }
0x1410   : > { %v8351_v27 = vpop.f32.mrb[83].mxu1 }
0x1415   : > { %v13582_v15 = vpop.f32.mrb[84].mxu1 }
0x1416   : > { %v8354_v16 = vpop.f32.mrb[85].mxu1 }
0x1417   : > { %v13584_v35 = vpop.f32.mrb[86].mxu1 }
0x1418   : > { %v8355_v12 = vpop.f32.mrb[87].mxu1 }
0x141d   : > { %v13586_v17 = vpop.f32.mrb[88].mxu1 }
0x141e   : > { %v8358_v5 = vpop.f32.mrb[89].mxu1 }
0x141f   : > { %v6617_v22 = vpop.f32.mrb[90].mxu1 }
0x1420   : > { %v8359_v13 = vpop.f32.mrb[91].mxu1  ;;  %v14562_v22 = vld [vmem:[#allocation53_spill] sm:$0xff] }
0x1435   : > { %v6395_v29 = vpop.f32.mrb[44].mxu0 }
0x1436   : > { %v6551_v43 = vadd.f32 %v6550_v46, %v6395_v29  ;;  %v8282_v42 = vpop.f32.mrb[45].mxu0  ;;  %v14559_v46 = vld [vmem:[#allocation50_spill] sm:$0xff] }
0x1437   : > { %v6398_v18 = vpop.f32.mrb[46].mxu0  ;;  %v14563_v42 = vld [vmem:[#allocation54_spill] sm:$0xff] }
0x1438   : > { %v6620_v25 = vadd.f32 %v6551_v43, %v14556_v31  ;;  %v6554_v47 = vadd.f32 %v6553_v23, %v6398_v18  ;;  %v8283_v1 = vpop.f32.mrb[47].mxu0 }
0x143a   : > { %v13599_v20 = vadd.f32 %v13595_v49, %v6620_v25  ;;  %v6621_v30 = vadd.f32 %v6554_v47, %v14557_v4 }
0x143c   : > { %v13603_v33 = vadd.f32 %v13595_v49, %v6621_v30  ;;  %v6658_v2 = vsel %vm866_vm2, %v13599_v20, 0.0  ;;  %v14564_v30 = vld [vmem:[#allocation57_spill] sm:$0xff] }
0x143d   : > { %v6403_v51 = vpop.f32.mrb[48].mxu0  ;;  %6659 = vadd.xlane.f32.xlu1 %v6658_v2 }
0x143e   : > { %v6559_v38 = vadd.f32 %v6558_v3, %v6403_v51  ;;  %v8286_v61 = vpop.f32.mrb[49].mxu0  ;;  %v6661_v24 = vsel %vm866_vm2, %v13603_v33, 0.0 }
0x143f   : > { %v6406_v62 = vpop.f32.mrb[50].mxu0 }
0x1440   : > { %v6622_v34 = vadd.f32 %v6559_v38, %v14558_v54  ;;  %v6562_v8 = vadd.f32 %v6561_v63, %v6406_v62  ;;  %v8287_v9 = vpop.f32.mrb[51].mxu0  ;;  %v14565_v62 = vld [vmem:[#allocation58_spill] sm:$0xff] }
0x1441   : > { %6662 = vadd.xlane.f32.xlu1 %v6661_v24 }
0x1442   : > { %v13611_v28 = vadd.f32 %v13595_v49, %v6622_v34  ;;  %v6623_v36 = vadd.f32 %v6562_v8, %v14559_v46 }
0x1444   : > { %v13615_v23 = vadd.f32 %v13595_v49, %v6623_v36  ;;  %v6664_v32 = vsel %vm866_vm2, %v13611_v28, 0.0  ;;  %v14566_v36 = vld [vmem:[#allocation59_spill] sm:$0xff] }
0x1445   : > { %v6411_v3 = vpop.f32.mrb[52].mxu0  ;;  %6665 = vadd.xlane.f32.xlu1 %v6664_v32 }
0x1446   : > { %v6567_v52 = vadd.f32 %v6566_v37, %v6411_v3  ;;  %v8290_v63 = vpop.f32.mrb[53].mxu0  ;;  %v6667_v60 = vsel %vm866_vm2, %v13615_v23, 0.0 }
0x1447   : > { %v6414_v58 = vpop.f32.mrb[54].mxu0 }
0x1448   : > { %v6624_v6 = vadd.f32 %v6567_v52, %v14560_v10  ;;  %v6570_v59 = vadd.f32 %v6569_v44, %v6414_v58  ;;  %v8291_v55 = vpop.f32.mrb[55].mxu0  ;;  %v14567_v58 = vld [vmem:[#allocation27_spill] sm:$0xff] }
0x1449   : > { %6668 = vadd.xlane.f32.xlu1 %v6667_v60 }
0x144a   : > { %v13623_v40 = vadd.f32 %v13595_v49, %v6624_v6  ;;  %v6625_v56 = vadd.f32 %v6570_v59, %v14561_v26 }
0x144c   : > { %v13627_v19 = vadd.f32 %v13595_v49, %v6625_v56  ;;  %v6670_v37 = vsel %vm866_vm2, %v13623_v40, 0.0  ;;  %v14568_v56 = vld [vmem:[#allocation28_spill] sm:$0xff] }
0x144d   : > { %6671 = vadd.xlane.f32.xlu1 %v6670_v37 }
0x144e   : > { %v6673_v44 = vsel %vm866_vm2, %v13627_v19, 0.0 }
0x144f   : > { %6674 = vadd.xlane.f32.xlu0 %v6673_v44 }
0x1468   : > { %v6419_v27 = vpop.f32.mrb[56].mxu0 }
0x1469   : > { %v6575_v16 = vadd.f32 %v13566_v57, %v6419_v27  ;;  %v8294_v12 = vpop.f32.mrb[57].mxu0 }
0x146a   : > { %v6422_v5 = vpop.f32.mrb[58].mxu0  ;;  %v14569_v12 = vld [vmem:[#allocation60_spill] sm:$0xff] }
0x146b   : > { %v6626_v13 = vadd.f32 %v6575_v16, %v14562_v22  ;;  %v6578_v29 = vadd.f32 %v13568_v14, %v6422_v5  ;;  %v8295_v43 = vpop.f32.mrb[59].mxu0 }
0x146d   : > { %v13637_v21 = vadd.f32 %v13595_v49, %v6626_v13  ;;  %v6627_v18 = vadd.f32 %v6578_v29, %v14563_v42 }
0x146f   : > { %v13641_v31 = vadd.f32 %v13595_v49, %v6627_v18  ;;  %v6676_v25 = vsel %vm866_vm2, %v13637_v21, 0.0  ;;  %v14570_v18 = vld [vmem:[#allocation29_spill] sm:$0xff] }
0x1470   : > { %v6427_v47 = vpop.f32.mrb[60].mxu0  ;;  %6677 = vadd.xlane.f32.xlu1 %v6676_v25 }
0x1471   : > { %v6583_v57 = vadd.f32 %v13570_v45, %v6427_v47  ;;  %v8298_v1 = vpop.f32.mrb[61].mxu0  ;;  %v6679_v14 = vsel %vm866_vm2, %v13641_v31, 0.0 }
0x1472   : > { %v6430_v4 = vpop.f32.mrb[62].mxu0  ;;  %6680 = vadd.xlane.f32.xlu0 %v6679_v14  ;;  %v14571_v14 = vld [vmem:[#allocation26_spill] sm:$0xff] }
0x1473   : > { %v6628_v2 = vadd.f32 %v6583_v57, %v14564_v30  ;;  %v6586_v51 = vadd.f32 %v13572_v0, %v6430_v4  ;;  %v8299_v38 = vpop.f32.mrb[63].mxu0 }
0x1475   : > { %v13651_v61 = vadd.f32 %v13595_v49, %v6628_v2  ;;  %v6629_v54 = vadd.f32 %v6586_v51, %v14565_v62 }
0x1477   : > { %v13655_v34 = vadd.f32 %v13595_v49, %v6629_v54  ;;  %v6682_v45 = vsel %vm866_vm2, %v13651_v61, 0.0  ;;  %v14572_v54 = vld [vmem:[#allocation30_spill] sm:$0xff] }
0x1478   : > { %v6435_v8 = vpop.f32.mrb[64].mxu0  ;;  %6683 = vadd.xlane.f32.xlu1 %v6682_v45 }
0x1479   : > { %v6591_v9 = vadd.f32 %v13574_v41, %v6435_v8  ;;  %v8302_v24 = vpop.f32.mrb[65].mxu0  ;;  %v6685_v0 = vsel %vm866_vm2, %v13655_v34, 0.0 }
0x147a   : > { %v6438_v46 = vpop.f32.mrb[66].mxu0  ;;  %6686 = vadd.xlane.f32.xlu0 %v6685_v0 }
0x147b   : > { %v6630_v32 = vadd.f32 %v6591_v9, %v14566_v36  ;;  %v6594_v3 = vadd.f32 %v13576_v48, %v6438_v46  ;;  %v8303_v52 = vpop.f32.mrb[67].mxu0 }
0x147d   : > { %v13665_v63 = vadd.f32 %v13595_v49, %v6630_v32  ;;  %v6631_v10 = vadd.f32 %v6594_v3, %v14567_v58 }
0x147f   : > { %v13669_v6 = vadd.f32 %v13595_v49, %v6631_v10  ;;  %v6688_v41 = vsel %vm866_vm2, %v13665_v63, 0.0 }
0x1480   : > { %v6443_v59 = vpop.f32.mrb[68].mxu0  ;;  %6689 = vadd.xlane.f32.xlu1 %v6688_v41 }
0x1481   : > { %v6599_v55 = vadd.f32 %v13578_v7, %v6443_v59  ;;  %v8306_v60 = vpop.f32.mrb[69].mxu0  ;;  %v6691_v48 = vsel %vm866_vm2, %v13669_v6, 0.0 }
0x1482   : > { %v6446_v26 = vpop.f32.mrb[70].mxu0  ;;  %6692 = vadd.xlane.f32.xlu0 %v6691_v48 }
0x1483   : > { %v6632_v37 = vadd.f32 %v6599_v55, %v14568_v56  ;;  %v6602_v44 = vadd.f32 %v13580_v53, %v6446_v26  ;;  %v8307_v27 = vpop.f32.mrb[71].mxu0 }
0x1485   : > { %v13679_v16 = vadd.f32 %v13595_v49, %v6632_v37  ;;  %v6633_v5 = vadd.f32 %v6602_v44, %v14569_v12 }
0x1487   : > { %v13683_v22 = vadd.f32 %v13595_v49, %v6633_v5  ;;  %v6694_v7 = vsel %vm866_vm2, %v13679_v16, 0.0 }
0x1488   : > { %v6451_v13 = vpop.f32.mrb[72].mxu0  ;;  %6695 = vadd.xlane.f32.xlu1 %v6694_v7 }
0x1489   : > { %v6607_v29 = vadd.f32 %v13582_v15, %v6451_v13  ;;  %v8310_v43 = vpop.f32.mrb[73].mxu0  ;;  %v6697_v53 = vsel %vm866_vm2, %v13683_v22, 0.0 }
0x148a   : > { %v6454_v42 = vpop.f32.mrb[74].mxu0  ;;  %6698 = vadd.xlane.f32.xlu0 %v6697_v53 }
0x148b   : > { %v6634_v25 = vadd.f32 %v6607_v29, %v14570_v18  ;;  %v6610_v47 = vadd.f32 %v13584_v35, %v6454_v42  ;;  %v8311_v57 = vpop.f32.mrb[75].mxu0 }
0x148d   : > { %v13693_v1 = vadd.f32 %v13595_v49, %v6634_v25  ;;  %v6635_v4 = vadd.f32 %v6610_v47, %v14571_v14 }
0x148f   : > { %v13697_v30 = vadd.f32 %v13595_v49, %v6635_v4  ;;  %v6700_v15 = vsel %vm866_vm2, %v13693_v1, 0.0 }
0x1490   : > { %v6459_v2 = vpop.f32.mrb[76].mxu0  ;;  %6701 = vadd.xlane.f32.xlu1 %v6700_v15 }
0x1491   : > { %v6615_v51 = vadd.f32 %v13586_v17, %v6459_v2  ;;  %v8314_v38 = vpop.f32.mrb[77].mxu0  ;;  %v6703_v35 = vsel %vm866_vm2, %v13697_v30, 0.0  ;;  %v8503_v17 = vld [vmem:[%s14113_s9 + $0x8] sm:$0xff]  }
0x1492   : > { %v6462_v62 = vpop.f32.mrb[78].mxu0  ;;  %6704 = vadd.xlane.f32.xlu0 %v6703_v35  ;;  %8361 = vmatpush3.bf16.msra.mxu0 %v8503_v17 }
0x1493   : > { %v6636_v45 = vadd.f32 %v6615_v51, %v14572_v54  ;;  %v8315_v8 = vpop.f32.mrb[79].mxu0  ;;  %7437 = vmatprep.subr.bf16.mxu0 %v14521_v11 }
0x1495   : > { %v13706_v9 = vadd.f32 %v13595_v49, %v6636_v45 }
0x1497   : > { %v6706_v24 = vsel %vm866_vm2, %v13706_v9, 0.0 }
0x1498   : > { %6707 = vadd.xlane.f32.xlu1 %v6706_v24 }
0x14ca   : > { %v6660_v0 = vpop.xlane.xlu1 %6659 }
0x14cb   : > { %v6709_v46 = vmul.f32 0.0625, %v6660_v0 }
0x14cd   : > { %v13715_v36 = vsub.f32 %v13599_v20, %v6709_v46 }
0x14ce   : > { %v6663_v32 = vpop.xlane.xlu1 %6662 }
0x14cf   : > { %v6710_v3 = vmul.f32 0.0625, %v6663_v32  ;;  %v6743_v49 = vmul.f32 %v13715_v36, %v13715_v36 }
0x14d1   : > { %v13720_v52 = vsub.f32 %v13603_v33, %v6710_v3  ;;  %v6760_v58 = vsel %vm866_vm2, %v6743_v49, 0.0 }
0x14d2   : > { %v6666_v10 = vpop.xlane.xlu1 %6665  ;;  %6761 = vadd.xlane.f32.xlu0 %v6760_v58 }
0x14d3   : > { %v6711_v41 = vmul.f32 0.0625, %v6666_v10  ;;  %v6744_v59 = vmul.f32 %v13720_v52, %v13720_v52 }
0x14d5   : > { %v13726_v55 = vsub.f32 %v13611_v28, %v6711_v41  ;;  %v6763_v60 = vsel %vm866_vm2, %v6744_v59, 0.0 }
0x14d6   : > { %v6669_v48 = vpop.xlane.xlu1 %6668  ;;  %6764 = vadd.xlane.f32.xlu1 %v6763_v60 }
0x14d7   : > { %v6712_v26 = vmul.f32 0.0625, %v6669_v48  ;;  %v6745_v56 = vmul.f32 %v13726_v55, %v13726_v55 }
0x14d9   : > { %v13732_v37 = vsub.f32 %v13615_v23, %v6712_v26  ;;  %v6766_v44 = vsel %vm866_vm2, %v6745_v56, 0.0 }
0x14da   : > { %v6672_v27 = vpop.xlane.xlu1 %6671  ;;  %6767 = vadd.xlane.f32.xlu0 %v6766_v44 }
0x14db   : > { %v6713_v12 = vmul.f32 0.0625, %v6672_v27  ;;  %v6746_v5 = vmul.f32 %v13732_v37, %v13732_v37 }
0x14dc   : > { %v6675_v7 = vpop.xlane.xlu0 %6674 }
0x14dd   : > { %v13738_v13 = vsub.f32 %v13623_v40, %v6713_v12  ;;  %v6714_v29 = vmul.f32 0.0625, %v6675_v7  ;;  %v6769_v43 = vsel %vm866_vm2, %v6746_v5, 0.0 }
0x14de   : > { %6770 = vadd.xlane.f32.xlu1 %v6769_v43 }
0x14df   : > { %v13742_v53 = vsub.f32 %v13627_v19, %v6714_v29  ;;  %v6747_v42 = vmul.f32 %v13738_v13, %v13738_v13 }
0x14e1   : > { %v6772_v18 = vsel %vm866_vm2, %v6747_v42, 0.0  ;;  %v6748_v25 = vmul.f32 %v13742_v53, %v13742_v53 }
0x14e2   : > { %6773 = vadd.xlane.f32.xlu0 %v6772_v18 }
0x14e3   : > { %v6775_v47 = vsel %vm866_vm2, %v6748_v25, 0.0 }
0x14e4   : > { %6776 = vadd.xlane.f32.xlu1 %v6775_v47 }
0x14fd   : > { %v6678_v57 = vpop.xlane.xlu1 %6677 }
0x14fe   : > { %v6715_v14 = vmul.f32 0.0625, %v6678_v57 }
0x14ff   : > { %v6681_v4 = vpop.xlane.xlu0 %6680 }
0x1500   : > { %v13751_v15 = vsub.f32 %v13637_v21, %v6715_v14  ;;  %v6716_v2 = vmul.f32 0.0625, %v6681_v4 }
0x1502   : > { %v13754_v51 = vsub.f32 %v13641_v31, %v6716_v2  ;;  %v6749_v38 = vmul.f32 %v13751_v15, %v13751_v15 }
0x1504   : > { %v6778_v35 = vsel %vm866_vm2, %v6749_v38, 0.0  ;;  %v6750_v62 = vmul.f32 %v13754_v51, %v13754_v51 }
0x1505   : > { %v6684_v54 = vpop.xlane.xlu1 %6683  ;;  %6779 = vadd.xlane.f32.xlu0 %v6778_v35 }
0x1506   : > { %v6717_v45 = vmul.f32 0.0625, %v6684_v54  ;;  %v6781_v8 = vsel %vm866_vm2, %v6750_v62, 0.0 }
0x1507   : > { %v6687_v24 = vpop.xlane.xlu0 %6686  ;;  %6782 = vadd.xlane.f32.xlu1 %v6781_v8 }
0x1508   : > { %v13763_v17 = vsub.f32 %v13651_v61, %v6717_v45  ;;  %v6718_v0 = vmul.f32 0.0625, %v6687_v24 }
0x150a   : > { %v13766_v46 = vsub.f32 %v13655_v34, %v6718_v0  ;;  %v6751_v32 = vmul.f32 %v13763_v17, %v13763_v17 }
0x150c   : > { %v6784_v3 = vsel %vm866_vm2, %v6751_v32, 0.0  ;;  %v6752_v49 = vmul.f32 %v13766_v46, %v13766_v46 }
0x150d   : > { %v6690_v58 = vpop.xlane.xlu1 %6689  ;;  %6785 = vadd.xlane.f32.xlu0 %v6784_v3 }
0x150e   : > { %v6719_v10 = vmul.f32 0.0625, %v6690_v58  ;;  %v6787_v41 = vsel %vm866_vm2, %v6752_v49, 0.0 }
0x150f   : > { %v6693_v59 = vpop.xlane.xlu0 %6692  ;;  %6788 = vadd.xlane.f32.xlu1 %v6787_v41  ;;  %v7847_v41 = vld [vmem:[%s14114_s10 + $0x4] sm:$0xf] }
0x1510   : > { %v13775_v60 = vsub.f32 %v13665_v63, %v6719_v10  ;;  %v6720_v48 = vmul.f32 0.0625, %v6693_v59  ;;  %v7266_v59 = vsel %vm2434_vm4, %v7847_v41, 0 }
0x1511   : > { %8399 = vmatpush3.bf16.msra.mxu1 %v7266_v59 }
0x1512   : > { %v13778_v26 = vsub.f32 %v13669_v6, %v6720_v48  ;;  %v6753_v56 = vmul.f32 %v13775_v60, %v13775_v60 }
0x1514   : > { %v6790_v44 = vsel %vm866_vm2, %v6753_v56, 0.0  ;;  %v6754_v27 = vmul.f32 %v13778_v26, %v13778_v26 }
0x1515   : > { %v6696_v12 = vpop.xlane.xlu1 %6695  ;;  %6791 = vadd.xlane.f32.xlu0 %v6790_v44 }
0x1516   : > { %v6721_v5 = vmul.f32 0.0625, %v6696_v12  ;;  %v6793_v7 = vsel %vm866_vm2, %v6754_v27, 0.0 }
0x1517   : > { %v6699_v29 = vpop.xlane.xlu0 %6698  ;;  %6794 = vadd.xlane.f32.xlu1 %v6793_v7 }
0x1518   : > { %v13787_v43 = vsub.f32 %v13679_v16, %v6721_v5  ;;  %v6722_v42 = vmul.f32 0.0625, %v6699_v29 }
0x151a   : > { %v13790_v18 = vsub.f32 %v13683_v22, %v6722_v42  ;;  %v6755_v25 = vmul.f32 %v13787_v43, %v13787_v43 }
0x151c   : > { %v6796_v47 = vsel %vm866_vm2, %v6755_v25, 0.0  ;;  %v6756_v57 = vmul.f32 %v13790_v18, %v13790_v18 }
0x151d   : > { %v6702_v14 = vpop.xlane.xlu1 %6701  ;;  %6797 = vadd.xlane.f32.xlu0 %v6796_v47 }
0x151e   : > { %v6723_v4 = vmul.f32 0.0625, %v6702_v14  ;;  %v6799_v2 = vsel %vm866_vm2, %v6756_v57, 0.0 }
0x151f   : > { %v6705_v38 = vpop.xlane.xlu0 %6704  ;;  %6800 = vadd.xlane.f32.xlu1 %v6799_v2 }
0x1520   : > { %v13799_v35 = vsub.f32 %v13693_v1, %v6723_v4  ;;  %v6724_v62 = vmul.f32 0.0625, %v6705_v38  ;;  %v14573_v4 = vld [vmem:[#allocation6_spill] sm:$0xff] }
0x1521   : > { %v13822_v2 = vrot.slane %v13591_v50, %v14573_v4 }
0x1522   : > { %v13802_v54 = vsub.f32 %v13697_v30, %v6724_v62  ;;  %v6757_v45 = vmul.f32 %v13799_v35, %v13799_v35 }
0x1524   : > { %v6802_v8 = vsel %vm866_vm2, %v6757_v45, 0.0  ;;  %v6758_v24 = vmul.f32 %v13802_v54, %v13802_v54 }
0x1525   : > { %6803 = vadd.xlane.f32.xlu0 %v6802_v8  ;;  %v6708_v0 = vpop.xlane.xlu1 %6707 }
0x1526   : > { %v6725_v32 = vmul.f32 0.0625, %v6708_v0  ;;  %v6805_v3 = vsel %vm866_vm2, %v6758_v24, 0.0 }
0x1527   : > { %6806 = vadd.xlane.f32.xlu1 %v6805_v3  ;;  %v14574_v3 = vld [vmem:[#allocation7_spill] sm:$0xff] }
0x1528   : > { %v13811_v49 = vsub.f32 %v13706_v9, %v6725_v32 }
0x152a   : > { %v6759_v58 = vmul.f32 %v13811_v49, %v13811_v49 }
0x152c   : > { %v6808_v10 = vsel %vm866_vm2, %v6759_v58, 0.0  ;;  %v13827_v58 = vrot.slane %v13591_v50, %v14574_v3 }
0x152d   : > { %6809 = vadd.xlane.f32.xlu0 %v6808_v10 }
0x155f   : > { %v6762_v48 = vpop.xlane.xlu0 %6761 }
0x1560   : > { %v6811_v56 = vmul.f32 0.0625, %v6762_v48 }
0x1562   : > { %v6828_v44 = vadd.f32 1e-05, %v6811_v56 }
0x1563   : > { %v6765_v27 = vpop.xlane.xlu1 %6764 }
0x1564   : > { %9117 = vrsqrt.f32 %v6828_v44  ;;  %v6812_v12 = vmul.f32 0.0625, %v6765_v27 }
0x1566   : > { %v6829_v5 = vadd.f32 1e-05, %v6812_v12 }
0x1567   : > { %v6768_v7 = vpop.xlane.xlu0 %6767 }
0x1568   : > { %9119 = vrsqrt.f32 %v6829_v5  ;;  %v6813_v29 = vmul.f32 0.0625, %v6768_v7 }
0x156a   : > { %v6830_v42 = vadd.f32 1e-05, %v6813_v29 }
0x156b   : > { %v6771_v25 = vpop.xlane.xlu1 %6770 }
0x156c   : > { %9121 = vrsqrt.f32 %v6830_v42  ;;  %v6814_v47 = vmul.f32 0.0625, %v6771_v25 }
0x156e   : > { %v9118_v57 = vpop.eup %9117  ;;  %v6831_v14 = vadd.f32 1e-05, %v6814_v47 }
0x156f   : > { %v6862_v38 = vmul.f32 %v9118_v57, %v13715_v36  ;;  %v6774_v62 = vpop.xlane.xlu0 %6773 }
0x1570   : > { %9123 = vrsqrt.f32 %v6831_v14  ;;  %v6815_v45 = vmul.f32 0.0625, %v6774_v62 }
0x1571   : > { %v6777_v8 = vpop.xlane.xlu1 %6776  ;;  %v6883_v10 = vmul.f32 %v13822_v2, %v6862_v38 }
0x1572   : > { %v9120_v24 = vpop.eup %9119  ;;  %v6832_v0 = vadd.f32 1e-05, %v6815_v45  ;;  %v6816_v32 = vmul.f32 0.0625, %v6777_v8 }
0x1573   : > { %v6863_v41 = vmul.f32 %v9120_v24, %v13720_v52  ;;  %v6904_v56 = vadd.f32 %v13827_v58, %v6883_v10 }
0x1574   : > { %9125 = vrsqrt.f32 %v6832_v0  ;;  %v6833_v59 = vadd.f32 1e-05, %v6816_v32 }
0x1575   : > { %v6884_v48 = vmul.f32 %v13822_v2, %v6863_v41 }
0x1576   : > { %v9122_v36 = vpop.eup %9121  ;;  %9127 = vrsqrt.f32 %v6833_v59 }
0x1577   : > { %v6905_v44 = vadd.f32 %v13827_v58, %v6884_v48  ;;  %v6864_v27 = vmul.f32 %v9122_v36, %v13726_v55 }
0x1579   : > { %v6921_v12 = vpack.c.bf16 %v6905_v44, %v6904_v56  ;;  %v6885_v7 = vmul.f32 %v13822_v2, %v6864_v27 }
0x157a   : > { %v9124_v5 = vpop.eup %9123 }
0x157b   : > { %v6865_v29 = vmul.f32 %v9124_v5, %v13732_v37  ;;  %8363 = vmatmul.mubr.msk.bf16.vlgmr.msra.gmra.mrb[80].mxu0 %vm866_vm2, %v6921_v12  ;;  %v6906_v25 = vadd.f32 %v13827_v58, %v6885_v7 }
0x157c   : > { %8366 = vmatprep.mubr.msk.bf16.mxu0 %vm9235_vm1, %v14546_v39 }
0x157d   : > { %v6886_v52 = vmul.f32 %v13822_v2, %v6865_v29 }
0x157e   : > { %v9126_v42 = vpop.eup %9125 }
0x157f   : > { %v6907_v47 = vadd.f32 %v13827_v58, %v6886_v52  ;;  %v6866_v55 = vmul.f32 %v9126_v42, %v13738_v13 }
0x1580   : > { %v9128_v57 = vpop.eup %9127 }
0x1581   : > { %v6922_v14 = vpack.c.bf16 %v6907_v47, %v6906_v25  ;;  %v6867_v4 = vmul.f32 %v9128_v57, %v13742_v53  ;;  %v6887_v37 = vmul.f32 %v13822_v2, %v6866_v55 }
0x1583   : > { %v6888_v38 = vmul.f32 %v13822_v2, %v6867_v4  ;;  %8367 = vmatmul.mubr.msk.bf16.gmra.mrb[84].mxu0 %vm866_vm2, %v6922_v14  ;;  %v6908_v45 = vadd.f32 %v13827_v58, %v6887_v37 }
0x1584   : > { %8370 = vmatprep.mubr.msk.bf16.mxu0 %vm9235_vm1, %v14546_v39 }
0x1585   : > { %v6909_v62 = vadd.f32 %v13827_v58, %v6888_v38 }
0x1587   : > { %v6923_v8 = vpack.c.bf16 %v6909_v62, %v6908_v45 }
0x158b   : > { %8371 = vmatmul.mubr.msk.bf16.gmra.mrb[88].mxu0 %vm866_vm2, %v6923_v8 }
0x158c   : > { %8374 = vmatprep.mubr.msk.bf16.mxu0 %vm9235_vm1, %v14546_v39 }
0x1592   : > { %v6780_v13 = vpop.xlane.xlu0 %6779 }
0x1593   : > { %v6817_v53 = vmul.f32 0.0625, %v6780_v13 }
0x1594   : > { %v6783_v24 = vpop.xlane.xlu1 %6782 }
0x1595   : > { %v6834_v0 = vadd.f32 1e-05, %v6817_v53  ;;  %v6818_v32 = vmul.f32 0.0625, %v6783_v24 }
0x1597   : > { %9129 = vrsqrt.f32 %v6834_v0  ;;  %v6835_v3 = vadd.f32 1e-05, %v6818_v32 }
0x1599   : > { %9131 = vrsqrt.f32 %v6835_v3 }
0x159a   : > { %v6786_v10 = vpop.xlane.xlu0 %6785 }
0x159b   : > { %v6819_v41 = vmul.f32 0.0625, %v6786_v10 }
0x159c   : > { %v6789_v59 = vpop.xlane.xlu1 %6788 }
0x159d   : > { %v6836_v48 = vadd.f32 1e-05, %v6819_v41  ;;  %v6820_v36 = vmul.f32 0.0625, %v6789_v59 }
0x159f   : > { %9133 = vrsqrt.f32 %v6836_v48  ;;  %v6837_v56 = vadd.f32 1e-05, %v6820_v36 }
0x15a1   : > { %v9130_v44 = vpop.eup %9129  ;;  %9135 = vrsqrt.f32 %v6837_v56 }
0x15a2   : > { %v6868_v27 = vmul.f32 %v9130_v44, %v13751_v15  ;;  %v6792_v12 = vpop.xlane.xlu0 %6791 }
0x15a3   : > { %v9132_v5 = vpop.eup %9131  ;;  %v6821_v7 = vmul.f32 0.0625, %v6792_v12 }
0x15a4   : > { %v6889_v29 = vmul.f32 %v13822_v2, %v6868_v27  ;;  %v6869_v52 = vmul.f32 %v9132_v5, %v13754_v51  ;;  %v6795_v42 = vpop.xlane.xlu1 %6794 }
0x15a5   : > { %v6838_v25 = vadd.f32 1e-05, %v6821_v7  ;;  %v6822_v47 = vmul.f32 0.0625, %v6795_v42 }
0x15a6   : > { %v6890_v55 = vmul.f32 %v13822_v2, %v6869_v52  ;;  %v6910_v14 = vadd.f32 %v13827_v58, %v6889_v29 }
0x15a7   : > { %9137 = vrsqrt.f32 %v6838_v25  ;;  %v6839_v57 = vadd.f32 1e-05, %v6822_v47 }
0x15a8   : > { %v6911_v4 = vadd.f32 %v13827_v58, %v6890_v55 }
0x15a9   : > { %v9134_v37 = vpop.eup %9133  ;;  %9139 = vrsqrt.f32 %v6839_v57 }
0x15aa   : > { %v6924_v15 = vpack.c.bf16 %v6911_v4, %v6910_v14  ;;  %v6870_v38 = vmul.f32 %v9134_v37, %v13763_v17  ;;  %v6798_v62 = vpop.xlane.xlu0 %6797 }
0x15ab   : > { %v9136_v45 = vpop.eup %9135  ;;  %v6823_v8 = vmul.f32 0.0625, %v6798_v62 }
0x15ac   : > { %v6891_v51 = vmul.f32 %v13822_v2, %v6870_v38  ;;  %v6871_v13 = vmul.f32 %v9136_v45, %v13766_v46  ;;  %8375 = vmatmul.mubr.msk.bf16.gmra.mrb[92].mxu0 %vm866_vm2, %v6924_v15  ;;  %v6801_v53 = vpop.xlane.xlu1 %6800 }
0x15ad   : > { %v6840_v24 = vadd.f32 1e-05, %v6823_v8  ;;  %v6824_v0 = vmul.f32 0.0625, %v6801_v53  ;;  %8378 = vmatprep.mubr.msk.bf16.mxu0 %vm9235_vm1, %v14546_v39 }
0x15ae   : > { %v6892_v32 = vmul.f32 %v13822_v2, %v6871_v13  ;;  %v6912_v17 = vadd.f32 %v13827_v58, %v6891_v51 }
0x15af   : > { %9141 = vrsqrt.f32 %v6840_v24  ;;  %v6841_v3 = vadd.f32 1e-05, %v6824_v0 }
0x15b0   : > { %v6913_v10 = vadd.f32 %v13827_v58, %v6892_v32 }
0x15b1   : > { %v9138_v41 = vpop.eup %9137  ;;  %9143 = vrsqrt.f32 %v6841_v3 }
0x15b2   : > { %v6925_v59 = vpack.c.bf16 %v6913_v10, %v6912_v17  ;;  %v6872_v46 = vmul.f32 %v9138_v41, %v13775_v60  ;;  %v6804_v48 = vpop.xlane.xlu0 %6803 }
0x15b3   : > { %v9140_v36 = vpop.eup %9139  ;;  %v6825_v56 = vmul.f32 0.0625, %v6804_v48 }
0x15b4   : > { %v6893_v44 = vmul.f32 %v13822_v2, %v6872_v46  ;;  %v6873_v27 = vmul.f32 %v9140_v36, %v13778_v26  ;;  %8379 = vmatmul.mubr.msk.bf16.gmra.mrb[96].mxu0 %vm866_vm2, %v6925_v59  ;;  %v6807_v12 = vpop.xlane.xlu1 %6806  ;;  %v14575_v59 = vld [vmem:[#allocation46_spill] sm:$0xff] }
0x15b5   : > { %v6842_v5 = vadd.f32 1e-05, %v6825_v56  ;;  %v6826_v7 = vmul.f32 0.0625, %v6807_v12  ;;  %8382 = vmatprep.mubr.msk.bf16.mxu0 %vm9235_vm1, %v14546_v39  ;;  %v13906_v46 = vrot.slane %v13591_v50, %v14575_v59 }
0x15b6   : > { %v6894_v29 = vmul.f32 %v13822_v2, %v6873_v27  ;;  %v6914_v60 = vadd.f32 %v13827_v58, %v6893_v44 }
0x15b7   : > { %9145 = vrsqrt.f32 %v6842_v5  ;;  %v6843_v52 = vadd.f32 1e-05, %v6826_v7 }
0x15b8   : > { %v6915_v42 = vadd.f32 %v13827_v58, %v6894_v29 }
0x15b9   : > { %v9142_v25 = vpop.eup %9141  ;;  %9147 = vrsqrt.f32 %v6843_v52 }
0x15ba   : > { %v6926_v47 = vpack.c.bf16 %v6915_v42, %v6914_v60  ;;  %v6874_v26 = vmul.f32 %v9142_v25, %v13787_v43  ;;  %v6810_v55 = vpop.xlane.xlu0 %6809 }
0x15bb   : > { %v9144_v57 = vpop.eup %9143  ;;  %v6827_v14 = vmul.f32 0.0625, %v6810_v55 }
0x15bc   : > { %v6895_v4 = vmul.f32 %v13822_v2, %v6874_v26  ;;  %v6875_v37 = vmul.f32 %v9144_v57, %v13790_v18  ;;  %8383 = vmatmul.mubr.msk.bf16.gmra.mrb[100].mxu0 %vm866_vm2, %v6926_v47 }
0x15bd   : > { %v6844_v15 = vadd.f32 1e-05, %v6827_v14  ;;  %8386 = vmatprep.mubr.msk.bf16.mxu0 %vm9235_vm1, %v14546_v39 }
0x15be   : > { %v6896_v38 = vmul.f32 %v13822_v2, %v6875_v37  ;;  %v6916_v62 = vadd.f32 %v13827_v58, %v6895_v4 }
0x15bf   : > { %9149 = vrsqrt.f32 %v6844_v15 }
0x15c0   : > { %v6917_v43 = vadd.f32 %v13827_v58, %v6896_v38 }
0x15c1   : > { %v9146_v45 = vpop.eup %9145 }
0x15c2   : > { %v6927_v8 = vpack.c.bf16 %v6917_v43, %v6916_v62  ;;  %v6876_v51 = vmul.f32 %v9146_v45, %v13799_v35 }
0x15c3   : > { %v9148_v13 = vpop.eup %9147 }
0x15c4   : > { %v6897_v18 = vmul.f32 %v13822_v2, %v6876_v51  ;;  %v6877_v53 = vmul.f32 %v9148_v13, %v13802_v54  ;;  %8387 = vmatmul.mubr.msk.bf16.gmra.mrb[104].mxu0 %vm866_vm2, %v6927_v8 }
0x15c5   : > { %8390 = vmatprep.mubr.msk.bf16.mxu0 %vm9235_vm1, %v14546_v39 }
0x15c6   : > { %v6898_v24 = vmul.f32 %v13822_v2, %v6877_v53  ;;  %v6918_v0 = vadd.f32 %v13827_v58, %v6897_v18 }
0x15c8   : > { %v6919_v32 = vadd.f32 %v13827_v58, %v6898_v24 }
0x15c9   : > { %v9150_v3 = vpop.eup %9149 }
0x15ca   : > { %v6928_v17 = vpack.c.bf16 %v6919_v32, %v6918_v0  ;;  %v6878_v35 = vmul.f32 %v9150_v3, %v13811_v49 }
0x15cc   : > { %v6899_v10 = vmul.f32 %v13822_v2, %v6878_v35  ;;  %8391 = vmatmul.mubr.msk.bf16.gmra.mrb[108].mxu0 %vm866_vm2, %v6928_v17 }
0x15cd   : > { %8394 = vmatprep.mubr.msk.bf16.mxu0 %vm9235_vm1, %v14546_v39 }
0x15ce   : > { %v6920_v54 = vadd.f32 %v13827_v58, %v6899_v10 }
0x15d0   : > { %v6929_v41 = vpack.c.bf16 %v6920_v54, %v6920_v54 }
0x15d4   : > { %8395 = vmatmul.mubr.msk.bf16.gmra.mrb[112].mxu0 %vm866_vm2, %v6929_v41 }
0x164e   : > { %v7004_v48 = vpop.f32.mrb[80].mxu0 }
0x164f   : > { %v7005_v36 = vadd.f32 %v7004_v48, %v13906_v46  ;;  %v8364_v49 = vpop.f32.mrb[81].mxu0 }
0x1650   : > { %v7007_v56 = vpop.f32.mrb[82].mxu0 }
0x1651   : > { %v7074_v2 = vmul.f32 %v7005_v36, %v7005_v36  ;;  %v7008_v44 = vadd.f32 %v7007_v56, %v13906_v46  ;;  %v8365_v27 = vpop.f32.mrb[83].mxu0 }
0x1653   : > { %v7091_v12 = vmul.f32 %v7074_v2, %v7005_v36  ;;  %v7075_v5 = vmul.f32 %v7008_v44, %v7008_v44 }
0x1655   : > { %v7108_v7 = vmul.f32 0.044715, %v7091_v12  ;;  %v7092_v58 = vmul.f32 %v7075_v5, %v7008_v44 }
0x1656   : > { %v7012_v29 = vpop.f32.mrb[84].mxu0 }
0x1657   : > { %v7125_v52 = vadd.f32 %v7108_v7, %v7005_v36  ;;  %v7109_v60 = vmul.f32 0.044715, %v7092_v58  ;;  %v7013_v42 = vadd.f32 %v7012_v29, %v13906_v46  ;;  %v8368_v50 = vpop.f32.mrb[85].mxu0 }
0x1658   : > { %v7015_v25 = vpop.f32.mrb[86].mxu0 }
0x1659   : > { %v7142_v47 = vmul.f32 0.7978846, %v7125_v52  ;;  %v7126_v26 = vadd.f32 %v7109_v60, %v7008_v44  ;;  %v7076_v55 = vmul.f32 %v7013_v42, %v7013_v42  ;;  %v7016_v57 = vadd.f32 %v7015_v25, %v13906_v46  ;;  %v8369_v14 = vpop.f32.mrb[87].mxu0 }
0x165b   : > { %9151 = vtanh.f32 %v7142_v47  ;;  %v7143_v4 = vmul.f32 0.7978846, %v7126_v26  ;;  %v7093_v37 = vmul.f32 %v7076_v55, %v7013_v42  ;;  %v7077_v15 = vmul.f32 %v7016_v57, %v7016_v57 }
0x165d   : > { %9153 = vtanh.f32 %v7143_v4  ;;  %v7110_v38 = vmul.f32 0.044715, %v7093_v37  ;;  %v7094_v62 = vmul.f32 %v7077_v15, %v7016_v57 }
0x165e   : > { %v7020_v43 = vpop.f32.mrb[88].mxu0 }
0x165f   : > { %v7127_v45 = vadd.f32 %v7110_v38, %v7013_v42  ;;  %v7111_v8 = vmul.f32 0.044715, %v7094_v62  ;;  %v7021_v51 = vadd.f32 %v7020_v43, %v13906_v46  ;;  %v8372_v13 = vpop.f32.mrb[89].mxu0 }
0x1660   : > { %v7023_v18 = vpop.f32.mrb[90].mxu0 }
0x1661   : > { %v7144_v53 = vmul.f32 0.7978846, %v7127_v45  ;;  %v7128_v24 = vadd.f32 %v7111_v8, %v7016_v57  ;;  %v7078_v0 = vmul.f32 %v7021_v51, %v7021_v51  ;;  %v7024_v32 = vadd.f32 %v7023_v18, %v13906_v46  ;;  %v8373_v3 = vpop.f32.mrb[91].mxu0 }
0x1663   : > { %9155 = vtanh.f32 %v7144_v53  ;;  %v7145_v17 = vmul.f32 0.7978846, %v7128_v24  ;;  %v7095_v35 = vmul.f32 %v7078_v0, %v7021_v51  ;;  %v7079_v10 = vmul.f32 %v7024_v32, %v7024_v32 }
0x1665   : > { %v9152_v54 = vpop.eup %9151  ;;  %9157 = vtanh.f32 %v7145_v17  ;;  %v7112_v41 = vmul.f32 0.044715, %v7095_v35  ;;  %v7096_v48 = vmul.f32 %v7079_v10, %v7024_v32 }
0x1666   : > { %v7176_v49 = vadd.f32 1.0, %v9152_v54 }
0x1667   : > { %v9154_v56 = vpop.eup %9153  ;;  %v7129_v2 = vadd.f32 %v7112_v41, %v7021_v51  ;;  %v7113_v27 = vmul.f32 0.044715, %v7096_v48 }
0x1668   : > { %v7193_v12 = vmul.f32 0.5, %v7176_v49  ;;  %v7177_v5 = vadd.f32 1.0, %v9154_v56 }
0x1669   : > { %v7146_v7 = vmul.f32 0.7978846, %v7129_v2  ;;  %v7130_v58 = vadd.f32 %v7113_v27, %v7024_v32 }
0x166a   : > { %v7194_v29 = vmul.f32 0.5, %v7177_v5  ;;  %v7210_v60 = vmul.f32 %v7193_v12, %v7005_v36 }
0x166b   : > { %9159 = vtanh.f32 %v7146_v7  ;;  %v7147_v52 = vmul.f32 0.7978846, %v7130_v58 }
0x166c   : > { %v7211_v50 = vmul.f32 %v7194_v29, %v7008_v44 }
0x166d   : > { %v9156_v25 = vpop.eup %9155  ;;  %9161 = vtanh.f32 %v7147_v52 }
0x166e   : > { %v7227_v47 = vpack.c.bf16 %v7211_v50, %v7210_v60  ;;  %v7178_v26 = vadd.f32 1.0, %v9156_v25 }
0x166f   : > { %v9158_v55 = vpop.eup %9157 }
0x1670   : > { %v7195_v14 = vmul.f32 0.5, %v7178_v26  ;;  %v7179_v4 = vadd.f32 1.0, %v9158_v55  ;;  %8401 = vmatmul.mubr.msk.bf16.vlgmr.msra.gmra.mrb[92].mxu1 %vm2090_vm5, %v7227_v47 }
0x1671   : > { %8404 = vmatprep.mubr.msk.bf16.mxu1 %vm9235_vm1, %v14546_v39 }
0x1672   : > { %v7196_v37 = vmul.f32 0.5, %v7179_v4  ;;  %v7212_v15 = vmul.f32 %v7195_v14, %v7013_v42 }
0x1674   : > { %v7213_v38 = vmul.f32 %v7196_v37, %v7016_v57 }
0x1675   : > { %v9160_v62 = vpop.eup %9159 }
0x1676   : > { %v7228_v43 = vpack.c.bf16 %v7213_v38, %v7212_v15  ;;  %v7180_v45 = vadd.f32 1.0, %v9160_v62 }
0x1677   : > { %v9162_v36 = vpop.eup %9161 }
0x1678   : > { %v7197_v44 = vmul.f32 0.5, %v7180_v45  ;;  %v7181_v8 = vadd.f32 1.0, %v9162_v36  ;;  %8405 = vmatmul.mubr.msk.bf16.gmra.mrb[96].mxu1 %vm2090_vm5, %v7228_v43 }
0x1679   : > { %8408 = vmatprep.mubr.msk.bf16.mxu1 %vm9235_vm1, %v14546_v39 }
0x167a   : > { %v7198_v13 = vmul.f32 0.5, %v7181_v8  ;;  %v7214_v18 = vmul.f32 %v7197_v44, %v7021_v51 }
0x167c   : > { %v7215_v53 = vmul.f32 %v7198_v13, %v7024_v32 }
0x167e   : > { %v7229_v24 = vpack.c.bf16 %v7215_v53, %v7214_v18 }
0x167f   : > { %v7028_v0 = vpop.f32.mrb[92].mxu0 }
0x1680   : > { %v13921_v3 = vadd.f32 %v7028_v0, %v13906_v46  ;;  %v8376_v42 = vpop.f32.mrb[93].mxu0  ;;  %8409 = vmatmul.mubr.msk.bf16.gmra.mrb[100].mxu1 %vm2090_vm5, %v7229_v24 }
0x1681   : > { %v7031_v57 = vpop.f32.mrb[94].mxu0  ;;  %8412 = vmatprep.mubr.msk.bf16.mxu1 %vm9235_vm1, %v14546_v39 }
0x1682   : > { %v7080_v17 = vmul.f32 %v13921_v3, %v13921_v3  ;;  %v13927_v35 = vadd.f32 %v7031_v57, %v13906_v46  ;;  %v8377_v10 = vpop.f32.mrb[95].mxu0 }
0x1684   : > { %v7097_v51 = vmul.f32 %v7080_v17, %v13921_v3  ;;  %v7081_v32 = vmul.f32 %v13927_v35, %v13927_v35 }
0x1686   : > { %v7114_v54 = vmul.f32 0.044715, %v7097_v51  ;;  %v7098_v41 = vmul.f32 %v7081_v32, %v13927_v35 }
0x1687   : > { %v7036_v48 = vpop.f32.mrb[96].mxu0 }
0x1688   : > { %v7131_v49 = vadd.f32 %v7114_v54, %v13921_v3  ;;  %v7115_v56 = vmul.f32 0.044715, %v7098_v41  ;;  %v13937_v2 = vadd.f32 %v7036_v48, %v13906_v46  ;;  %v8380_v27 = vpop.f32.mrb[97].mxu0 }
0x1689   : > { %v7039_v12 = vpop.f32.mrb[98].mxu0 }
0x168a   : > { %v7148_v5 = vmul.f32 0.7978846, %v7131_v49  ;;  %v7132_v7 = vadd.f32 %v7115_v56, %v13927_v35  ;;  %v7082_v58 = vmul.f32 %v13937_v2, %v13937_v2  ;;  %v13943_v29 = vadd.f32 %v7039_v12, %v13906_v46  ;;  %v8381_v52 = vpop.f32.mrb[99].mxu0 }
0x168c   : > { %9163 = vtanh.f32 %v7148_v5  ;;  %v7149_v60 = vmul.f32 0.7978846, %v7132_v7  ;;  %v7099_v50 = vmul.f32 %v7082_v58, %v13937_v2  ;;  %v7083_v25 = vmul.f32 %v13943_v29, %v13943_v29 }
0x168e   : > { %9165 = vtanh.f32 %v7149_v60  ;;  %v7116_v47 = vmul.f32 0.044715, %v7099_v50  ;;  %v7100_v26 = vmul.f32 %v7083_v25, %v13943_v29 }
0x168f   : > { %v7044_v55 = vpop.f32.mrb[100].mxu0 }
0x1690   : > { %v7133_v14 = vadd.f32 %v7116_v47, %v13937_v2  ;;  %v7117_v4 = vmul.f32 0.044715, %v7100_v26  ;;  %v13951_v37 = vadd.f32 %v7044_v55, %v13906_v46  ;;  %v8384_v15 = vpop.f32.mrb[101].mxu0 }
0x1691   : > { %v7047_v38 = vpop.f32.mrb[102].mxu0 }
0x1692   : > { %v7150_v62 = vmul.f32 0.7978846, %v7133_v14  ;;  %v7134_v43 = vadd.f32 %v7117_v4, %v13943_v29  ;;  %v7084_v45 = vmul.f32 %v13951_v37, %v13951_v37  ;;  %v13957_v36 = vadd.f32 %v7047_v38, %v13906_v46  ;;  %v8385_v44 = vpop.f32.mrb[103].mxu0 }
0x1694   : > { %9167 = vtanh.f32 %v7150_v62  ;;  %v7151_v8 = vmul.f32 0.7978846, %v7134_v43  ;;  %v7101_v13 = vmul.f32 %v7084_v45, %v13951_v37  ;;  %v7085_v18 = vmul.f32 %v13957_v36, %v13957_v36 }
0x1696   : > { %v9164_v53 = vpop.eup %9163  ;;  %9169 = vtanh.f32 %v7151_v8  ;;  %v7118_v24 = vmul.f32 0.044715, %v7101_v13  ;;  %v7102_v0 = vmul.f32 %v7085_v18, %v13957_v36 }
0x1697   : > { %v7182_v42 = vadd.f32 1.0, %v9164_v53  ;;  %v7052_v57 = vpop.f32.mrb[104].mxu0 }
0x1698   : > { %v9166_v17 = vpop.eup %9165  ;;  %v7135_v10 = vadd.f32 %v7118_v24, %v13951_v37  ;;  %v7119_v51 = vmul.f32 0.044715, %v7102_v0  ;;  %v13965_v32 = vadd.f32 %v7052_v57, %v13906_v46  ;;  %v8388_v54 = vpop.f32.mrb[105].mxu0 }
0x1699   : > { %v7199_v41 = vmul.f32 0.5, %v7182_v42  ;;  %v7183_v48 = vadd.f32 1.0, %v9166_v17  ;;  %v7055_v49 = vpop.f32.mrb[106].mxu0 }
0x169a   : > { %v7152_v56 = vmul.f32 0.7978846, %v7135_v10  ;;  %v7136_v27 = vadd.f32 %v7119_v51, %v13957_v36  ;;  %v7086_v12 = vmul.f32 %v13965_v32, %v13965_v32  ;;  %v13971_v5 = vadd.f32 %v7055_v49, %v13906_v46  ;;  %v8389_v7 = vpop.f32.mrb[107].mxu0 }
0x169b   : > { %v7200_v58 = vmul.f32 0.5, %v7183_v48  ;;  %v7216_v25 = vmul.f32 %v7199_v41, %v13921_v3 }
0x169c   : > { %9171 = vtanh.f32 %v7152_v56  ;;  %v7153_v52 = vmul.f32 0.7978846, %v7136_v27  ;;  %v7103_v60 = vmul.f32 %v7086_v12, %v13965_v32  ;;  %v7087_v50 = vmul.f32 %v13971_v5, %v13971_v5 }
0x169d   : > { %v7217_v47 = vmul.f32 %v7200_v58, %v13927_v35 }
0x169e   : > { %v9168_v26 = vpop.eup %9167  ;;  %9173 = vtanh.f32 %v7153_v52  ;;  %v7120_v55 = vmul.f32 0.044715, %v7103_v60  ;;  %v7104_v14 = vmul.f32 %v7087_v50, %v13971_v5 }
0x169f   : > { %v7230_v4 = vpack.c.bf16 %v7217_v47, %v7216_v25  ;;  %v7184_v15 = vadd.f32 1.0, %v9168_v26  ;;  %v7060_v38 = vpop.f32.mrb[108].mxu0 }
0x16a0   : > { %v9170_v62 = vpop.eup %9169  ;;  %v7137_v43 = vadd.f32 %v7120_v55, %v13965_v32  ;;  %v7121_v45 = vmul.f32 0.044715, %v7104_v14  ;;  %v13981_v44 = vadd.f32 %v7060_v38, %v13906_v46  ;;  %v8392_v8 = vpop.f32.mrb[109].mxu0 }
0x16a1   : > { %v7201_v13 = vmul.f32 0.5, %v7184_v15  ;;  %v7185_v3 = vadd.f32 1.0, %v9170_v62  ;;  %v7063_v18 = vpop.f32.mrb[110].mxu0  ;;  %8413 = vmatmul.mubr.msk.bf16.gmra.mrb[104].mxu1 %vm2090_vm5, %v7230_v4 }
0x16a2   : > { %v7154_v35 = vmul.f32 0.7978846, %v7137_v43  ;;  %v7138_v53 = vadd.f32 %v7121_v45, %v13971_v5  ;;  %v7088_v24 = vmul.f32 %v13981_v44, %v13981_v44  ;;  %v13988_v0 = vadd.f32 %v7063_v18, %v13906_v46  ;;  %v8393_v42 = vpop.f32.mrb[111].mxu0  ;;  %8416 = vmatprep.mubr.msk.bf16.mxu1 %vm9235_vm1, %v14546_v39 }
0x16a3   : > { %v7202_v57 = vmul.f32 0.5, %v7185_v3  ;;  %v7218_v54 = vmul.f32 %v7201_v13, %v13937_v2 }
0x16a4   : > { %9175 = vtanh.f32 %v7154_v35  ;;  %v7155_v17 = vmul.f32 0.7978846, %v7138_v53  ;;  %v7105_v10 = vmul.f32 %v7088_v24, %v13981_v44  ;;  %v7089_v51 = vmul.f32 %v13988_v0, %v13988_v0 }
0x16a5   : > { %v7219_v41 = vmul.f32 %v7202_v57, %v13943_v29 }
0x16a6   : > { %v9172_v48 = vpop.eup %9171  ;;  %9177 = vtanh.f32 %v7155_v17  ;;  %v7122_v49 = vmul.f32 0.044715, %v7105_v10  ;;  %v7106_v56 = vmul.f32 %v7089_v51, %v13988_v0 }
0x16a7   : > { %v7231_v27 = vpack.c.bf16 %v7219_v41, %v7218_v54  ;;  %v7186_v12 = vadd.f32 1.0, %v9172_v48  ;;  %v7068_v7 = vpop.f32.mrb[112].mxu0 }
0x16a8   : > { %v9174_v58 = vpop.eup %9173  ;;  %v7139_v52 = vadd.f32 %v7122_v49, %v13981_v44  ;;  %v7123_v60 = vmul.f32 0.044715, %v7106_v56  ;;  %v7069_v50 = vadd.f32 %v7068_v7, %v13906_v46  ;;  %v8396_v25 = vpop.f32.mrb[113].mxu0 }
0x16a9   : > { %v7203_v47 = vmul.f32 0.5, %v7186_v12  ;;  %v7187_v26 = vadd.f32 1.0, %v9174_v58  ;;  %v7071_v2 = vpop.f32.mrb[114].mxu0  ;;  %8417 = vmatmul.mubr.msk.bf16.gmra.mrb[108].mxu1 %vm2090_vm5, %v7231_v27 }
0x16aa   : > { %v7156_v29 = vmul.f32 0.7978846, %v7139_v52  ;;  %v7140_v55 = vadd.f32 %v7123_v60, %v13988_v0  ;;  %v7090_v14 = vmul.f32 %v7069_v50, %v7069_v50  ;;  %v8397_v4 = vpop.f32.mrb[115].mxu0  ;;  %8420 = vmatprep.mubr.msk.bf16.mxu1 %vm9235_vm1, %v14546_v39  ;;  %v14576_v60 = vlaneseq }
0x16ab   : > { %v7204_v15 = vmul.f32 0.5, %v7187_v26  ;;  %v7220_v46 = vmul.f32 %v7203_v47, %v13951_v37  ;;  %v14577_v26 = vld [vmem:[#allocation2_spill] sm:$0xff]  ;;  %v14580_v4 = vld [vmem:[#allocation44_spill] sm:$0xff] }
0x16ac   : > { %9179 = vtanh.f32 %v7156_v29  ;;  %v7157_v38 = vmul.f32 0.7978846, %v7140_v55  ;;  %v7107_v62 = vmul.f32 %v7090_v14, %v7069_v50  ;;  %v7411_v25 = vand.u32 127, %v14576_v60  ;;  %v9224_v14 = vld [vmem:[%s14109_s5 + $0x8] sm:$0x7f] }
0x16ad   : > { %v7221_v43 = vmul.f32 %v7204_v15, %v13957_v36  ;;  %v14033_v15 = vrot.slane %v9224_v14, %v14580_v4 }
0x16ae   : > { %v9176_v45 = vpop.eup %9175  ;;  %9181 = vtanh.f32 %v7157_v38  ;;  %v7124_v8 = vmul.f32 0.044715, %v7107_v62  ;;  %v7412_v47 = vadd.s32 128, %v7411_v25 }
0x16af   : > { %v7232_v13 = vpack.c.bf16 %v7221_v43, %v7220_v46  ;;  %v7188_v3 = vadd.f32 1.0, %v9176_v45 }
0x16b0   : > { %v9178_v18 = vpop.eup %9177  ;;  %v7141_v35 = vadd.f32 %v7124_v8, %v7069_v50 }
0x16b1   : > { %v7205_v53 = vmul.f32 0.5, %v7188_v3  ;;  %v7189_v24 = vadd.f32 1.0, %v9178_v18  ;;  %8421 = vmatmul.mubr.msk.bf16.gmra.mrb[112].mxu1 %vm2090_vm5, %v7232_v13 }
0x16b2   : > { %v7158_v42 = vmul.f32 0.7978846, %v7141_v35  ;;  %8424 = vmatprep.mubr.msk.bf16.mxu1 %vm9235_vm1, %v14546_v39 }
0x16b3   : > { %v7206_v57 = vmul.f32 0.5, %v7189_v24  ;;  %v7222_v37 = vmul.f32 %v7205_v53, %v13965_v32 }
0x16b4   : > { %9183 = vtanh.f32 %v7158_v42 }
0x16b5   : > { %v7223_v36 = vmul.f32 %v7206_v57, %v13971_v5 }
0x16b6   : > { %v9180_v17 = vpop.eup %9179 }
0x16b7   : > { %v7233_v10 = vpack.c.bf16 %v7223_v36, %v7222_v37  ;;  %v7190_v51 = vadd.f32 1.0, %v9180_v17 }
0x16b8   : > { %v9182_v54 = vpop.eup %9181 }
0x16b9   : > { %v7207_v41 = vmul.f32 0.5, %v7190_v51  ;;  %v7191_v48 = vadd.f32 1.0, %v9182_v54  ;;  %8425 = vmatmul.mubr.msk.bf16.gmra.mrb[116].mxu1 %vm2090_vm5, %v7233_v10 }
0x16ba   : > { %8428 = vmatprep.mubr.msk.bf16.mxu1 %vm9235_vm1, %v14546_v39 }
0x16bb   : > { %v7208_v49 = vmul.f32 0.5, %v7191_v48  ;;  %v7224_v56 = vmul.f32 %v7207_v41, %v13981_v44  ;;  %v7415_v44 = vmul.u32 17, %v14577_v26 }
0x16bd   : > { %v7225_v27 = vmul.f32 %v7208_v49, %v13988_v0  ;;  %vm14022_vm6 = vcmp.eq.s32.totalorder %v7411_v25, %v7415_v44  ;;  %vm7417_vm7 = vcmp.eq.s32.totalorder %v7412_v47, %v7415_v44 }
0x16be   : > { %v9184_v12 = vpop.eup %9183  ;;  %v7419_v2 = vsel %vm7417_vm7, 1.0, %v14546_v39  ;;  %vm7858_vm8 = vmpackc.low %vm14022_vm6, %vm14022_vm6 }
0x16bf   : > { %v7234_v32 = vpack.c.bf16 %v7225_v27, %v7224_v56  ;;  %v7192_v7 = vadd.f32 1.0, %v9184_v12  ;;  %v7421_v29 = vpack.c.bf16 %v7419_v2, %v7419_v2 }
0x16c1   : > { %v7209_v5 = vmul.f32 0.5, %v7192_v7  ;;  %8429 = vmatmul.mubr.msk.bf16.gmra.mrb[120].mxu1 %vm2090_vm5, %v7234_v32  ;;  %7857 = vmatprep.mubr.msk.bf16.mxu0 %vm2090_vm5, %v7421_v29 }
0x16c2   : > { %8432 = vmatprep.mubr.msk.bf16.mxu1 %vm9235_vm1, %v14546_v39 }
0x16c3   : > { %v7226_v58 = vmul.f32 %v7209_v5, %v7069_v50 }
0x16c5   : > { %v7235_v52 = vpack.c.bf16 %v7226_v58, %v7226_v58 }
0x16c9   : > { %8433 = vmatmul.mubr.msk.bf16.gmra.mrb[124].mxu1 %vm2090_vm5, %v7235_v52 }
0x1743   : > { %v7302_v55 = vpop.f32.mrb[92].mxu1 }
0x1744   : > { %v7372_v50 = vadd.f32 %v7302_v55, %v13599_v20  ;;  %v8402_v38 = vpop.f32.mrb[93].mxu1 }
0x1745   : > { %v7305_v62 = vpop.f32.mrb[94].mxu1 }
0x1746   : > { %v7373_v46 = vadd.f32 %v7305_v62, %v13603_v33  ;;  %v8403_v43 = vpop.f32.mrb[95].mxu1  ;;  %v7393_v45 = vadd.f32 %v14033_v15, %v7372_v50 }
0x1748   : > { %v7394_v8 = vadd.f32 %v14033_v15, %v7373_v46 }
0x174a   : > { %v7422_v13 = vpack.c.bf16 %v7394_v8, %v7393_v45 }
0x174b   : > { %v7310_v3 = vpop.f32.mrb[96].mxu1 }
0x174c   : > { %v7374_v20 = vadd.f32 %v7310_v3, %v13611_v28  ;;  %v8406_v18 = vpop.f32.mrb[97].mxu1  ;;  %7438 = vmatpush1.bf16.msra.mxu0 %v7422_v13 }
0x174d   : > { %v7313_v35 = vpop.f32.mrb[98].mxu1  ;;  %7439 = vmatprep.subr.bf16.mxu0 %v14521_v11 }
0x174e   : > { %v7375_v53 = vadd.f32 %v7313_v35, %v13615_v23  ;;  %v8407_v24 = vpop.f32.mrb[99].mxu1  ;;  %v7395_v42 = vadd.f32 %v14033_v15, %v7374_v20 }
0x1750   : > { %v7396_v33 = vadd.f32 %v14033_v15, %v7375_v53 }
0x1752   : > { %v7423_v57 = vpack.c.bf16 %v7396_v33, %v7395_v42 }
0x1753   : > { %v7318_v37 = vpop.f32.mrb[100].mxu1 }
0x1754   : > { %v7376_v36 = vadd.f32 %v7318_v37, %v13623_v40  ;;  %v8410_v17 = vpop.f32.mrb[101].mxu1  ;;  %7440 = vmatpush1.bf16.msra.mxu0 %v7423_v57 }
0x1755   : > { %v7321_v10 = vpop.f32.mrb[102].mxu1  ;;  %7441 = vmatprep.subr.bf16.mxu0 %v14521_v11 }
0x1756   : > { %v7377_v28 = vadd.f32 %v7321_v10, %v13627_v19  ;;  %v8411_v51 = vpop.f32.mrb[103].mxu1  ;;  %v7397_v54 = vadd.f32 %v14033_v15, %v7376_v36 }
0x1758   : > { %v7398_v23 = vadd.f32 %v14033_v15, %v7377_v28 }
0x175a   : > { %v7424_v41 = vpack.c.bf16 %v7398_v23, %v7397_v54  ;;  %v9238_v54 = vmov 1.0|1.0  }
0x175c   : > { %7442 = vmatpush1.bf16.msra.mxu0 %v7424_v41 }
0x175d   : > { %7443 = vmatprep.subr.bf16.mxu0 %v14521_v11 }
0x1774   : > { %v7326_v48 = vpop.f32.mrb[104].mxu1 }
0x1775   : > { %v7378_v49 = vadd.f32 %v7326_v48, %v13637_v21  ;;  %v8414_v40 = vpop.f32.mrb[105].mxu1 }
0x1776   : > { %v7329_v56 = vpop.f32.mrb[106].mxu1 }
0x1777   : > { %v7379_v27 = vadd.f32 %v7329_v56, %v13641_v31  ;;  %v8415_v12 = vpop.f32.mrb[107].mxu1  ;;  %v7399_v32 = vadd.f32 %v14033_v15, %v7378_v49 }
0x1779   : > { %v7400_v19 = vadd.f32 %v14033_v15, %v7379_v27  ;;  %v8504_v27 = vld [vmem:[%s14115_s11] sm:$0xff]  }
0x177b   : > { %v7425_v7 = vpack.c.bf16 %v7400_v19, %v7399_v32  ;;  %v9225_v19 = vld [vmem:[%s14108_s4] sm:$0xff] }
0x177c   : > { %v7334_v5 = vpop.f32.mrb[108].mxu1 }
0x177d   : > { %v7380_v58 = vadd.f32 %v7334_v5, %v13651_v61  ;;  %v8418_v52 = vpop.f32.mrb[109].mxu1  ;;  %7444 = vmatpush1.bf16.msra.mxu0 %v7425_v7  ;;  %v7493_v7 = vrot.slane %v9225_v19, %v14575_v59 }
0x177e   : > { %v7337_v60 = vpop.f32.mrb[110].mxu1  ;;  %7445 = vmatprep.subr.bf16.mxu0 %v14521_v11 }
0x177f   : > { %v7381_v21 = vadd.f32 %v7337_v60, %v13655_v34  ;;  %v8419_v25 = vpop.f32.mrb[111].mxu1  ;;  %v7401_v47 = vadd.f32 %v14033_v15, %v7380_v58  ;;  %v7498_v58 = vrot.slane %v9225_v19, %v14580_v4 }
0x1781   : > { %v7402_v31 = vadd.f32 %v14033_v15, %v7381_v21 }
0x1783   : > { %v7426_v44 = vpack.c.bf16 %v7402_v31, %v7401_v47  ;;  %v7505_v47 = vsub.s32 7, %v14577_v26 }
0x1784   : > { %v7342_v2 = vpop.f32.mrb[112].mxu1 }
0x1785   : > { %v7382_v29 = vadd.f32 %v7342_v2, %v13665_v63  ;;  %v8422_v55 = vpop.f32.mrb[113].mxu1  ;;  %7446 = vmatpush1.bf16.msra.mxu0 %v7426_v44  ;;  %v7506_v31 = vrot.slane %v9225_v19, %v7505_v47 }
0x1786   : > { %v7345_v50 = vpop.f32.mrb[114].mxu1  ;;  %7447 = vmatprep.subr.bf16.mxu0 %v14521_v11 }
0x1787   : > { %v7383_v61 = vadd.f32 %v7345_v50, %v13669_v6  ;;  %v8423_v14 = vpop.f32.mrb[115].mxu1  ;;  %v7403_v38 = vadd.f32 %v14033_v15, %v7382_v29 }
0x1789   : > { %v7404_v34 = vadd.f32 %v14033_v15, %v7383_v61 }
0x178b   : > { %v7427_v62 = vpack.c.bf16 %v7404_v34, %v7403_v38 }
0x178c   : > { %v7350_v46 = vpop.f32.mrb[116].mxu1 }
0x178d   : > { %v7384_v43 = vadd.f32 %v7350_v46, %v13679_v16  ;;  %v8426_v45 = vpop.f32.mrb[117].mxu1  ;;  %7448 = vmatpush1.bf16.msra.mxu0 %v7427_v62 }
0x178e   : > { %v7353_v8 = vpop.f32.mrb[118].mxu1  ;;  %7449 = vmatprep.subr.bf16.mxu0 %v14521_v11 }
0x178f   : > { %v7385_v63 = vadd.f32 %v7353_v8, %v13683_v22  ;;  %v8427_v13 = vpop.f32.mrb[119].mxu1  ;;  %v7405_v3 = vadd.f32 %v14033_v15, %v7384_v43 }
0x1791   : > { %v7406_v6 = vadd.f32 %v14033_v15, %v7385_v63 }
0x1793   : > { %v7428_v20 = vpack.c.bf16 %v7406_v6, %v7405_v3 }
0x1794   : > { %v7358_v18 = vpop.f32.mrb[120].mxu1 }
0x1795   : > { %v7386_v35 = vadd.f32 %v7358_v18, %v13693_v1  ;;  %v8430_v53 = vpop.f32.mrb[121].mxu1  ;;  %7450 = vmatpush1.bf16.msra.mxu0 %v7428_v20 }
0x1796   : > { %v7361_v24 = vpop.f32.mrb[122].mxu1  ;;  %7451 = vmatprep.subr.bf16.mxu0 %v14521_v11 }
0x1797   : > { %v7387_v16 = vadd.f32 %v7361_v24, %v13697_v30  ;;  %v8431_v42 = vpop.f32.mrb[123].mxu1  ;;  %v7407_v33 = vadd.f32 %v14033_v15, %v7386_v35 }
0x1799   : > { %v7408_v22 = vadd.f32 %v14033_v15, %v7387_v16 }
0x179b   : > { %v7429_v57 = vpack.c.bf16 %v7408_v22, %v7407_v33 }
0x179c   : > { %v7366_v37 = vpop.f32.mrb[124].mxu1 }
0x179d   : > { %v7388_v36 = vadd.f32 %v7366_v37, %v13706_v9  ;;  %v8434_v17 = vpop.f32.mrb[125].mxu1  ;;  %7452 = vmatpush1.bf16.msra.mxu0 %v7429_v57 }
0x179e   : > { %v7369_v10 = vpop.f32.mrb[126].mxu1  ;;  %7453 = vmatprep.subr.bf16.mxu0 %v14521_v11 }
0x179f   : > { %v7409_v1 = vadd.f32 %v14033_v15, %v7388_v36  ;;  %v8435_v28 = vpop.f32.mrb[127].mxu1 }
0x17a1   : > { %v7430_v51 = vpack.c.bf16 %v7409_v1, %v7409_v1 }
0x17a3   : > { %v7435_v30 = vsel %vm2434_vm4, %v7430_v51, 0 }
0x17a4   : > { %7454 = vmatpush1.bf16.msra.mxu0 %v7435_v30 }
0x17a5   : > { %8436 = vmatprep.subr.bf16.mxu0 %v14546_v39 }
0x17a7   : > { %7859 = vmatmul.mubr.msk.bf16.vlgmr.msra.gmra.mrb[116].mxu0 %vm7858_vm8, %v9238_v54 }
0x17a8   : > { %8438 = vmatprep.mubr.msk.bf16.mxu0 %vm9235_vm1, %v14546_v39  ;;  %8437 = vmatpush3.bf16.msra.mxu0 %v8504_v27 }
0x187a   : > { %v7471_v9 = vpop.f32.mrb[116].mxu0 }
0x187b   : > { %v7477_v11 = vsel %vm866_vm2, %v7471_v9, 0.0  ;;  %v7473_v15 = vpop.f32.mrb[117].mxu0 }
0x187c   : > { %7478 = vadd.xlane.f32.xlu1 %v7477_v11  ;;  %v7474_v23 = vpop.f32.mrb[118].mxu0 }
0x187d   : > { %v7475_v41 = vpop.f32.mrb[119].mxu0 }
0x1909   : > { %v7479_v48 = vpop.xlane.xlu1 %7478 }
0x190a   : > { %v7480_v49 = vmul.f32 0.0625, %v7479_v48 }
0x190c   : > { %v7481_v40 = vsub.f32 %v7471_v9, %v7480_v49 }
0x190e   : > { %v7482_v0 = vmul.f32 %v7481_v40, %v7481_v40 }
0x1910   : > { %v7483_v56 = vsel %vm866_vm2, %v7482_v0, 0.0 }
0x1911   : > { %7484 = vadd.xlane.f32.xlu0 %v7483_v56 }
0x199e   : > { %v7485_v39 = vpop.xlane.xlu0 %7484 }
0x199f   : > { %v7486_v12 = vmul.f32 0.0625, %v7485_v39 }
0x19a1   : > { %v7487_v32 = vadd.f32 1e-05, %v7486_v12 }
0x19a3   : > { %9185 = vrsqrt.f32 %v7487_v32 }
0x19ad   : > { %v9186_v5 = vpop.eup %9185 }
0x19ae   : > { %v7489_v52 = vmul.f32 %v9186_v5, %v7481_v40 }
0x19b0   : > { %v7494_v60 = vmul.f32 %v7493_v7, %v7489_v52 }
0x19b2   : > { %v7499_v21 = vadd.f32 %v7498_v58, %v7494_v60 }
0x19b4   : > { %v7500_v25 = vpack.c.bf16 %v7499_v21, %v7499_v21 }
0x19b6   : > { %8439 = vmatmul.mubr.msk.bf16.vlgmr.msra.gmra.mrb[120].mxu0 %vm866_vm2, %v7500_v25 }
0x1a89   : > { %v7550_v59 = vpop.f32.mrb[120].mxu0 }
0x1a8a   : > { %v7551_v44 = vadd.f32 %v7550_v59, %v7506_v31  ;;  %v8440_v2 = vpop.f32.mrb[121].mxu0 }
0x1a8b   : > { %v7553_v4 = vpop.f32.mrb[122].mxu0 }
0x1a8c   : > { %7556 = vst.msk [vmem:[%s413_s17] sm:$0xff] %vm2090_vm5, %v7551_v44  ;;  %v8441_v29 = vpop.f32.mrb[123].mxu0 }
0x1a8d PF: > { %s22_s21 = sadd.s32 1, %s9232_s21  }
0x1a8e   : > { %p19_p5 = scmp.ge.s32.totalorder %s22_s21, 4  }
0x1a90   :  { %21 = sbr.rel (!%p19_p5) target bundleno = 1 (0x1), region = 103 }

</bundles_post_ra>
